<compile_context>
chip_gen: v6e
topology: v6e:2x2x1
jax: 0.10.0
libtpu: 0.0.40
codegen_flags: <defaults>
</compile_context>

<pallas_src>
import jax
import jax.numpy as jnp
from jax import lax
from jax.experimental import pallas as pl
from jax.experimental.pallas import tpu as pltpu


# --------------------------------------------------------------------------
# small helpers
# --------------------------------------------------------------------------
def _round_up(x, m):
    return ((x + m - 1) // m) * m


def _pad_segments(w, seg, n_seg, seg_pad):
    """[in, n_seg*seg] -> [in, n_seg*seg_pad]; each segment right-padded w/ 0."""
    if seg_pad == seg:
        return w
    parts = []
    for k in range(n_seg):
        s = w[:, k * seg:(k + 1) * seg]
        parts.append(jnp.pad(s, ((0, 0), (0, seg_pad - seg))))
    return jnp.concatenate(parts, axis=1)


def _bytes(shape, itemsize):
    n = 1
    for s in shape:
        n *= s
    return n * itemsize


def _vmem_capacity():
    try:
        return int(pltpu.get_tpu_info().vmem_capacity_bytes)
    except Exception:
        return 64 * 1024 * 1024            # conservative (v7x-sized) fallback


def _clip_vmem(nbytes, cap):
    return int(min(int(0.6 * cap), max(8 * 1024 * 1024, int(nbytes))))


def _pick_batch_block(B):
    # Split the batch only when it yields >=2 blocks of >=16 rows; on v7x the
    # "parallel" grid axis then uses both TensorCores, elsewhere it only buys
    # VMEM relief.
    for cand in (64, 48, 32, 16):
        if B % cand == 0 and B // cand >= 2:
            return cand
    return B


def _pick_row_block(n_rows, H, V, budget, max_rb=512):
    # Largest row block (multiple of 16, divides n_rows, <= max_rb) whose
    # double-buffered tiles fit the VMEM budget; else one full block.
    cands = [rb for rb in range(16, min(n_rows, max_rb) + 1, 16)
             if n_rows % rb == 0]
    for rb in sorted(cands, reverse=True):
        need = (2 * (rb * H * 2 + rb * V * 4)
                + 2 * (H * V * 2 + V * 4) + (2 << 20))
        if need <= budget:
            return rb
    return cands[0] if cands else n_rows


def _batch_spec(shape, bdim, bblk):
    blk = tuple(bblk if d == bdim else s for d, s in enumerate(shape))
    nd = len(shape)

    def idx(b, _bdim=bdim, _nd=nd):
        return tuple(b if d == _bdim else 0 for d in range(_nd))

    return pl.BlockSpec(blk, idx)


def _full_spec(shape):
    nd = len(shape)

    def idx(b, _nd=nd):
        return (0,) * _nd

    return pl.BlockSpec(tuple(shape), idx)


# --------------------------------------------------------------------------
# kernel 1: encoder LSTM + latent + attention/LSTMCell decoder recurrence
# --------------------------------------------------------------------------
def _make_recurrent_kernel(T, B, H, HS, Z, ZS, E, training, unroll):
    f32 = jnp.float32
    bf16 = jnp.bfloat16

    def kernel(*refs):
        (enc_emb_ref, dec_emb_ref, att_bias_ref, sorted_len_ref, orig_len_ref,
         eps_z_ref, *rest) = refs
        if training:
            step_eps_ref, *rest = rest
        (w_ih_enc_ref, w_hh_enc_ref, b_enc_ref,
         w_lat_h_ref, w_lat_c_ref, b_lat_ref,
         w_attn_x_ref, w_attn_h_ref, b_attn_ref,
         w_pri_ref, b_pri_ref,
         w_inf_h_ref, w_inf_c_ref, b_inf_ref,
         w_aux_ref, b_aux_ref,
         w_comb_x_ref, w_comb_a_ref, w_comb_zs_ref, w_comb_z_ref, b_comb_ref,
         w_ih_dec_ref, w_hh_dec_ref, b_dec_ref,
         hs_ref, mu_ref, logvar_ref, kld_ref, aux_ref,
         enc_out_scr, xg_enc_scr, xat_scr, xcb_scr) = rest

        sorted_len = sorted_len_ref[...]      # [B,1] f32 (descending-sorted)
        orig_len = orig_len_ref[...]          # [B,1] f32 (ORIGINAL order)
        att_bias = att_bias_ref[...]          # [B,T] f32 additive mask

        # ---- hoisted x-side projections: single wide bf16 MXU matmuls ------
        enc_flat = enc_emb_ref[...].reshape(T * B, E).astype(bf16)
        xg_enc_scr[...] = (jnp.dot(enc_flat, w_ih_enc_ref[...],
                                   preferred_element_type=f32)
                           .reshape(T, B, 4 * HS) + b_enc_ref[...])
        dec_flat = dec_emb_ref[...].reshape((T + 1) * B, E).astype(bf16)
        xat_scr[...] = (jnp.dot(dec_flat, w_attn_x_ref[...],
                                preferred_element_type=f32)
                        .reshape(T + 1, B, T)
                        + b_attn_ref[...] + att_bias[None])
        xcb_scr[...] = (jnp.dot(dec_flat, w_comb_x_ref[...],
                                preferred_element_type=f32)
                        .reshape(T + 1, B, H) + b_comb_ref[...])

        w_hh_enc = w_hh_enc_ref[...]

        def gates_to_hc(gates, c):
            # 128-lane-aligned segment starts (0, HS, 2HS, 3HS); i,f,g,o order
            i_g = jax.nn.sigmoid(gates[:, 0 * HS:0 * HS + H])
            f_g = jax.nn.sigmoid(gates[:, 1 * HS:1 * HS + H])
            g_g = jnp.tanh(gates[:, 2 * HS:2 * HS + H])
            o_g = jax.nn.sigmoid(gates[:, 3 * HS:3 * HS + H])
            c_new = f_g * c + i_g * g_g
            h_new = o_g * jnp.tanh(c_new)
            return h_new, c_new

        # ------------- encoder (pack_padded_sequence semantics) -------------
        def enc_body(t, carry):
            h, c = carry
            valid = (sorted_len > t.astype(f32)).astype(f32)
            gates = xg_enc_scr[t] + jnp.dot(h.astype(bf16), w_hh_enc,
                                            preferred_element_type=f32)
            h_new, c_new = gates_to_hc(gates, c)
            enc_out_scr[t] = h_new * valid          # pad_packed zero-fill
            h = valid * h_new + (1.0 - valid) * h   # keep last-valid state
            c = valid * c_new + (1.0 - valid) * c
            return h, c

        h0 = jnp.zeros((B, H), f32)
        h_enc, c_enc = lax.fori_loop(0, T, enc_body, (h0, h0), unroll=unroll)

        # ----------------------------- latent --------------------------------
        lat = (jnp.dot(h_enc.astype(bf16), w_lat_h_ref[...],
                       preferred_element_type=f32)
               + jnp.dot(c_enc.astype(bf16), w_lat_c_ref[...],
                         preferred_element_type=f32)
               + b_lat_ref[...])                              # [B, 2*ZS]
        mu = lat[:, 0:Z]
        logvar = lat[:, ZS:ZS + Z]
        z = mu + jnp.exp(0.5 * logvar) * eps_z_ref[...]
        mu_ref[...] = mu
        logvar_ref[...] = logvar

        # loop-constant part of the `combine` projection
        z_comb = jnp.dot(z.astype(bf16), w_comb_z_ref[...],
                         preferred_element_type=f32)          # [B, H]

        w_attn_h = w_attn_h_ref[...]
        w_pri = w_pri_ref[...]
        b_pri = b_pri_ref[...]
        w_inf_h = w_inf_h_ref[...]
        w_inf_c = w_inf_c_ref[...]
        b_inf = b_inf_ref[...]
        w_aux = w_aux_ref[...]
        b_aux = b_aux_ref[...]
        w_comb_a = w_comb_a_ref[...]
        w_comb_zs = w_comb_zs_ref[...]
        w_ih_dec = w_ih_dec_ref[...]
        w_hh_dec = w_hh_dec_ref[...]
        b_dec = b_dec_ref[...]

        # ----------------------------- decoder --------------------------------
        def dec_body(t, carry):
            h, c, kld_acc, aux_acc = carry
            h_b = h.astype(bf16)
            # NOTE: PyTorch masks the KLD with the *unsorted* `length` tensor
            # while the rows are sorted — reproduced faithfully here.
            step_mask = (orig_len + 1.0 > t.astype(f32)).astype(f32)   # [B,1]

            # attention scores (x-part, bias and pad-mask precomputed)
            scale = xat_scr[t] + jnp.dot(h_b, w_attn_h,
                                         preferred_element_type=f32)  # [B,T]
            s_max = jnp.max(scale, axis=-1, keepdims=True)
            p = jnp.exp(scale - s_max)
            attn_w = p / jnp.sum(p, axis=-1, keepdims=True)            # [B,T]

            # attention context: VPU weighted sum over [T,B,H] encoder outputs
            ctx = attn_w[:, 0:1] * enc_out_scr[0]
            for tt in range(1, T):
                ctx = ctx + attn_w[:, tt:tt + 1] * enc_out_scr[tt]     # [B,H]

            pri = jnp.dot(h_b, w_pri, preferred_element_type=f32) + b_pri
            pri_mu = pri[:, 0:Z]
            pri_logvar = pri[:, ZS:ZS + Z]

            inf = (jnp.dot(h_b, w_inf_h, preferred_element_type=f32)
                   + jnp.dot(ctx.astype(bf16), w_inf_c,
                             preferred_element_type=f32) + b_inf)
            inf_mu = inf[:, 0:Z]
            inf_logvar = inf[:, ZS:ZS + Z]

            # KL(N(inf) || N(pri)), summed over z-dim, masked (stable form)
            kld_elem = 0.5 * (pri_logvar - inf_logvar
                              + jnp.exp(inf_logvar - pri_logvar)
                              + (inf_mu - pri_mu) ** 2 * jnp.exp(-pri_logvar)
                              - 1.0)                                   # [B,Z]
            kld_acc = kld_acc + jnp.sum(kld_elem, axis=1,
                                        keepdims=True) * step_mask     # [B,1]

            if training:
                z_step = inf_mu + jnp.exp(0.5 * inf_logvar) * step_eps_ref[t]
            else:
                z_step = pri_mu

            aux_mu = jnp.dot(z_step.astype(bf16), w_aux,
                             preferred_element_type=f32) + b_aux       # [B,H]
            # aux loss is (faithfully) NOT masked for padded decoder steps
            aux_acc = aux_acc + jnp.sum((ctx - aux_mu) ** 2, axis=1,
                                        keepdims=True)                 # [B,1]

            inp = (xcb_scr[t] + z_comb
                   + jnp.dot(aux_mu.astype(bf16), w_comb_a,
                             preferred_element_type=f32)
                   + jnp.dot(z_step.astype(bf16), w_comb_zs,
                             preferred_element_type=f32))              # [B,H]

            gates = (jnp.dot(inp.astype(bf16), w_ih_dec,
                             preferred_element_type=f32)
                     + jnp.dot(h_b, w_hh_dec, preferred_element_type=f32)
                     + b_dec)
            h, c = gates_to_hc(gates, c)

            hs_ref[t] = h.astype(bf16)   # vocab projection hoisted (kernel 2)
            return h, c, kld_acc, aux_acc

        zero_b1 = jnp.zeros((B, 1), f32)
        _, _, kld_acc, aux_acc = lax.fori_loop(
            0, T + 1, dec_body, (h0, h0, zero_b1, zero_b1), unroll=unroll)
        kld_ref[...] = kld_acc
        aux_ref[...] = aux_acc

    return kernel


# --------------------------------------------------------------------------
# kernel 2: hoisted output projection + log_softmax (row-blocked, final layout)
# --------------------------------------------------------------------------
def _proj_kernel(h_ref, w_ref, b_ref, logp_ref):
    # [rows,H] (bf16) @ [H,V] (bf16) with f32 accumulation; rows are already
    # in the final un-sorted, batch-major order so the store is the final logp.
    logits = jnp.dot(h_ref[...], w_ref[...],
                     preferred_element_type=jnp.float32) + b_ref[...]
    m = jnp.max(logits, axis=-1, keepdims=True)
    lse = m + jnp.log(jnp.sum(jnp.exp(logits - m), axis=-1, keepdims=True))
    logp_ref[...] = logits - lse


# --------------------------------------------------------------------------
# wrapper
# --------------------------------------------------------------------------
def selfvae_forward(params, enc_tokens, dec_tokens, lengths, rng_key,
                    pad_idx=0, dropout_rate=0.5, training=False):
    B, T = enc_tokens.shape
    E = params["enc_embedding"].shape[1]
    H = params["w_hh_enc"].shape[0]
    Z = params["w_pri"].shape[1] // 2
    V = params["w_out"].shape[1]
    assert dec_tokens.shape == (B, T + 1)
    f32 = jnp.float32
    bf16 = jnp.bfloat16
    HS = _round_up(H, 128)          # per-gate lane stride (aligned slices)
    ZS = _round_up(Z, 128)          # per-(mu|logvar) lane stride

    # ---- glue: descending length sort (torch.sort(descending=True)) --------
    sorted_idx = jnp.argsort(-lengths)
    sorted_len = lengths[sorted_idx]
    enc_s = enc_tokens[sorted_idx]
    dec_s = dec_tokens[sorted_idx]
    # additive attention mask (finite -1e30, no NaN edge case)
    att_bias = jnp.where(enc_s == pad_idx, -1e30, 0.0).astype(f32)     # [B,T]

    enc_emb = params["enc_embedding"][enc_s]                           # [B,T,E]
    dec_emb = params["dec_embedding"][dec_s]                           # [B,T+1,E]

    k_eps, k_step, k_drop = jax.random.split(rng_key, 3)
    if training and dropout_rate > 0.0:
        keep = jax.random.bernoulli(k_drop, 1.0 - dropout_rate, dec_emb.shape)
        dec_emb = jnp.where(keep, dec_emb / (1.0 - dropout_rate), 0.0)

    eps_z = jax.random.normal(k_eps, (B, Z), f32)                      # reparam z

    enc_emb_tm = jnp.transpose(enc_emb, (1, 0, 2)).astype(f32)         # [T,B,E]
    dec_emb_tm = jnp.transpose(dec_emb, (1, 0, 2)).astype(f32)         # [T+1,B,E]
    sorted_len_f = sorted_len.astype(f32)[:, None]                     # [B,1]
    orig_len_f = lengths.astype(f32)[:, None]                          # [B,1]

    # ---- weight prep: split x/h parts, pad output segments to 128-aligned
    # starts, cast matmul operands to bf16 (biases stay f32) ------------------
    w_ih_enc = _pad_segments(params["w_ih_enc"], H, 4, HS).astype(bf16)
    w_hh_enc = _pad_segments(params["w_hh_enc"], H, 4, HS).astype(bf16)
    b_enc = _pad_segments(params["b_enc"], H, 4, HS).astype(f32)
    w_lat_h = _pad_segments(params["w_latent"][:H], Z, 2, ZS).astype(bf16)
    w_lat_c = _pad_segments(params["w_latent"][H:], Z, 2, ZS).astype(bf16)
    b_lat = _pad_segments(params["b_latent"], Z, 2, ZS).astype(f32)
    w_attn_x = params["w_attn"][:E].astype(bf16)
    w_attn_h = params["w_attn"][E:].astype(bf16)
    b_attn = params["b_attn"].astype(f32)
    w_pri = _pad_segments(params["w_pri"], Z, 2, ZS).astype(bf16)
    b_pri = _pad_segments(params["b_pri"], Z, 2, ZS).astype(f32)
    w_inf_h = _pad_segments(params["w_inf"][:H], Z, 2, ZS).astype(bf16)
    w_inf_c = _pad_segments(params["w_inf"][H:], Z, 2, ZS).astype(bf16)
    b_inf = _pad_segments(params["b_inf"], Z, 2, ZS).astype(f32)
    w_aux = params["w_aux"].astype(bf16)
    b_aux = params["b_aux"].astype(f32)
    w_comb_x = params["w_combine"][:E].astype(bf16)
    w_comb_a = params["w_combine"][E:E + H].astype(bf16)
    w_comb_zs = params["w_combine"][E + H:E + H + Z].astype(bf16)
    w_comb_z = params["w_combine"][E + H + Z:].astype(bf16)
    b_comb = params["b_combine"].astype(f32)
    w_ih_dec = _pad_segments(params["w_ih_dec"], H, 4, HS).astype(bf16)
    w_hh_dec = _pad_segments(params["w_hh_dec"], H, 4, HS).astype(bf16)
    b_dec = _pad_segments(params["b_dec"], H, 4, HS).astype(f32)

    Bblk = _pick_batch_block(B)
    data_inputs = [enc_emb_tm, dec_emb_tm, att_bias, sorted_len_f, orig_len_f,
                   eps_z]
    data_specs = [
        _batch_spec((T, B, E), 1, Bblk),
        _batch_spec((T + 1, B, E), 1, Bblk),
        _batch_spec((B, T), 0, Bblk),
        _batch_spec((B, 1), 0, Bblk),
        _batch_spec((B, 1), 0, Bblk),
        _batch_spec((B, Z), 0, Bblk),
    ]
    if training:
        data_inputs.append(jax.random.normal(k_step, (T + 1, B, Z), f32))
        data_specs.append(_batch_spec((T + 1, B, Z), 1, Bblk))

    weights = [w_ih_enc, w_hh_enc, b_enc,
               w_lat_h, w_lat_c, b_lat,
               w_attn_x, w_attn_h, b_attn,
               w_pri, b_pri,
               w_inf_h, w_inf_c, b_inf,
               w_aux, b_aux,
               w_comb_x, w_comb_a, w_comb_zs, w_comb_z, b_comb,
               w_ih_dec, w_hh_dec, b_dec]
    inputs = data_inputs + weights
    in_specs = data_specs + [_full_spec(w.shape) for w in weights]

    out_shape = (
        jax.ShapeDtypeStruct((T + 1, B, H), bf16),   # decoder hidden states
        jax.ShapeDtypeStruct((B, Z), f32),           # mu     (sorted order)
        jax.ShapeDtypeStruct((B, Z), f32),           # logvar (sorted order)
        jax.ShapeDtypeStruct((B, 1), f32),           # per-row KLD partials
        jax.ShapeDtypeStruct((B, 1), f32),           # per-row aux partials
    )
    out_specs = (
        _batch_spec((T + 1, B, H), 1, Bblk),
        _batch_spec((B, Z), 0, Bblk),
        _batch_spec((B, Z), 0, Bblk),
        _batch_spec((B, 1), 0, Bblk),
        _batch_spec((B, 1), 0, Bblk),
    )
    scratch_shapes = [
        pltpu.VMEM((T, Bblk, H), f32),           # encoder outputs (pad -> 0)
        pltpu.VMEM((T, Bblk, 4 * HS), f32),      # hoisted enc-LSTM x-gates
        pltpu.VMEM((T + 1, Bblk, T), f32),       # hoisted attn x-part (+mask)
        pltpu.VMEM((T + 1, Bblk, H), f32),       # hoisted combine x-part
    ]

    cap = _vmem_capacity()
    est1 = (_bytes((T, Bblk, E), 4) + _bytes((T + 1, Bblk, E), 4)
            + _bytes((Bblk, T), 4) + 2 * _bytes((Bblk, 1), 4)
            + _bytes((Bblk, Z), 4)
            + (_bytes((T + 1, Bblk, Z), 4) if training else 0)
            + sum(int(w.size) * w.dtype.itemsize for w in weights)
            + _bytes((T + 1, Bblk, H), 2) + 2 * _bytes((Bblk, Z), 4)
            + 2 * _bytes((Bblk, 1), 4)
            + _bytes((T, Bblk, H), 4) + _bytes((T, Bblk, 4 * HS), 4)
            + _bytes((T + 1, Bblk, T), 4) + _bytes((T + 1, Bblk, H), 4))
    vmem_limit1 = _clip_vmem(2 * est1 + (8 << 20), cap)

    unroll = True if T <= 16 else 2
    flops1 = int(
        2 * B * T * (E + H) * 4 * HS
        + 2 * B * (T + 1) * E * (T + H)
        + 2 * B * (2 * H * 2 * ZS + Z * H)
        + 2 * B * (T + 1) * (H * T + H * 2 * ZS + 2 * H * 2 * ZS
                             + Z * H + (H + Z) * H + 2 * H * 4 * HS + T * H))
    transc1 = int(B * (T * 6 * H + (T + 1) * (T + 6 * H + 4 * Z)))
    cost1 = pl.CostEstimate(flops=flops1, transcendentals=transc1,
                            bytes_accessed=int(2 * est1))

    kernel = _make_recurrent_kernel(T, Bblk, H, HS, Z, ZS, E, training, unroll)

    hs, mu, logvar, kld_rows, aux_rows = pl.pallas_call(
        kernel,
        out_shape=out_shape,
        grid=(B // Bblk,),
        in_specs=in_specs,
        out_specs=out_specs,
        scratch_shapes=scratch_shapes,
        compiler_params=pltpu.CompilerParams(
            dimension_semantics=("parallel",),
            vmem_limit_bytes=vmem_limit1),
        cost_estimate=cost1,
    )(*inputs)

    # ---- un-sort / re-layout the SMALL hidden-state tensor so kernel 2 can
    # write logp directly in the final [B, T+1, V] layout ---------------------
    reversed_idx = jnp.argsort(sorted_idx)
    hs_final = jnp.transpose(hs, (1, 0, 2))[reversed_idx]              # [B,T+1,H]
    N = B * (T + 1)
    hs_flat = hs_final.reshape(N, H)                                   # bf16

    w_out = params["w_out"].astype(bf16)                               # [H,V]
    b_out = params["b_out"].astype(f32)                                # [1,V]

    rb = _pick_row_block(N, H, V, int(0.45 * cap))
    est2 = (2 * (_bytes((rb, H), 2) + _bytes((rb, V), 4))
            + 2 * (_bytes((H, V), 2) + _bytes((1, V), 4)))
    vmem_limit2 = _clip_vmem(est2 + (4 << 20), cap)
    cost2 = pl.CostEstimate(
        flops=int(2 * N * H * V + 4 * N * V),
        transcendentals=int(N * V),
        bytes_accessed=int(N * H * 2 + H * V * 2 + V * 4 + N * V * 4))

    logp_flat = pl.pallas_call(
        _proj_kernel,
        out_shape=jax.ShapeDtypeStruct((N, V), f32),
        grid=(N // rb,),
        in_specs=[pl.BlockSpec((rb, H), lambda i: (i, 0)),
                  pl.BlockSpec((H, V), lambda i: (0, 0)),
                  pl.BlockSpec((1, V), lambda i: (0, 0))],
        out_specs=pl.BlockSpec((rb, V), lambda i: (i, 0)),
        compiler_params=pltpu.CompilerParams(
            dimension_semantics=("parallel",),
            vmem_limit_bytes=vmem_limit2),
        cost_estimate=cost2,
    )(hs_flat, w_out, b_out)

    logp = logp_flat.reshape(B, T + 1, V)       # metadata-only reshape
    kld = jnp.sum(kld_rows)
    aux_loss = jnp.sum(aux_rows)
    # mu/logvar are returned in SORTED batch order, like the PyTorch reference.
    return logp, mu, logvar, kld, aux_loss


# --------------------------------------------------------------------------
# parameter init (PyTorch-like layout: Linear/LSTM weights stored as [in,out])
# --------------------------------------------------------------------------
def init_params(key, vocab_size, embed_size, time_step, hidden_size, z_dim,
                pad_idx):
    E, T, H, Z, V = embed_size, time_step, hidden_size, z_dim, vocab_size
    keys = jax.random.split(key, 24)

    def mat(k, shape, scale=0.1):
        return jax.random.normal(k, shape, jnp.float32) * scale

    enc_embedding = mat(keys[0], (V, E)).at[pad_idx].set(0.0)
    dec_embedding = mat(keys[1], (V, E)).at[pad_idx].set(0.0)
    return dict(
        enc_embedding=enc_embedding,
        dec_embedding=dec_embedding,
        # encoder nn.LSTM: [in, 4H] (PyTorch weight.T), gate order i,f,g,o
        w_ih_enc=mat(keys[2], (E, 4 * H)),
        w_hh_enc=mat(keys[3], (H, 4 * H)),
        b_enc=mat(keys[4], (1, 4 * H)) + mat(keys[5], (1, 4 * H)),  # b_ih+b_hh
        w_latent=mat(keys[6], (2 * H, 2 * Z)),
        b_latent=mat(keys[7], (1, 2 * Z)),
        # attn input order is [x_step, h]: first E rows are x, last H rows are h
        w_attn=mat(keys[8], (E + H, T)),
        b_attn=mat(keys[9], (1, T)),
        w_combine=mat(keys[10], (E + H + 2 * Z, H)),
        b_combine=mat(keys[11], (1, H)),
        # decoder nn.LSTMCell
        w_ih_dec=mat(keys[12], (H, 4 * H)),
        w_hh_dec=mat(keys[13], (H, 4 * H)),
        b_dec=mat(keys[14], (1, 4 * H)) + mat(keys[15], (1, 4 * H)),
        w_pri=mat(keys[16], (H, 2 * Z)),
        b_pri=mat(keys[17], (1, 2 * Z)),
        w_inf=mat(keys[18], (2 * H, 2 * Z)),
        b_inf=mat(keys[19], (1, 2 * Z)),
        w_aux=mat(keys[20], (Z, H)),
        b_aux=mat(keys[21], (1, H)),
        w_out=mat(keys[22], (H, V)),
        b_out=mat(keys[23], (1, V)),
    )


if __name__ == "__main__":
    vocab_size, embed_size, time_step, hidden_size, z_dim = 64, 16, 8, 32, 8
    dropout_rate = 0.5
    pad_idx, bos_idx, eos_idx = 0, 1, 2
    B = 8   # sublane-aligned batch

    key = jax.random.PRNGKey(0)
    k_param, k_tok1, k_tok2, k_eps = jax.random.split(key, 4)
    params = init_params(k_param, vocab_size, embed_size, time_step,
                         hidden_size, z_dim, pad_idx)

    # lengths: max(length) must equal time_step (see TODO at top)
    lengths = jnp.array([8, 5, 3, 8, 2, 7, 6, 4], dtype=jnp.int32)
    assert int(jnp.max(lengths)) == time_step

    pos_enc = jnp.arange(time_step)[None, :]
    enc_tokens = jax.random.randint(k_tok1, (B, time_step), 3, vocab_size)
    enc_tokens = jnp.where(pos_enc < lengths[:, None], enc_tokens, pad_idx)

    pos_dec = jnp.arange(time_step + 1)[None, :]
    dec_tokens = jax.random.randint(k_tok2, (B, time_step + 1), 3, vocab_size)
    dec_tokens = dec_tokens.at[:, 0].set(bos_idx)
    dec_tokens = jnp.where(pos_dec < lengths[:, None] + 1, dec_tokens, pad_idx)

    # eval-mode forward (training=False): dropout is identity, z_step = pri_mu
    logp, mu, logvar, kld, aux_loss = selfvae_forward(
        params, enc_tokens, dec_tokens, lengths, k_eps,
        pad_idx=pad_idx, dropout_rate=dropout_rate, training=False)

    jax.block_until_ready((logp, mu, logvar, kld, aux_loss))
    assert logp.shape == (B, time_step + 1, vocab_size)
    assert mu.shape == (B, z_dim) and logvar.shape == (B, z_dim)
    assert bool(jnp.isfinite(logp).all())
    assert bool(jnp.isfinite(kld)) and bool(jnp.isfinite(aux_loss))
    print("KERNEL_OK")
</pallas_src>

<mosaic_0001>
module attributes {stable_mosaic.version = 11 : i64} {
  func.func @kernel(%arg0: i32, %arg1: memref<8x8x16xf32, #tpu.memory_space<vmem>>, %arg2: memref<9x8x16xf32, #tpu.memory_space<vmem>>, %arg3: memref<8x8xf32, #tpu.memory_space<vmem>>, %arg4: memref<8x1xf32, #tpu.memory_space<vmem>>, %arg5: memref<8x1xf32, #tpu.memory_space<vmem>>, %arg6: memref<8x8xf32, #tpu.memory_space<vmem>>, %arg7: memref<16x512xbf16, #tpu.memory_space<vmem>>, %arg8: memref<32x512xbf16, #tpu.memory_space<vmem>>, %arg9: memref<1x512xf32, #tpu.memory_space<vmem>>, %arg10: memref<32x256xbf16, #tpu.memory_space<vmem>>, %arg11: memref<32x256xbf16, #tpu.memory_space<vmem>>, %arg12: memref<1x256xf32, #tpu.memory_space<vmem>>, %arg13: memref<16x8xbf16, #tpu.memory_space<vmem>>, %arg14: memref<32x8xbf16, #tpu.memory_space<vmem>>, %arg15: memref<1x8xf32, #tpu.memory_space<vmem>>, %arg16: memref<32x256xbf16, #tpu.memory_space<vmem>>, %arg17: memref<1x256xf32, #tpu.memory_space<vmem>>, %arg18: memref<32x256xbf16, #tpu.memory_space<vmem>>, %arg19: memref<32x256xbf16, #tpu.memory_space<vmem>>, %arg20: memref<1x256xf32, #tpu.memory_space<vmem>>, %arg21: memref<8x32xbf16, #tpu.memory_space<vmem>>, %arg22: memref<1x32xf32, #tpu.memory_space<vmem>>, %arg23: memref<16x32xbf16, #tpu.memory_space<vmem>>, %arg24: memref<32x32xbf16, #tpu.memory_space<vmem>>, %arg25: memref<8x32xbf16, #tpu.memory_space<vmem>>, %arg26: memref<8x32xbf16, #tpu.memory_space<vmem>>, %arg27: memref<1x32xf32, #tpu.memory_space<vmem>>, %arg28: memref<32x512xbf16, #tpu.memory_space<vmem>>, %arg29: memref<32x512xbf16, #tpu.memory_space<vmem>>, %arg30: memref<1x512xf32, #tpu.memory_space<vmem>>, %arg31: memref<9x8x32xbf16, #tpu.memory_space<vmem>>, %arg32: memref<8x8xf32, #tpu.memory_space<vmem>>, %arg33: memref<8x8xf32, #tpu.memory_space<vmem>>, %arg34: memref<8x1xf32, #tpu.memory_space<vmem>>, %arg35: memref<8x1xf32, #tpu.memory_space<vmem>>, %arg36: memref<8x8x32xf32, #tpu.memory_space<vmem>>, %arg37: memref<8x8x512xf32, #tpu.memory_space<vmem>>, %arg38: memref<9x8x8xf32, #tpu.memory_space<vmem>>, %arg39: memref<9x8x32xf32, #tpu.memory_space<vmem>>) attributes {dimension_semantics = [#tpu.dimension_semantics<parallel>], iteration_bounds = array<i64: 1>, scalar_prefetch = 0 : i64, scratch_operands = 4 : i64, tpu.core_type = #tpu.core_type<tc>, window_params = [{transform_indices = @transform_0, window_bounds = array<i64: 8, 8, 16>}, {transform_indices = @transform_1, window_bounds = array<i64: 9, 8, 16>}, {transform_indices = @transform_2, window_bounds = array<i64: 8, 8>}, {transform_indices = @transform_3, window_bounds = array<i64: 8, 1>}, {transform_indices = @transform_4, window_bounds = array<i64: 8, 1>}, {transform_indices = @transform_5, window_bounds = array<i64: 8, 8>}, {pipeline_mode = #tpu.pipeline_mode<synchronous>, transform_indices = @transform_6, window_bounds = array<i64: 16, 512>}, {pipeline_mode = #tpu.pipeline_mode<synchronous>, transform_indices = @transform_7, window_bounds = array<i64: 32, 512>}, {pipeline_mode = #tpu.pipeline_mode<synchronous>, transform_indices = @transform_8, window_bounds = array<i64: 1, 512>}, {pipeline_mode = #tpu.pipeline_mode<synchronous>, transform_indices = @transform_9, window_bounds = array<i64: 32, 256>}, {pipeline_mode = #tpu.pipeline_mode<synchronous>, transform_indices = @transform_10, window_bounds = array<i64: 32, 256>}, {pipeline_mode = #tpu.pipeline_mode<synchronous>, transform_indices = @transform_11, window_bounds = array<i64: 1, 256>}, {pipeline_mode = #tpu.pipeline_mode<synchronous>, transform_indices = @transform_12, window_bounds = array<i64: 16, 8>}, {pipeline_mode = #tpu.pipeline_mode<synchronous>, transform_indices = @transform_13, window_bounds = array<i64: 32, 8>}, {pipeline_mode = #tpu.pipeline_mode<synchronous>, transform_indices = @transform_14, window_bounds = array<i64: 1, 8>}, {pipeline_mode = #tpu.pipeline_mode<synchronous>, transform_indices = @transform_15, window_bounds = array<i64: 32, 256>}, {pipeline_mode = #tpu.pipeline_mode<synchronous>, transform_indices = @transform_16, window_bounds = array<i64: 1, 256>}, {pipeline_mode = #tpu.pipeline_mode<synchronous>, transform_indices = @transform_17, window_bounds = array<i64: 32, 256>}, {pipeline_mode = #tpu.pipeline_mode<synchronous>, transform_indices = @transform_18, window_bounds = array<i64: 32, 256>}, {pipeline_mode = #tpu.pipeline_mode<synchronous>, transform_indices = @transform_19, window_bounds = array<i64: 1, 256>}, {pipeline_mode = #tpu.pipeline_mode<synchronous>, transform_indices = @transform_20, window_bounds = array<i64: 8, 32>}, {pipeline_mode = #tpu.pipeline_mode<synchronous>, transform_indices = @transform_21, window_bounds = array<i64: 1, 32>}, {pipeline_mode = #tpu.pipeline_mode<synchronous>, transform_indices = @transform_22, window_bounds = array<i64: 16, 32>}, {pipeline_mode = #tpu.pipeline_mode<synchronous>, transform_indices = @transform_23, window_bounds = array<i64: 32, 32>}, {pipeline_mode = #tpu.pipeline_mode<synchronous>, transform_indices = @transform_24, window_bounds = array<i64: 8, 32>}, {pipeline_mode = #tpu.pipeline_mode<synchronous>, transform_indices = @transform_25, window_bounds = array<i64: 8, 32>}, {pipeline_mode = #tpu.pipeline_mode<synchronous>, transform_indices = @transform_26, window_bounds = array<i64: 1, 32>}, {pipeline_mode = #tpu.pipeline_mode<synchronous>, transform_indices = @transform_27, window_bounds = array<i64: 32, 512>}, {pipeline_mode = #tpu.pipeline_mode<synchronous>, transform_indices = @transform_28, window_bounds = array<i64: 32, 512>}, {pipeline_mode = #tpu.pipeline_mode<synchronous>, transform_indices = @transform_29, window_bounds = array<i64: 1, 512>}, {transform_indices = @transform_30, window_bounds = array<i64: 9, 8, 32>}, {transform_indices = @transform_31, window_bounds = array<i64: 8, 8>}, {transform_indices = @transform_32, window_bounds = array<i64: 8, 8>}, {transform_indices = @transform_33, window_bounds = array<i64: 8, 1>}, {transform_indices = @transform_34, window_bounds = array<i64: 8, 1>}]} {
    %c0 = arith.constant 0 : index
    %c0_0 = arith.constant 0 : index
    %0 = vector.load %arg4[%c0, %c0_0] : memref<8x1xf32, #tpu.memory_space<vmem>>, vector<8x1xf32>
    %c0_1 = arith.constant 0 : index
    %c0_2 = arith.constant 0 : index
    %1 = vector.load %arg5[%c0_1, %c0_2] : memref<8x1xf32, #tpu.memory_space<vmem>>, vector<8x1xf32>
    %c0_3 = arith.constant 0 : index
    %c0_4 = arith.constant 0 : index
    %2 = vector.load %arg3[%c0_3, %c0_4] : memref<8x8xf32, #tpu.memory_space<vmem>>, vector<8x8xf32>
    %c0_5 = arith.constant 0 : index
    %c0_6 = arith.constant 0 : index
    %c0_7 = arith.constant 0 : index
    %3 = vector.load %arg1[%c0_5, %c0_6, %c0_7] : memref<8x8x16xf32, #tpu.memory_space<vmem>>, vector<8x8x16xf32>
    %4 = vector.shape_cast %3 : vector<8x8x16xf32> to vector<64x16xf32>
    %5 = arith.truncf %4 : vector<64x16xf32> to vector<64x16xbf16>
    %c0_8 = arith.constant 0 : index
    %c0_9 = arith.constant 0 : index
    %6 = vector.load %arg7[%c0_8, %c0_9] : memref<16x512xbf16, #tpu.memory_space<vmem>>, vector<16x512xbf16>
    %cst = arith.constant dense<0.000000e+00> : vector<64x512xf32>
    %7 = tpu.matmul %5, %6, %cst {dimension_numbers = #tpu.dot_dimension_numbers<[1], [0], [0], [1], [0, 0, 1, 1], [], []>} : vector<64x16xbf16>, vector<16x512xbf16>, vector<64x512xf32> -> vector<64x512xf32>
    %8 = vector.shape_cast %7 : vector<64x512xf32> to vector<8x8x512xf32>
    %c0_10 = arith.constant 0 : index
    %c0_11 = arith.constant 0 : index
    %9 = vector.load %arg9[%c0_10, %c0_11] : memref<1x512xf32, #tpu.memory_space<vmem>>, vector<1x512xf32>
    %10 = vector.shape_cast %9 : vector<1x512xf32> to vector<1x1x512xf32>
    %11 = vector.broadcast %10 : vector<1x1x512xf32> to vector<8x8x512xf32>
    %12 = arith.addf %8, %11 : vector<8x8x512xf32>
    %c0_12 = arith.constant 0 : index
    %c0_13 = arith.constant 0 : index
    %c0_14 = arith.constant 0 : index
    %13 = vector.load %arg37[%c0_12, %c0_13, %c0_14] : memref<8x8x512xf32, #tpu.memory_space<vmem>>, vector<8x8x512xf32>
    tpu.vector_store %arg37[%c0_12, %c0_13, %c0_14], %12 {strides = array<i32>} : memref<8x8x512xf32, #tpu.memory_space<vmem>>, vector<8x8x512xf32>,
    %c0_15 = arith.constant 0 : index
    %c0_16 = arith.constant 0 : index
    %c0_17 = arith.constant 0 : index
    %14 = vector.load %arg2[%c0_15, %c0_16, %c0_17] : memref<9x8x16xf32, #tpu.memory_space<vmem>>, vector<9x8x16xf32>
    %15 = vector.shape_cast %14 : vector<9x8x16xf32> to vector<72x16xf32>
    %16 = arith.truncf %15 : vector<72x16xf32> to vector<72x16xbf16>
    %c0_18 = arith.constant 0 : index
    %c0_19 = arith.constant 0 : index
    %17 = vector.load %arg13[%c0_18, %c0_19] : memref<16x8xbf16, #tpu.memory_space<vmem>>, vector<16x8xbf16>
    %cst_20 = arith.constant dense<0.000000e+00> : vector<72x8xf32>
    %18 = tpu.matmul %16, %17, %cst_20 {dimension_numbers = #tpu.dot_dimension_numbers<[1], [0], [0], [1], [0, 0, 1, 1], [], []>} : vector<72x16xbf16>, vector<16x8xbf16>, vector<72x8xf32> -> vector<72x8xf32>
    %19 = vector.shape_cast %18 : vector<72x8xf32> to vector<9x8x8xf32>
    %c0_21 = arith.constant 0 : index
    %c0_22 = arith.constant 0 : index
    %20 = vector.load %arg15[%c0_21, %c0_22] : memref<1x8xf32, #tpu.memory_space<vmem>>, vector<1x8xf32>
    %21 = vector.shape_cast %20 : vector<1x8xf32> to vector<1x1x8xf32>
    %22 = vector.broadcast %21 : vector<1x1x8xf32> to vector<9x8x8xf32>
    %23 = arith.addf %19, %22 : vector<9x8x8xf32>
    %24 = vector.shape_cast %2 : vector<8x8xf32> to vector<1x8x8xf32>
    %25 = vector.broadcast %24 : vector<1x8x8xf32> to vector<9x8x8xf32>
    %26 = arith.addf %23, %25 : vector<9x8x8xf32>
    %c0_23 = arith.constant 0 : index
    %c0_24 = arith.constant 0 : index
    %c0_25 = arith.constant 0 : index
    %27 = vector.load %arg38[%c0_23, %c0_24, %c0_25] : memref<9x8x8xf32, #tpu.memory_space<vmem>>, vector<9x8x8xf32>
    tpu.vector_store %arg38[%c0_23, %c0_24, %c0_25], %26 {strides = array<i32>} : memref<9x8x8xf32, #tpu.memory_space<vmem>>, vector<9x8x8xf32>,
    %c0_26 = arith.constant 0 : index
    %c0_27 = arith.constant 0 : index
    %28 = vector.load %arg23[%c0_26, %c0_27] : memref<16x32xbf16, #tpu.memory_space<vmem>>, vector<16x32xbf16>
    %cst_28 = arith.constant dense<0.000000e+00> : vector<72x32xf32>
    %29 = tpu.matmul %16, %28, %cst_28 {dimension_numbers = #tpu.dot_dimension_numbers<[1], [0], [0], [1], [0, 0, 1, 1], [], []>} : vector<72x16xbf16>, vector<16x32xbf16>, vector<72x32xf32> -> vector<72x32xf32>
    %30 = vector.shape_cast %29 : vector<72x32xf32> to vector<9x8x32xf32>
    %c0_29 = arith.constant 0 : index
    %c0_30 = arith.constant 0 : index
    %31 = vector.load %arg27[%c0_29, %c0_30] : memref<1x32xf32, #tpu.memory_space<vmem>>, vector<1x32xf32>
    %32 = vector.shape_cast %31 : vector<1x32xf32> to vector<1x1x32xf32>
    %33 = vector.broadcast %32 : vector<1x1x32xf32> to vector<9x8x32xf32>
    %34 = arith.addf %30, %33 : vector<9x8x32xf32>
    %c0_31 = arith.constant 0 : index
    %c0_32 = arith.constant 0 : index
    %c0_33 = arith.constant 0 : index
    %35 = vector.load %arg39[%c0_31, %c0_32, %c0_33] : memref<9x8x32xf32, #tpu.memory_space<vmem>>, vector<9x8x32xf32>
    tpu.vector_store %arg39[%c0_31, %c0_32, %c0_33], %34 {strides = array<i32>} : memref<9x8x32xf32, #tpu.memory_space<vmem>>, vector<9x8x32xf32>,
    %c0_34 = arith.constant 0 : index
    %c0_35 = arith.constant 0 : index
    %36 = vector.load %arg8[%c0_34, %c0_35] : memref<32x512xbf16, #tpu.memory_space<vmem>>, vector<32x512xbf16>
    %cst_36 = arith.constant 0.000000e+00 : f32
    %37 = vector.broadcast %cst_36 : f32 to vector<8x32xf32>
    %c0_i32 = arith.constant 0 : i32
    %38 = arith.sitofp %c0_i32 : i32 to f32
    %39 = vector.broadcast %38 : f32 to vector<8x1xf32>
    %40 = arith.cmpf ogt, %0, %39 : vector<8x1xf32>
    %41 = arith.extui %40 : vector<8x1xi1> to vector<8x1xi32>
    %42 = arith.sitofp %41 : vector<8x1xi32> to vector<8x1xf32>
    %43 = arith.index_cast %c0_i32 : i32 to index
    %c0_37 = arith.constant 0 : index
    %c0_38 = arith.constant 0 : index
    %44 = vector.load %arg37[%43, %c0_37, %c0_38] : memref<8x8x512xf32, #tpu.memory_space<vmem>>, vector<1x8x512xf32>
    %45 = vector.shape_cast %44 : vector<1x8x512xf32> to vector<8x512xf32>
    %46 = arith.truncf %37 : vector<8x32xf32> to vector<8x32xbf16>
    %cst_39 = arith.constant dense<0.000000e+00> : vector<8x512xf32>
    %47 = tpu.matmul %46, %36, %cst_39 {dimension_numbers = #tpu.dot_dimension_numbers<[1], [0], [0], [1], [0, 0, 1, 1], [], []>} : vector<8x32xbf16>, vector<32x512xbf16>, vector<8x512xf32> -> vector<8x512xf32>
    %48 = arith.addf %45, %47 : vector<8x512xf32>
    %49 = vector.extract_strided_slice %48 {offsets = [0, 0], sizes = [8, 32], strides = [1, 1]} : vector<8x512xf32> to vector<8x32xf32>
    %50 = arith.negf %49 : vector<8x32xf32>
    %51 = math.exp %50 : vector<8x32xf32>
    %cst_40 = arith.constant 1.000000e+00 : f32
    %52 = vector.broadcast %cst_40 : f32 to vector<8x32xf32>
    %53 = arith.addf %52, %51 : vector<8x32xf32>
    %54 = arith.divf %52, %53 : vector<8x32xf32>
    %55 = vector.extract_strided_slice %48 {offsets = [0, 128], sizes = [8, 32], strides = [1, 1]} : vector<8x512xf32> to vector<8x32xf32>
    %56 = arith.negf %55 : vector<8x32xf32>
    %57 = math.exp %56 : vector<8x32xf32>
    %cst_41 = arith.constant 1.000000e+00 : f32
    %58 = vector.broadcast %cst_41 : f32 to vector<8x32xf32>
    %59 = arith.addf %58, %57 : vector<8x32xf32>
    %60 = arith.divf %58, %59 : vector<8x32xf32>
    %61 = vector.extract_strided_slice %48 {offsets = [0, 256], sizes = [8, 32], strides = [1, 1]} : vector<8x512xf32> to vector<8x32xf32>
    %62 = math.tanh %61 : vector<8x32xf32>
    %63 = vector.extract_strided_slice %48 {offsets = [0, 384], sizes = [8, 32], strides = [1, 1]} : vector<8x512xf32> to vector<8x32xf32>
    %64 = arith.negf %63 : vector<8x32xf32>
    %65 = math.exp %64 : vector<8x32xf32>
    %cst_42 = arith.constant 1.000000e+00 : f32
    %66 = vector.broadcast %cst_42 : f32 to vector<8x32xf32>
    %67 = arith.addf %66, %65 : vector<8x32xf32>
    %68 = arith.divf %66, %67 : vector<8x32xf32>
    %69 = arith.mulf %60, %37 : vector<8x32xf32>
    %70 = arith.mulf %54, %62 : vector<8x32xf32>
    %71 = arith.addf %69, %70 : vector<8x32xf32>
    %72 = math.tanh %71 : vector<8x32xf32>
    %73 = arith.mulf %68, %72 : vector<8x32xf32>
    %74 = vector.broadcast %42 : vector<8x1xf32> to vector<8x32xf32>
    %75 = arith.mulf %73, %74 : vector<8x32xf32>
    %76 = arith.index_cast %c0_i32 : i32 to index
    %c0_43 = arith.constant 0 : index
    %c0_44 = arith.constant 0 : index
    %77 = vector.load %arg36[%76, %c0_43, %c0_44] : memref<8x8x32xf32, #tpu.memory_space<vmem>>, vector<1x8x32xf32>
    %78 = vector.shape_cast %77 : vector<1x8x32xf32> to vector<8x32xf32>
    %79 = vector.shape_cast %75 : vector<8x32xf32> to vector<1x8x32xf32>
    tpu.vector_store %arg36[%76, %c0_43, %c0_44], %79 {strides = array<i32>} : memref<8x8x32xf32, #tpu.memory_space<vmem>>, vector<1x8x32xf32>,
    %80 = vector.broadcast %42 : vector<8x1xf32> to vector<8x32xf32>
    %81 = arith.mulf %80, %73 : vector<8x32xf32>
    %cst_45 = arith.constant 1.000000e+00 : f32
    %82 = vector.broadcast %cst_45 : f32 to vector<8x1xf32>
    %83 = arith.subf %82, %42 : vector<8x1xf32>
    %84 = vector.broadcast %83 : vector<8x1xf32> to vector<8x32xf32>
    %85 = arith.mulf %84, %37 : vector<8x32xf32>
    %86 = arith.addf %81, %85 : vector<8x32xf32>
    %87 = vector.broadcast %42 : vector<8x1xf32> to vector<8x32xf32>
    %88 = arith.mulf %87, %71 : vector<8x32xf32>
    %cst_46 = arith.constant 1.000000e+00 : f32
    %89 = vector.broadcast %cst_46 : f32 to vector<8x1xf32>
    %90 = arith.subf %89, %42 : vector<8x1xf32>
    %91 = vector.broadcast %90 : vector<8x1xf32> to vector<8x32xf32>
    %92 = arith.mulf %91, %37 : vector<8x32xf32>
    %93 = arith.addf %88, %92 : vector<8x32xf32>
    %c1_i32 = arith.constant 1 : i32
    %94 = arith.sitofp %c1_i32 : i32 to f32
    %95 = vector.broadcast %94 : f32 to vector<8x1xf32>
    %96 = arith.cmpf ogt, %0, %95 : vector<8x1xf32>
    %97 = arith.extui %96 : vector<8x1xi1> to vector<8x1xi32>
    %98 = arith.sitofp %97 : vector<8x1xi32> to vector<8x1xf32>
    %99 = arith.index_cast %c1_i32 : i32 to index
    %c0_47 = arith.constant 0 : index
    %c0_48 = arith.constant 0 : index
    %100 = vector.load %arg37[%99, %c0_47, %c0_48] : memref<8x8x512xf32, #tpu.memory_space<vmem>>, vector<1x8x512xf32>
    %101 = vector.shape_cast %100 : vector<1x8x512xf32> to vector<8x512xf32>
    %102 = arith.truncf %86 : vector<8x32xf32> to vector<8x32xbf16>
    %cst_49 = arith.constant dense<0.000000e+00> : vector<8x512xf32>
    %103 = tpu.matmul %102, %36, %cst_49 {dimension_numbers = #tpu.dot_dimension_numbers<[1], [0], [0], [1], [0, 0, 1, 1], [], []>} : vector<8x32xbf16>, vector<32x512xbf16>, vector<8x512xf32> -> vector<8x512xf32>
    %104 = arith.addf %101, %103 : vector<8x512xf32>
    %105 = vector.extract_strided_slice %104 {offsets = [0, 0], sizes = [8, 32], strides = [1, 1]} : vector<8x512xf32> to vector<8x32xf32>
    %106 = arith.negf %105 : vector<8x32xf32>
    %107 = math.exp %106 : vector<8x32xf32>
    %cst_50 = arith.constant 1.000000e+00 : f32
    %108 = vector.broadcast %cst_50 : f32 to vector<8x32xf32>
    %109 = arith.addf %108, %107 : vector<8x32xf32>
    %110 = arith.divf %108, %109 : vector<8x32xf32>
    %111 = vector.extract_strided_slice %104 {offsets = [0, 128], sizes = [8, 32], strides = [1, 1]} : vector<8x512xf32> to vector<8x32xf32>
    %112 = arith.negf %111 : vector<8x32xf32>
    %113 = math.exp %112 : vector<8x32xf32>
    %cst_51 = arith.constant 1.000000e+00 : f32
    %114 = vector.broadcast %cst_51 : f32 to vector<8x32xf32>
    %115 = arith.addf %114, %113 : vector<8x32xf32>
    %116 = arith.divf %114, %115 : vector<8x32xf32>
    %117 = vector.extract_strided_slice %104 {offsets = [0, 256], sizes = [8, 32], strides = [1, 1]} : vector<8x512xf32> to vector<8x32xf32>
    %118 = math.tanh %117 : vector<8x32xf32>
    %119 = vector.extract_strided_slice %104 {offsets = [0, 384], sizes = [8, 32], strides = [1, 1]} : vector<8x512xf32> to vector<8x32xf32>
    %120 = arith.negf %119 : vector<8x32xf32>
    %121 = math.exp %120 : vector<8x32xf32>
    %cst_52 = arith.constant 1.000000e+00 : f32
    %122 = vector.broadcast %cst_52 : f32 to vector<8x32xf32>
    %123 = arith.addf %122, %121 : vector<8x32xf32>
    %124 = arith.divf %122, %123 : vector<8x32xf32>
    %125 = arith.mulf %116, %93 : vector<8x32xf32>
    %126 = arith.mulf %110, %118 : vector<8x32xf32>
    %127 = arith.addf %125, %126 : vector<8x32xf32>
    %128 = math.tanh %127 : vector<8x32xf32>
    %129 = arith.mulf %124, %128 : vector<8x32xf32>
    %130 = vector.broadcast %98 : vector<8x1xf32> to vector<8x32xf32>
    %131 = arith.mulf %129, %130 : vector<8x32xf32>
    %132 = arith.index_cast %c1_i32 : i32 to index
    %c0_53 = arith.constant 0 : index
    %c0_54 = arith.constant 0 : index
    %133 = vector.load %arg36[%132, %c0_53, %c0_54] : memref<8x8x32xf32, #tpu.memory_space<vmem>>, vector<1x8x32xf32>
    %134 = vector.shape_cast %133 : vector<1x8x32xf32> to vector<8x32xf32>
    %135 = vector.shape_cast %131 : vector<8x32xf32> to vector<1x8x32xf32>
    tpu.vector_store %arg36[%132, %c0_53, %c0_54], %135 {strides = array<i32>} : memref<8x8x32xf32, #tpu.memory_space<vmem>>, vector<1x8x32xf32>,
    %136 = vector.broadcast %98 : vector<8x1xf32> to vector<8x32xf32>
    %137 = arith.mulf %136, %129 : vector<8x32xf32>
    %cst_55 = arith.constant 1.000000e+00 : f32
    %138 = vector.broadcast %cst_55 : f32 to vector<8x1xf32>
    %139 = arith.subf %138, %98 : vector<8x1xf32>
    %140 = vector.broadcast %139 : vector<8x1xf32> to vector<8x32xf32>
    %141 = arith.mulf %140, %86 : vector<8x32xf32>
    %142 = arith.addf %137, %141 : vector<8x32xf32>
    %143 = vector.broadcast %98 : vector<8x1xf32> to vector<8x32xf32>
    %144 = arith.mulf %143, %127 : vector<8x32xf32>
    %cst_56 = arith.constant 1.000000e+00 : f32
    %145 = vector.broadcast %cst_56 : f32 to vector<8x1xf32>
    %146 = arith.subf %145, %98 : vector<8x1xf32>
    %147 = vector.broadcast %146 : vector<8x1xf32> to vector<8x32xf32>
    %148 = arith.mulf %147, %93 : vector<8x32xf32>
    %149 = arith.addf %144, %148 : vector<8x32xf32>
    %c2_i32 = arith.constant 2 : i32
    %150 = arith.sitofp %c2_i32 : i32 to f32
    %151 = vector.broadcast %150 : f32 to vector<8x1xf32>
    %152 = arith.cmpf ogt, %0, %151 : vector<8x1xf32>
    %153 = arith.extui %152 : vector<8x1xi1> to vector<8x1xi32>
    %154 = arith.sitofp %153 : vector<8x1xi32> to vector<8x1xf32>
    %155 = arith.index_cast %c2_i32 : i32 to index
    %c0_57 = arith.constant 0 : index
    %c0_58 = arith.constant 0 : index
    %156 = vector.load %arg37[%155, %c0_57, %c0_58] : memref<8x8x512xf32, #tpu.memory_space<vmem>>, vector<1x8x512xf32>
    %157 = vector.shape_cast %156 : vector<1x8x512xf32> to vector<8x512xf32>
    %158 = arith.truncf %142 : vector<8x32xf32> to vector<8x32xbf16>
    %cst_59 = arith.constant dense<0.000000e+00> : vector<8x512xf32>
    %159 = tpu.matmul %158, %36, %cst_59 {dimension_numbers = #tpu.dot_dimension_numbers<[1], [0], [0], [1], [0, 0, 1, 1], [], []>} : vector<8x32xbf16>, vector<32x512xbf16>, vector<8x512xf32> -> vector<8x512xf32>
    %160 = arith.addf %157, %159 : vector<8x512xf32>
    %161 = vector.extract_strided_slice %160 {offsets = [0, 0], sizes = [8, 32], strides = [1, 1]} : vector<8x512xf32> to vector<8x32xf32>
    %162 = arith.negf %161 : vector<8x32xf32>
    %163 = math.exp %162 : vector<8x32xf32>
    %cst_60 = arith.constant 1.000000e+00 : f32
    %164 = vector.broadcast %cst_60 : f32 to vector<8x32xf32>
    %165 = arith.addf %164, %163 : vector<8x32xf32>
    %166 = arith.divf %164, %165 : vector<8x32xf32>
    %167 = vector.extract_strided_slice %160 {offsets = [0, 128], sizes = [8, 32], strides = [1, 1]} : vector<8x512xf32> to vector<8x32xf32>
    %168 = arith.negf %167 : vector<8x32xf32>
    %169 = math.exp %168 : vector<8x32xf32>
    %cst_61 = arith.constant 1.000000e+00 : f32
    %170 = vector.broadcast %cst_61 : f32 to vector<8x32xf32>
    %171 = arith.addf %170, %169 : vector<8x32xf32>
    %172 = arith.divf %170, %171 : vector<8x32xf32>
    %173 = vector.extract_strided_slice %160 {offsets = [0, 256], sizes = [8, 32], strides = [1, 1]} : vector<8x512xf32> to vector<8x32xf32>
    %174 = math.tanh %173 : vector<8x32xf32>
    %175 = vector.extract_strided_slice %160 {offsets = [0, 384], sizes = [8, 32], strides = [1, 1]} : vector<8x512xf32> to vector<8x32xf32>
    %176 = arith.negf %175 : vector<8x32xf32>
    %177 = math.exp %176 : vector<8x32xf32>
    %cst_62 = arith.constant 1.000000e+00 : f32
    %178 = vector.broadcast %cst_62 : f32 to vector<8x32xf32>
    %179 = arith.addf %178, %177 : vector<8x32xf32>
    %180 = arith.divf %178, %179 : vector<8x32xf32>
    %181 = arith.mulf %172, %149 : vector<8x32xf32>
    %182 = arith.mulf %166, %174 : vector<8x32xf32>
    %183 = arith.addf %181, %182 : vector<8x32xf32>
    %184 = math.tanh %183 : vector<8x32xf32>
    %185 = arith.mulf %180, %184 : vector<8x32xf32>
    %186 = vector.broadcast %154 : vector<8x1xf32> to vector<8x32xf32>
    %187 = arith.mulf %185, %186 : vector<8x32xf32>
    %188 = arith.index_cast %c2_i32 : i32 to index
    %c0_63 = arith.constant 0 : index
    %c0_64 = arith.constant 0 : index
    %189 = vector.load %arg36[%188, %c0_63, %c0_64] : memref<8x8x32xf32, #tpu.memory_space<vmem>>, vector<1x8x32xf32>
    %190 = vector.shape_cast %189 : vector<1x8x32xf32> to vector<8x32xf32>
    %191 = vector.shape_cast %187 : vector<8x32xf32> to vector<1x8x32xf32>
    tpu.vector_store %arg36[%188, %c0_63, %c0_64], %191 {strides = array<i32>} : memref<8x8x32xf32, #tpu.memory_space<vmem>>, vector<1x8x32xf32>,
    %192 = vector.broadcast %154 : vector<8x1xf32> to vector<8x32xf32>
    %193 = arith.mulf %192, %185 : vector<8x32xf32>
    %cst_65 = arith.constant 1.000000e+00 : f32
    %194 = vector.broadcast %cst_65 : f32 to vector<8x1xf32>
    %195 = arith.subf %194, %154 : vector<8x1xf32>
    %196 = vector.broadcast %195 : vector<8x1xf32> to vector<8x32xf32>
    %197 = arith.mulf %196, %142 : vector<8x32xf32>
    %198 = arith.addf %193, %197 : vector<8x32xf32>
    %199 = vector.broadcast %154 : vector<8x1xf32> to vector<8x32xf32>
    %200 = arith.mulf %199, %183 : vector<8x32xf32>
    %cst_66 = arith.constant 1.000000e+00 : f32
    %201 = vector.broadcast %cst_66 : f32 to vector<8x1xf32>
    %202 = arith.subf %201, %154 : vector<8x1xf32>
    %203 = vector.broadcast %202 : vector<8x1xf32> to vector<8x32xf32>
    %204 = arith.mulf %203, %149 : vector<8x32xf32>
    %205 = arith.addf %200, %204 : vector<8x32xf32>
    %c3_i32 = arith.constant 3 : i32
    %206 = arith.sitofp %c3_i32 : i32 to f32
    %207 = vector.broadcast %206 : f32 to vector<8x1xf32>
    %208 = arith.cmpf ogt, %0, %207 : vector<8x1xf32>
    %209 = arith.extui %208 : vector<8x1xi1> to vector<8x1xi32>
    %210 = arith.sitofp %209 : vector<8x1xi32> to vector<8x1xf32>
    %211 = arith.index_cast %c3_i32 : i32 to index
    %c0_67 = arith.constant 0 : index
    %c0_68 = arith.constant 0 : index
    %212 = vector.load %arg37[%211, %c0_67, %c0_68] : memref<8x8x512xf32, #tpu.memory_space<vmem>>, vector<1x8x512xf32>
    %213 = vector.shape_cast %212 : vector<1x8x512xf32> to vector<8x512xf32>
    %214 = arith.truncf %198 : vector<8x32xf32> to vector<8x32xbf16>
    %cst_69 = arith.constant dense<0.000000e+00> : vector<8x512xf32>
    %215 = tpu.matmul %214, %36, %cst_69 {dimension_numbers = #tpu.dot_dimension_numbers<[1], [0], [0], [1], [0, 0, 1, 1], [], []>} : vector<8x32xbf16>, vector<32x512xbf16>, vector<8x512xf32> -> vector<8x512xf32>
    %216 = arith.addf %213, %215 : vector<8x512xf32>
    %217 = vector.extract_strided_slice %216 {offsets = [0, 0], sizes = [8, 32], strides = [1, 1]} : vector<8x512xf32> to vector<8x32xf32>
    %218 = arith.negf %217 : vector<8x32xf32>
    %219 = math.exp %218 : vector<8x32xf32>
    %cst_70 = arith.constant 1.000000e+00 : f32
    %220 = vector.broadcast %cst_70 : f32 to vector<8x32xf32>
    %221 = arith.addf %220, %219 : vector<8x32xf32>
    %222 = arith.divf %220, %221 : vector<8x32xf32>
    %223 = vector.extract_strided_slice %216 {offsets = [0, 128], sizes = [8, 32], strides = [1, 1]} : vector<8x512xf32> to vector<8x32xf32>
    %224 = arith.negf %223 : vector<8x32xf32>
    %225 = math.exp %224 : vector<8x32xf32>
    %cst_71 = arith.constant 1.000000e+00 : f32
    %226 = vector.broadcast %cst_71 : f32 to vector<8x32xf32>
    %227 = arith.addf %226, %225 : vector<8x32xf32>
    %228 = arith.divf %226, %227 : vector<8x32xf32>
    %229 = vector.extract_strided_slice %216 {offsets = [0, 256], sizes = [8, 32], strides = [1, 1]} : vector<8x512xf32> to vector<8x32xf32>
    %230 = math.tanh %229 : vector<8x32xf32>
    %231 = vector.extract_strided_slice %216 {offsets = [0, 384], sizes = [8, 32], strides = [1, 1]} : vector<8x512xf32> to vector<8x32xf32>
    %232 = arith.negf %231 : vector<8x32xf32>
    %233 = math.exp %232 : vector<8x32xf32>
    %cst_72 = arith.constant 1.000000e+00 : f32
    %234 = vector.broadcast %cst_72 : f32 to vector<8x32xf32>
    %235 = arith.addf %234, %233 : vector<8x32xf32>
    %236 = arith.divf %234, %235 : vector<8x32xf32>
    %237 = arith.mulf %228, %205 : vector<8x32xf32>
    %238 = arith.mulf %222, %230 : vector<8x32xf32>
    %239 = arith.addf %237, %238 : vector<8x32xf32>
    %240 = math.tanh %239 : vector<8x32xf32>
    %241 = arith.mulf %236, %240 : vector<8x32xf32>
    %242 = vector.broadcast %210 : vector<8x1xf32> to vector<8x32xf32>
    %243 = arith.mulf %241, %242 : vector<8x32xf32>
    %244 = arith.index_cast %c3_i32 : i32 to index
    %c0_73 = arith.constant 0 : index
    %c0_74 = arith.constant 0 : index
    %245 = vector.load %arg36[%244, %c0_73, %c0_74] : memref<8x8x32xf32, #tpu.memory_space<vmem>>, vector<1x8x32xf32>
    %246 = vector.shape_cast %245 : vector<1x8x32xf32> to vector<8x32xf32>
    %247 = vector.shape_cast %243 : vector<8x32xf32> to vector<1x8x32xf32>
    tpu.vector_store %arg36[%244, %c0_73, %c0_74], %247 {strides = array<i32>} : memref<8x8x32xf32, #tpu.memory_space<vmem>>, vector<1x8x32xf32>,
    %248 = vector.broadcast %210 : vector<8x1xf32> to vector<8x32xf32>
    %249 = arith.mulf %248, %241 : vector<8x32xf32>
    %cst_75 = arith.constant 1.000000e+00 : f32
    %250 = vector.broadcast %cst_75 : f32 to vector<8x1xf32>
    %251 = arith.subf %250, %210 : vector<8x1xf32>
    %252 = vector.broadcast %251 : vector<8x1xf32> to vector<8x32xf32>
    %253 = arith.mulf %252, %198 : vector<8x32xf32>
    %254 = arith.addf %249, %253 : vector<8x32xf32>
    %255 = vector.broadcast %210 : vector<8x1xf32> to vector<8x32xf32>
    %256 = arith.mulf %255, %239 : vector<8x32xf32>
    %cst_76 = arith.constant 1.000000e+00 : f32
    %257 = vector.broadcast %cst_76 : f32 to vector<8x1xf32>
    %258 = arith.subf %257, %210 : vector<8x1xf32>
    %259 = vector.broadcast %258 : vector<8x1xf32> to vector<8x32xf32>
    %260 = arith.mulf %259, %205 : vector<8x32xf32>
    %261 = arith.addf %256, %260 : vector<8x32xf32>
    %c4_i32 = arith.constant 4 : i32
    %262 = arith.sitofp %c4_i32 : i32 to f32
    %263 = vector.broadcast %262 : f32 to vector<8x1xf32>
    %264 = arith.cmpf ogt, %0, %263 : vector<8x1xf32>
    %265 = arith.extui %264 : vector<8x1xi1> to vector<8x1xi32>
    %266 = arith.sitofp %265 : vector<8x1xi32> to vector<8x1xf32>
    %267 = arith.index_cast %c4_i32 : i32 to index
    %c0_77 = arith.constant 0 : index
    %c0_78 = arith.constant 0 : index
    %268 = vector.load %arg37[%267, %c0_77, %c0_78] : memref<8x8x512xf32, #tpu.memory_space<vmem>>, vector<1x8x512xf32>
    %269 = vector.shape_cast %268 : vector<1x8x512xf32> to vector<8x512xf32>
    %270 = arith.truncf %254 : vector<8x32xf32> to vector<8x32xbf16>
    %cst_79 = arith.constant dense<0.000000e+00> : vector<8x512xf32>
    %271 = tpu.matmul %270, %36, %cst_79 {dimension_numbers = #tpu.dot_dimension_numbers<[1], [0], [0], [1], [0, 0, 1, 1], [], []>} : vector<8x32xbf16>, vector<32x512xbf16>, vector<8x512xf32> -> vector<8x512xf32>
    %272 = arith.addf %269, %271 : vector<8x512xf32>
    %273 = vector.extract_strided_slice %272 {offsets = [0, 0], sizes = [8, 32], strides = [1, 1]} : vector<8x512xf32> to vector<8x32xf32>
    %274 = arith.negf %273 : vector<8x32xf32>
    %275 = math.exp %274 : vector<8x32xf32>
    %cst_80 = arith.constant 1.000000e+00 : f32
    %276 = vector.broadcast %cst_80 : f32 to vector<8x32xf32>
    %277 = arith.addf %276, %275 : vector<8x32xf32>
    %278 = arith.divf %276, %277 : vector<8x32xf32>
    %279 = vector.extract_strided_slice %272 {offsets = [0, 128], sizes = [8, 32], strides = [1, 1]} : vector<8x512xf32> to vector<8x32xf32>
    %280 = arith.negf %279 : vector<8x32xf32>
    %281 = math.exp %280 : vector<8x32xf32>
    %cst_81 = arith.constant 1.000000e+00 : f32
    %282 = vector.broadcast %cst_81 : f32 to vector<8x32xf32>
    %283 = arith.addf %282, %281 : vector<8x32xf32>
    %284 = arith.divf %282, %283 : vector<8x32xf32>
    %285 = vector.extract_strided_slice %272 {offsets = [0, 256], sizes = [8, 32], strides = [1, 1]} : vector<8x512xf32> to vector<8x32xf32>
    %286 = math.tanh %285 : vector<8x32xf32>
    %287 = vector.extract_strided_slice %272 {offsets = [0, 384], sizes = [8, 32], strides = [1, 1]} : vector<8x512xf32> to vector<8x32xf32>
    %288 = arith.negf %287 : vector<8x32xf32>
    %289 = math.exp %288 : vector<8x32xf32>
    %cst_82 = arith.constant 1.000000e+00 : f32
    %290 = vector.broadcast %cst_82 : f32 to vector<8x32xf32>
    %291 = arith.addf %290, %289 : vector<8x32xf32>
    %292 = arith.divf %290, %291 : vector<8x32xf32>
    %293 = arith.mulf %284, %261 : vector<8x32xf32>
    %294 = arith.mulf %278, %286 : vector<8x32xf32>
    %295 = arith.addf %293, %294 : vector<8x32xf32>
    %296 = math.tanh %295 : vector<8x32xf32>
    %297 = arith.mulf %292, %296 : vector<8x32xf32>
    %298 = vector.broadcast %266 : vector<8x1xf32> to vector<8x32xf32>
    %299 = arith.mulf %297, %298 : vector<8x32xf32>
    %300 = arith.index_cast %c4_i32 : i32 to index
    %c0_83 = arith.constant 0 : index
    %c0_84 = arith.constant 0 : index
    %301 = vector.load %arg36[%300, %c0_83, %c0_84] : memref<8x8x32xf32, #tpu.memory_space<vmem>>, vector<1x8x32xf32>
    %302 = vector.shape_cast %301 : vector<1x8x32xf32> to vector<8x32xf32>
    %303 = vector.shape_cast %299 : vector<8x32xf32> to vector<1x8x32xf32>
    tpu.vector_store %arg36[%300, %c0_83, %c0_84], %303 {strides = array<i32>} : memref<8x8x32xf32, #tpu.memory_space<vmem>>, vector<1x8x32xf32>,
    %304 = vector.broadcast %266 : vector<8x1xf32> to vector<8x32xf32>
    %305 = arith.mulf %304, %297 : vector<8x32xf32>
    %cst_85 = arith.constant 1.000000e+00 : f32
    %306 = vector.broadcast %cst_85 : f32 to vector<8x1xf32>
    %307 = arith.subf %306, %266 : vector<8x1xf32>
    %308 = vector.broadcast %307 : vector<8x1xf32> to vector<8x32xf32>
    %309 = arith.mulf %308, %254 : vector<8x32xf32>
    %310 = arith.addf %305, %309 : vector<8x32xf32>
    %311 = vector.broadcast %266 : vector<8x1xf32> to vector<8x32xf32>
    %312 = arith.mulf %311, %295 : vector<8x32xf32>
    %cst_86 = arith.constant 1.000000e+00 : f32
    %313 = vector.broadcast %cst_86 : f32 to vector<8x1xf32>
    %314 = arith.subf %313, %266 : vector<8x1xf32>
    %315 = vector.broadcast %314 : vector<8x1xf32> to vector<8x32xf32>
    %316 = arith.mulf %315, %261 : vector<8x32xf32>
    %317 = arith.addf %312, %316 : vector<8x32xf32>
    %c5_i32 = arith.constant 5 : i32
    %318 = arith.sitofp %c5_i32 : i32 to f32
    %319 = vector.broadcast %318 : f32 to vector<8x1xf32>
    %320 = arith.cmpf ogt, %0, %319 : vector<8x1xf32>
    %321 = arith.extui %320 : vector<8x1xi1> to vector<8x1xi32>
    %322 = arith.sitofp %321 : vector<8x1xi32> to vector<8x1xf32>
    %323 = arith.index_cast %c5_i32 : i32 to index
    %c0_87 = arith.constant 0 : index
    %c0_88 = arith.constant 0 : index
    %324 = vector.load %arg37[%323, %c0_87, %c0_88] : memref<8x8x512xf32, #tpu.memory_space<vmem>>, vector<1x8x512xf32>
    %325 = vector.shape_cast %324 : vector<1x8x512xf32> to vector<8x512xf32>
    %326 = arith.truncf %310 : vector<8x32xf32> to vector<8x32xbf16>
    %cst_89 = arith.constant dense<0.000000e+00> : vector<8x512xf32>
    %327 = tpu.matmul %326, %36, %cst_89 {dimension_numbers = #tpu.dot_dimension_numbers<[1], [0], [0], [1], [0, 0, 1, 1], [], []>} : vector<8x32xbf16>, vector<32x512xbf16>, vector<8x512xf32> -> vector<8x512xf32>
    %328 = arith.addf %325, %327 : vector<8x512xf32>
    %329 = vector.extract_strided_slice %328 {offsets = [0, 0], sizes = [8, 32], strides = [1, 1]} : vector<8x512xf32> to vector<8x32xf32>
    %330 = arith.negf %329 : vector<8x32xf32>
    %331 = math.exp %330 : vector<8x32xf32>
    %cst_90 = arith.constant 1.000000e+00 : f32
    %332 = vector.broadcast %cst_90 : f32 to vector<8x32xf32>
    %333 = arith.addf %332, %331 : vector<8x32xf32>
    %334 = arith.divf %332, %333 : vector<8x32xf32>
    %335 = vector.extract_strided_slice %328 {offsets = [0, 128], sizes = [8, 32], strides = [1, 1]} : vector<8x512xf32> to vector<8x32xf32>
    %336 = arith.negf %335 : vector<8x32xf32>
    %337 = math.exp %336 : vector<8x32xf32>
    %cst_91 = arith.constant 1.000000e+00 : f32
    %338 = vector.broadcast %cst_91 : f32 to vector<8x32xf32>
    %339 = arith.addf %338, %337 : vector<8x32xf32>
    %340 = arith.divf %338, %339 : vector<8x32xf32>
    %341 = vector.extract_strided_slice %328 {offsets = [0, 256], sizes = [8, 32], strides = [1, 1]} : vector<8x512xf32> to vector<8x32xf32>
    %342 = math.tanh %341 : vector<8x32xf32>
    %343 = vector.extract_strided_slice %328 {offsets = [0, 384], sizes = [8, 32], strides = [1, 1]} : vector<8x512xf32> to vector<8x32xf32>
    %344 = arith.negf %343 : vector<8x32xf32>
    %345 = math.exp %344 : vector<8x32xf32>
    %cst_92 = arith.constant 1.000000e+00 : f32
    %346 = vector.broadcast %cst_92 : f32 to vector<8x32xf32>
    %347 = arith.addf %346, %345 : vector<8x32xf32>
    %348 = arith.divf %346, %347 : vector<8x32xf32>
    %349 = arith.mulf %340, %317 : vector<8x32xf32>
    %350 = arith.mulf %334, %342 : vector<8x32xf32>
    %351 = arith.addf %349, %350 : vector<8x32xf32>
    %352 = math.tanh %351 : vector<8x32xf32>
    %353 = arith.mulf %348, %352 : vector<8x32xf32>
    %354 = vector.broadcast %322 : vector<8x1xf32> to vector<8x32xf32>
    %355 = arith.mulf %353, %354 : vector<8x32xf32>
    %356 = arith.index_cast %c5_i32 : i32 to index
    %c0_93 = arith.constant 0 : index
    %c0_94 = arith.constant 0 : index
    %357 = vector.load %arg36[%356, %c0_93, %c0_94] : memref<8x8x32xf32, #tpu.memory_space<vmem>>, vector<1x8x32xf32>
    %358 = vector.shape_cast %357 : vector<1x8x32xf32> to vector<8x32xf32>
    %359 = vector.shape_cast %355 : vector<8x32xf32> to vector<1x8x32xf32>
    tpu.vector_store %arg36[%356, %c0_93, %c0_94], %359 {strides = array<i32>} : memref<8x8x32xf32, #tpu.memory_space<vmem>>, vector<1x8x32xf32>,
    %360 = vector.broadcast %322 : vector<8x1xf32> to vector<8x32xf32>
    %361 = arith.mulf %360, %353 : vector<8x32xf32>
    %cst_95 = arith.constant 1.000000e+00 : f32
    %362 = vector.broadcast %cst_95 : f32 to vector<8x1xf32>
    %363 = arith.subf %362, %322 : vector<8x1xf32>
    %364 = vector.broadcast %363 : vector<8x1xf32> to vector<8x32xf32>
    %365 = arith.mulf %364, %310 : vector<8x32xf32>
    %366 = arith.addf %361, %365 : vector<8x32xf32>
    %367 = vector.broadcast %322 : vector<8x1xf32> to vector<8x32xf32>
    %368 = arith.mulf %367, %351 : vector<8x32xf32>
    %cst_96 = arith.constant 1.000000e+00 : f32
    %369 = vector.broadcast %cst_96 : f32 to vector<8x1xf32>
    %370 = arith.subf %369, %322 : vector<8x1xf32>
    %371 = vector.broadcast %370 : vector<8x1xf32> to vector<8x32xf32>
    %372 = arith.mulf %371, %317 : vector<8x32xf32>
    %373 = arith.addf %368, %372 : vector<8x32xf32>
    %c6_i32 = arith.constant 6 : i32
    %374 = arith.sitofp %c6_i32 : i32 to f32
    %375 = vector.broadcast %374 : f32 to vector<8x1xf32>
    %376 = arith.cmpf ogt, %0, %375 : vector<8x1xf32>
    %377 = arith.extui %376 : vector<8x1xi1> to vector<8x1xi32>
    %378 = arith.sitofp %377 : vector<8x1xi32> to vector<8x1xf32>
    %379 = arith.index_cast %c6_i32 : i32 to index
    %c0_97 = arith.constant 0 : index
    %c0_98 = arith.constant 0 : index
    %380 = vector.load %arg37[%379, %c0_97, %c0_98] : memref<8x8x512xf32, #tpu.memory_space<vmem>>, vector<1x8x512xf32>
    %381 = vector.shape_cast %380 : vector<1x8x512xf32> to vector<8x512xf32>
    %382 = arith.truncf %366 : vector<8x32xf32> to vector<8x32xbf16>
    %cst_99 = arith.constant dense<0.000000e+00> : vector<8x512xf32>
    %383 = tpu.matmul %382, %36, %cst_99 {dimension_numbers = #tpu.dot_dimension_numbers<[1], [0], [0], [1], [0, 0, 1, 1], [], []>} : vector<8x32xbf16>, vector<32x512xbf16>, vector<8x512xf32> -> vector<8x512xf32>
    %384 = arith.addf %381, %383 : vector<8x512xf32>
    %385 = vector.extract_strided_slice %384 {offsets = [0, 0], sizes = [8, 32], strides = [1, 1]} : vector<8x512xf32> to vector<8x32xf32>
    %386 = arith.negf %385 : vector<8x32xf32>
    %387 = math.exp %386 : vector<8x32xf32>
    %cst_100 = arith.constant 1.000000e+00 : f32
    %388 = vector.broadcast %cst_100 : f32 to vector<8x32xf32>
    %389 = arith.addf %388, %387 : vector<8x32xf32>
    %390 = arith.divf %388, %389 : vector<8x32xf32>
    %391 = vector.extract_strided_slice %384 {offsets = [0, 128], sizes = [8, 32], strides = [1, 1]} : vector<8x512xf32> to vector<8x32xf32>
    %392 = arith.negf %391 : vector<8x32xf32>
    %393 = math.exp %392 : vector<8x32xf32>
    %cst_101 = arith.constant 1.000000e+00 : f32
    %394 = vector.broadcast %cst_101 : f32 to vector<8x32xf32>
    %395 = arith.addf %394, %393 : vector<8x32xf32>
    %396 = arith.divf %394, %395 : vector<8x32xf32>
    %397 = vector.extract_strided_slice %384 {offsets = [0, 256], sizes = [8, 32], strides = [1, 1]} : vector<8x512xf32> to vector<8x32xf32>
    %398 = math.tanh %397 : vector<8x32xf32>
    %399 = vector.extract_strided_slice %384 {offsets = [0, 384], sizes = [8, 32], strides = [1, 1]} : vector<8x512xf32> to vector<8x32xf32>
    %400 = arith.negf %399 : vector<8x32xf32>
    %401 = math.exp %400 : vector<8x32xf32>
    %cst_102 = arith.constant 1.000000e+00 : f32
    %402 = vector.broadcast %cst_102 : f32 to vector<8x32xf32>
    %403 = arith.addf %402, %401 : vector<8x32xf32>
    %404 = arith.divf %402, %403 : vector<8x32xf32>
    %405 = arith.mulf %396, %373 : vector<8x32xf32>
    %406 = arith.mulf %390, %398 : vector<8x32xf32>
    %407 = arith.addf %405, %406 : vector<8x32xf32>
    %408 = math.tanh %407 : vector<8x32xf32>
    %409 = arith.mulf %404, %408 : vector<8x32xf32>
    %410 = vector.broadcast %378 : vector<8x1xf32> to vector<8x32xf32>
    %411 = arith.mulf %409, %410 : vector<8x32xf32>
    %412 = arith.index_cast %c6_i32 : i32 to index
    %c0_103 = arith.constant 0 : index
    %c0_104 = arith.constant 0 : index
    %413 = vector.load %arg36[%412, %c0_103, %c0_104] : memref<8x8x32xf32, #tpu.memory_space<vmem>>, vector<1x8x32xf32>
    %414 = vector.shape_cast %413 : vector<1x8x32xf32> to vector<8x32xf32>
    %415 = vector.shape_cast %411 : vector<8x32xf32> to vector<1x8x32xf32>
    tpu.vector_store %arg36[%412, %c0_103, %c0_104], %415 {strides = array<i32>} : memref<8x8x32xf32, #tpu.memory_space<vmem>>, vector<1x8x32xf32>,
    %416 = vector.broadcast %378 : vector<8x1xf32> to vector<8x32xf32>
    %417 = arith.mulf %416, %409 : vector<8x32xf32>
    %cst_105 = arith.constant 1.000000e+00 : f32
    %418 = vector.broadcast %cst_105 : f32 to vector<8x1xf32>
    %419 = arith.subf %418, %378 : vector<8x1xf32>
    %420 = vector.broadcast %419 : vector<8x1xf32> to vector<8x32xf32>
    %421 = arith.mulf %420, %366 : vector<8x32xf32>
    %422 = arith.addf %417, %421 : vector<8x32xf32>
    %423 = vector.broadcast %378 : vector<8x1xf32> to vector<8x32xf32>
    %424 = arith.mulf %423, %407 : vector<8x32xf32>
    %cst_106 = arith.constant 1.000000e+00 : f32
    %425 = vector.broadcast %cst_106 : f32 to vector<8x1xf32>
    %426 = arith.subf %425, %378 : vector<8x1xf32>
    %427 = vector.broadcast %426 : vector<8x1xf32> to vector<8x32xf32>
    %428 = arith.mulf %427, %373 : vector<8x32xf32>
    %429 = arith.addf %424, %428 : vector<8x32xf32>
    %c7_i32 = arith.constant 7 : i32
    %430 = arith.sitofp %c7_i32 : i32 to f32
    %431 = vector.broadcast %430 : f32 to vector<8x1xf32>
    %432 = arith.cmpf ogt, %0, %431 : vector<8x1xf32>
    %433 = arith.extui %432 : vector<8x1xi1> to vector<8x1xi32>
    %434 = arith.sitofp %433 : vector<8x1xi32> to vector<8x1xf32>
    %435 = arith.index_cast %c7_i32 : i32 to index
    %c0_107 = arith.constant 0 : index
    %c0_108 = arith.constant 0 : index
    %436 = vector.load %arg37[%435, %c0_107, %c0_108] : memref<8x8x512xf32, #tpu.memory_space<vmem>>, vector<1x8x512xf32>
    %437 = vector.shape_cast %436 : vector<1x8x512xf32> to vector<8x512xf32>
    %438 = arith.truncf %422 : vector<8x32xf32> to vector<8x32xbf16>
    %cst_109 = arith.constant dense<0.000000e+00> : vector<8x512xf32>
    %439 = tpu.matmul %438, %36, %cst_109 {dimension_numbers = #tpu.dot_dimension_numbers<[1], [0], [0], [1], [0, 0, 1, 1], [], []>} : vector<8x32xbf16>, vector<32x512xbf16>, vector<8x512xf32> -> vector<8x512xf32>
    %440 = arith.addf %437, %439 : vector<8x512xf32>
    %441 = vector.extract_strided_slice %440 {offsets = [0, 0], sizes = [8, 32], strides = [1, 1]} : vector<8x512xf32> to vector<8x32xf32>
    %442 = arith.negf %441 : vector<8x32xf32>
    %443 = math.exp %442 : vector<8x32xf32>
    %cst_110 = arith.constant 1.000000e+00 : f32
    %444 = vector.broadcast %cst_110 : f32 to vector<8x32xf32>
    %445 = arith.addf %444, %443 : vector<8x32xf32>
    %446 = arith.divf %444, %445 : vector<8x32xf32>
    %447 = vector.extract_strided_slice %440 {offsets = [0, 128], sizes = [8, 32], strides = [1, 1]} : vector<8x512xf32> to vector<8x32xf32>
    %448 = arith.negf %447 : vector<8x32xf32>
    %449 = math.exp %448 : vector<8x32xf32>
    %cst_111 = arith.constant 1.000000e+00 : f32
    %450 = vector.broadcast %cst_111 : f32 to vector<8x32xf32>
    %451 = arith.addf %450, %449 : vector<8x32xf32>
    %452 = arith.divf %450, %451 : vector<8x32xf32>
    %453 = vector.extract_strided_slice %440 {offsets = [0, 256], sizes = [8, 32], strides = [1, 1]} : vector<8x512xf32> to vector<8x32xf32>
    %454 = math.tanh %453 : vector<8x32xf32>
    %455 = vector.extract_strided_slice %440 {offsets = [0, 384], sizes = [8, 32], strides = [1, 1]} : vector<8x512xf32> to vector<8x32xf32>
    %456 = arith.negf %455 : vector<8x32xf32>
    %457 = math.exp %456 : vector<8x32xf32>
    %cst_112 = arith.constant 1.000000e+00 : f32
    %458 = vector.broadcast %cst_112 : f32 to vector<8x32xf32>
    %459 = arith.addf %458, %457 : vector<8x32xf32>
    %460 = arith.divf %458, %459 : vector<8x32xf32>
    %461 = arith.mulf %452, %429 : vector<8x32xf32>
    %462 = arith.mulf %446, %454 : vector<8x32xf32>
    %463 = arith.addf %461, %462 : vector<8x32xf32>
    %464 = math.tanh %463 : vector<8x32xf32>
    %465 = arith.mulf %460, %464 : vector<8x32xf32>
    %466 = vector.broadcast %434 : vector<8x1xf32> to vector<8x32xf32>
    %467 = arith.mulf %465, %466 : vector<8x32xf32>
    %468 = arith.index_cast %c7_i32 : i32 to index
    %c0_113 = arith.constant 0 : index
    %c0_114 = arith.constant 0 : index
    %469 = vector.load %arg36[%468, %c0_113, %c0_114] : memref<8x8x32xf32, #tpu.memory_space<vmem>>, vector<1x8x32xf32>
    %470 = vector.shape_cast %469 : vector<1x8x32xf32> to vector<8x32xf32>
    %471 = vector.shape_cast %467 : vector<8x32xf32> to vector<1x8x32xf32>
    tpu.vector_store %arg36[%468, %c0_113, %c0_114], %471 {strides = array<i32>} : memref<8x8x32xf32, #tpu.memory_space<vmem>>, vector<1x8x32xf32>,
    %472 = vector.broadcast %434 : vector<8x1xf32> to vector<8x32xf32>
    %473 = arith.mulf %472, %465 : vector<8x32xf32>
    %cst_115 = arith.constant 1.000000e+00 : f32
    %474 = vector.broadcast %cst_115 : f32 to vector<8x1xf32>
    %475 = arith.subf %474, %434 : vector<8x1xf32>
    %476 = vector.broadcast %475 : vector<8x1xf32> to vector<8x32xf32>
    %477 = arith.mulf %476, %422 : vector<8x32xf32>
    %478 = arith.addf %473, %477 : vector<8x32xf32>
    %479 = vector.broadcast %434 : vector<8x1xf32> to vector<8x32xf32>
    %480 = arith.mulf %479, %463 : vector<8x32xf32>
    %cst_116 = arith.constant 1.000000e+00 : f32
    %481 = vector.broadcast %cst_116 : f32 to vector<8x1xf32>
    %482 = arith.subf %481, %434 : vector<8x1xf32>
    %483 = vector.broadcast %482 : vector<8x1xf32> to vector<8x32xf32>
    %484 = arith.mulf %483, %429 : vector<8x32xf32>
    %485 = arith.addf %480, %484 : vector<8x32xf32>
    %c8_i32 = arith.constant 8 : i32
    %486 = arith.truncf %478 : vector<8x32xf32> to vector<8x32xbf16>
    %c0_117 = arith.constant 0 : index
    %c0_118 = arith.constant 0 : index
    %487 = vector.load %arg10[%c0_117, %c0_118] : memref<32x256xbf16, #tpu.memory_space<vmem>>, vector<32x256xbf16>
    %cst_119 = arith.constant dense<0.000000e+00> : vector<8x256xf32>
    %488 = tpu.matmul %486, %487, %cst_119 {dimension_numbers = #tpu.dot_dimension_numbers<[1], [0], [0], [1], [0, 0, 1, 1], [], []>} : vector<8x32xbf16>, vector<32x256xbf16>, vector<8x256xf32> -> vector<8x256xf32>
    %489 = arith.truncf %485 : vector<8x32xf32> to vector<8x32xbf16>
    %c0_120 = arith.constant 0 : index
    %c0_121 = arith.constant 0 : index
    %490 = vector.load %arg11[%c0_120, %c0_121] : memref<32x256xbf16, #tpu.memory_space<vmem>>, vector<32x256xbf16>
    %cst_122 = arith.constant dense<0.000000e+00> : vector<8x256xf32>
    %491 = tpu.matmul %489, %490, %cst_122 {dimension_numbers = #tpu.dot_dimension_numbers<[1], [0], [0], [1], [0, 0, 1, 1], [], []>} : vector<8x32xbf16>, vector<32x256xbf16>, vector<8x256xf32> -> vector<8x256xf32>
    %492 = arith.addf %488, %491 : vector<8x256xf32>
    %c0_123 = arith.constant 0 : index
    %c0_124 = arith.constant 0 : index
    %493 = vector.load %arg12[%c0_123, %c0_124] : memref<1x256xf32, #tpu.memory_space<vmem>>, vector<1x256xf32>
    %494 = vector.broadcast %493 : vector<1x256xf32> to vector<8x256xf32>
    %495 = arith.addf %492, %494 : vector<8x256xf32>
    %496 = vector.extract_strided_slice %495 {offsets = [0, 0], sizes = [8, 8], strides = [1, 1]} : vector<8x256xf32> to vector<8x8xf32>
    %497 = vector.extract_strided_slice %495 {offsets = [0, 128], sizes = [8, 8], strides = [1, 1]} : vector<8x256xf32> to vector<8x8xf32>
    %cst_125 = arith.constant 5.000000e-01 : f32
    %498 = vector.broadcast %cst_125 : f32 to vector<8x8xf32>
    %499 = arith.mulf %498, %497 : vector<8x8xf32>
    %500 = math.exp %499 : vector<8x8xf32>
    %c0_126 = arith.constant 0 : index
    %c0_127 = arith.constant 0 : index
    %501 = vector.load %arg6[%c0_126, %c0_127] : memref<8x8xf32, #tpu.memory_space<vmem>>, vector<8x8xf32>
    %502 = arith.mulf %500, %501 : vector<8x8xf32>
    %503 = arith.addf %496, %502 : vector<8x8xf32>
    %c0_128 = arith.constant 0 : index
    %c0_129 = arith.constant 0 : index
    %504 = vector.load %arg32[%c0_128, %c0_129] : memref<8x8xf32, #tpu.memory_space<vmem>>, vector<8x8xf32>
    tpu.vector_store %arg32[%c0_128, %c0_129], %496 {strides = array<i32>} : memref<8x8xf32, #tpu.memory_space<vmem>>, vector<8x8xf32>,
    %c0_130 = arith.constant 0 : index
    %c0_131 = arith.constant 0 : index
    %505 = vector.load %arg33[%c0_130, %c0_131] : memref<8x8xf32, #tpu.memory_space<vmem>>, vector<8x8xf32>
    tpu.vector_store %arg33[%c0_130, %c0_131], %497 {strides = array<i32>} : memref<8x8xf32, #tpu.memory_space<vmem>>, vector<8x8xf32>,
    %506 = arith.truncf %503 : vector<8x8xf32> to vector<8x8xbf16>
    %c0_132 = arith.constant 0 : index
    %c0_133 = arith.constant 0 : index
    %507 = vector.load %arg26[%c0_132, %c0_133] : memref<8x32xbf16, #tpu.memory_space<vmem>>, vector<8x32xbf16>
    %cst_134 = arith.constant dense<0.000000e+00> : vector<8x32xf32>
    %508 = tpu.matmul %506, %507, %cst_134 {dimension_numbers = #tpu.dot_dimension_numbers<[1], [0], [0], [1], [0, 0, 1, 1], [], []>} : vector<8x8xbf16>, vector<8x32xbf16>, vector<8x32xf32> -> vector<8x32xf32>
    %c0_135 = arith.constant 0 : index
    %c0_136 = arith.constant 0 : index
    %509 = vector.load %arg14[%c0_135, %c0_136] : memref<32x8xbf16, #tpu.memory_space<vmem>>, vector<32x8xbf16>
    %c0_137 = arith.constant 0 : index
    %c0_138 = arith.constant 0 : index
    %510 = vector.load %arg16[%c0_137, %c0_138] : memref<32x256xbf16, #tpu.memory_space<vmem>>, vector<32x256xbf16>
    %c0_139 = arith.constant 0 : index
    %c0_140 = arith.constant 0 : index
    %511 = vector.load %arg17[%c0_139, %c0_140] : memref<1x256xf32, #tpu.memory_space<vmem>>, vector<1x256xf32>
    %c0_141 = arith.constant 0 : index
    %c0_142 = arith.constant 0 : index
    %512 = vector.load %arg18[%c0_141, %c0_142] : memref<32x256xbf16, #tpu.memory_space<vmem>>, vector<32x256xbf16>
    %c0_143 = arith.constant 0 : index
    %c0_144 = arith.constant 0 : index
    %513 = vector.load %arg19[%c0_143, %c0_144] : memref<32x256xbf16, #tpu.memory_space<vmem>>, vector<32x256xbf16>
    %c0_145 = arith.constant 0 : index
    %c0_146 = arith.constant 0 : index
    %514 = vector.load %arg20[%c0_145, %c0_146] : memref<1x256xf32, #tpu.memory_space<vmem>>, vector<1x256xf32>
    %c0_147 = arith.constant 0 : index
    %c0_148 = arith.constant 0 : index
    %515 = vector.load %arg21[%c0_147, %c0_148] : memref<8x32xbf16, #tpu.memory_space<vmem>>, vector<8x32xbf16>
    %c0_149 = arith.constant 0 : index
    %c0_150 = arith.constant 0 : index
    %516 = vector.load %arg22[%c0_149, %c0_150] : memref<1x32xf32, #tpu.memory_space<vmem>>, vector<1x32xf32>
    %c0_151 = arith.constant 0 : index
    %c0_152 = arith.constant 0 : index
    %517 = vector.load %arg24[%c0_151, %c0_152] : memref<32x32xbf16, #tpu.memory_space<vmem>>, vector<32x32xbf16>
    %c0_153 = arith.constant 0 : index
    %c0_154 = arith.constant 0 : index
    %518 = vector.load %arg25[%c0_153, %c0_154] : memref<8x32xbf16, #tpu.memory_space<vmem>>, vector<8x32xbf16>
    %c0_155 = arith.constant 0 : index
    %c0_156 = arith.constant 0 : index
    %519 = vector.load %arg28[%c0_155, %c0_156] : memref<32x512xbf16, #tpu.memory_space<vmem>>, vector<32x512xbf16>
    %c0_157 = arith.constant 0 : index
    %c0_158 = arith.constant 0 : index
    %520 = vector.load %arg29[%c0_157, %c0_158] : memref<32x512xbf16, #tpu.memory_space<vmem>>, vector<32x512xbf16>
    %c0_159 = arith.constant 0 : index
    %c0_160 = arith.constant 0 : index
    %521 = vector.load %arg30[%c0_159, %c0_160] : memref<1x512xf32, #tpu.memory_space<vmem>>, vector<1x512xf32>
    %cst_161 = arith.constant 0.000000e+00 : f32
    %522 = vector.broadcast %cst_161 : f32 to vector<8x1xf32>
    %c0_i32_162 = arith.constant 0 : i32
    %523 = arith.truncf %37 : vector<8x32xf32> to vector<8x32xbf16>
    %cst_163 = arith.constant 1.000000e+00 : f32
    %524 = vector.broadcast %cst_163 : f32 to vector<8x1xf32>
    %525 = arith.addf %1, %524 : vector<8x1xf32>
    %526 = arith.sitofp %c0_i32_162 : i32 to f32
    %527 = vector.broadcast %526 : f32 to vector<8x1xf32>
    %528 = arith.cmpf ogt, %525, %527 : vector<8x1xf32>
    %529 = arith.extui %528 : vector<8x1xi1> to vector<8x1xi32>
    %530 = arith.sitofp %529 : vector<8x1xi32> to vector<8x1xf32>
    %531 = arith.index_cast %c0_i32_162 : i32 to index
    %c0_164 = arith.constant 0 : index
    %c0_165 = arith.constant 0 : index
    %532 = vector.load %arg38[%531, %c0_164, %c0_165] : memref<9x8x8xf32, #tpu.memory_space<vmem>>, vector<1x8x8xf32>
    %533 = vector.shape_cast %532 : vector<1x8x8xf32> to vector<8x8xf32>
    %cst_166 = arith.constant dense<0.000000e+00> : vector<8x8xf32>
    %534 = tpu.matmul %523, %509, %cst_166 {dimension_numbers = #tpu.dot_dimension_numbers<[1], [0], [0], [1], [0, 0, 1, 1], [], []>} : vector<8x32xbf16>, vector<32x8xbf16>, vector<8x8xf32> -> vector<8x8xf32>
    %535 = arith.addf %533, %534 : vector<8x8xf32>
    %cst_167 = arith.constant dense<0xFF800000> : vector<8xf32>
    %536 = vector.multi_reduction <maximumf>, %535, %cst_167 [1] : vector<8x8xf32> to vector<8xf32>
    %537 = vector.shape_cast %536 : vector<8xf32> to vector<8x1xf32>
    %538 = vector.broadcast %537 : vector<8x1xf32> to vector<8x8xf32>
    %539 = arith.subf %535, %538 : vector<8x8xf32>
    %540 = math.exp %539 : vector<8x8xf32>
    %cst_168 = arith.constant dense<0.000000e+00> : vector<8xf32>
    %541 = vector.multi_reduction <add>, %540, %cst_168 [1] : vector<8x8xf32> to vector<8xf32>
    %542 = vector.shape_cast %541 : vector<8xf32> to vector<8x1xf32>
    %543 = vector.broadcast %542 : vector<8x1xf32> to vector<8x8xf32>
    %544 = arith.divf %540, %543 : vector<8x8xf32>
    %545 = vector.extract_strided_slice %544 {offsets = [0, 0], sizes = [8, 1], strides = [1, 1]} : vector<8x8xf32> to vector<8x1xf32>
    %c0_169 = arith.constant 0 : index
    %c0_170 = arith.constant 0 : index
    %c0_171 = arith.constant 0 : index
    %546 = vector.load %arg36[%c0_169, %c0_170, %c0_171] : memref<8x8x32xf32, #tpu.memory_space<vmem>>, vector<1x8x32xf32>
    %547 = vector.shape_cast %546 : vector<1x8x32xf32> to vector<8x32xf32>
    %548 = vector.broadcast %545 : vector<8x1xf32> to vector<8x32xf32>
    %549 = arith.mulf %548, %547 : vector<8x32xf32>
    %550 = vector.extract_strided_slice %544 {offsets = [0, 1], sizes = [8, 1], strides = [1, 1]} : vector<8x8xf32> to vector<8x1xf32>
    %c1 = arith.constant 1 : index
    %c0_172 = arith.constant 0 : index
    %c0_173 = arith.constant 0 : index
    %551 = vector.load %arg36[%c1, %c0_172, %c0_173] : memref<8x8x32xf32, #tpu.memory_space<vmem>>, vector<1x8x32xf32>
    %552 = vector.shape_cast %551 : vector<1x8x32xf32> to vector<8x32xf32>
    %553 = vector.broadcast %550 : vector<8x1xf32> to vector<8x32xf32>
    %554 = arith.mulf %553, %552 : vector<8x32xf32>
    %555 = arith.addf %549, %554 : vector<8x32xf32>
    %556 = vector.extract_strided_slice %544 {offsets = [0, 2], sizes = [8, 1], strides = [1, 1]} : vector<8x8xf32> to vector<8x1xf32>
    %c2 = arith.constant 2 : index
    %c0_174 = arith.constant 0 : index
    %c0_175 = arith.constant 0 : index
    %557 = vector.load %arg36[%c2, %c0_174, %c0_175] : memref<8x8x32xf32, #tpu.memory_space<vmem>>, vector<1x8x32xf32>
    %558 = vector.shape_cast %557 : vector<1x8x32xf32> to vector<8x32xf32>
    %559 = vector.broadcast %556 : vector<8x1xf32> to vector<8x32xf32>
    %560 = arith.mulf %559, %558 : vector<8x32xf32>
    %561 = arith.addf %555, %560 : vector<8x32xf32>
    %562 = vector.extract_strided_slice %544 {offsets = [0, 3], sizes = [8, 1], strides = [1, 1]} : vector<8x8xf32> to vector<8x1xf32>
    %c3 = arith.constant 3 : index
    %c0_176 = arith.constant 0 : index
    %c0_177 = arith.constant 0 : index
    %563 = vector.load %arg36[%c3, %c0_176, %c0_177] : memref<8x8x32xf32, #tpu.memory_space<vmem>>, vector<1x8x32xf32>
    %564 = vector.shape_cast %563 : vector<1x8x32xf32> to vector<8x32xf32>
    %565 = vector.broadcast %562 : vector<8x1xf32> to vector<8x32xf32>
    %566 = arith.mulf %565, %564 : vector<8x32xf32>
    %567 = arith.addf %561, %566 : vector<8x32xf32>
    %568 = vector.extract_strided_slice %544 {offsets = [0, 4], sizes = [8, 1], strides = [1, 1]} : vector<8x8xf32> to vector<8x1xf32>
    %c4 = arith.constant 4 : index
    %c0_178 = arith.constant 0 : index
    %c0_179 = arith.constant 0 : index
    %569 = vector.load %arg36[%c4, %c0_178, %c0_179] : memref<8x8x32xf32, #tpu.memory_space<vmem>>, vector<1x8x32xf32>
    %570 = vector.shape_cast %569 : vector<1x8x32xf32> to vector<8x32xf32>
    %571 = vector.broadcast %568 : vector<8x1xf32> to vector<8x32xf32>
    %572 = arith.mulf %571, %570 : vector<8x32xf32>
    %573 = arith.addf %567, %572 : vector<8x32xf32>
    %574 = vector.extract_strided_slice %544 {offsets = [0, 5], sizes = [8, 1], strides = [1, 1]} : vector<8x8xf32> to vector<8x1xf32>
    %c5 = arith.constant 5 : index
    %c0_180 = arith.constant 0 : index
    %c0_181 = arith.constant 0 : index
    %575 = vector.load %arg36[%c5, %c0_180, %c0_181] : memref<8x8x32xf32, #tpu.memory_space<vmem>>, vector<1x8x32xf32>
    %576 = vector.shape_cast %575 : vector<1x8x32xf32> to vector<8x32xf32>
    %577 = vector.broadcast %574 : vector<8x1xf32> to vector<8x32xf32>
    %578 = arith.mulf %577, %576 : vector<8x32xf32>
    %579 = arith.addf %573, %578 : vector<8x32xf32>
    %580 = vector.extract_strided_slice %544 {offsets = [0, 6], sizes = [8, 1], strides = [1, 1]} : vector<8x8xf32> to vector<8x1xf32>
    %c6 = arith.constant 6 : index
    %c0_182 = arith.constant 0 : index
    %c0_183 = arith.constant 0 : index
    %581 = vector.load %arg36[%c6, %c0_182, %c0_183] : memref<8x8x32xf32, #tpu.memory_space<vmem>>, vector<1x8x32xf32>
    %582 = vector.shape_cast %581 : vector<1x8x32xf32> to vector<8x32xf32>
    %583 = vector.broadcast %580 : vector<8x1xf32> to vector<8x32xf32>
    %584 = arith.mulf %583, %582 : vector<8x32xf32>
    %585 = arith.addf %579, %584 : vector<8x32xf32>
    %586 = vector.extract_strided_slice %544 {offsets = [0, 7], sizes = [8, 1], strides = [1, 1]} : vector<8x8xf32> to vector<8x1xf32>
    %c7 = arith.constant 7 : index
    %c0_184 = arith.constant 0 : index
    %c0_185 = arith.constant 0 : index
    %587 = vector.load %arg36[%c7, %c0_184, %c0_185] : memref<8x8x32xf32, #tpu.memory_space<vmem>>, vector<1x8x32xf32>
    %588 = vector.shape_cast %587 : vector<1x8x32xf32> to vector<8x32xf32>
    %589 = vector.broadcast %586 : vector<8x1xf32> to vector<8x32xf32>
    %590 = arith.mulf %589, %588 : vector<8x32xf32>
    %591 = arith.addf %585, %590 : vector<8x32xf32>
    %cst_186 = arith.constant dense<0.000000e+00> : vector<8x256xf32>
    %592 = tpu.matmul %523, %510, %cst_186 {dimension_numbers = #tpu.dot_dimension_numbers<[1], [0], [0], [1], [0, 0, 1, 1], [], []>} : vector<8x32xbf16>, vector<32x256xbf16>, vector<8x256xf32> -> vector<8x256xf32>
    %593 = vector.broadcast %511 : vector<1x256xf32> to vector<8x256xf32>
    %594 = arith.addf %592, %593 : vector<8x256xf32>
    %595 = vector.extract_strided_slice %594 {offsets = [0, 0], sizes = [8, 8], strides = [1, 1]} : vector<8x256xf32> to vector<8x8xf32>
    %596 = vector.extract_strided_slice %594 {offsets = [0, 128], sizes = [8, 8], strides = [1, 1]} : vector<8x256xf32> to vector<8x8xf32>
    %cst_187 = arith.constant dense<0.000000e+00> : vector<8x256xf32>
    %597 = tpu.matmul %523, %512, %cst_187 {dimension_numbers = #tpu.dot_dimension_numbers<[1], [0], [0], [1], [0, 0, 1, 1], [], []>} : vector<8x32xbf16>, vector<32x256xbf16>, vector<8x256xf32> -> vector<8x256xf32>
    %598 = arith.truncf %591 : vector<8x32xf32> to vector<8x32xbf16>
    %cst_188 = arith.constant dense<0.000000e+00> : vector<8x256xf32>
    %599 = tpu.matmul %598, %513, %cst_188 {dimension_numbers = #tpu.dot_dimension_numbers<[1], [0], [0], [1], [0, 0, 1, 1], [], []>} : vector<8x32xbf16>, vector<32x256xbf16>, vector<8x256xf32> -> vector<8x256xf32>
    %600 = arith.addf %597, %599 : vector<8x256xf32>
    %601 = vector.broadcast %514 : vector<1x256xf32> to vector<8x256xf32>
    %602 = arith.addf %600, %601 : vector<8x256xf32>
    %603 = vector.extract_strided_slice %602 {offsets = [0, 0], sizes = [8, 8], strides = [1, 1]} : vector<8x256xf32> to vector<8x8xf32>
    %604 = vector.extract_strided_slice %602 {offsets = [0, 128], sizes = [8, 8], strides = [1, 1]} : vector<8x256xf32> to vector<8x8xf32>
    %605 = arith.subf %596, %604 : vector<8x8xf32>
    %606 = arith.subf %604, %596 : vector<8x8xf32>
    %607 = math.exp %606 : vector<8x8xf32>
    %608 = arith.addf %605, %607 : vector<8x8xf32>
    %609 = arith.subf %603, %595 : vector<8x8xf32>
    %610 = arith.mulf %609, %609 : vector<8x8xf32>
    %cst_189 = arith.constant 0.000000e+00 : f32
    %611 = vector.broadcast %cst_189 : f32 to vector<8x8xf32>
    %612 = arith.subf %611, %596 : vector<8x8xf32>
    %613 = math.exp %612 : vector<8x8xf32>
    %614 = arith.mulf %610, %613 : vector<8x8xf32>
    %615 = arith.addf %608, %614 : vector<8x8xf32>
    %cst_190 = arith.constant 1.000000e+00 : f32
    %616 = vector.broadcast %cst_190 : f32 to vector<8x8xf32>
    %617 = arith.subf %615, %616 : vector<8x8xf32>
    %cst_191 = arith.constant 5.000000e-01 : f32
    %618 = vector.broadcast %cst_191 : f32 to vector<8x8xf32>
    %619 = arith.mulf %618, %617 : vector<8x8xf32>
    %cst_192 = arith.constant dense<0.000000e+00> : vector<8xf32>
    %620 = vector.multi_reduction <add>, %619, %cst_192 [1] : vector<8x8xf32> to vector<8xf32>
    %621 = vector.shape_cast %620 : vector<8xf32> to vector<8x1xf32>
    %622 = arith.mulf %621, %530 : vector<8x1xf32>
    %623 = arith.addf %522, %622 : vector<8x1xf32>
    %624 = arith.truncf %595 : vector<8x8xf32> to vector<8x8xbf16>
    %cst_193 = arith.constant dense<0.000000e+00> : vector<8x32xf32>
    %625 = tpu.matmul %624, %515, %cst_193 {dimension_numbers = #tpu.dot_dimension_numbers<[1], [0], [0], [1], [0, 0, 1, 1], [], []>} : vector<8x8xbf16>, vector<8x32xbf16>, vector<8x32xf32> -> vector<8x32xf32>
    %626 = vector.broadcast %516 : vector<1x32xf32> to vector<8x32xf32>
    %627 = arith.addf %625, %626 : vector<8x32xf32>
    %628 = arith.subf %591, %627 : vector<8x32xf32>
    %629 = arith.mulf %628, %628 : vector<8x32xf32>
    %cst_194 = arith.constant dense<0.000000e+00> : vector<8xf32>
    %630 = vector.multi_reduction <add>, %629, %cst_194 [1] : vector<8x32xf32> to vector<8xf32>
    %631 = vector.shape_cast %630 : vector<8xf32> to vector<8x1xf32>
    %632 = arith.addf %522, %631 : vector<8x1xf32>
    %633 = arith.index_cast %c0_i32_162 : i32 to index
    %c0_195 = arith.constant 0 : index
    %c0_196 = arith.constant 0 : index
    %634 = vector.load %arg39[%633, %c0_195, %c0_196] : memref<9x8x32xf32, #tpu.memory_space<vmem>>, vector<1x8x32xf32>
    %635 = vector.shape_cast %634 : vector<1x8x32xf32> to vector<8x32xf32>
    %636 = arith.addf %635, %508 : vector<8x32xf32>
    %637 = arith.truncf %627 : vector<8x32xf32> to vector<8x32xbf16>
    %cst_197 = arith.constant dense<0.000000e+00> : vector<8x32xf32>
    %638 = tpu.matmul %637, %517, %cst_197 {dimension_numbers = #tpu.dot_dimension_numbers<[1], [0], [0], [1], [0, 0, 1, 1], [], []>} : vector<8x32xbf16>, vector<32x32xbf16>, vector<8x32xf32> -> vector<8x32xf32>
    %639 = arith.addf %636, %638 : vector<8x32xf32>
    %640 = arith.truncf %595 : vector<8x8xf32> to vector<8x8xbf16>
    %cst_198 = arith.constant dense<0.000000e+00> : vector<8x32xf32>
    %641 = tpu.matmul %640, %518, %cst_198 {dimension_numbers = #tpu.dot_dimension_numbers<[1], [0], [0], [1], [0, 0, 1, 1], [], []>} : vector<8x8xbf16>, vector<8x32xbf16>, vector<8x32xf32> -> vector<8x32xf32>
    %642 = arith.addf %639, %641 : vector<8x32xf32>
    %643 = arith.truncf %642 : vector<8x32xf32> to vector<8x32xbf16>
    %cst_199 = arith.constant dense<0.000000e+00> : vector<8x512xf32>
    %644 = tpu.matmul %643, %519, %cst_199 {dimension_numbers = #tpu.dot_dimension_numbers<[1], [0], [0], [1], [0, 0, 1, 1], [], []>} : vector<8x32xbf16>, vector<32x512xbf16>, vector<8x512xf32> -> vector<8x512xf32>
    %cst_200 = arith.constant dense<0.000000e+00> : vector<8x512xf32>
    %645 = tpu.matmul %523, %520, %cst_200 {dimension_numbers = #tpu.dot_dimension_numbers<[1], [0], [0], [1], [0, 0, 1, 1], [], []>} : vector<8x32xbf16>, vector<32x512xbf16>, vector<8x512xf32> -> vector<8x512xf32>
    %646 = arith.addf %644, %645 : vector<8x512xf32>
    %647 = vector.broadcast %521 : vector<1x512xf32> to vector<8x512xf32>
    %648 = arith.addf %646, %647 : vector<8x512xf32>
    %649 = vector.extract_strided_slice %648 {offsets = [0, 0], sizes = [8, 32], strides = [1, 1]} : vector<8x512xf32> to vector<8x32xf32>
    %650 = arith.negf %649 : vector<8x32xf32>
    %651 = math.exp %650 : vector<8x32xf32>
    %cst_201 = arith.constant 1.000000e+00 : f32
    %652 = vector.broadcast %cst_201 : f32 to vector<8x32xf32>
    %653 = arith.addf %652, %651 : vector<8x32xf32>
    %654 = arith.divf %652, %653 : vector<8x32xf32>
    %655 = vector.extract_strided_slice %648 {offsets = [0, 128], sizes = [8, 32], strides = [1, 1]} : vector<8x512xf32> to vector<8x32xf32>
    %656 = arith.negf %655 : vector<8x32xf32>
    %657 = math.exp %656 : vector<8x32xf32>
    %cst_202 = arith.constant 1.000000e+00 : f32
    %658 = vector.broadcast %cst_202 : f32 to vector<8x32xf32>
    %659 = arith.addf %658, %657 : vector<8x32xf32>
    %660 = arith.divf %658, %659 : vector<8x32xf32>
    %661 = vector.extract_strided_slice %648 {offsets = [0, 256], sizes = [8, 32], strides = [1, 1]} : vector<8x512xf32> to vector<8x32xf32>
    %662 = math.tanh %661 : vector<8x32xf32>
    %663 = vector.extract_strided_slice %648 {offsets = [0, 384], sizes = [8, 32], strides = [1, 1]} : vector<8x512xf32> to vector<8x32xf32>
    %664 = arith.negf %663 : vector<8x32xf32>
    %665 = math.exp %664 : vector<8x32xf32>
    %cst_203 = arith.constant 1.000000e+00 : f32
    %666 = vector.broadcast %cst_203 : f32 to vector<8x32xf32>
    %667 = arith.addf %666, %665 : vector<8x32xf32>
    %668 = arith.divf %666, %667 : vector<8x32xf32>
    %669 = arith.mulf %660, %37 : vector<8x32xf32>
    %670 = arith.mulf %654, %662 : vector<8x32xf32>
    %671 = arith.addf %669, %670 : vector<8x32xf32>
    %672 = math.tanh %671 : vector<8x32xf32>
    %673 = arith.mulf %668, %672 : vector<8x32xf32>
    %674 = arith.truncf %673 : vector<8x32xf32> to vector<8x32xbf16>
    %675 = arith.index_cast %c0_i32_162 : i32 to index
    %c0_204 = arith.constant 0 : index
    %c0_205 = arith.constant 0 : index
    %676 = vector.load %arg31[%675, %c0_204, %c0_205] : memref<9x8x32xbf16, #tpu.memory_space<vmem>>, vector<1x8x32xbf16>
    %677 = vector.shape_cast %676 : vector<1x8x32xbf16> to vector<8x32xbf16>
    %678 = vector.shape_cast %674 : vector<8x32xbf16> to vector<1x8x32xbf16>
    tpu.vector_store %arg31[%675, %c0_204, %c0_205], %678 {strides = array<i32>} : memref<9x8x32xbf16, #tpu.memory_space<vmem>>, vector<1x8x32xbf16>,
    %c1_i32_206 = arith.constant 1 : i32
    %679 = arith.truncf %673 : vector<8x32xf32> to vector<8x32xbf16>
    %cst_207 = arith.constant 1.000000e+00 : f32
    %680 = vector.broadcast %cst_207 : f32 to vector<8x1xf32>
    %681 = arith.addf %1, %680 : vector<8x1xf32>
    %682 = arith.sitofp %c1_i32_206 : i32 to f32
    %683 = vector.broadcast %682 : f32 to vector<8x1xf32>
    %684 = arith.cmpf ogt, %681, %683 : vector<8x1xf32>
    %685 = arith.extui %684 : vector<8x1xi1> to vector<8x1xi32>
    %686 = arith.sitofp %685 : vector<8x1xi32> to vector<8x1xf32>
    %687 = arith.index_cast %c1_i32_206 : i32 to index
    %c0_208 = arith.constant 0 : index
    %c0_209 = arith.constant 0 : index
    %688 = vector.load %arg38[%687, %c0_208, %c0_209] : memref<9x8x8xf32, #tpu.memory_space<vmem>>, vector<1x8x8xf32>
    %689 = vector.shape_cast %688 : vector<1x8x8xf32> to vector<8x8xf32>
    %cst_210 = arith.constant dense<0.000000e+00> : vector<8x8xf32>
    %690 = tpu.matmul %679, %509, %cst_210 {dimension_numbers = #tpu.dot_dimension_numbers<[1], [0], [0], [1], [0, 0, 1, 1], [], []>} : vector<8x32xbf16>, vector<32x8xbf16>, vector<8x8xf32> -> vector<8x8xf32>
    %691 = arith.addf %689, %690 : vector<8x8xf32>
    %cst_211 = arith.constant dense<0xFF800000> : vector<8xf32>
    %692 = vector.multi_reduction <maximumf>, %691, %cst_211 [1] : vector<8x8xf32> to vector<8xf32>
    %693 = vector.shape_cast %692 : vector<8xf32> to vector<8x1xf32>
    %694 = vector.broadcast %693 : vector<8x1xf32> to vector<8x8xf32>
    %695 = arith.subf %691, %694 : vector<8x8xf32>
    %696 = math.exp %695 : vector<8x8xf32>
    %cst_212 = arith.constant dense<0.000000e+00> : vector<8xf32>
    %697 = vector.multi_reduction <add>, %696, %cst_212 [1] : vector<8x8xf32> to vector<8xf32>
    %698 = vector.shape_cast %697 : vector<8xf32> to vector<8x1xf32>
    %699 = vector.broadcast %698 : vector<8x1xf32> to vector<8x8xf32>
    %700 = arith.divf %696, %699 : vector<8x8xf32>
    %701 = vector.extract_strided_slice %700 {offsets = [0, 0], sizes = [8, 1], strides = [1, 1]} : vector<8x8xf32> to vector<8x1xf32>
    %c0_213 = arith.constant 0 : index
    %c0_214 = arith.constant 0 : index
    %c0_215 = arith.constant 0 : index
    %702 = vector.load %arg36[%c0_213, %c0_214, %c0_215] : memref<8x8x32xf32, #tpu.memory_space<vmem>>, vector<1x8x32xf32>
    %703 = vector.shape_cast %702 : vector<1x8x32xf32> to vector<8x32xf32>
    %704 = vector.broadcast %701 : vector<8x1xf32> to vector<8x32xf32>
    %705 = arith.mulf %704, %703 : vector<8x32xf32>
    %706 = vector.extract_strided_slice %700 {offsets = [0, 1], sizes = [8, 1], strides = [1, 1]} : vector<8x8xf32> to vector<8x1xf32>
    %c1_216 = arith.constant 1 : index
    %c0_217 = arith.constant 0 : index
    %c0_218 = arith.constant 0 : index
    %707 = vector.load %arg36[%c1_216, %c0_217, %c0_218] : memref<8x8x32xf32, #tpu.memory_space<vmem>>, vector<1x8x32xf32>
    %708 = vector.shape_cast %707 : vector<1x8x32xf32> to vector<8x32xf32>
    %709 = vector.broadcast %706 : vector<8x1xf32> to vector<8x32xf32>
    %710 = arith.mulf %709, %708 : vector<8x32xf32>
    %711 = arith.addf %705, %710 : vector<8x32xf32>
    %712 = vector.extract_strided_slice %700 {offsets = [0, 2], sizes = [8, 1], strides = [1, 1]} : vector<8x8xf32> to vector<8x1xf32>
    %c2_219 = arith.constant 2 : index
    %c0_220 = arith.constant 0 : index
    %c0_221 = arith.constant 0 : index
    %713 = vector.load %arg36[%c2_219, %c0_220, %c0_221] : memref<8x8x32xf32, #tpu.memory_space<vmem>>, vector<1x8x32xf32>
    %714 = vector.shape_cast %713 : vector<1x8x32xf32> to vector<8x32xf32>
    %715 = vector.broadcast %712 : vector<8x1xf32> to vector<8x32xf32>
    %716 = arith.mulf %715, %714 : vector<8x32xf32>
    %717 = arith.addf %711, %716 : vector<8x32xf32>
    %718 = vector.extract_strided_slice %700 {offsets = [0, 3], sizes = [8, 1], strides = [1, 1]} : vector<8x8xf32> to vector<8x1xf32>
    %c3_222 = arith.constant 3 : index
    %c0_223 = arith.constant 0 : index
    %c0_224 = arith.constant 0 : index
    %719 = vector.load %arg36[%c3_222, %c0_223, %c0_224] : memref<8x8x32xf32, #tpu.memory_space<vmem>>, vector<1x8x32xf32>
    %720 = vector.shape_cast %719 : vector<1x8x32xf32> to vector<8x32xf32>
    %721 = vector.broadcast %718 : vector<8x1xf32> to vector<8x32xf32>
    %722 = arith.mulf %721, %720 : vector<8x32xf32>
    %723 = arith.addf %717, %722 : vector<8x32xf32>
    %724 = vector.extract_strided_slice %700 {offsets = [0, 4], sizes = [8, 1], strides = [1, 1]} : vector<8x8xf32> to vector<8x1xf32>
    %c4_225 = arith.constant 4 : index
    %c0_226 = arith.constant 0 : index
    %c0_227 = arith.constant 0 : index
    %725 = vector.load %arg36[%c4_225, %c0_226, %c0_227] : memref<8x8x32xf32, #tpu.memory_space<vmem>>, vector<1x8x32xf32>
    %726 = vector.shape_cast %725 : vector<1x8x32xf32> to vector<8x32xf32>
    %727 = vector.broadcast %724 : vector<8x1xf32> to vector<8x32xf32>
    %728 = arith.mulf %727, %726 : vector<8x32xf32>
    %729 = arith.addf %723, %728 : vector<8x32xf32>
    %730 = vector.extract_strided_slice %700 {offsets = [0, 5], sizes = [8, 1], strides = [1, 1]} : vector<8x8xf32> to vector<8x1xf32>
    %c5_228 = arith.constant 5 : index
    %c0_229 = arith.constant 0 : index
    %c0_230 = arith.constant 0 : index
    %731 = vector.load %arg36[%c5_228, %c0_229, %c0_230] : memref<8x8x32xf32, #tpu.memory_space<vmem>>, vector<1x8x32xf32>
    %732 = vector.shape_cast %731 : vector<1x8x32xf32> to vector<8x32xf32>
    %733 = vector.broadcast %730 : vector<8x1xf32> to vector<8x32xf32>
    %734 = arith.mulf %733, %732 : vector<8x32xf32>
    %735 = arith.addf %729, %734 : vector<8x32xf32>
    %736 = vector.extract_strided_slice %700 {offsets = [0, 6], sizes = [8, 1], strides = [1, 1]} : vector<8x8xf32> to vector<8x1xf32>
    %c6_231 = arith.constant 6 : index
    %c0_232 = arith.constant 0 : index
    %c0_233 = arith.constant 0 : index
    %737 = vector.load %arg36[%c6_231, %c0_232, %c0_233] : memref<8x8x32xf32, #tpu.memory_space<vmem>>, vector<1x8x32xf32>
    %738 = vector.shape_cast %737 : vector<1x8x32xf32> to vector<8x32xf32>
    %739 = vector.broadcast %736 : vector<8x1xf32> to vector<8x32xf32>
    %740 = arith.mulf %739, %738 : vector<8x32xf32>
    %741 = arith.addf %735, %740 : vector<8x32xf32>
    %742 = vector.extract_strided_slice %700 {offsets = [0, 7], sizes = [8, 1], strides = [1, 1]} : vector<8x8xf32> to vector<8x1xf32>
    %c7_234 = arith.constant 7 : index
    %c0_235 = arith.constant 0 : index
    %c0_236 = arith.constant 0 : index
    %743 = vector.load %arg36[%c7_234, %c0_235, %c0_236] : memref<8x8x32xf32, #tpu.memory_space<vmem>>, vector<1x8x32xf32>
    %744 = vector.shape_cast %743 : vector<1x8x32xf32> to vector<8x32xf32>
    %745 = vector.broadcast %742 : vector<8x1xf32> to vector<8x32xf32>
    %746 = arith.mulf %745, %744 : vector<8x32xf32>
    %747 = arith.addf %741, %746 : vector<8x32xf32>
    %cst_237 = arith.constant dense<0.000000e+00> : vector<8x256xf32>
    %748 = tpu.matmul %679, %510, %cst_237 {dimension_numbers = #tpu.dot_dimension_numbers<[1], [0], [0], [1], [0, 0, 1, 1], [], []>} : vector<8x32xbf16>, vector<32x256xbf16>, vector<8x256xf32> -> vector<8x256xf32>
    %749 = vector.broadcast %511 : vector<1x256xf32> to vector<8x256xf32>
    %750 = arith.addf %748, %749 : vector<8x256xf32>
    %751 = vector.extract_strided_slice %750 {offsets = [0, 0], sizes = [8, 8], strides = [1, 1]} : vector<8x256xf32> to vector<8x8xf32>
    %752 = vector.extract_strided_slice %750 {offsets = [0, 128], sizes = [8, 8], strides = [1, 1]} : vector<8x256xf32> to vector<8x8xf32>
    %cst_238 = arith.constant dense<0.000000e+00> : vector<8x256xf32>
    %753 = tpu.matmul %679, %512, %cst_238 {dimension_numbers = #tpu.dot_dimension_numbers<[1], [0], [0], [1], [0, 0, 1, 1], [], []>} : vector<8x32xbf16>, vector<32x256xbf16>, vector<8x256xf32> -> vector<8x256xf32>
    %754 = arith.truncf %747 : vector<8x32xf32> to vector<8x32xbf16>
    %cst_239 = arith.constant dense<0.000000e+00> : vector<8x256xf32>
    %755 = tpu.matmul %754, %513, %cst_239 {dimension_numbers = #tpu.dot_dimension_numbers<[1], [0], [0], [1], [0, 0, 1, 1], [], []>} : vector<8x32xbf16>, vector<32x256xbf16>, vector<8x256xf32> -> vector<8x256xf32>
    %756 = arith.addf %753, %755 : vector<8x256xf32>
    %757 = vector.broadcast %514 : vector<1x256xf32> to vector<8x256xf32>
    %758 = arith.addf %756, %757 : vector<8x256xf32>
    %759 = vector.extract_strided_slice %758 {offsets = [0, 0], sizes = [8, 8], strides = [1, 1]} : vector<8x256xf32> to vector<8x8xf32>
    %760 = vector.extract_strided_slice %758 {offsets = [0, 128], sizes = [8, 8], strides = [1, 1]} : vector<8x256xf32> to vector<8x8xf32>
    %761 = arith.subf %752, %760 : vector<8x8xf32>
    %762 = arith.subf %760, %752 : vector<8x8xf32>
    %763 = math.exp %762 : vector<8x8xf32>
    %764 = arith.addf %761, %763 : vector<8x8xf32>
    %765 = arith.subf %759, %751 : vector<8x8xf32>
    %766 = arith.mulf %765, %765 : vector<8x8xf32>
    %cst_240 = arith.constant 0.000000e+00 : f32
    %767 = vector.broadcast %cst_240 : f32 to vector<8x8xf32>
    %768 = arith.subf %767, %752 : vector<8x8xf32>
    %769 = math.exp %768 : vector<8x8xf32>
    %770 = arith.mulf %766, %769 : vector<8x8xf32>
    %771 = arith.addf %764, %770 : vector<8x8xf32>
    %cst_241 = arith.constant 1.000000e+00 : f32
    %772 = vector.broadcast %cst_241 : f32 to vector<8x8xf32>
    %773 = arith.subf %771, %772 : vector<8x8xf32>
    %cst_242 = arith.constant 5.000000e-01 : f32
    %774 = vector.broadcast %cst_242 : f32 to vector<8x8xf32>
    %775 = arith.mulf %774, %773 : vector<8x8xf32>
    %cst_243 = arith.constant dense<0.000000e+00> : vector<8xf32>
    %776 = vector.multi_reduction <add>, %775, %cst_243 [1] : vector<8x8xf32> to vector<8xf32>
    %777 = vector.shape_cast %776 : vector<8xf32> to vector<8x1xf32>
    %778 = arith.mulf %777, %686 : vector<8x1xf32>
    %779 = arith.addf %623, %778 : vector<8x1xf32>
    %780 = arith.truncf %751 : vector<8x8xf32> to vector<8x8xbf16>
    %cst_244 = arith.constant dense<0.000000e+00> : vector<8x32xf32>
    %781 = tpu.matmul %780, %515, %cst_244 {dimension_numbers = #tpu.dot_dimension_numbers<[1], [0], [0], [1], [0, 0, 1, 1], [], []>} : vector<8x8xbf16>, vector<8x32xbf16>, vector<8x32xf32> -> vector<8x32xf32>
    %782 = vector.broadcast %516 : vector<1x32xf32> to vector<8x32xf32>
    %783 = arith.addf %781, %782 : vector<8x32xf32>
    %784 = arith.subf %747, %783 : vector<8x32xf32>
    %785 = arith.mulf %784, %784 : vector<8x32xf32>
    %cst_245 = arith.constant dense<0.000000e+00> : vector<8xf32>
    %786 = vector.multi_reduction <add>, %785, %cst_245 [1] : vector<8x32xf32> to vector<8xf32>
    %787 = vector.shape_cast %786 : vector<8xf32> to vector<8x1xf32>
    %788 = arith.addf %632, %787 : vector<8x1xf32>
    %789 = arith.index_cast %c1_i32_206 : i32 to index
    %c0_246 = arith.constant 0 : index
    %c0_247 = arith.constant 0 : index
    %790 = vector.load %arg39[%789, %c0_246, %c0_247] : memref<9x8x32xf32, #tpu.memory_space<vmem>>, vector<1x8x32xf32>
    %791 = vector.shape_cast %790 : vector<1x8x32xf32> to vector<8x32xf32>
    %792 = arith.addf %791, %508 : vector<8x32xf32>
    %793 = arith.truncf %783 : vector<8x32xf32> to vector<8x32xbf16>
    %cst_248 = arith.constant dense<0.000000e+00> : vector<8x32xf32>
    %794 = tpu.matmul %793, %517, %cst_248 {dimension_numbers = #tpu.dot_dimension_numbers<[1], [0], [0], [1], [0, 0, 1, 1], [], []>} : vector<8x32xbf16>, vector<32x32xbf16>, vector<8x32xf32> -> vector<8x32xf32>
    %795 = arith.addf %792, %794 : vector<8x32xf32>
    %796 = arith.truncf %751 : vector<8x8xf32> to vector<8x8xbf16>
    %cst_249 = arith.constant dense<0.000000e+00> : vector<8x32xf32>
    %797 = tpu.matmul %796, %518, %cst_249 {dimension_numbers = #tpu.dot_dimension_numbers<[1], [0], [0], [1], [0, 0, 1, 1], [], []>} : vector<8x8xbf16>, vector<8x32xbf16>, vector<8x32xf32> -> vector<8x32xf32>
    %798 = arith.addf %795, %797 : vector<8x32xf32>
    %799 = arith.truncf %798 : vector<8x32xf32> to vector<8x32xbf16>
    %cst_250 = arith.constant dense<0.000000e+00> : vector<8x512xf32>
    %800 = tpu.matmul %799, %519, %cst_250 {dimension_numbers = #tpu.dot_dimension_numbers<[1], [0], [0], [1], [0, 0, 1, 1], [], []>} : vector<8x32xbf16>, vector<32x512xbf16>, vector<8x512xf32> -> vector<8x512xf32>
    %cst_251 = arith.constant dense<0.000000e+00> : vector<8x512xf32>
    %801 = tpu.matmul %679, %520, %cst_251 {dimension_numbers = #tpu.dot_dimension_numbers<[1], [0], [0], [1], [0, 0, 1, 1], [], []>} : vector<8x32xbf16>, vector<32x512xbf16>, vector<8x512xf32> -> vector<8x512xf32>
    %802 = arith.addf %800, %801 : vector<8x512xf32>
    %803 = vector.broadcast %521 : vector<1x512xf32> to vector<8x512xf32>
    %804 = arith.addf %802, %803 : vector<8x512xf32>
    %805 = vector.extract_strided_slice %804 {offsets = [0, 0], sizes = [8, 32], strides = [1, 1]} : vector<8x512xf32> to vector<8x32xf32>
    %806 = arith.negf %805 : vector<8x32xf32>
    %807 = math.exp %806 : vector<8x32xf32>
    %cst_252 = arith.constant 1.000000e+00 : f32
    %808 = vector.broadcast %cst_252 : f32 to vector<8x32xf32>
    %809 = arith.addf %808, %807 : vector<8x32xf32>
    %810 = arith.divf %808, %809 : vector<8x32xf32>
    %811 = vector.extract_strided_slice %804 {offsets = [0, 128], sizes = [8, 32], strides = [1, 1]} : vector<8x512xf32> to vector<8x32xf32>
    %812 = arith.negf %811 : vector<8x32xf32>
    %813 = math.exp %812 : vector<8x32xf32>
    %cst_253 = arith.constant 1.000000e+00 : f32
    %814 = vector.broadcast %cst_253 : f32 to vector<8x32xf32>
    %815 = arith.addf %814, %813 : vector<8x32xf32>
    %816 = arith.divf %814, %815 : vector<8x32xf32>
    %817 = vector.extract_strided_slice %804 {offsets = [0, 256], sizes = [8, 32], strides = [1, 1]} : vector<8x512xf32> to vector<8x32xf32>
    %818 = math.tanh %817 : vector<8x32xf32>
    %819 = vector.extract_strided_slice %804 {offsets = [0, 384], sizes = [8, 32], strides = [1, 1]} : vector<8x512xf32> to vector<8x32xf32>
    %820 = arith.negf %819 : vector<8x32xf32>
    %821 = math.exp %820 : vector<8x32xf32>
    %cst_254 = arith.constant 1.000000e+00 : f32
    %822 = vector.broadcast %cst_254 : f32 to vector<8x32xf32>
    %823 = arith.addf %822, %821 : vector<8x32xf32>
    %824 = arith.divf %822, %823 : vector<8x32xf32>
    %825 = arith.mulf %816, %671 : vector<8x32xf32>
    %826 = arith.mulf %810, %818 : vector<8x32xf32>
    %827 = arith.addf %825, %826 : vector<8x32xf32>
    %828 = math.tanh %827 : vector<8x32xf32>
    %829 = arith.mulf %824, %828 : vector<8x32xf32>
    %830 = arith.truncf %829 : vector<8x32xf32> to vector<8x32xbf16>
    %831 = arith.index_cast %c1_i32_206 : i32 to index
    %c0_255 = arith.constant 0 : index
    %c0_256 = arith.constant 0 : index
    %832 = vector.load %arg31[%831, %c0_255, %c0_256] : memref<9x8x32xbf16, #tpu.memory_space<vmem>>, vector<1x8x32xbf16>
    %833 = vector.shape_cast %832 : vector<1x8x32xbf16> to vector<8x32xbf16>
    %834 = vector.shape_cast %830 : vector<8x32xbf16> to vector<1x8x32xbf16>
    tpu.vector_store %arg31[%831, %c0_255, %c0_256], %834 {strides = array<i32>} : memref<9x8x32xbf16, #tpu.memory_space<vmem>>, vector<1x8x32xbf16>,
    %c2_i32_257 = arith.constant 2 : i32
    %835 = arith.truncf %829 : vector<8x32xf32> to vector<8x32xbf16>
    %cst_258 = arith.constant 1.000000e+00 : f32
    %836 = vector.broadcast %cst_258 : f32 to vector<8x1xf32>
    %837 = arith.addf %1, %836 : vector<8x1xf32>
    %838 = arith.sitofp %c2_i32_257 : i32 to f32
    %839 = vector.broadcast %838 : f32 to vector<8x1xf32>
    %840 = arith.cmpf ogt, %837, %839 : vector<8x1xf32>
    %841 = arith.extui %840 : vector<8x1xi1> to vector<8x1xi32>
    %842 = arith.sitofp %841 : vector<8x1xi32> to vector<8x1xf32>
    %843 = arith.index_cast %c2_i32_257 : i32 to index
    %c0_259 = arith.constant 0 : index
    %c0_260 = arith.constant 0 : index
    %844 = vector.load %arg38[%843, %c0_259, %c0_260] : memref<9x8x8xf32, #tpu.memory_space<vmem>>, vector<1x8x8xf32>
    %845 = vector.shape_cast %844 : vector<1x8x8xf32> to vector<8x8xf32>
    %cst_261 = arith.constant dense<0.000000e+00> : vector<8x8xf32>
    %846 = tpu.matmul %835, %509, %cst_261 {dimension_numbers = #tpu.dot_dimension_numbers<[1], [0], [0], [1], [0, 0, 1, 1], [], []>} : vector<8x32xbf16>, vector<32x8xbf16>, vector<8x8xf32> -> vector<8x8xf32>
    %847 = arith.addf %845, %846 : vector<8x8xf32>
    %cst_262 = arith.constant dense<0xFF800000> : vector<8xf32>
    %848 = vector.multi_reduction <maximumf>, %847, %cst_262 [1] : vector<8x8xf32> to vector<8xf32>
    %849 = vector.shape_cast %848 : vector<8xf32> to vector<8x1xf32>
    %850 = vector.broadcast %849 : vector<8x1xf32> to vector<8x8xf32>
    %851 = arith.subf %847, %850 : vector<8x8xf32>
    %852 = math.exp %851 : vector<8x8xf32>
    %cst_263 = arith.constant dense<0.000000e+00> : vector<8xf32>
    %853 = vector.multi_reduction <add>, %852, %cst_263 [1] : vector<8x8xf32> to vector<8xf32>
    %854 = vector.shape_cast %853 : vector<8xf32> to vector<8x1xf32>
    %855 = vector.broadcast %854 : vector<8x1xf32> to vector<8x8xf32>
    %856 = arith.divf %852, %855 : vector<8x8xf32>
    %857 = vector.extract_strided_slice %856 {offsets = [0, 0], sizes = [8, 1], strides = [1, 1]} : vector<8x8xf32> to vector<8x1xf32>
    %c0_264 = arith.constant 0 : index
    %c0_265 = arith.constant 0 : index
    %c0_266 = arith.constant 0 : index
    %858 = vector.load %arg36[%c0_264, %c0_265, %c0_266] : memref<8x8x32xf32, #tpu.memory_space<vmem>>, vector<1x8x32xf32>
    %859 = vector.shape_cast %858 : vector<1x8x32xf32> to vector<8x32xf32>
    %860 = vector.broadcast %857 : vector<8x1xf32> to vector<8x32xf32>
    %861 = arith.mulf %860, %859 : vector<8x32xf32>
    %862 = vector.extract_strided_slice %856 {offsets = [0, 1], sizes = [8, 1], strides = [1, 1]} : vector<8x8xf32> to vector<8x1xf32>
    %c1_267 = arith.constant 1 : index
    %c0_268 = arith.constant 0 : index
    %c0_269 = arith.constant 0 : index
    %863 = vector.load %arg36[%c1_267, %c0_268, %c0_269] : memref<8x8x32xf32, #tpu.memory_space<vmem>>, vector<1x8x32xf32>
    %864 = vector.shape_cast %863 : vector<1x8x32xf32> to vector<8x32xf32>
    %865 = vector.broadcast %862 : vector<8x1xf32> to vector<8x32xf32>
    %866 = arith.mulf %865, %864 : vector<8x32xf32>
    %867 = arith.addf %861, %866 : vector<8x32xf32>
    %868 = vector.extract_strided_slice %856 {offsets = [0, 2], sizes = [8, 1], strides = [1, 1]} : vector<8x8xf32> to vector<8x1xf32>
    %c2_270 = arith.constant 2 : index
    %c0_271 = arith.constant 0 : index
    %c0_272 = arith.constant 0 : index
    %869 = vector.load %arg36[%c2_270, %c0_271, %c0_272] : memref<8x8x32xf32, #tpu.memory_space<vmem>>, vector<1x8x32xf32>
    %870 = vector.shape_cast %869 : vector<1x8x32xf32> to vector<8x32xf32>
    %871 = vector.broadcast %868 : vector<8x1xf32> to vector<8x32xf32>
    %872 = arith.mulf %871, %870 : vector<8x32xf32>
    %873 = arith.addf %867, %872 : vector<8x32xf32>
    %874 = vector.extract_strided_slice %856 {offsets = [0, 3], sizes = [8, 1], strides = [1, 1]} : vector<8x8xf32> to vector<8x1xf32>
    %c3_273 = arith.constant 3 : index
    %c0_274 = arith.constant 0 : index
    %c0_275 = arith.constant 0 : index
    %875 = vector.load %arg36[%c3_273, %c0_274, %c0_275] : memref<8x8x32xf32, #tpu.memory_space<vmem>>, vector<1x8x32xf32>
    %876 = vector.shape_cast %875 : vector<1x8x32xf32> to vector<8x32xf32>
    %877 = vector.broadcast %874 : vector<8x1xf32> to vector<8x32xf32>
    %878 = arith.mulf %877, %876 : vector<8x32xf32>
    %879 = arith.addf %873, %878 : vector<8x32xf32>
    %880 = vector.extract_strided_slice %856 {offsets = [0, 4], sizes = [8, 1], strides = [1, 1]} : vector<8x8xf32> to vector<8x1xf32>
    %c4_276 = arith.constant 4 : index
    %c0_277 = arith.constant 0 : index
    %c0_278 = arith.constant 0 : index
    %881 = vector.load %arg36[%c4_276, %c0_277, %c0_278] : memref<8x8x32xf32, #tpu.memory_space<vmem>>, vector<1x8x32xf32>
    %882 = vector.shape_cast %881 : vector<1x8x32xf32> to vector<8x32xf32>
    %883 = vector.broadcast %880 : vector<8x1xf32> to vector<8x32xf32>
    %884 = arith.mulf %883, %882 : vector<8x32xf32>
    %885 = arith.addf %879, %884 : vector<8x32xf32>
    %886 = vector.extract_strided_slice %856 {offsets = [0, 5], sizes = [8, 1], strides = [1, 1]} : vector<8x8xf32> to vector<8x1xf32>
    %c5_279 = arith.constant 5 : index
    %c0_280 = arith.constant 0 : index
    %c0_281 = arith.constant 0 : index
    %887 = vector.load %arg36[%c5_279, %c0_280, %c0_281] : memref<8x8x32xf32, #tpu.memory_space<vmem>>, vector<1x8x32xf32>
    %888 = vector.shape_cast %887 : vector<1x8x32xf32> to vector<8x32xf32>
    %889 = vector.broadcast %886 : vector<8x1xf32> to vector<8x32xf32>
    %890 = arith.mulf %889, %888 : vector<8x32xf32>
    %891 = arith.addf %885, %890 : vector<8x32xf32>
    %892 = vector.extract_strided_slice %856 {offsets = [0, 6], sizes = [8, 1], strides = [1, 1]} : vector<8x8xf32> to vector<8x1xf32>
    %c6_282 = arith.constant 6 : index
    %c0_283 = arith.constant 0 : index
    %c0_284 = arith.constant 0 : index
    %893 = vector.load %arg36[%c6_282, %c0_283, %c0_284] : memref<8x8x32xf32, #tpu.memory_space<vmem>>, vector<1x8x32xf32>
    %894 = vector.shape_cast %893 : vector<1x8x32xf32> to vector<8x32xf32>
    %895 = vector.broadcast %892 : vector<8x1xf32> to vector<8x32xf32>
    %896 = arith.mulf %895, %894 : vector<8x32xf32>
    %897 = arith.addf %891, %896 : vector<8x32xf32>
    %898 = vector.extract_strided_slice %856 {offsets = [0, 7], sizes = [8, 1], strides = [1, 1]} : vector<8x8xf32> to vector<8x1xf32>
    %c7_285 = arith.constant 7 : index
    %c0_286 = arith.constant 0 : index
    %c0_287 = arith.constant 0 : index
    %899 = vector.load %arg36[%c7_285, %c0_286, %c0_287] : memref<8x8x32xf32, #tpu.memory_space<vmem>>, vector<1x8x32xf32>
    %900 = vector.shape_cast %899 : vector<1x8x32xf32> to vector<8x32xf32>
    %901 = vector.broadcast %898 : vector<8x1xf32> to vector<8x32xf32>
    %902 = arith.mulf %901, %900 : vector<8x32xf32>
    %903 = arith.addf %897, %902 : vector<8x32xf32>
    %cst_288 = arith.constant dense<0.000000e+00> : vector<8x256xf32>
    %904 = tpu.matmul %835, %510, %cst_288 {dimension_numbers = #tpu.dot_dimension_numbers<[1], [0], [0], [1], [0, 0, 1, 1], [], []>} : vector<8x32xbf16>, vector<32x256xbf16>, vector<8x256xf32> -> vector<8x256xf32>
    %905 = vector.broadcast %511 : vector<1x256xf32> to vector<8x256xf32>
    %906 = arith.addf %904, %905 : vector<8x256xf32>
    %907 = vector.extract_strided_slice %906 {offsets = [0, 0], sizes = [8, 8], strides = [1, 1]} : vector<8x256xf32> to vector<8x8xf32>
    %908 = vector.extract_strided_slice %906 {offsets = [0, 128], sizes = [8, 8], strides = [1, 1]} : vector<8x256xf32> to vector<8x8xf32>
    %cst_289 = arith.constant dense<0.000000e+00> : vector<8x256xf32>
    %909 = tpu.matmul %835, %512, %cst_289 {dimension_numbers = #tpu.dot_dimension_numbers<[1], [0], [0], [1], [0, 0, 1, 1], [], []>} : vector<8x32xbf16>, vector<32x256xbf16>, vector<8x256xf32> -> vector<8x256xf32>
    %910 = arith.truncf %903 : vector<8x32xf32> to vector<8x32xbf16>
    %cst_290 = arith.constant dense<0.000000e+00> : vector<8x256xf32>
    %911 = tpu.matmul %910, %513, %cst_290 {dimension_numbers = #tpu.dot_dimension_numbers<[1], [0], [0], [1], [0, 0, 1, 1], [], []>} : vector<8x32xbf16>, vector<32x256xbf16>, vector<8x256xf32> -> vector<8x256xf32>
    %912 = arith.addf %909, %911 : vector<8x256xf32>
    %913 = vector.broadcast %514 : vector<1x256xf32> to vector<8x256xf32>
    %914 = arith.addf %912, %913 : vector<8x256xf32>
    %915 = vector.extract_strided_slice %914 {offsets = [0, 0], sizes = [8, 8], strides = [1, 1]} : vector<8x256xf32> to vector<8x8xf32>
    %916 = vector.extract_strided_slice %914 {offsets = [0, 128], sizes = [8, 8], strides = [1, 1]} : vector<8x256xf32> to vector<8x8xf32>
    %917 = arith.subf %908, %916 : vector<8x8xf32>
    %918 = arith.subf %916, %908 : vector<8x8xf32>
    %919 = math.exp %918 : vector<8x8xf32>
    %920 = arith.addf %917, %919 : vector<8x8xf32>
    %921 = arith.subf %915, %907 : vector<8x8xf32>
    %922 = arith.mulf %921, %921 : vector<8x8xf32>
    %cst_291 = arith.constant 0.000000e+00 : f32
    %923 = vector.broadcast %cst_291 : f32 to vector<8x8xf32>
    %924 = arith.subf %923, %908 : vector<8x8xf32>
    %925 = math.exp %924 : vector<8x8xf32>
    %926 = arith.mulf %922, %925 : vector<8x8xf32>
    %927 = arith.addf %920, %926 : vector<8x8xf32>
    %cst_292 = arith.constant 1.000000e+00 : f32
    %928 = vector.broadcast %cst_292 : f32 to vector<8x8xf32>
    %929 = arith.subf %927, %928 : vector<8x8xf32>
    %cst_293 = arith.constant 5.000000e-01 : f32
    %930 = vector.broadcast %cst_293 : f32 to vector<8x8xf32>
    %931 = arith.mulf %930, %929 : vector<8x8xf32>
    %cst_294 = arith.constant dense<0.000000e+00> : vector<8xf32>
    %932 = vector.multi_reduction <add>, %931, %cst_294 [1] : vector<8x8xf32> to vector<8xf32>
    %933 = vector.shape_cast %932 : vector<8xf32> to vector<8x1xf32>
    %934 = arith.mulf %933, %842 : vector<8x1xf32>
    %935 = arith.addf %779, %934 : vector<8x1xf32>
    %936 = arith.truncf %907 : vector<8x8xf32> to vector<8x8xbf16>
    %cst_295 = arith.constant dense<0.000000e+00> : vector<8x32xf32>
    %937 = tpu.matmul %936, %515, %cst_295 {dimension_numbers = #tpu.dot_dimension_numbers<[1], [0], [0], [1], [0, 0, 1, 1], [], []>} : vector<8x8xbf16>, vector<8x32xbf16>, vector<8x32xf32> -> vector<8x32xf32>
    %938 = vector.broadcast %516 : vector<1x32xf32> to vector<8x32xf32>
    %939 = arith.addf %937, %938 : vector<8x32xf32>
    %940 = arith.subf %903, %939 : vector<8x32xf32>
    %941 = arith.mulf %940, %940 : vector<8x32xf32>
    %cst_296 = arith.constant dense<0.000000e+00> : vector<8xf32>
    %942 = vector.multi_reduction <add>, %941, %cst_296 [1] : vector<8x32xf32> to vector<8xf32>
    %943 = vector.shape_cast %942 : vector<8xf32> to vector<8x1xf32>
    %944 = arith.addf %788, %943 : vector<8x1xf32>
    %945 = arith.index_cast %c2_i32_257 : i32 to index
    %c0_297 = arith.constant 0 : index
    %c0_298 = arith.constant 0 : index
    %946 = vector.load %arg39[%945, %c0_297, %c0_298] : memref<9x8x32xf32, #tpu.memory_space<vmem>>, vector<1x8x32xf32>
    %947 = vector.shape_cast %946 : vector<1x8x32xf32> to vector<8x32xf32>
    %948 = arith.addf %947, %508 : vector<8x32xf32>
    %949 = arith.truncf %939 : vector<8x32xf32> to vector<8x32xbf16>
    %cst_299 = arith.constant dense<0.000000e+00> : vector<8x32xf32>
    %950 = tpu.matmul %949, %517, %cst_299 {dimension_numbers = #tpu.dot_dimension_numbers<[1], [0], [0], [1], [0, 0, 1, 1], [], []>} : vector<8x32xbf16>, vector<32x32xbf16>, vector<8x32xf32> -> vector<8x32xf32>
    %951 = arith.addf %948, %950 : vector<8x32xf32>
    %952 = arith.truncf %907 : vector<8x8xf32> to vector<8x8xbf16>
    %cst_300 = arith.constant dense<0.000000e+00> : vector<8x32xf32>
    %953 = tpu.matmul %952, %518, %cst_300 {dimension_numbers = #tpu.dot_dimension_numbers<[1], [0], [0], [1], [0, 0, 1, 1], [], []>} : vector<8x8xbf16>, vector<8x32xbf16>, vector<8x32xf32> -> vector<8x32xf32>
    %954 = arith.addf %951, %953 : vector<8x32xf32>
    %955 = arith.truncf %954 : vector<8x32xf32> to vector<8x32xbf16>
    %cst_301 = arith.constant dense<0.000000e+00> : vector<8x512xf32>
    %956 = tpu.matmul %955, %519, %cst_301 {dimension_numbers = #tpu.dot_dimension_numbers<[1], [0], [0], [1], [0, 0, 1, 1], [], []>} : vector<8x32xbf16>, vector<32x512xbf16>, vector<8x512xf32> -> vector<8x512xf32>
    %cst_302 = arith.constant dense<0.000000e+00> : vector<8x512xf32>
    %957 = tpu.matmul %835, %520, %cst_302 {dimension_numbers = #tpu.dot_dimension_numbers<[1], [0], [0], [1], [0, 0, 1, 1], [], []>} : vector<8x32xbf16>, vector<32x512xbf16>, vector<8x512xf32> -> vector<8x512xf32>
    %958 = arith.addf %956, %957 : vector<8x512xf32>
    %959 = vector.broadcast %521 : vector<1x512xf32> to vector<8x512xf32>
    %960 = arith.addf %958, %959 : vector<8x512xf32>
    %961 = vector.extract_strided_slice %960 {offsets = [0, 0], sizes = [8, 32], strides = [1, 1]} : vector<8x512xf32> to vector<8x32xf32>
    %962 = arith.negf %961 : vector<8x32xf32>
    %963 = math.exp %962 : vector<8x32xf32>
    %cst_303 = arith.constant 1.000000e+00 : f32
    %964 = vector.broadcast %cst_303 : f32 to vector<8x32xf32>
    %965 = arith.addf %964, %963 : vector<8x32xf32>
    %966 = arith.divf %964, %965 : vector<8x32xf32>
    %967 = vector.extract_strided_slice %960 {offsets = [0, 128], sizes = [8, 32], strides = [1, 1]} : vector<8x512xf32> to vector<8x32xf32>
    %968 = arith.negf %967 : vector<8x32xf32>
    %969 = math.exp %968 : vector<8x32xf32>
    %cst_304 = arith.constant 1.000000e+00 : f32
    %970 = vector.broadcast %cst_304 : f32 to vector<8x32xf32>
    %971 = arith.addf %970, %969 : vector<8x32xf32>
    %972 = arith.divf %970, %971 : vector<8x32xf32>
    %973 = vector.extract_strided_slice %960 {offsets = [0, 256], sizes = [8, 32], strides = [1, 1]} : vector<8x512xf32> to vector<8x32xf32>
    %974 = math.tanh %973 : vector<8x32xf32>
    %975 = vector.extract_strided_slice %960 {offsets = [0, 384], sizes = [8, 32], strides = [1, 1]} : vector<8x512xf32> to vector<8x32xf32>
    %976 = arith.negf %975 : vector<8x32xf32>
    %977 = math.exp %976 : vector<8x32xf32>
    %cst_305 = arith.constant 1.000000e+00 : f32
    %978 = vector.broadcast %cst_305 : f32 to vector<8x32xf32>
    %979 = arith.addf %978, %977 : vector<8x32xf32>
    %980 = arith.divf %978, %979 : vector<8x32xf32>
    %981 = arith.mulf %972, %827 : vector<8x32xf32>
    %982 = arith.mulf %966, %974 : vector<8x32xf32>
    %983 = arith.addf %981, %982 : vector<8x32xf32>
    %984 = math.tanh %983 : vector<8x32xf32>
    %985 = arith.mulf %980, %984 : vector<8x32xf32>
    %986 = arith.truncf %985 : vector<8x32xf32> to vector<8x32xbf16>
    %987 = arith.index_cast %c2_i32_257 : i32 to index
    %c0_306 = arith.constant 0 : index
    %c0_307 = arith.constant 0 : index
    %988 = vector.load %arg31[%987, %c0_306, %c0_307] : memref<9x8x32xbf16, #tpu.memory_space<vmem>>, vector<1x8x32xbf16>
    %989 = vector.shape_cast %988 : vector<1x8x32xbf16> to vector<8x32xbf16>
    %990 = vector.shape_cast %986 : vector<8x32xbf16> to vector<1x8x32xbf16>
    tpu.vector_store %arg31[%987, %c0_306, %c0_307], %990 {strides = array<i32>} : memref<9x8x32xbf16, #tpu.memory_space<vmem>>, vector<1x8x32xbf16>,
    %c3_i32_308 = arith.constant 3 : i32
    %991 = arith.truncf %985 : vector<8x32xf32> to vector<8x32xbf16>
    %cst_309 = arith.constant 1.000000e+00 : f32
    %992 = vector.broadcast %cst_309 : f32 to vector<8x1xf32>
    %993 = arith.addf %1, %992 : vector<8x1xf32>
    %994 = arith.sitofp %c3_i32_308 : i32 to f32
    %995 = vector.broadcast %994 : f32 to vector<8x1xf32>
    %996 = arith.cmpf ogt, %993, %995 : vector<8x1xf32>
    %997 = arith.extui %996 : vector<8x1xi1> to vector<8x1xi32>
    %998 = arith.sitofp %997 : vector<8x1xi32> to vector<8x1xf32>
    %999 = arith.index_cast %c3_i32_308 : i32 to index
    %c0_310 = arith.constant 0 : index
    %c0_311 = arith.constant 0 : index
    %1000 = vector.load %arg38[%999, %c0_310, %c0_311] : memref<9x8x8xf32, #tpu.memory_space<vmem>>, vector<1x8x8xf32>
    %1001 = vector.shape_cast %1000 : vector<1x8x8xf32> to vector<8x8xf32>
    %cst_312 = arith.constant dense<0.000000e+00> : vector<8x8xf32>
    %1002 = tpu.matmul %991, %509, %cst_312 {dimension_numbers = #tpu.dot_dimension_numbers<[1], [0], [0], [1], [0, 0, 1, 1], [], []>} : vector<8x32xbf16>, vector<32x8xbf16>, vector<8x8xf32> -> vector<8x8xf32>
    %1003 = arith.addf %1001, %1002 : vector<8x8xf32>
    %cst_313 = arith.constant dense<0xFF800000> : vector<8xf32>
    %1004 = vector.multi_reduction <maximumf>, %1003, %cst_313 [1] : vector<8x8xf32> to vector<8xf32>
    %1005 = vector.shape_cast %1004 : vector<8xf32> to vector<8x1xf32>
    %1006 = vector.broadcast %1005 : vector<8x1xf32> to vector<8x8xf32>
    %1007 = arith.subf %1003, %1006 : vector<8x8xf32>
    %1008 = math.exp %1007 : vector<8x8xf32>
    %cst_314 = arith.constant dense<0.000000e+00> : vector<8xf32>
    %1009 = vector.multi_reduction <add>, %1008, %cst_314 [1] : vector<8x8xf32> to vector<8xf32>
    %1010 = vector.shape_cast %1009 : vector<8xf32> to vector<8x1xf32>
    %1011 = vector.broadcast %1010 : vector<8x1xf32> to vector<8x8xf32>
    %1012 = arith.divf %1008, %1011 : vector<8x8xf32>
    %1013 = vector.extract_strided_slice %1012 {offsets = [0, 0], sizes = [8, 1], strides = [1, 1]} : vector<8x8xf32> to vector<8x1xf32>
    %c0_315 = arith.constant 0 : index
    %c0_316 = arith.constant 0 : index
    %c0_317 = arith.constant 0 : index
    %1014 = vector.load %arg36[%c0_315, %c0_316, %c0_317] : memref<8x8x32xf32, #tpu.memory_space<vmem>>, vector<1x8x32xf32>
    %1015 = vector.shape_cast %1014 : vector<1x8x32xf32> to vector<8x32xf32>
    %1016 = vector.broadcast %1013 : vector<8x1xf32> to vector<8x32xf32>
    %1017 = arith.mulf %1016, %1015 : vector<8x32xf32>
    %1018 = vector.extract_strided_slice %1012 {offsets = [0, 1], sizes = [8, 1], strides = [1, 1]} : vector<8x8xf32> to vector<8x1xf32>
    %c1_318 = arith.constant 1 : index
    %c0_319 = arith.constant 0 : index
    %c0_320 = arith.constant 0 : index
    %1019 = vector.load %arg36[%c1_318, %c0_319, %c0_320] : memref<8x8x32xf32, #tpu.memory_space<vmem>>, vector<1x8x32xf32>
    %1020 = vector.shape_cast %1019 : vector<1x8x32xf32> to vector<8x32xf32>
    %1021 = vector.broadcast %1018 : vector<8x1xf32> to vector<8x32xf32>
    %1022 = arith.mulf %1021, %1020 : vector<8x32xf32>
    %1023 = arith.addf %1017, %1022 : vector<8x32xf32>
    %1024 = vector.extract_strided_slice %1012 {offsets = [0, 2], sizes = [8, 1], strides = [1, 1]} : vector<8x8xf32> to vector<8x1xf32>
    %c2_321 = arith.constant 2 : index
    %c0_322 = arith.constant 0 : index
    %c0_323 = arith.constant 0 : index
    %1025 = vector.load %arg36[%c2_321, %c0_322, %c0_323] : memref<8x8x32xf32, #tpu.memory_space<vmem>>, vector<1x8x32xf32>
    %1026 = vector.shape_cast %1025 : vector<1x8x32xf32> to vector<8x32xf32>
    %1027 = vector.broadcast %1024 : vector<8x1xf32> to vector<8x32xf32>
    %1028 = arith.mulf %1027, %1026 : vector<8x32xf32>
    %1029 = arith.addf %1023, %1028 : vector<8x32xf32>
    %1030 = vector.extract_strided_slice %1012 {offsets = [0, 3], sizes = [8, 1], strides = [1, 1]} : vector<8x8xf32> to vector<8x1xf32>
    %c3_324 = arith.constant 3 : index
    %c0_325 = arith.constant 0 : index
    %c0_326 = arith.constant 0 : index
    %1031 = vector.load %arg36[%c3_324, %c0_325, %c0_326] : memref<8x8x32xf32, #tpu.memory_space<vmem>>, vector<1x8x32xf32>
    %1032 = vector.shape_cast %1031 : vector<1x8x32xf32> to vector<8x32xf32>
    %1033 = vector.broadcast %1030 : vector<8x1xf32> to vector<8x32xf32>
    %1034 = arith.mulf %1033, %1032 : vector<8x32xf32>
    %1035 = arith.addf %1029, %1034 : vector<8x32xf32>
    %1036 = vector.extract_strided_slice %1012 {offsets = [0, 4], sizes = [8, 1], strides = [1, 1]} : vector<8x8xf32> to vector<8x1xf32>
    %c4_327 = arith.constant 4 : index
    %c0_328 = arith.constant 0 : index
    %c0_329 = arith.constant 0 : index
    %1037 = vector.load %arg36[%c4_327, %c0_328, %c0_329] : memref<8x8x32xf32, #tpu.memory_space<vmem>>, vector<1x8x32xf32>
    %1038 = vector.shape_cast %1037 : vector<1x8x32xf32> to vector<8x32xf32>
    %1039 = vector.broadcast %1036 : vector<8x1xf32> to vector<8x32xf32>
    %1040 = arith.mulf %1039, %1038 : vector<8x32xf32>
    %1041 = arith.addf %1035, %1040 : vector<8x32xf32>
    %1042 = vector.extract_strided_slice %1012 {offsets = [0, 5], sizes = [8, 1], strides = [1, 1]} : vector<8x8xf32> to vector<8x1xf32>
    %c5_330 = arith.constant 5 : index
    %c0_331 = arith.constant 0 : index
    %c0_332 = arith.constant 0 : index
    %1043 = vector.load %arg36[%c5_330, %c0_331, %c0_332] : memref<8x8x32xf32, #tpu.memory_space<vmem>>, vector<1x8x32xf32>
    %1044 = vector.shape_cast %1043 : vector<1x8x32xf32> to vector<8x32xf32>
    %1045 = vector.broadcast %1042 : vector<8x1xf32> to vector<8x32xf32>
    %1046 = arith.mulf %1045, %1044 : vector<8x32xf32>
    %1047 = arith.addf %1041, %1046 : vector<8x32xf32>
    %1048 = vector.extract_strided_slice %1012 {offsets = [0, 6], sizes = [8, 1], strides = [1, 1]} : vector<8x8xf32> to vector<8x1xf32>
    %c6_333 = arith.constant 6 : index
    %c0_334 = arith.constant 0 : index
    %c0_335 = arith.constant 0 : index
    %1049 = vector.load %arg36[%c6_333, %c0_334, %c0_335] : memref<8x8x32xf32, #tpu.memory_space<vmem>>, vector<1x8x32xf32>
    %1050 = vector.shape_cast %1049 : vector<1x8x32xf32> to vector<8x32xf32>
    %1051 = vector.broadcast %1048 : vector<8x1xf32> to vector<8x32xf32>
    %1052 = arith.mulf %1051, %1050 : vector<8x32xf32>
    %1053 = arith.addf %1047, %1052 : vector<8x32xf32>
    %1054 = vector.extract_strided_slice %1012 {offsets = [0, 7], sizes = [8, 1], strides = [1, 1]} : vector<8x8xf32> to vector<8x1xf32>
    %c7_336 = arith.constant 7 : index
    %c0_337 = arith.constant 0 : index
    %c0_338 = arith.constant 0 : index
    %1055 = vector.load %arg36[%c7_336, %c0_337, %c0_338] : memref<8x8x32xf32, #tpu.memory_space<vmem>>, vector<1x8x32xf32>
    %1056 = vector.shape_cast %1055 : vector<1x8x32xf32> to vector<8x32xf32>
    %1057 = vector.broadcast %1054 : vector<8x1xf32> to vector<8x32xf32>
    %1058 = arith.mulf %1057, %1056 : vector<8x32xf32>
    %1059 = arith.addf %1053, %1058 : vector<8x32xf32>
    %cst_339 = arith.constant dense<0.000000e+00> : vector<8x256xf32>
    %1060 = tpu.matmul %991, %510, %cst_339 {dimension_numbers = #tpu.dot_dimension_numbers<[1], [0], [0], [1], [0, 0, 1, 1], [], []>} : vector<8x32xbf16>, vector<32x256xbf16>, vector<8x256xf32> -> vector<8x256xf32>
    %1061 = vector.broadcast %511 : vector<1x256xf32> to vector<8x256xf32>
    %1062 = arith.addf %1060, %1061 : vector<8x256xf32>
    %1063 = vector.extract_strided_slice %1062 {offsets = [0, 0], sizes = [8, 8], strides = [1, 1]} : vector<8x256xf32> to vector<8x8xf32>
    %1064 = vector.extract_strided_slice %1062 {offsets = [0, 128], sizes = [8, 8], strides = [1, 1]} : vector<8x256xf32> to vector<8x8xf32>
    %cst_340 = arith.constant dense<0.000000e+00> : vector<8x256xf32>
    %1065 = tpu.matmul %991, %512, %cst_340 {dimension_numbers = #tpu.dot_dimension_numbers<[1], [0], [0], [1], [0, 0, 1, 1], [], []>} : vector<8x32xbf16>, vector<32x256xbf16>, vector<8x256xf32> -> vector<8x256xf32>
    %1066 = arith.truncf %1059 : vector<8x32xf32> to vector<8x32xbf16>
    %cst_341 = arith.constant dense<0.000000e+00> : vector<8x256xf32>
    %1067 = tpu.matmul %1066, %513, %cst_341 {dimension_numbers = #tpu.dot_dimension_numbers<[1], [0], [0], [1], [0, 0, 1, 1], [], []>} : vector<8x32xbf16>, vector<32x256xbf16>, vector<8x256xf32> -> vector<8x256xf32>
    %1068 = arith.addf %1065, %1067 : vector<8x256xf32>
    %1069 = vector.broadcast %514 : vector<1x256xf32> to vector<8x256xf32>
    %1070 = arith.addf %1068, %1069 : vector<8x256xf32>
    %1071 = vector.extract_strided_slice %1070 {offsets = [0, 0], sizes = [8, 8], strides = [1, 1]} : vector<8x256xf32> to vector<8x8xf32>
    %1072 = vector.extract_strided_slice %1070 {offsets = [0, 128], sizes = [8, 8], strides = [1, 1]} : vector<8x256xf32> to vector<8x8xf32>
    %1073 = arith.subf %1064, %1072 : vector<8x8xf32>
    %1074 = arith.subf %1072, %1064 : vector<8x8xf32>
    %1075 = math.exp %1074 : vector<8x8xf32>
    %1076 = arith.addf %1073, %1075 : vector<8x8xf32>
    %1077 = arith.subf %1071, %1063 : vector<8x8xf32>
    %1078 = arith.mulf %1077, %1077 : vector<8x8xf32>
    %cst_342 = arith.constant 0.000000e+00 : f32
    %1079 = vector.broadcast %cst_342 : f32 to vector<8x8xf32>
    %1080 = arith.subf %1079, %1064 : vector<8x8xf32>
    %1081 = math.exp %1080 : vector<8x8xf32>
    %1082 = arith.mulf %1078, %1081 : vector<8x8xf32>
    %1083 = arith.addf %1076, %1082 : vector<8x8xf32>
    %cst_343 = arith.constant 1.000000e+00 : f32
    %1084 = vector.broadcast %cst_343 : f32 to vector<8x8xf32>
    %1085 = arith.subf %1083, %1084 : vector<8x8xf32>
    %cst_344 = arith.constant 5.000000e-01 : f32
    %1086 = vector.broadcast %cst_344 : f32 to vector<8x8xf32>
    %1087 = arith.mulf %1086, %1085 : vector<8x8xf32>
    %cst_345 = arith.constant dense<0.000000e+00> : vector<8xf32>
    %1088 = vector.multi_reduction <add>, %1087, %cst_345 [1] : vector<8x8xf32> to vector<8xf32>
    %1089 = vector.shape_cast %1088 : vector<8xf32> to vector<8x1xf32>
    %1090 = arith.mulf %1089, %998 : vector<8x1xf32>
    %1091 = arith.addf %935, %1090 : vector<8x1xf32>
    %1092 = arith.truncf %1063 : vector<8x8xf32> to vector<8x8xbf16>
    %cst_346 = arith.constant dense<0.000000e+00> : vector<8x32xf32>
    %1093 = tpu.matmul %1092, %515, %cst_346 {dimension_numbers = #tpu.dot_dimension_numbers<[1], [0], [0], [1], [0, 0, 1, 1], [], []>} : vector<8x8xbf16>, vector<8x32xbf16>, vector<8x32xf32> -> vector<8x32xf32>
    %1094 = vector.broadcast %516 : vector<1x32xf32> to vector<8x32xf32>
    %1095 = arith.addf %1093, %1094 : vector<8x32xf32>
    %1096 = arith.subf %1059, %1095 : vector<8x32xf32>
    %1097 = arith.mulf %1096, %1096 : vector<8x32xf32>
    %cst_347 = arith.constant dense<0.000000e+00> : vector<8xf32>
    %1098 = vector.multi_reduction <add>, %1097, %cst_347 [1] : vector<8x32xf32> to vector<8xf32>
    %1099 = vector.shape_cast %1098 : vector<8xf32> to vector<8x1xf32>
    %1100 = arith.addf %944, %1099 : vector<8x1xf32>
    %1101 = arith.index_cast %c3_i32_308 : i32 to index
    %c0_348 = arith.constant 0 : index
    %c0_349 = arith.constant 0 : index
    %1102 = vector.load %arg39[%1101, %c0_348, %c0_349] : memref<9x8x32xf32, #tpu.memory_space<vmem>>, vector<1x8x32xf32>
    %1103 = vector.shape_cast %1102 : vector<1x8x32xf32> to vector<8x32xf32>
    %1104 = arith.addf %1103, %508 : vector<8x32xf32>
    %1105 = arith.truncf %1095 : vector<8x32xf32> to vector<8x32xbf16>
    %cst_350 = arith.constant dense<0.000000e+00> : vector<8x32xf32>
    %1106 = tpu.matmul %1105, %517, %cst_350 {dimension_numbers = #tpu.dot_dimension_numbers<[1], [0], [0], [1], [0, 0, 1, 1], [], []>} : vector<8x32xbf16>, vector<32x32xbf16>, vector<8x32xf32> -> vector<8x32xf32>
    %1107 = arith.addf %1104, %1106 : vector<8x32xf32>
    %1108 = arith.truncf %1063 : vector<8x8xf32> to vector<8x8xbf16>
    %cst_351 = arith.constant dense<0.000000e+00> : vector<8x32xf32>
    %1109 = tpu.matmul %1108, %518, %cst_351 {dimension_numbers = #tpu.dot_dimension_numbers<[1], [0], [0], [1], [0, 0, 1, 1], [], []>} : vector<8x8xbf16>, vector<8x32xbf16>, vector<8x32xf32> -> vector<8x32xf32>
    %1110 = arith.addf %1107, %1109 : vector<8x32xf32>
    %1111 = arith.truncf %1110 : vector<8x32xf32> to vector<8x32xbf16>
    %cst_352 = arith.constant dense<0.000000e+00> : vector<8x512xf32>
    %1112 = tpu.matmul %1111, %519, %cst_352 {dimension_numbers = #tpu.dot_dimension_numbers<[1], [0], [0], [1], [0, 0, 1, 1], [], []>} : vector<8x32xbf16>, vector<32x512xbf16>, vector<8x512xf32> -> vector<8x512xf32>
    %cst_353 = arith.constant dense<0.000000e+00> : vector<8x512xf32>
    %1113 = tpu.matmul %991, %520, %cst_353 {dimension_numbers = #tpu.dot_dimension_numbers<[1], [0], [0], [1], [0, 0, 1, 1], [], []>} : vector<8x32xbf16>, vector<32x512xbf16>, vector<8x512xf32> -> vector<8x512xf32>
    %1114 = arith.addf %1112, %1113 : vector<8x512xf32>
    %1115 = vector.broadcast %521 : vector<1x512xf32> to vector<8x512xf32>
    %1116 = arith.addf %1114, %1115 : vector<8x512xf32>
    %1117 = vector.extract_strided_slice %1116 {offsets = [0, 0], sizes = [8, 32], strides = [1, 1]} : vector<8x512xf32> to vector<8x32xf32>
    %1118 = arith.negf %1117 : vector<8x32xf32>
    %1119 = math.exp %1118 : vector<8x32xf32>
    %cst_354 = arith.constant 1.000000e+00 : f32
    %1120 = vector.broadcast %cst_354 : f32 to vector<8x32xf32>
    %1121 = arith.addf %1120, %1119 : vector<8x32xf32>
    %1122 = arith.divf %1120, %1121 : vector<8x32xf32>
    %1123 = vector.extract_strided_slice %1116 {offsets = [0, 128], sizes = [8, 32], strides = [1, 1]} : vector<8x512xf32> to vector<8x32xf32>
    %1124 = arith.negf %1123 : vector<8x32xf32>
    %1125 = math.exp %1124 : vector<8x32xf32>
    %cst_355 = arith.constant 1.000000e+00 : f32
    %1126 = vector.broadcast %cst_355 : f32 to vector<8x32xf32>
    %1127 = arith.addf %1126, %1125 : vector<8x32xf32>
    %1128 = arith.divf %1126, %1127 : vector<8x32xf32>
    %1129 = vector.extract_strided_slice %1116 {offsets = [0, 256], sizes = [8, 32], strides = [1, 1]} : vector<8x512xf32> to vector<8x32xf32>
    %1130 = math.tanh %1129 : vector<8x32xf32>
    %1131 = vector.extract_strided_slice %1116 {offsets = [0, 384], sizes = [8, 32], strides = [1, 1]} : vector<8x512xf32> to vector<8x32xf32>
    %1132 = arith.negf %1131 : vector<8x32xf32>
    %1133 = math.exp %1132 : vector<8x32xf32>
    %cst_356 = arith.constant 1.000000e+00 : f32
    %1134 = vector.broadcast %cst_356 : f32 to vector<8x32xf32>
    %1135 = arith.addf %1134, %1133 : vector<8x32xf32>
    %1136 = arith.divf %1134, %1135 : vector<8x32xf32>
    %1137 = arith.mulf %1128, %983 : vector<8x32xf32>
    %1138 = arith.mulf %1122, %1130 : vector<8x32xf32>
    %1139 = arith.addf %1137, %1138 : vector<8x32xf32>
    %1140 = math.tanh %1139 : vector<8x32xf32>
    %1141 = arith.mulf %1136, %1140 : vector<8x32xf32>
    %1142 = arith.truncf %1141 : vector<8x32xf32> to vector<8x32xbf16>
    %1143 = arith.index_cast %c3_i32_308 : i32 to index
    %c0_357 = arith.constant 0 : index
    %c0_358 = arith.constant 0 : index
    %1144 = vector.load %arg31[%1143, %c0_357, %c0_358] : memref<9x8x32xbf16, #tpu.memory_space<vmem>>, vector<1x8x32xbf16>
    %1145 = vector.shape_cast %1144 : vector<1x8x32xbf16> to vector<8x32xbf16>
    %1146 = vector.shape_cast %1142 : vector<8x32xbf16> to vector<1x8x32xbf16>
    tpu.vector_store %arg31[%1143, %c0_357, %c0_358], %1146 {strides = array<i32>} : memref<9x8x32xbf16, #tpu.memory_space<vmem>>, vector<1x8x32xbf16>,
    %c4_i32_359 = arith.constant 4 : i32
    %1147 = arith.truncf %1141 : vector<8x32xf32> to vector<8x32xbf16>
    %cst_360 = arith.constant 1.000000e+00 : f32
    %1148 = vector.broadcast %cst_360 : f32 to vector<8x1xf32>
    %1149 = arith.addf %1, %1148 : vector<8x1xf32>
    %1150 = arith.sitofp %c4_i32_359 : i32 to f32
    %1151 = vector.broadcast %1150 : f32 to vector<8x1xf32>
    %1152 = arith.cmpf ogt, %1149, %1151 : vector<8x1xf32>
    %1153 = arith.extui %1152 : vector<8x1xi1> to vector<8x1xi32>
    %1154 = arith.sitofp %1153 : vector<8x1xi32> to vector<8x1xf32>
    %1155 = arith.index_cast %c4_i32_359 : i32 to index
    %c0_361 = arith.constant 0 : index
    %c0_362 = arith.constant 0 : index
    %1156 = vector.load %arg38[%1155, %c0_361, %c0_362] : memref<9x8x8xf32, #tpu.memory_space<vmem>>, vector<1x8x8xf32>
    %1157 = vector.shape_cast %1156 : vector<1x8x8xf32> to vector<8x8xf32>
    %cst_363 = arith.constant dense<0.000000e+00> : vector<8x8xf32>
    %1158 = tpu.matmul %1147, %509, %cst_363 {dimension_numbers = #tpu.dot_dimension_numbers<[1], [0], [0], [1], [0, 0, 1, 1], [], []>} : vector<8x32xbf16>, vector<32x8xbf16>, vector<8x8xf32> -> vector<8x8xf32>
    %1159 = arith.addf %1157, %1158 : vector<8x8xf32>
    %cst_364 = arith.constant dense<0xFF800000> : vector<8xf32>
    %1160 = vector.multi_reduction <maximumf>, %1159, %cst_364 [1] : vector<8x8xf32> to vector<8xf32>
    %1161 = vector.shape_cast %1160 : vector<8xf32> to vector<8x1xf32>
    %1162 = vector.broadcast %1161 : vector<8x1xf32> to vector<8x8xf32>
    %1163 = arith.subf %1159, %1162 : vector<8x8xf32>
    %1164 = math.exp %1163 : vector<8x8xf32>
    %cst_365 = arith.constant dense<0.000000e+00> : vector<8xf32>
    %1165 = vector.multi_reduction <add>, %1164, %cst_365 [1] : vector<8x8xf32> to vector<8xf32>
    %1166 = vector.shape_cast %1165 : vector<8xf32> to vector<8x1xf32>
    %1167 = vector.broadcast %1166 : vector<8x1xf32> to vector<8x8xf32>
    %1168 = arith.divf %1164, %1167 : vector<8x8xf32>
    %1169 = vector.extract_strided_slice %1168 {offsets = [0, 0], sizes = [8, 1], strides = [1, 1]} : vector<8x8xf32> to vector<8x1xf32>
    %c0_366 = arith.constant 0 : index
    %c0_367 = arith.constant 0 : index
    %c0_368 = arith.constant 0 : index
    %1170 = vector.load %arg36[%c0_366, %c0_367, %c0_368] : memref<8x8x32xf32, #tpu.memory_space<vmem>>, vector<1x8x32xf32>
    %1171 = vector.shape_cast %1170 : vector<1x8x32xf32> to vector<8x32xf32>
    %1172 = vector.broadcast %1169 : vector<8x1xf32> to vector<8x32xf32>
    %1173 = arith.mulf %1172, %1171 : vector<8x32xf32>
    %1174 = vector.extract_strided_slice %1168 {offsets = [0, 1], sizes = [8, 1], strides = [1, 1]} : vector<8x8xf32> to vector<8x1xf32>
    %c1_369 = arith.constant 1 : index
    %c0_370 = arith.constant 0 : index
    %c0_371 = arith.constant 0 : index
    %1175 = vector.load %arg36[%c1_369, %c0_370, %c0_371] : memref<8x8x32xf32, #tpu.memory_space<vmem>>, vector<1x8x32xf32>
    %1176 = vector.shape_cast %1175 : vector<1x8x32xf32> to vector<8x32xf32>
    %1177 = vector.broadcast %1174 : vector<8x1xf32> to vector<8x32xf32>
    %1178 = arith.mulf %1177, %1176 : vector<8x32xf32>
    %1179 = arith.addf %1173, %1178 : vector<8x32xf32>
    %1180 = vector.extract_strided_slice %1168 {offsets = [0, 2], sizes = [8, 1], strides = [1, 1]} : vector<8x8xf32> to vector<8x1xf32>
    %c2_372 = arith.constant 2 : index
    %c0_373 = arith.constant 0 : index
    %c0_374 = arith.constant 0 : index
    %1181 = vector.load %arg36[%c2_372, %c0_373, %c0_374] : memref<8x8x32xf32, #tpu.memory_space<vmem>>, vector<1x8x32xf32>
    %1182 = vector.shape_cast %1181 : vector<1x8x32xf32> to vector<8x32xf32>
    %1183 = vector.broadcast %1180 : vector<8x1xf32> to vector<8x32xf32>
    %1184 = arith.mulf %1183, %1182 : vector<8x32xf32>
    %1185 = arith.addf %1179, %1184 : vector<8x32xf32>
    %1186 = vector.extract_strided_slice %1168 {offsets = [0, 3], sizes = [8, 1], strides = [1, 1]} : vector<8x8xf32> to vector<8x1xf32>
    %c3_375 = arith.constant 3 : index
    %c0_376 = arith.constant 0 : index
    %c0_377 = arith.constant 0 : index
    %1187 = vector.load %arg36[%c3_375, %c0_376, %c0_377] : memref<8x8x32xf32, #tpu.memory_space<vmem>>, vector<1x8x32xf32>
    %1188 = vector.shape_cast %1187 : vector<1x8x32xf32> to vector<8x32xf32>
    %1189 = vector.broadcast %1186 : vector<8x1xf32> to vector<8x32xf32>
    %1190 = arith.mulf %1189, %1188 : vector<8x32xf32>
    %1191 = arith.addf %1185, %1190 : vector<8x32xf32>
    %1192 = vector.extract_strided_slice %1168 {offsets = [0, 4], sizes = [8, 1], strides = [1, 1]} : vector<8x8xf32> to vector<8x1xf32>
    %c4_378 = arith.constant 4 : index
    %c0_379 = arith.constant 0 : index
    %c0_380 = arith.constant 0 : index
    %1193 = vector.load %arg36[%c4_378, %c0_379, %c0_380] : memref<8x8x32xf32, #tpu.memory_space<vmem>>, vector<1x8x32xf32>
    %1194 = vector.shape_cast %1193 : vector<1x8x32xf32> to vector<8x32xf32>
    %1195 = vector.broadcast %1192 : vector<8x1xf32> to vector<8x32xf32>
    %1196 = arith.mulf %1195, %1194 : vector<8x32xf32>
    %1197 = arith.addf %1191, %1196 : vector<8x32xf32>
    %1198 = vector.extract_strided_slice %1168 {offsets = [0, 5], sizes = [8, 1], strides = [1, 1]} : vector<8x8xf32> to vector<8x1xf32>
    %c5_381 = arith.constant 5 : index
    %c0_382 = arith.constant 0 : index
    %c0_383 = arith.constant 0 : index
    %1199 = vector.load %arg36[%c5_381, %c0_382, %c0_383] : memref<8x8x32xf32, #tpu.memory_space<vmem>>, vector<1x8x32xf32>
    %1200 = vector.shape_cast %1199 : vector<1x8x32xf32> to vector<8x32xf32>
    %1201 = vector.broadcast %1198 : vector<8x1xf32> to vector<8x32xf32>
    %1202 = arith.mulf %1201, %1200 : vector<8x32xf32>
    %1203 = arith.addf %1197, %1202 : vector<8x32xf32>
    %1204 = vector.extract_strided_slice %1168 {offsets = [0, 6], sizes = [8, 1], strides = [1, 1]} : vector<8x8xf32> to vector<8x1xf32>
    %c6_384 = arith.constant 6 : index
    %c0_385 = arith.constant 0 : index
    %c0_386 = arith.constant 0 : index
    %1205 = vector.load %arg36[%c6_384, %c0_385, %c0_386] : memref<8x8x32xf32, #tpu.memory_space<vmem>>, vector<1x8x32xf32>
    %1206 = vector.shape_cast %1205 : vector<1x8x32xf32> to vector<8x32xf32>
    %1207 = vector.broadcast %1204 : vector<8x1xf32> to vector<8x32xf32>
    %1208 = arith.mulf %1207, %1206 : vector<8x32xf32>
    %1209 = arith.addf %1203, %1208 : vector<8x32xf32>
    %1210 = vector.extract_strided_slice %1168 {offsets = [0, 7], sizes = [8, 1], strides = [1, 1]} : vector<8x8xf32> to vector<8x1xf32>
    %c7_387 = arith.constant 7 : index
    %c0_388 = arith.constant 0 : index
    %c0_389 = arith.constant 0 : index
    %1211 = vector.load %arg36[%c7_387, %c0_388, %c0_389] : memref<8x8x32xf32, #tpu.memory_space<vmem>>, vector<1x8x32xf32>
    %1212 = vector.shape_cast %1211 : vector<1x8x32xf32> to vector<8x32xf32>
    %1213 = vector.broadcast %1210 : vector<8x1xf32> to vector<8x32xf32>
    %1214 = arith.mulf %1213, %1212 : vector<8x32xf32>
    %1215 = arith.addf %1209, %1214 : vector<8x32xf32>
    %cst_390 = arith.constant dense<0.000000e+00> : vector<8x256xf32>
    %1216 = tpu.matmul %1147, %510, %cst_390 {dimension_numbers = #tpu.dot_dimension_numbers<[1], [0], [0], [1], [0, 0, 1, 1], [], []>} : vector<8x32xbf16>, vector<32x256xbf16>, vector<8x256xf32> -> vector<8x256xf32>
    %1217 = vector.broadcast %511 : vector<1x256xf32> to vector<8x256xf32>
    %1218 = arith.addf %1216, %1217 : vector<8x256xf32>
    %1219 = vector.extract_strided_slice %1218 {offsets = [0, 0], sizes = [8, 8], strides = [1, 1]} : vector<8x256xf32> to vector<8x8xf32>
    %1220 = vector.extract_strided_slice %1218 {offsets = [0, 128], sizes = [8, 8], strides = [1, 1]} : vector<8x256xf32> to vector<8x8xf32>
    %cst_391 = arith.constant dense<0.000000e+00> : vector<8x256xf32>
    %1221 = tpu.matmul %1147, %512, %cst_391 {dimension_numbers = #tpu.dot_dimension_numbers<[1], [0], [0], [1], [0, 0, 1, 1], [], []>} : vector<8x32xbf16>, vector<32x256xbf16>, vector<8x256xf32> -> vector<8x256xf32>
    %1222 = arith.truncf %1215 : vector<8x32xf32> to vector<8x32xbf16>
    %cst_392 = arith.constant dense<0.000000e+00> : vector<8x256xf32>
    %1223 = tpu.matmul %1222, %513, %cst_392 {dimension_numbers = #tpu.dot_dimension_numbers<[1], [0], [0], [1], [0, 0, 1, 1], [], []>} : vector<8x32xbf16>, vector<32x256xbf16>, vector<8x256xf32> -> vector<8x256xf32>
    %1224 = arith.addf %1221, %1223 : vector<8x256xf32>
    %1225 = vector.broadcast %514 : vector<1x256xf32> to vector<8x256xf32>
    %1226 = arith.addf %1224, %1225 : vector<8x256xf32>
    %1227 = vector.extract_strided_slice %1226 {offsets = [0, 0], sizes = [8, 8], strides = [1, 1]} : vector<8x256xf32> to vector<8x8xf32>
    %1228 = vector.extract_strided_slice %1226 {offsets = [0, 128], sizes = [8, 8], strides = [1, 1]} : vector<8x256xf32> to vector<8x8xf32>
    %1229 = arith.subf %1220, %1228 : vector<8x8xf32>
    %1230 = arith.subf %1228, %1220 : vector<8x8xf32>
    %1231 = math.exp %1230 : vector<8x8xf32>
    %1232 = arith.addf %1229, %1231 : vector<8x8xf32>
    %1233 = arith.subf %1227, %1219 : vector<8x8xf32>
    %1234 = arith.mulf %1233, %1233 : vector<8x8xf32>
    %cst_393 = arith.constant 0.000000e+00 : f32
    %1235 = vector.broadcast %cst_393 : f32 to vector<8x8xf32>
    %1236 = arith.subf %1235, %1220 : vector<8x8xf32>
    %1237 = math.exp %1236 : vector<8x8xf32>
    %1238 = arith.mulf %1234, %1237 : vector<8x8xf32>
    %1239 = arith.addf %1232, %1238 : vector<8x8xf32>
    %cst_394 = arith.constant 1.000000e+00 : f32
    %1240 = vector.broadcast %cst_394 : f32 to vector<8x8xf32>
    %1241 = arith.subf %1239, %1240 : vector<8x8xf32>
    %cst_395 = arith.constant 5.000000e-01 : f32
    %1242 = vector.broadcast %cst_395 : f32 to vector<8x8xf32>
    %1243 = arith.mulf %1242, %1241 : vector<8x8xf32>
    %cst_396 = arith.constant dense<0.000000e+00> : vector<8xf32>
    %1244 = vector.multi_reduction <add>, %1243, %cst_396 [1] : vector<8x8xf32> to vector<8xf32>
    %1245 = vector.shape_cast %1244 : vector<8xf32> to vector<8x1xf32>
    %1246 = arith.mulf %1245, %1154 : vector<8x1xf32>
    %1247 = arith.addf %1091, %1246 : vector<8x1xf32>
    %1248 = arith.truncf %1219 : vector<8x8xf32> to vector<8x8xbf16>
    %cst_397 = arith.constant dense<0.000000e+00> : vector<8x32xf32>
    %1249 = tpu.matmul %1248, %515, %cst_397 {dimension_numbers = #tpu.dot_dimension_numbers<[1], [0], [0], [1], [0, 0, 1, 1], [], []>} : vector<8x8xbf16>, vector<8x32xbf16>, vector<8x32xf32> -> vector<8x32xf32>
    %1250 = vector.broadcast %516 : vector<1x32xf32> to vector<8x32xf32>
    %1251 = arith.addf %1249, %1250 : vector<8x32xf32>
    %1252 = arith.subf %1215, %1251 : vector<8x32xf32>
    %1253 = arith.mulf %1252, %1252 : vector<8x32xf32>
    %cst_398 = arith.constant dense<0.000000e+00> : vector<8xf32>
    %1254 = vector.multi_reduction <add>, %1253, %cst_398 [1] : vector<8x32xf32> to vector<8xf32>
    %1255 = vector.shape_cast %1254 : vector<8xf32> to vector<8x1xf32>
    %1256 = arith.addf %1100, %1255 : vector<8x1xf32>
    %1257 = arith.index_cast %c4_i32_359 : i32 to index
    %c0_399 = arith.constant 0 : index
    %c0_400 = arith.constant 0 : index
    %1258 = vector.load %arg39[%1257, %c0_399, %c0_400] : memref<9x8x32xf32, #tpu.memory_space<vmem>>, vector<1x8x32xf32>
    %1259 = vector.shape_cast %1258 : vector<1x8x32xf32> to vector<8x32xf32>
    %1260 = arith.addf %1259, %508 : vector<8x32xf32>
    %1261 = arith.truncf %1251 : vector<8x32xf32> to vector<8x32xbf16>
    %cst_401 = arith.constant dense<0.000000e+00> : vector<8x32xf32>
    %1262 = tpu.matmul %1261, %517, %cst_401 {dimension_numbers = #tpu.dot_dimension_numbers<[1], [0], [0], [1], [0, 0, 1, 1], [], []>} : vector<8x32xbf16>, vector<32x32xbf16>, vector<8x32xf32> -> vector<8x32xf32>
    %1263 = arith.addf %1260, %1262 : vector<8x32xf32>
    %1264 = arith.truncf %1219 : vector<8x8xf32> to vector<8x8xbf16>
    %cst_402 = arith.constant dense<0.000000e+00> : vector<8x32xf32>
    %1265 = tpu.matmul %1264, %518, %cst_402 {dimension_numbers = #tpu.dot_dimension_numbers<[1], [0], [0], [1], [0, 0, 1, 1], [], []>} : vector<8x8xbf16>, vector<8x32xbf16>, vector<8x32xf32> -> vector<8x32xf32>
    %1266 = arith.addf %1263, %1265 : vector<8x32xf32>
    %1267 = arith.truncf %1266 : vector<8x32xf32> to vector<8x32xbf16>
    %cst_403 = arith.constant dense<0.000000e+00> : vector<8x512xf32>
    %1268 = tpu.matmul %1267, %519, %cst_403 {dimension_numbers = #tpu.dot_dimension_numbers<[1], [0], [0], [1], [0, 0, 1, 1], [], []>} : vector<8x32xbf16>, vector<32x512xbf16>, vector<8x512xf32> -> vector<8x512xf32>
    %cst_404 = arith.constant dense<0.000000e+00> : vector<8x512xf32>
    %1269 = tpu.matmul %1147, %520, %cst_404 {dimension_numbers = #tpu.dot_dimension_numbers<[1], [0], [0], [1], [0, 0, 1, 1], [], []>} : vector<8x32xbf16>, vector<32x512xbf16>, vector<8x512xf32> -> vector<8x512xf32>
    %1270 = arith.addf %1268, %1269 : vector<8x512xf32>
    %1271 = vector.broadcast %521 : vector<1x512xf32> to vector<8x512xf32>
    %1272 = arith.addf %1270, %1271 : vector<8x512xf32>
    %1273 = vector.extract_strided_slice %1272 {offsets = [0, 0], sizes = [8, 32], strides = [1, 1]} : vector<8x512xf32> to vector<8x32xf32>
    %1274 = arith.negf %1273 : vector<8x32xf32>
    %1275 = math.exp %1274 : vector<8x32xf32>
    %cst_405 = arith.constant 1.000000e+00 : f32
    %1276 = vector.broadcast %cst_405 : f32 to vector<8x32xf32>
    %1277 = arith.addf %1276, %1275 : vector<8x32xf32>
    %1278 = arith.divf %1276, %1277 : vector<8x32xf32>
    %1279 = vector.extract_strided_slice %1272 {offsets = [0, 128], sizes = [8, 32], strides = [1, 1]} : vector<8x512xf32> to vector<8x32xf32>
    %1280 = arith.negf %1279 : vector<8x32xf32>
    %1281 = math.exp %1280 : vector<8x32xf32>
    %cst_406 = arith.constant 1.000000e+00 : f32
    %1282 = vector.broadcast %cst_406 : f32 to vector<8x32xf32>
    %1283 = arith.addf %1282, %1281 : vector<8x32xf32>
    %1284 = arith.divf %1282, %1283 : vector<8x32xf32>
    %1285 = vector.extract_strided_slice %1272 {offsets = [0, 256], sizes = [8, 32], strides = [1, 1]} : vector<8x512xf32> to vector<8x32xf32>
    %1286 = math.tanh %1285 : vector<8x32xf32>
    %1287 = vector.extract_strided_slice %1272 {offsets = [0, 384], sizes = [8, 32], strides = [1, 1]} : vector<8x512xf32> to vector<8x32xf32>
    %1288 = arith.negf %1287 : vector<8x32xf32>
    %1289 = math.exp %1288 : vector<8x32xf32>
    %cst_407 = arith.constant 1.000000e+00 : f32
    %1290 = vector.broadcast %cst_407 : f32 to vector<8x32xf32>
    %1291 = arith.addf %1290, %1289 : vector<8x32xf32>
    %1292 = arith.divf %1290, %1291 : vector<8x32xf32>
    %1293 = arith.mulf %1284, %1139 : vector<8x32xf32>
    %1294 = arith.mulf %1278, %1286 : vector<8x32xf32>
    %1295 = arith.addf %1293, %1294 : vector<8x32xf32>
    %1296 = math.tanh %1295 : vector<8x32xf32>
    %1297 = arith.mulf %1292, %1296 : vector<8x32xf32>
    %1298 = arith.truncf %1297 : vector<8x32xf32> to vector<8x32xbf16>
    %1299 = arith.index_cast %c4_i32_359 : i32 to index
    %c0_408 = arith.constant 0 : index
    %c0_409 = arith.constant 0 : index
    %1300 = vector.load %arg31[%1299, %c0_408, %c0_409] : memref<9x8x32xbf16, #tpu.memory_space<vmem>>, vector<1x8x32xbf16>
    %1301 = vector.shape_cast %1300 : vector<1x8x32xbf16> to vector<8x32xbf16>
    %1302 = vector.shape_cast %1298 : vector<8x32xbf16> to vector<1x8x32xbf16>
    tpu.vector_store %arg31[%1299, %c0_408, %c0_409], %1302 {strides = array<i32>} : memref<9x8x32xbf16, #tpu.memory_space<vmem>>, vector<1x8x32xbf16>,
    %c5_i32_410 = arith.constant 5 : i32
    %1303 = arith.truncf %1297 : vector<8x32xf32> to vector<8x32xbf16>
    %cst_411 = arith.constant 1.000000e+00 : f32
    %1304 = vector.broadcast %cst_411 : f32 to vector<8x1xf32>
    %1305 = arith.addf %1, %1304 : vector<8x1xf32>
    %1306 = arith.sitofp %c5_i32_410 : i32 to f32
    %1307 = vector.broadcast %1306 : f32 to vector<8x1xf32>
    %1308 = arith.cmpf ogt, %1305, %1307 : vector<8x1xf32>
    %1309 = arith.extui %1308 : vector<8x1xi1> to vector<8x1xi32>
    %1310 = arith.sitofp %1309 : vector<8x1xi32> to vector<8x1xf32>
    %1311 = arith.index_cast %c5_i32_410 : i32 to index
    %c0_412 = arith.constant 0 : index
    %c0_413 = arith.constant 0 : index
    %1312 = vector.load %arg38[%1311, %c0_412, %c0_413] : memref<9x8x8xf32, #tpu.memory_space<vmem>>, vector<1x8x8xf32>
    %1313 = vector.shape_cast %1312 : vector<1x8x8xf32> to vector<8x8xf32>
    %cst_414 = arith.constant dense<0.000000e+00> : vector<8x8xf32>
    %1314 = tpu.matmul %1303, %509, %cst_414 {dimension_numbers = #tpu.dot_dimension_numbers<[1], [0], [0], [1], [0, 0, 1, 1], [], []>} : vector<8x32xbf16>, vector<32x8xbf16>, vector<8x8xf32> -> vector<8x8xf32>
    %1315 = arith.addf %1313, %1314 : vector<8x8xf32>
    %cst_415 = arith.constant dense<0xFF800000> : vector<8xf32>
    %1316 = vector.multi_reduction <maximumf>, %1315, %cst_415 [1] : vector<8x8xf32> to vector<8xf32>
    %1317 = vector.shape_cast %1316 : vector<8xf32> to vector<8x1xf32>
    %1318 = vector.broadcast %1317 : vector<8x1xf32> to vector<8x8xf32>
    %1319 = arith.subf %1315, %1318 : vector<8x8xf32>
    %1320 = math.exp %1319 : vector<8x8xf32>
    %cst_416 = arith.constant dense<0.000000e+00> : vector<8xf32>
    %1321 = vector.multi_reduction <add>, %1320, %cst_416 [1] : vector<8x8xf32> to vector<8xf32>
    %1322 = vector.shape_cast %1321 : vector<8xf32> to vector<8x1xf32>
    %1323 = vector.broadcast %1322 : vector<8x1xf32> to vector<8x8xf32>
    %1324 = arith.divf %1320, %1323 : vector<8x8xf32>
    %1325 = vector.extract_strided_slice %1324 {offsets = [0, 0], sizes = [8, 1], strides = [1, 1]} : vector<8x8xf32> to vector<8x1xf32>
    %c0_417 = arith.constant 0 : index
    %c0_418 = arith.constant 0 : index
    %c0_419 = arith.constant 0 : index
    %1326 = vector.load %arg36[%c0_417, %c0_418, %c0_419] : memref<8x8x32xf32, #tpu.memory_space<vmem>>, vector<1x8x32xf32>
    %1327 = vector.shape_cast %1326 : vector<1x8x32xf32> to vector<8x32xf32>
    %1328 = vector.broadcast %1325 : vector<8x1xf32> to vector<8x32xf32>
    %1329 = arith.mulf %1328, %1327 : vector<8x32xf32>
    %1330 = vector.extract_strided_slice %1324 {offsets = [0, 1], sizes = [8, 1], strides = [1, 1]} : vector<8x8xf32> to vector<8x1xf32>
    %c1_420 = arith.constant 1 : index
    %c0_421 = arith.constant 0 : index
    %c0_422 = arith.constant 0 : index
    %1331 = vector.load %arg36[%c1_420, %c0_421, %c0_422] : memref<8x8x32xf32, #tpu.memory_space<vmem>>, vector<1x8x32xf32>
    %1332 = vector.shape_cast %1331 : vector<1x8x32xf32> to vector<8x32xf32>
    %1333 = vector.broadcast %1330 : vector<8x1xf32> to vector<8x32xf32>
    %1334 = arith.mulf %1333, %1332 : vector<8x32xf32>
    %1335 = arith.addf %1329, %1334 : vector<8x32xf32>
    %1336 = vector.extract_strided_slice %1324 {offsets = [0, 2], sizes = [8, 1], strides = [1, 1]} : vector<8x8xf32> to vector<8x1xf32>
    %c2_423 = arith.constant 2 : index
    %c0_424 = arith.constant 0 : index
    %c0_425 = arith.constant 0 : index
    %1337 = vector.load %arg36[%c2_423, %c0_424, %c0_425] : memref<8x8x32xf32, #tpu.memory_space<vmem>>, vector<1x8x32xf32>
    %1338 = vector.shape_cast %1337 : vector<1x8x32xf32> to vector<8x32xf32>
    %1339 = vector.broadcast %1336 : vector<8x1xf32> to vector<8x32xf32>
    %1340 = arith.mulf %1339, %1338 : vector<8x32xf32>
    %1341 = arith.addf %1335, %1340 : vector<8x32xf32>
    %1342 = vector.extract_strided_slice %1324 {offsets = [0, 3], sizes = [8, 1], strides = [1, 1]} : vector<8x8xf32> to vector<8x1xf32>
    %c3_426 = arith.constant 3 : index
    %c0_427 = arith.constant 0 : index
    %c0_428 = arith.constant 0 : index
    %1343 = vector.load %arg36[%c3_426, %c0_427, %c0_428] : memref<8x8x32xf32, #tpu.memory_space<vmem>>, vector<1x8x32xf32>
    %1344 = vector.shape_cast %1343 : vector<1x8x32xf32> to vector<8x32xf32>
    %1345 = vector.broadcast %1342 : vector<8x1xf32> to vector<8x32xf32>
    %1346 = arith.mulf %1345, %1344 : vector<8x32xf32>
    %1347 = arith.addf %1341, %1346 : vector<8x32xf32>
    %1348 = vector.extract_strided_slice %1324 {offsets = [0, 4], sizes = [8, 1], strides = [1, 1]} : vector<8x8xf32> to vector<8x1xf32>
    %c4_429 = arith.constant 4 : index
    %c0_430 = arith.constant 0 : index
    %c0_431 = arith.constant 0 : index
    %1349 = vector.load %arg36[%c4_429, %c0_430, %c0_431] : memref<8x8x32xf32, #tpu.memory_space<vmem>>, vector<1x8x32xf32>
    %1350 = vector.shape_cast %1349 : vector<1x8x32xf32> to vector<8x32xf32>
    %1351 = vector.broadcast %1348 : vector<8x1xf32> to vector<8x32xf32>
    %1352 = arith.mulf %1351, %1350 : vector<8x32xf32>
    %1353 = arith.addf %1347, %1352 : vector<8x32xf32>
    %1354 = vector.extract_strided_slice %1324 {offsets = [0, 5], sizes = [8, 1], strides = [1, 1]} : vector<8x8xf32> to vector<8x1xf32>
    %c5_432 = arith.constant 5 : index
    %c0_433 = arith.constant 0 : index
    %c0_434 = arith.constant 0 : index
    %1355 = vector.load %arg36[%c5_432, %c0_433, %c0_434] : memref<8x8x32xf32, #tpu.memory_space<vmem>>, vector<1x8x32xf32>
    %1356 = vector.shape_cast %1355 : vector<1x8x32xf32> to vector<8x32xf32>
    %1357 = vector.broadcast %1354 : vector<8x1xf32> to vector<8x32xf32>
    %1358 = arith.mulf %1357, %1356 : vector<8x32xf32>
    %1359 = arith.addf %1353, %1358 : vector<8x32xf32>
    %1360 = vector.extract_strided_slice %1324 {offsets = [0, 6], sizes = [8, 1], strides = [1, 1]} : vector<8x8xf32> to vector<8x1xf32>
    %c6_435 = arith.constant 6 : index
    %c0_436 = arith.constant 0 : index
    %c0_437 = arith.constant 0 : index
    %1361 = vector.load %arg36[%c6_435, %c0_436, %c0_437] : memref<8x8x32xf32, #tpu.memory_space<vmem>>, vector<1x8x32xf32>
    %1362 = vector.shape_cast %1361 : vector<1x8x32xf32> to vector<8x32xf32>
    %1363 = vector.broadcast %1360 : vector<8x1xf32> to vector<8x32xf32>
    %1364 = arith.mulf %1363, %1362 : vector<8x32xf32>
    %1365 = arith.addf %1359, %1364 : vector<8x32xf32>
    %1366 = vector.extract_strided_slice %1324 {offsets = [0, 7], sizes = [8, 1], strides = [1, 1]} : vector<8x8xf32> to vector<8x1xf32>
    %c7_438 = arith.constant 7 : index
    %c0_439 = arith.constant 0 : index
    %c0_440 = arith.constant 0 : index
    %1367 = vector.load %arg36[%c7_438, %c0_439, %c0_440] : memref<8x8x32xf32, #tpu.memory_space<vmem>>, vector<1x8x32xf32>
    %1368 = vector.shape_cast %1367 : vector<1x8x32xf32> to vector<8x32xf32>
    %1369 = vector.broadcast %1366 : vector<8x1xf32> to vector<8x32xf32>
    %1370 = arith.mulf %1369, %1368 : vector<8x32xf32>
    %1371 = arith.addf %1365, %1370 : vector<8x32xf32>
    %cst_441 = arith.constant dense<0.000000e+00> : vector<8x256xf32>
    %1372 = tpu.matmul %1303, %510, %cst_441 {dimension_numbers = #tpu.dot_dimension_numbers<[1], [0], [0], [1], [0, 0, 1, 1], [], []>} : vector<8x32xbf16>, vector<32x256xbf16>, vector<8x256xf32> -> vector<8x256xf32>
    %1373 = vector.broadcast %511 : vector<1x256xf32> to vector<8x256xf32>
    %1374 = arith.addf %1372, %1373 : vector<8x256xf32>
    %1375 = vector.extract_strided_slice %1374 {offsets = [0, 0], sizes = [8, 8], strides = [1, 1]} : vector<8x256xf32> to vector<8x8xf32>
    %1376 = vector.extract_strided_slice %1374 {offsets = [0, 128], sizes = [8, 8], strides = [1, 1]} : vector<8x256xf32> to vector<8x8xf32>
    %cst_442 = arith.constant dense<0.000000e+00> : vector<8x256xf32>
    %1377 = tpu.matmul %1303, %512, %cst_442 {dimension_numbers = #tpu.dot_dimension_numbers<[1], [0], [0], [1], [0, 0, 1, 1], [], []>} : vector<8x32xbf16>, vector<32x256xbf16>, vector<8x256xf32> -> vector<8x256xf32>
    %1378 = arith.truncf %1371 : vector<8x32xf32> to vector<8x32xbf16>
    %cst_443 = arith.constant dense<0.000000e+00> : vector<8x256xf32>
    %1379 = tpu.matmul %1378, %513, %cst_443 {dimension_numbers = #tpu.dot_dimension_numbers<[1], [0], [0], [1], [0, 0, 1, 1], [], []>} : vector<8x32xbf16>, vector<32x256xbf16>, vector<8x256xf32> -> vector<8x256xf32>
    %1380 = arith.addf %1377, %1379 : vector<8x256xf32>
    %1381 = vector.broadcast %514 : vector<1x256xf32> to vector<8x256xf32>
    %1382 = arith.addf %1380, %1381 : vector<8x256xf32>
    %1383 = vector.extract_strided_slice %1382 {offsets = [0, 0], sizes = [8, 8], strides = [1, 1]} : vector<8x256xf32> to vector<8x8xf32>
    %1384 = vector.extract_strided_slice %1382 {offsets = [0, 128], sizes = [8, 8], strides = [1, 1]} : vector<8x256xf32> to vector<8x8xf32>
    %1385 = arith.subf %1376, %1384 : vector<8x8xf32>
    %1386 = arith.subf %1384, %1376 : vector<8x8xf32>
    %1387 = math.exp %1386 : vector<8x8xf32>
    %1388 = arith.addf %1385, %1387 : vector<8x8xf32>
    %1389 = arith.subf %1383, %1375 : vector<8x8xf32>
    %1390 = arith.mulf %1389, %1389 : vector<8x8xf32>
    %cst_444 = arith.constant 0.000000e+00 : f32
    %1391 = vector.broadcast %cst_444 : f32 to vector<8x8xf32>
    %1392 = arith.subf %1391, %1376 : vector<8x8xf32>
    %1393 = math.exp %1392 : vector<8x8xf32>
    %1394 = arith.mulf %1390, %1393 : vector<8x8xf32>
    %1395 = arith.addf %1388, %1394 : vector<8x8xf32>
    %cst_445 = arith.constant 1.000000e+00 : f32
    %1396 = vector.broadcast %cst_445 : f32 to vector<8x8xf32>
    %1397 = arith.subf %1395, %1396 : vector<8x8xf32>
    %cst_446 = arith.constant 5.000000e-01 : f32
    %1398 = vector.broadcast %cst_446 : f32 to vector<8x8xf32>
    %1399 = arith.mulf %1398, %1397 : vector<8x8xf32>
    %cst_447 = arith.constant dense<0.000000e+00> : vector<8xf32>
    %1400 = vector.multi_reduction <add>, %1399, %cst_447 [1] : vector<8x8xf32> to vector<8xf32>
    %1401 = vector.shape_cast %1400 : vector<8xf32> to vector<8x1xf32>
    %1402 = arith.mulf %1401, %1310 : vector<8x1xf32>
    %1403 = arith.addf %1247, %1402 : vector<8x1xf32>
    %1404 = arith.truncf %1375 : vector<8x8xf32> to vector<8x8xbf16>
    %cst_448 = arith.constant dense<0.000000e+00> : vector<8x32xf32>
    %1405 = tpu.matmul %1404, %515, %cst_448 {dimension_numbers = #tpu.dot_dimension_numbers<[1], [0], [0], [1], [0, 0, 1, 1], [], []>} : vector<8x8xbf16>, vector<8x32xbf16>, vector<8x32xf32> -> vector<8x32xf32>
    %1406 = vector.broadcast %516 : vector<1x32xf32> to vector<8x32xf32>
    %1407 = arith.addf %1405, %1406 : vector<8x32xf32>
    %1408 = arith.subf %1371, %1407 : vector<8x32xf32>
    %1409 = arith.mulf %1408, %1408 : vector<8x32xf32>
    %cst_449 = arith.constant dense<0.000000e+00> : vector<8xf32>
    %1410 = vector.multi_reduction <add>, %1409, %cst_449 [1] : vector<8x32xf32> to vector<8xf32>
    %1411 = vector.shape_cast %1410 : vector<8xf32> to vector<8x1xf32>
    %1412 = arith.addf %1256, %1411 : vector<8x1xf32>
    %1413 = arith.index_cast %c5_i32_410 : i32 to index
    %c0_450 = arith.constant 0 : index
    %c0_451 = arith.constant 0 : index
    %1414 = vector.load %arg39[%1413, %c0_450, %c0_451] : memref<9x8x32xf32, #tpu.memory_space<vmem>>, vector<1x8x32xf32>
    %1415 = vector.shape_cast %1414 : vector<1x8x32xf32> to vector<8x32xf32>
    %1416 = arith.addf %1415, %508 : vector<8x32xf32>
    %1417 = arith.truncf %1407 : vector<8x32xf32> to vector<8x32xbf16>
    %cst_452 = arith.constant dense<0.000000e+00> : vector<8x32xf32>
    %1418 = tpu.matmul %1417, %517, %cst_452 {dimension_numbers = #tpu.dot_dimension_numbers<[1], [0], [0], [1], [0, 0, 1, 1], [], []>} : vector<8x32xbf16>, vector<32x32xbf16>, vector<8x32xf32> -> vector<8x32xf32>
    %1419 = arith.addf %1416, %1418 : vector<8x32xf32>
    %1420 = arith.truncf %1375 : vector<8x8xf32> to vector<8x8xbf16>
    %cst_453 = arith.constant dense<0.000000e+00> : vector<8x32xf32>
    %1421 = tpu.matmul %1420, %518, %cst_453 {dimension_numbers = #tpu.dot_dimension_numbers<[1], [0], [0], [1], [0, 0, 1, 1], [], []>} : vector<8x8xbf16>, vector<8x32xbf16>, vector<8x32xf32> -> vector<8x32xf32>
    %1422 = arith.addf %1419, %1421 : vector<8x32xf32>
    %1423 = arith.truncf %1422 : vector<8x32xf32> to vector<8x32xbf16>
    %cst_454 = arith.constant dense<0.000000e+00> : vector<8x512xf32>
    %1424 = tpu.matmul %1423, %519, %cst_454 {dimension_numbers = #tpu.dot_dimension_numbers<[1], [0], [0], [1], [0, 0, 1, 1], [], []>} : vector<8x32xbf16>, vector<32x512xbf16>, vector<8x512xf32> -> vector<8x512xf32>
    %cst_455 = arith.constant dense<0.000000e+00> : vector<8x512xf32>
    %1425 = tpu.matmul %1303, %520, %cst_455 {dimension_numbers = #tpu.dot_dimension_numbers<[1], [0], [0], [1], [0, 0, 1, 1], [], []>} : vector<8x32xbf16>, vector<32x512xbf16>, vector<8x512xf32> -> vector<8x512xf32>
    %1426 = arith.addf %1424, %1425 : vector<8x512xf32>
    %1427 = vector.broadcast %521 : vector<1x512xf32> to vector<8x512xf32>
    %1428 = arith.addf %1426, %1427 : vector<8x512xf32>
    %1429 = vector.extract_strided_slice %1428 {offsets = [0, 0], sizes = [8, 32], strides = [1, 1]} : vector<8x512xf32> to vector<8x32xf32>
    %1430 = arith.negf %1429 : vector<8x32xf32>
    %1431 = math.exp %1430 : vector<8x32xf32>
    %cst_456 = arith.constant 1.000000e+00 : f32
    %1432 = vector.broadcast %cst_456 : f32 to vector<8x32xf32>
    %1433 = arith.addf %1432, %1431 : vector<8x32xf32>
    %1434 = arith.divf %1432, %1433 : vector<8x32xf32>
    %1435 = vector.extract_strided_slice %1428 {offsets = [0, 128], sizes = [8, 32], strides = [1, 1]} : vector<8x512xf32> to vector<8x32xf32>
    %1436 = arith.negf %1435 : vector<8x32xf32>
    %1437 = math.exp %1436 : vector<8x32xf32>
    %cst_457 = arith.constant 1.000000e+00 : f32
    %1438 = vector.broadcast %cst_457 : f32 to vector<8x32xf32>
    %1439 = arith.addf %1438, %1437 : vector<8x32xf32>
    %1440 = arith.divf %1438, %1439 : vector<8x32xf32>
    %1441 = vector.extract_strided_slice %1428 {offsets = [0, 256], sizes = [8, 32], strides = [1, 1]} : vector<8x512xf32> to vector<8x32xf32>
    %1442 = math.tanh %1441 : vector<8x32xf32>
    %1443 = vector.extract_strided_slice %1428 {offsets = [0, 384], sizes = [8, 32], strides = [1, 1]} : vector<8x512xf32> to vector<8x32xf32>
    %1444 = arith.negf %1443 : vector<8x32xf32>
    %1445 = math.exp %1444 : vector<8x32xf32>
    %cst_458 = arith.constant 1.000000e+00 : f32
    %1446 = vector.broadcast %cst_458 : f32 to vector<8x32xf32>
    %1447 = arith.addf %1446, %1445 : vector<8x32xf32>
    %1448 = arith.divf %1446, %1447 : vector<8x32xf32>
    %1449 = arith.mulf %1440, %1295 : vector<8x32xf32>
    %1450 = arith.mulf %1434, %1442 : vector<8x32xf32>
    %1451 = arith.addf %1449, %1450 : vector<8x32xf32>
    %1452 = math.tanh %1451 : vector<8x32xf32>
    %1453 = arith.mulf %1448, %1452 : vector<8x32xf32>
    %1454 = arith.truncf %1453 : vector<8x32xf32> to vector<8x32xbf16>
    %1455 = arith.index_cast %c5_i32_410 : i32 to index
    %c0_459 = arith.constant 0 : index
    %c0_460 = arith.constant 0 : index
    %1456 = vector.load %arg31[%1455, %c0_459, %c0_460] : memref<9x8x32xbf16, #tpu.memory_space<vmem>>, vector<1x8x32xbf16>
    %1457 = vector.shape_cast %1456 : vector<1x8x32xbf16> to vector<8x32xbf16>
    %1458 = vector.shape_cast %1454 : vector<8x32xbf16> to vector<1x8x32xbf16>
    tpu.vector_store %arg31[%1455, %c0_459, %c0_460], %1458 {strides = array<i32>} : memref<9x8x32xbf16, #tpu.memory_space<vmem>>, vector<1x8x32xbf16>,
    %c6_i32_461 = arith.constant 6 : i32
    %1459 = arith.truncf %1453 : vector<8x32xf32> to vector<8x32xbf16>
    %cst_462 = arith.constant 1.000000e+00 : f32
    %1460 = vector.broadcast %cst_462 : f32 to vector<8x1xf32>
    %1461 = arith.addf %1, %1460 : vector<8x1xf32>
    %1462 = arith.sitofp %c6_i32_461 : i32 to f32
    %1463 = vector.broadcast %1462 : f32 to vector<8x1xf32>
    %1464 = arith.cmpf ogt, %1461, %1463 : vector<8x1xf32>
    %1465 = arith.extui %1464 : vector<8x1xi1> to vector<8x1xi32>
    %1466 = arith.sitofp %1465 : vector<8x1xi32> to vector<8x1xf32>
    %1467 = arith.index_cast %c6_i32_461 : i32 to index
    %c0_463 = arith.constant 0 : index
    %c0_464 = arith.constant 0 : index
    %1468 = vector.load %arg38[%1467, %c0_463, %c0_464] : memref<9x8x8xf32, #tpu.memory_space<vmem>>, vector<1x8x8xf32>
    %1469 = vector.shape_cast %1468 : vector<1x8x8xf32> to vector<8x8xf32>
    %cst_465 = arith.constant dense<0.000000e+00> : vector<8x8xf32>
    %1470 = tpu.matmul %1459, %509, %cst_465 {dimension_numbers = #tpu.dot_dimension_numbers<[1], [0], [0], [1], [0, 0, 1, 1], [], []>} : vector<8x32xbf16>, vector<32x8xbf16>, vector<8x8xf32> -> vector<8x8xf32>
    %1471 = arith.addf %1469, %1470 : vector<8x8xf32>
    %cst_466 = arith.constant dense<0xFF800000> : vector<8xf32>
    %1472 = vector.multi_reduction <maximumf>, %1471, %cst_466 [1] : vector<8x8xf32> to vector<8xf32>
    %1473 = vector.shape_cast %1472 : vector<8xf32> to vector<8x1xf32>
    %1474 = vector.broadcast %1473 : vector<8x1xf32> to vector<8x8xf32>
    %1475 = arith.subf %1471, %1474 : vector<8x8xf32>
    %1476 = math.exp %1475 : vector<8x8xf32>
    %cst_467 = arith.constant dense<0.000000e+00> : vector<8xf32>
    %1477 = vector.multi_reduction <add>, %1476, %cst_467 [1] : vector<8x8xf32> to vector<8xf32>
    %1478 = vector.shape_cast %1477 : vector<8xf32> to vector<8x1xf32>
    %1479 = vector.broadcast %1478 : vector<8x1xf32> to vector<8x8xf32>
    %1480 = arith.divf %1476, %1479 : vector<8x8xf32>
    %1481 = vector.extract_strided_slice %1480 {offsets = [0, 0], sizes = [8, 1], strides = [1, 1]} : vector<8x8xf32> to vector<8x1xf32>
    %c0_468 = arith.constant 0 : index
    %c0_469 = arith.constant 0 : index
    %c0_470 = arith.constant 0 : index
    %1482 = vector.load %arg36[%c0_468, %c0_469, %c0_470] : memref<8x8x32xf32, #tpu.memory_space<vmem>>, vector<1x8x32xf32>
    %1483 = vector.shape_cast %1482 : vector<1x8x32xf32> to vector<8x32xf32>
    %1484 = vector.broadcast %1481 : vector<8x1xf32> to vector<8x32xf32>
    %1485 = arith.mulf %1484, %1483 : vector<8x32xf32>
    %1486 = vector.extract_strided_slice %1480 {offsets = [0, 1], sizes = [8, 1], strides = [1, 1]} : vector<8x8xf32> to vector<8x1xf32>
    %c1_471 = arith.constant 1 : index
    %c0_472 = arith.constant 0 : index
    %c0_473 = arith.constant 0 : index
    %1487 = vector.load %arg36[%c1_471, %c0_472, %c0_473] : memref<8x8x32xf32, #tpu.memory_space<vmem>>, vector<1x8x32xf32>
    %1488 = vector.shape_cast %1487 : vector<1x8x32xf32> to vector<8x32xf32>
    %1489 = vector.broadcast %1486 : vector<8x1xf32> to vector<8x32xf32>
    %1490 = arith.mulf %1489, %1488 : vector<8x32xf32>
    %1491 = arith.addf %1485, %1490 : vector<8x32xf32>
    %1492 = vector.extract_strided_slice %1480 {offsets = [0, 2], sizes = [8, 1], strides = [1, 1]} : vector<8x8xf32> to vector<8x1xf32>
    %c2_474 = arith.constant 2 : index
    %c0_475 = arith.constant 0 : index
    %c0_476 = arith.constant 0 : index
    %1493 = vector.load %arg36[%c2_474, %c0_475, %c0_476] : memref<8x8x32xf32, #tpu.memory_space<vmem>>, vector<1x8x32xf32>
    %1494 = vector.shape_cast %1493 : vector<1x8x32xf32> to vector<8x32xf32>
    %1495 = vector.broadcast %1492 : vector<8x1xf32> to vector<8x32xf32>
    %1496 = arith.mulf %1495, %1494 : vector<8x32xf32>
    %1497 = arith.addf %1491, %1496 : vector<8x32xf32>
    %1498 = vector.extract_strided_slice %1480 {offsets = [0, 3], sizes = [8, 1], strides = [1, 1]} : vector<8x8xf32> to vector<8x1xf32>
    %c3_477 = arith.constant 3 : index
    %c0_478 = arith.constant 0 : index
    %c0_479 = arith.constant 0 : index
    %1499 = vector.load %arg36[%c3_477, %c0_478, %c0_479] : memref<8x8x32xf32, #tpu.memory_space<vmem>>, vector<1x8x32xf32>
    %1500 = vector.shape_cast %1499 : vector<1x8x32xf32> to vector<8x32xf32>
    %1501 = vector.broadcast %1498 : vector<8x1xf32> to vector<8x32xf32>
    %1502 = arith.mulf %1501, %1500 : vector<8x32xf32>
    %1503 = arith.addf %1497, %1502 : vector<8x32xf32>
    %1504 = vector.extract_strided_slice %1480 {offsets = [0, 4], sizes = [8, 1], strides = [1, 1]} : vector<8x8xf32> to vector<8x1xf32>
    %c4_480 = arith.constant 4 : index
    %c0_481 = arith.constant 0 : index
    %c0_482 = arith.constant 0 : index
    %1505 = vector.load %arg36[%c4_480, %c0_481, %c0_482] : memref<8x8x32xf32, #tpu.memory_space<vmem>>, vector<1x8x32xf32>
    %1506 = vector.shape_cast %1505 : vector<1x8x32xf32> to vector<8x32xf32>
    %1507 = vector.broadcast %1504 : vector<8x1xf32> to vector<8x32xf32>
    %1508 = arith.mulf %1507, %1506 : vector<8x32xf32>
    %1509 = arith.addf %1503, %1508 : vector<8x32xf32>
    %1510 = vector.extract_strided_slice %1480 {offsets = [0, 5], sizes = [8, 1], strides = [1, 1]} : vector<8x8xf32> to vector<8x1xf32>
    %c5_483 = arith.constant 5 : index
    %c0_484 = arith.constant 0 : index
    %c0_485 = arith.constant 0 : index
    %1511 = vector.load %arg36[%c5_483, %c0_484, %c0_485] : memref<8x8x32xf32, #tpu.memory_space<vmem>>, vector<1x8x32xf32>
    %1512 = vector.shape_cast %1511 : vector<1x8x32xf32> to vector<8x32xf32>
    %1513 = vector.broadcast %1510 : vector<8x1xf32> to vector<8x32xf32>
    %1514 = arith.mulf %1513, %1512 : vector<8x32xf32>
    %1515 = arith.addf %1509, %1514 : vector<8x32xf32>
    %1516 = vector.extract_strided_slice %1480 {offsets = [0, 6], sizes = [8, 1], strides = [1, 1]} : vector<8x8xf32> to vector<8x1xf32>
    %c6_486 = arith.constant 6 : index
    %c0_487 = arith.constant 0 : index
    %c0_488 = arith.constant 0 : index
    %1517 = vector.load %arg36[%c6_486, %c0_487, %c0_488] : memref<8x8x32xf32, #tpu.memory_space<vmem>>, vector<1x8x32xf32>
    %1518 = vector.shape_cast %1517 : vector<1x8x32xf32> to vector<8x32xf32>
    %1519 = vector.broadcast %1516 : vector<8x1xf32> to vector<8x32xf32>
    %1520 = arith.mulf %1519, %1518 : vector<8x32xf32>
    %1521 = arith.addf %1515, %1520 : vector<8x32xf32>
    %1522 = vector.extract_strided_slice %1480 {offsets = [0, 7], sizes = [8, 1], strides = [1, 1]} : vector<8x8xf32> to vector<8x1xf32>
    %c7_489 = arith.constant 7 : index
    %c0_490 = arith.constant 0 : index
    %c0_491 = arith.constant 0 : index
    %1523 = vector.load %arg36[%c7_489, %c0_490, %c0_491] : memref<8x8x32xf32, #tpu.memory_space<vmem>>, vector<1x8x32xf32>
    %1524 = vector.shape_cast %1523 : vector<1x8x32xf32> to vector<8x32xf32>
    %1525 = vector.broadcast %1522 : vector<8x1xf32> to vector<8x32xf32>
    %1526 = arith.mulf %1525, %1524 : vector<8x32xf32>
    %1527 = arith.addf %1521, %1526 : vector<8x32xf32>
    %cst_492 = arith.constant dense<0.000000e+00> : vector<8x256xf32>
    %1528 = tpu.matmul %1459, %510, %cst_492 {dimension_numbers = #tpu.dot_dimension_numbers<[1], [0], [0], [1], [0, 0, 1, 1], [], []>} : vector<8x32xbf16>, vector<32x256xbf16>, vector<8x256xf32> -> vector<8x256xf32>
    %1529 = vector.broadcast %511 : vector<1x256xf32> to vector<8x256xf32>
    %1530 = arith.addf %1528, %1529 : vector<8x256xf32>
    %1531 = vector.extract_strided_slice %1530 {offsets = [0, 0], sizes = [8, 8], strides = [1, 1]} : vector<8x256xf32> to vector<8x8xf32>
    %1532 = vector.extract_strided_slice %1530 {offsets = [0, 128], sizes = [8, 8], strides = [1, 1]} : vector<8x256xf32> to vector<8x8xf32>
    %cst_493 = arith.constant dense<0.000000e+00> : vector<8x256xf32>
    %1533 = tpu.matmul %1459, %512, %cst_493 {dimension_numbers = #tpu.dot_dimension_numbers<[1], [0], [0], [1], [0, 0, 1, 1], [], []>} : vector<8x32xbf16>, vector<32x256xbf16>, vector<8x256xf32> -> vector<8x256xf32>
    %1534 = arith.truncf %1527 : vector<8x32xf32> to vector<8x32xbf16>
    %cst_494 = arith.constant dense<0.000000e+00> : vector<8x256xf32>
    %1535 = tpu.matmul %1534, %513, %cst_494 {dimension_numbers = #tpu.dot_dimension_numbers<[1], [0], [0], [1], [0, 0, 1, 1], [], []>} : vector<8x32xbf16>, vector<32x256xbf16>, vector<8x256xf32> -> vector<8x256xf32>
    %1536 = arith.addf %1533, %1535 : vector<8x256xf32>
    %1537 = vector.broadcast %514 : vector<1x256xf32> to vector<8x256xf32>
    %1538 = arith.addf %1536, %1537 : vector<8x256xf32>
    %1539 = vector.extract_strided_slice %1538 {offsets = [0, 0], sizes = [8, 8], strides = [1, 1]} : vector<8x256xf32> to vector<8x8xf32>
    %1540 = vector.extract_strided_slice %1538 {offsets = [0, 128], sizes = [8, 8], strides = [1, 1]} : vector<8x256xf32> to vector<8x8xf32>
    %1541 = arith.subf %1532, %1540 : vector<8x8xf32>
    %1542 = arith.subf %1540, %1532 : vector<8x8xf32>
    %1543 = math.exp %1542 : vector<8x8xf32>
    %1544 = arith.addf %1541, %1543 : vector<8x8xf32>
    %1545 = arith.subf %1539, %1531 : vector<8x8xf32>
    %1546 = arith.mulf %1545, %1545 : vector<8x8xf32>
    %cst_495 = arith.constant 0.000000e+00 : f32
    %1547 = vector.broadcast %cst_495 : f32 to vector<8x8xf32>
    %1548 = arith.subf %1547, %1532 : vector<8x8xf32>
    %1549 = math.exp %1548 : vector<8x8xf32>
    %1550 = arith.mulf %1546, %1549 : vector<8x8xf32>
    %1551 = arith.addf %1544, %1550 : vector<8x8xf32>
    %cst_496 = arith.constant 1.000000e+00 : f32
    %1552 = vector.broadcast %cst_496 : f32 to vector<8x8xf32>
    %1553 = arith.subf %1551, %1552 : vector<8x8xf32>
    %cst_497 = arith.constant 5.000000e-01 : f32
    %1554 = vector.broadcast %cst_497 : f32 to vector<8x8xf32>
    %1555 = arith.mulf %1554, %1553 : vector<8x8xf32>
    %cst_498 = arith.constant dense<0.000000e+00> : vector<8xf32>
    %1556 = vector.multi_reduction <add>, %1555, %cst_498 [1] : vector<8x8xf32> to vector<8xf32>
    %1557 = vector.shape_cast %1556 : vector<8xf32> to vector<8x1xf32>
    %1558 = arith.mulf %1557, %1466 : vector<8x1xf32>
    %1559 = arith.addf %1403, %1558 : vector<8x1xf32>
    %1560 = arith.truncf %1531 : vector<8x8xf32> to vector<8x8xbf16>
    %cst_499 = arith.constant dense<0.000000e+00> : vector<8x32xf32>
    %1561 = tpu.matmul %1560, %515, %cst_499 {dimension_numbers = #tpu.dot_dimension_numbers<[1], [0], [0], [1], [0, 0, 1, 1], [], []>} : vector<8x8xbf16>, vector<8x32xbf16>, vector<8x32xf32> -> vector<8x32xf32>
    %1562 = vector.broadcast %516 : vector<1x32xf32> to vector<8x32xf32>
    %1563 = arith.addf %1561, %1562 : vector<8x32xf32>
    %1564 = arith.subf %1527, %1563 : vector<8x32xf32>
    %1565 = arith.mulf %1564, %1564 : vector<8x32xf32>
    %cst_500 = arith.constant dense<0.000000e+00> : vector<8xf32>
    %1566 = vector.multi_reduction <add>, %1565, %cst_500 [1] : vector<8x32xf32> to vector<8xf32>
    %1567 = vector.shape_cast %1566 : vector<8xf32> to vector<8x1xf32>
    %1568 = arith.addf %1412, %1567 : vector<8x1xf32>
    %1569 = arith.index_cast %c6_i32_461 : i32 to index
    %c0_501 = arith.constant 0 : index
    %c0_502 = arith.constant 0 : index
    %1570 = vector.load %arg39[%1569, %c0_501, %c0_502] : memref<9x8x32xf32, #tpu.memory_space<vmem>>, vector<1x8x32xf32>
    %1571 = vector.shape_cast %1570 : vector<1x8x32xf32> to vector<8x32xf32>
    %1572 = arith.addf %1571, %508 : vector<8x32xf32>
    %1573 = arith.truncf %1563 : vector<8x32xf32> to vector<8x32xbf16>
    %cst_503 = arith.constant dense<0.000000e+00> : vector<8x32xf32>
    %1574 = tpu.matmul %1573, %517, %cst_503 {dimension_numbers = #tpu.dot_dimension_numbers<[1], [0], [0], [1], [0, 0, 1, 1], [], []>} : vector<8x32xbf16>, vector<32x32xbf16>, vector<8x32xf32> -> vector<8x32xf32>
    %1575 = arith.addf %1572, %1574 : vector<8x32xf32>
    %1576 = arith.truncf %1531 : vector<8x8xf32> to vector<8x8xbf16>
    %cst_504 = arith.constant dense<0.000000e+00> : vector<8x32xf32>
    %1577 = tpu.matmul %1576, %518, %cst_504 {dimension_numbers = #tpu.dot_dimension_numbers<[1], [0], [0], [1], [0, 0, 1, 1], [], []>} : vector<8x8xbf16>, vector<8x32xbf16>, vector<8x32xf32> -> vector<8x32xf32>
    %1578 = arith.addf %1575, %1577 : vector<8x32xf32>
    %1579 = arith.truncf %1578 : vector<8x32xf32> to vector<8x32xbf16>
    %cst_505 = arith.constant dense<0.000000e+00> : vector<8x512xf32>
    %1580 = tpu.matmul %1579, %519, %cst_505 {dimension_numbers = #tpu.dot_dimension_numbers<[1], [0], [0], [1], [0, 0, 1, 1], [], []>} : vector<8x32xbf16>, vector<32x512xbf16>, vector<8x512xf32> -> vector<8x512xf32>
    %cst_506 = arith.constant dense<0.000000e+00> : vector<8x512xf32>
    %1581 = tpu.matmul %1459, %520, %cst_506 {dimension_numbers = #tpu.dot_dimension_numbers<[1], [0], [0], [1], [0, 0, 1, 1], [], []>} : vector<8x32xbf16>, vector<32x512xbf16>, vector<8x512xf32> -> vector<8x512xf32>
    %1582 = arith.addf %1580, %1581 : vector<8x512xf32>
    %1583 = vector.broadcast %521 : vector<1x512xf32> to vector<8x512xf32>
    %1584 = arith.addf %1582, %1583 : vector<8x512xf32>
    %1585 = vector.extract_strided_slice %1584 {offsets = [0, 0], sizes = [8, 32], strides = [1, 1]} : vector<8x512xf32> to vector<8x32xf32>
    %1586 = arith.negf %1585 : vector<8x32xf32>
    %1587 = math.exp %1586 : vector<8x32xf32>
    %cst_507 = arith.constant 1.000000e+00 : f32
    %1588 = vector.broadcast %cst_507 : f32 to vector<8x32xf32>
    %1589 = arith.addf %1588, %1587 : vector<8x32xf32>
    %1590 = arith.divf %1588, %1589 : vector<8x32xf32>
    %1591 = vector.extract_strided_slice %1584 {offsets = [0, 128], sizes = [8, 32], strides = [1, 1]} : vector<8x512xf32> to vector<8x32xf32>
    %1592 = arith.negf %1591 : vector<8x32xf32>
    %1593 = math.exp %1592 : vector<8x32xf32>
    %cst_508 = arith.constant 1.000000e+00 : f32
    %1594 = vector.broadcast %cst_508 : f32 to vector<8x32xf32>
    %1595 = arith.addf %1594, %1593 : vector<8x32xf32>
    %1596 = arith.divf %1594, %1595 : vector<8x32xf32>
    %1597 = vector.extract_strided_slice %1584 {offsets = [0, 256], sizes = [8, 32], strides = [1, 1]} : vector<8x512xf32> to vector<8x32xf32>
    %1598 = math.tanh %1597 : vector<8x32xf32>
    %1599 = vector.extract_strided_slice %1584 {offsets = [0, 384], sizes = [8, 32], strides = [1, 1]} : vector<8x512xf32> to vector<8x32xf32>
    %1600 = arith.negf %1599 : vector<8x32xf32>
    %1601 = math.exp %1600 : vector<8x32xf32>
    %cst_509 = arith.constant 1.000000e+00 : f32
    %1602 = vector.broadcast %cst_509 : f32 to vector<8x32xf32>
    %1603 = arith.addf %1602, %1601 : vector<8x32xf32>
    %1604 = arith.divf %1602, %1603 : vector<8x32xf32>
    %1605 = arith.mulf %1596, %1451 : vector<8x32xf32>
    %1606 = arith.mulf %1590, %1598 : vector<8x32xf32>
    %1607 = arith.addf %1605, %1606 : vector<8x32xf32>
    %1608 = math.tanh %1607 : vector<8x32xf32>
    %1609 = arith.mulf %1604, %1608 : vector<8x32xf32>
    %1610 = arith.truncf %1609 : vector<8x32xf32> to vector<8x32xbf16>
    %1611 = arith.index_cast %c6_i32_461 : i32 to index
    %c0_510 = arith.constant 0 : index
    %c0_511 = arith.constant 0 : index
    %1612 = vector.load %arg31[%1611, %c0_510, %c0_511] : memref<9x8x32xbf16, #tpu.memory_space<vmem>>, vector<1x8x32xbf16>
    %1613 = vector.shape_cast %1612 : vector<1x8x32xbf16> to vector<8x32xbf16>
    %1614 = vector.shape_cast %1610 : vector<8x32xbf16> to vector<1x8x32xbf16>
    tpu.vector_store %arg31[%1611, %c0_510, %c0_511], %1614 {strides = array<i32>} : memref<9x8x32xbf16, #tpu.memory_space<vmem>>, vector<1x8x32xbf16>,
    %c7_i32_512 = arith.constant 7 : i32
    %1615 = arith.truncf %1609 : vector<8x32xf32> to vector<8x32xbf16>
    %cst_513 = arith.constant 1.000000e+00 : f32
    %1616 = vector.broadcast %cst_513 : f32 to vector<8x1xf32>
    %1617 = arith.addf %1, %1616 : vector<8x1xf32>
    %1618 = arith.sitofp %c7_i32_512 : i32 to f32
    %1619 = vector.broadcast %1618 : f32 to vector<8x1xf32>
    %1620 = arith.cmpf ogt, %1617, %1619 : vector<8x1xf32>
    %1621 = arith.extui %1620 : vector<8x1xi1> to vector<8x1xi32>
    %1622 = arith.sitofp %1621 : vector<8x1xi32> to vector<8x1xf32>
    %1623 = arith.index_cast %c7_i32_512 : i32 to index
    %c0_514 = arith.constant 0 : index
    %c0_515 = arith.constant 0 : index
    %1624 = vector.load %arg38[%1623, %c0_514, %c0_515] : memref<9x8x8xf32, #tpu.memory_space<vmem>>, vector<1x8x8xf32>
    %1625 = vector.shape_cast %1624 : vector<1x8x8xf32> to vector<8x8xf32>
    %cst_516 = arith.constant dense<0.000000e+00> : vector<8x8xf32>
    %1626 = tpu.matmul %1615, %509, %cst_516 {dimension_numbers = #tpu.dot_dimension_numbers<[1], [0], [0], [1], [0, 0, 1, 1], [], []>} : vector<8x32xbf16>, vector<32x8xbf16>, vector<8x8xf32> -> vector<8x8xf32>
    %1627 = arith.addf %1625, %1626 : vector<8x8xf32>
    %cst_517 = arith.constant dense<0xFF800000> : vector<8xf32>
    %1628 = vector.multi_reduction <maximumf>, %1627, %cst_517 [1] : vector<8x8xf32> to vector<8xf32>
    %1629 = vector.shape_cast %1628 : vector<8xf32> to vector<8x1xf32>
    %1630 = vector.broadcast %1629 : vector<8x1xf32> to vector<8x8xf32>
    %1631 = arith.subf %1627, %1630 : vector<8x8xf32>
    %1632 = math.exp %1631 : vector<8x8xf32>
    %cst_518 = arith.constant dense<0.000000e+00> : vector<8xf32>
    %1633 = vector.multi_reduction <add>, %1632, %cst_518 [1] : vector<8x8xf32> to vector<8xf32>
    %1634 = vector.shape_cast %1633 : vector<8xf32> to vector<8x1xf32>
    %1635 = vector.broadcast %1634 : vector<8x1xf32> to vector<8x8xf32>
    %1636 = arith.divf %1632, %1635 : vector<8x8xf32>
    %1637 = vector.extract_strided_slice %1636 {offsets = [0, 0], sizes = [8, 1], strides = [1, 1]} : vector<8x8xf32> to vector<8x1xf32>
    %c0_519 = arith.constant 0 : index
    %c0_520 = arith.constant 0 : index
    %c0_521 = arith.constant 0 : index
    %1638 = vector.load %arg36[%c0_519, %c0_520, %c0_521] : memref<8x8x32xf32, #tpu.memory_space<vmem>>, vector<1x8x32xf32>
    %1639 = vector.shape_cast %1638 : vector<1x8x32xf32> to vector<8x32xf32>
    %1640 = vector.broadcast %1637 : vector<8x1xf32> to vector<8x32xf32>
    %1641 = arith.mulf %1640, %1639 : vector<8x32xf32>
    %1642 = vector.extract_strided_slice %1636 {offsets = [0, 1], sizes = [8, 1], strides = [1, 1]} : vector<8x8xf32> to vector<8x1xf32>
    %c1_522 = arith.constant 1 : index
    %c0_523 = arith.constant 0 : index
    %c0_524 = arith.constant 0 : index
    %1643 = vector.load %arg36[%c1_522, %c0_523, %c0_524] : memref<8x8x32xf32, #tpu.memory_space<vmem>>, vector<1x8x32xf32>
    %1644 = vector.shape_cast %1643 : vector<1x8x32xf32> to vector<8x32xf32>
    %1645 = vector.broadcast %1642 : vector<8x1xf32> to vector<8x32xf32>
    %1646 = arith.mulf %1645, %1644 : vector<8x32xf32>
    %1647 = arith.addf %1641, %1646 : vector<8x32xf32>
    %1648 = vector.extract_strided_slice %1636 {offsets = [0, 2], sizes = [8, 1], strides = [1, 1]} : vector<8x8xf32> to vector<8x1xf32>
    %c2_525 = arith.constant 2 : index
    %c0_526 = arith.constant 0 : index
    %c0_527 = arith.constant 0 : index
    %1649 = vector.load %arg36[%c2_525, %c0_526, %c0_527] : memref<8x8x32xf32, #tpu.memory_space<vmem>>, vector<1x8x32xf32>
    %1650 = vector.shape_cast %1649 : vector<1x8x32xf32> to vector<8x32xf32>
    %1651 = vector.broadcast %1648 : vector<8x1xf32> to vector<8x32xf32>
    %1652 = arith.mulf %1651, %1650 : vector<8x32xf32>
    %1653 = arith.addf %1647, %1652 : vector<8x32xf32>
    %1654 = vector.extract_strided_slice %1636 {offsets = [0, 3], sizes = [8, 1], strides = [1, 1]} : vector<8x8xf32> to vector<8x1xf32>
    %c3_528 = arith.constant 3 : index
    %c0_529 = arith.constant 0 : index
    %c0_530 = arith.constant 0 : index
    %1655 = vector.load %arg36[%c3_528, %c0_529, %c0_530] : memref<8x8x32xf32, #tpu.memory_space<vmem>>, vector<1x8x32xf32>
    %1656 = vector.shape_cast %1655 : vector<1x8x32xf32> to vector<8x32xf32>
    %1657 = vector.broadcast %1654 : vector<8x1xf32> to vector<8x32xf32>
    %1658 = arith.mulf %1657, %1656 : vector<8x32xf32>
    %1659 = arith.addf %1653, %1658 : vector<8x32xf32>
    %1660 = vector.extract_strided_slice %1636 {offsets = [0, 4], sizes = [8, 1], strides = [1, 1]} : vector<8x8xf32> to vector<8x1xf32>
    %c4_531 = arith.constant 4 : index
    %c0_532 = arith.constant 0 : index
    %c0_533 = arith.constant 0 : index
    %1661 = vector.load %arg36[%c4_531, %c0_532, %c0_533] : memref<8x8x32xf32, #tpu.memory_space<vmem>>, vector<1x8x32xf32>
    %1662 = vector.shape_cast %1661 : vector<1x8x32xf32> to vector<8x32xf32>
    %1663 = vector.broadcast %1660 : vector<8x1xf32> to vector<8x32xf32>
    %1664 = arith.mulf %1663, %1662 : vector<8x32xf32>
    %1665 = arith.addf %1659, %1664 : vector<8x32xf32>
    %1666 = vector.extract_strided_slice %1636 {offsets = [0, 5], sizes = [8, 1], strides = [1, 1]} : vector<8x8xf32> to vector<8x1xf32>
    %c5_534 = arith.constant 5 : index
    %c0_535 = arith.constant 0 : index
    %c0_536 = arith.constant 0 : index
    %1667 = vector.load %arg36[%c5_534, %c0_535, %c0_536] : memref<8x8x32xf32, #tpu.memory_space<vmem>>, vector<1x8x32xf32>
    %1668 = vector.shape_cast %1667 : vector<1x8x32xf32> to vector<8x32xf32>
    %1669 = vector.broadcast %1666 : vector<8x1xf32> to vector<8x32xf32>
    %1670 = arith.mulf %1669, %1668 : vector<8x32xf32>
    %1671 = arith.addf %1665, %1670 : vector<8x32xf32>
    %1672 = vector.extract_strided_slice %1636 {offsets = [0, 6], sizes = [8, 1], strides = [1, 1]} : vector<8x8xf32> to vector<8x1xf32>
    %c6_537 = arith.constant 6 : index
    %c0_538 = arith.constant 0 : index
    %c0_539 = arith.constant 0 : index
    %1673 = vector.load %arg36[%c6_537, %c0_538, %c0_539] : memref<8x8x32xf32, #tpu.memory_space<vmem>>, vector<1x8x32xf32>
    %1674 = vector.shape_cast %1673 : vector<1x8x32xf32> to vector<8x32xf32>
    %1675 = vector.broadcast %1672 : vector<8x1xf32> to vector<8x32xf32>
    %1676 = arith.mulf %1675, %1674 : vector<8x32xf32>
    %1677 = arith.addf %1671, %1676 : vector<8x32xf32>
    %1678 = vector.extract_strided_slice %1636 {offsets = [0, 7], sizes = [8, 1], strides = [1, 1]} : vector<8x8xf32> to vector<8x1xf32>
    %c7_540 = arith.constant 7 : index
    %c0_541 = arith.constant 0 : index
    %c0_542 = arith.constant 0 : index
    %1679 = vector.load %arg36[%c7_540, %c0_541, %c0_542] : memref<8x8x32xf32, #tpu.memory_space<vmem>>, vector<1x8x32xf32>
    %1680 = vector.shape_cast %1679 : vector<1x8x32xf32> to vector<8x32xf32>
    %1681 = vector.broadcast %1678 : vector<8x1xf32> to vector<8x32xf32>
    %1682 = arith.mulf %1681, %1680 : vector<8x32xf32>
    %1683 = arith.addf %1677, %1682 : vector<8x32xf32>
    %cst_543 = arith.constant dense<0.000000e+00> : vector<8x256xf32>
    %1684 = tpu.matmul %1615, %510, %cst_543 {dimension_numbers = #tpu.dot_dimension_numbers<[1], [0], [0], [1], [0, 0, 1, 1], [], []>} : vector<8x32xbf16>, vector<32x256xbf16>, vector<8x256xf32> -> vector<8x256xf32>
    %1685 = vector.broadcast %511 : vector<1x256xf32> to vector<8x256xf32>
    %1686 = arith.addf %1684, %1685 : vector<8x256xf32>
    %1687 = vector.extract_strided_slice %1686 {offsets = [0, 0], sizes = [8, 8], strides = [1, 1]} : vector<8x256xf32> to vector<8x8xf32>
    %1688 = vector.extract_strided_slice %1686 {offsets = [0, 128], sizes = [8, 8], strides = [1, 1]} : vector<8x256xf32> to vector<8x8xf32>
    %cst_544 = arith.constant dense<0.000000e+00> : vector<8x256xf32>
    %1689 = tpu.matmul %1615, %512, %cst_544 {dimension_numbers = #tpu.dot_dimension_numbers<[1], [0], [0], [1], [0, 0, 1, 1], [], []>} : vector<8x32xbf16>, vector<32x256xbf16>, vector<8x256xf32> -> vector<8x256xf32>
    %1690 = arith.truncf %1683 : vector<8x32xf32> to vector<8x32xbf16>
    %cst_545 = arith.constant dense<0.000000e+00> : vector<8x256xf32>
    %1691 = tpu.matmul %1690, %513, %cst_545 {dimension_numbers = #tpu.dot_dimension_numbers<[1], [0], [0], [1], [0, 0, 1, 1], [], []>} : vector<8x32xbf16>, vector<32x256xbf16>, vector<8x256xf32> -> vector<8x256xf32>
    %1692 = arith.addf %1689, %1691 : vector<8x256xf32>
    %1693 = vector.broadcast %514 : vector<1x256xf32> to vector<8x256xf32>
    %1694 = arith.addf %1692, %1693 : vector<8x256xf32>
    %1695 = vector.extract_strided_slice %1694 {offsets = [0, 0], sizes = [8, 8], strides = [1, 1]} : vector<8x256xf32> to vector<8x8xf32>
    %1696 = vector.extract_strided_slice %1694 {offsets = [0, 128], sizes = [8, 8], strides = [1, 1]} : vector<8x256xf32> to vector<8x8xf32>
    %1697 = arith.subf %1688, %1696 : vector<8x8xf32>
    %1698 = arith.subf %1696, %1688 : vector<8x8xf32>
    %1699 = math.exp %1698 : vector<8x8xf32>
    %1700 = arith.addf %1697, %1699 : vector<8x8xf32>
    %1701 = arith.subf %1695, %1687 : vector<8x8xf32>
    %1702 = arith.mulf %1701, %1701 : vector<8x8xf32>
    %cst_546 = arith.constant 0.000000e+00 : f32
    %1703 = vector.broadcast %cst_546 : f32 to vector<8x8xf32>
    %1704 = arith.subf %1703, %1688 : vector<8x8xf32>
    %1705 = math.exp %1704 : vector<8x8xf32>
    %1706 = arith.mulf %1702, %1705 : vector<8x8xf32>
    %1707 = arith.addf %1700, %1706 : vector<8x8xf32>
    %cst_547 = arith.constant 1.000000e+00 : f32
    %1708 = vector.broadcast %cst_547 : f32 to vector<8x8xf32>
    %1709 = arith.subf %1707, %1708 : vector<8x8xf32>
    %cst_548 = arith.constant 5.000000e-01 : f32
    %1710 = vector.broadcast %cst_548 : f32 to vector<8x8xf32>
    %1711 = arith.mulf %1710, %1709 : vector<8x8xf32>
    %cst_549 = arith.constant dense<0.000000e+00> : vector<8xf32>
    %1712 = vector.multi_reduction <add>, %1711, %cst_549 [1] : vector<8x8xf32> to vector<8xf32>
    %1713 = vector.shape_cast %1712 : vector<8xf32> to vector<8x1xf32>
    %1714 = arith.mulf %1713, %1622 : vector<8x1xf32>
    %1715 = arith.addf %1559, %1714 : vector<8x1xf32>
    %1716 = arith.truncf %1687 : vector<8x8xf32> to vector<8x8xbf16>
    %cst_550 = arith.constant dense<0.000000e+00> : vector<8x32xf32>
    %1717 = tpu.matmul %1716, %515, %cst_550 {dimension_numbers = #tpu.dot_dimension_numbers<[1], [0], [0], [1], [0, 0, 1, 1], [], []>} : vector<8x8xbf16>, vector<8x32xbf16>, vector<8x32xf32> -> vector<8x32xf32>
    %1718 = vector.broadcast %516 : vector<1x32xf32> to vector<8x32xf32>
    %1719 = arith.addf %1717, %1718 : vector<8x32xf32>
    %1720 = arith.subf %1683, %1719 : vector<8x32xf32>
    %1721 = arith.mulf %1720, %1720 : vector<8x32xf32>
    %cst_551 = arith.constant dense<0.000000e+00> : vector<8xf32>
    %1722 = vector.multi_reduction <add>, %1721, %cst_551 [1] : vector<8x32xf32> to vector<8xf32>
    %1723 = vector.shape_cast %1722 : vector<8xf32> to vector<8x1xf32>
    %1724 = arith.addf %1568, %1723 : vector<8x1xf32>
    %1725 = arith.index_cast %c7_i32_512 : i32 to index
    %c0_552 = arith.constant 0 : index
    %c0_553 = arith.constant 0 : index
    %1726 = vector.load %arg39[%1725, %c0_552, %c0_553] : memref<9x8x32xf32, #tpu.memory_space<vmem>>, vector<1x8x32xf32>
    %1727 = vector.shape_cast %1726 : vector<1x8x32xf32> to vector<8x32xf32>
    %1728 = arith.addf %1727, %508 : vector<8x32xf32>
    %1729 = arith.truncf %1719 : vector<8x32xf32> to vector<8x32xbf16>
    %cst_554 = arith.constant dense<0.000000e+00> : vector<8x32xf32>
    %1730 = tpu.matmul %1729, %517, %cst_554 {dimension_numbers = #tpu.dot_dimension_numbers<[1], [0], [0], [1], [0, 0, 1, 1], [], []>} : vector<8x32xbf16>, vector<32x32xbf16>, vector<8x32xf32> -> vector<8x32xf32>
    %1731 = arith.addf %1728, %1730 : vector<8x32xf32>
    %1732 = arith.truncf %1687 : vector<8x8xf32> to vector<8x8xbf16>
    %cst_555 = arith.constant dense<0.000000e+00> : vector<8x32xf32>
    %1733 = tpu.matmul %1732, %518, %cst_555 {dimension_numbers = #tpu.dot_dimension_numbers<[1], [0], [0], [1], [0, 0, 1, 1], [], []>} : vector<8x8xbf16>, vector<8x32xbf16>, vector<8x32xf32> -> vector<8x32xf32>
    %1734 = arith.addf %1731, %1733 : vector<8x32xf32>
    %1735 = arith.truncf %1734 : vector<8x32xf32> to vector<8x32xbf16>
    %cst_556 = arith.constant dense<0.000000e+00> : vector<8x512xf32>
    %1736 = tpu.matmul %1735, %519, %cst_556 {dimension_numbers = #tpu.dot_dimension_numbers<[1], [0], [0], [1], [0, 0, 1, 1], [], []>} : vector<8x32xbf16>, vector<32x512xbf16>, vector<8x512xf32> -> vector<8x512xf32>
    %cst_557 = arith.constant dense<0.000000e+00> : vector<8x512xf32>
    %1737 = tpu.matmul %1615, %520, %cst_557 {dimension_numbers = #tpu.dot_dimension_numbers<[1], [0], [0], [1], [0, 0, 1, 1], [], []>} : vector<8x32xbf16>, vector<32x512xbf16>, vector<8x512xf32> -> vector<8x512xf32>
    %1738 = arith.addf %1736, %1737 : vector<8x512xf32>
    %1739 = vector.broadcast %521 : vector<1x512xf32> to vector<8x512xf32>
    %1740 = arith.addf %1738, %1739 : vector<8x512xf32>
    %1741 = vector.extract_strided_slice %1740 {offsets = [0, 0], sizes = [8, 32], strides = [1, 1]} : vector<8x512xf32> to vector<8x32xf32>
    %1742 = arith.negf %1741 : vector<8x32xf32>
    %1743 = math.exp %1742 : vector<8x32xf32>
    %cst_558 = arith.constant 1.000000e+00 : f32
    %1744 = vector.broadcast %cst_558 : f32 to vector<8x32xf32>
    %1745 = arith.addf %1744, %1743 : vector<8x32xf32>
    %1746 = arith.divf %1744, %1745 : vector<8x32xf32>
    %1747 = vector.extract_strided_slice %1740 {offsets = [0, 128], sizes = [8, 32], strides = [1, 1]} : vector<8x512xf32> to vector<8x32xf32>
    %1748 = arith.negf %1747 : vector<8x32xf32>
    %1749 = math.exp %1748 : vector<8x32xf32>
    %cst_559 = arith.constant 1.000000e+00 : f32
    %1750 = vector.broadcast %cst_559 : f32 to vector<8x32xf32>
    %1751 = arith.addf %1750, %1749 : vector<8x32xf32>
    %1752 = arith.divf %1750, %1751 : vector<8x32xf32>
    %1753 = vector.extract_strided_slice %1740 {offsets = [0, 256], sizes = [8, 32], strides = [1, 1]} : vector<8x512xf32> to vector<8x32xf32>
    %1754 = math.tanh %1753 : vector<8x32xf32>
    %1755 = vector.extract_strided_slice %1740 {offsets = [0, 384], sizes = [8, 32], strides = [1, 1]} : vector<8x512xf32> to vector<8x32xf32>
    %1756 = arith.negf %1755 : vector<8x32xf32>
    %1757 = math.exp %1756 : vector<8x32xf32>
    %cst_560 = arith.constant 1.000000e+00 : f32
    %1758 = vector.broadcast %cst_560 : f32 to vector<8x32xf32>
    %1759 = arith.addf %1758, %1757 : vector<8x32xf32>
    %1760 = arith.divf %1758, %1759 : vector<8x32xf32>
    %1761 = arith.mulf %1752, %1607 : vector<8x32xf32>
    %1762 = arith.mulf %1746, %1754 : vector<8x32xf32>
    %1763 = arith.addf %1761, %1762 : vector<8x32xf32>
    %1764 = math.tanh %1763 : vector<8x32xf32>
    %1765 = arith.mulf %1760, %1764 : vector<8x32xf32>
    %1766 = arith.truncf %1765 : vector<8x32xf32> to vector<8x32xbf16>
    %1767 = arith.index_cast %c7_i32_512 : i32 to index
    %c0_561 = arith.constant 0 : index
    %c0_562 = arith.constant 0 : index
    %1768 = vector.load %arg31[%1767, %c0_561, %c0_562] : memref<9x8x32xbf16, #tpu.memory_space<vmem>>, vector<1x8x32xbf16>
    %1769 = vector.shape_cast %1768 : vector<1x8x32xbf16> to vector<8x32xbf16>
    %1770 = vector.shape_cast %1766 : vector<8x32xbf16> to vector<1x8x32xbf16>
    tpu.vector_store %arg31[%1767, %c0_561, %c0_562], %1770 {strides = array<i32>} : memref<9x8x32xbf16, #tpu.memory_space<vmem>>, vector<1x8x32xbf16>,
    %c8_i32_563 = arith.constant 8 : i32
    %1771 = arith.truncf %1765 : vector<8x32xf32> to vector<8x32xbf16>
    %cst_564 = arith.constant 1.000000e+00 : f32
    %1772 = vector.broadcast %cst_564 : f32 to vector<8x1xf32>
    %1773 = arith.addf %1, %1772 : vector<8x1xf32>
    %1774 = arith.sitofp %c8_i32_563 : i32 to f32
    %1775 = vector.broadcast %1774 : f32 to vector<8x1xf32>
    %1776 = arith.cmpf ogt, %1773, %1775 : vector<8x1xf32>
    %1777 = arith.extui %1776 : vector<8x1xi1> to vector<8x1xi32>
    %1778 = arith.sitofp %1777 : vector<8x1xi32> to vector<8x1xf32>
    %1779 = arith.index_cast %c8_i32_563 : i32 to index
    %c0_565 = arith.constant 0 : index
    %c0_566 = arith.constant 0 : index
    %1780 = vector.load %arg38[%1779, %c0_565, %c0_566] : memref<9x8x8xf32, #tpu.memory_space<vmem>>, vector<1x8x8xf32>
    %1781 = vector.shape_cast %1780 : vector<1x8x8xf32> to vector<8x8xf32>
    %cst_567 = arith.constant dense<0.000000e+00> : vector<8x8xf32>
    %1782 = tpu.matmul %1771, %509, %cst_567 {dimension_numbers = #tpu.dot_dimension_numbers<[1], [0], [0], [1], [0, 0, 1, 1], [], []>} : vector<8x32xbf16>, vector<32x8xbf16>, vector<8x8xf32> -> vector<8x8xf32>
    %1783 = arith.addf %1781, %1782 : vector<8x8xf32>
    %cst_568 = arith.constant dense<0xFF800000> : vector<8xf32>
    %1784 = vector.multi_reduction <maximumf>, %1783, %cst_568 [1] : vector<8x8xf32> to vector<8xf32>
    %1785 = vector.shape_cast %1784 : vector<8xf32> to vector<8x1xf32>
    %1786 = vector.broadcast %1785 : vector<8x1xf32> to vector<8x8xf32>
    %1787 = arith.subf %1783, %1786 : vector<8x8xf32>
    %1788 = math.exp %1787 : vector<8x8xf32>
    %cst_569 = arith.constant dense<0.000000e+00> : vector<8xf32>
    %1789 = vector.multi_reduction <add>, %1788, %cst_569 [1] : vector<8x8xf32> to vector<8xf32>
    %1790 = vector.shape_cast %1789 : vector<8xf32> to vector<8x1xf32>
    %1791 = vector.broadcast %1790 : vector<8x1xf32> to vector<8x8xf32>
    %1792 = arith.divf %1788, %1791 : vector<8x8xf32>
    %1793 = vector.extract_strided_slice %1792 {offsets = [0, 0], sizes = [8, 1], strides = [1, 1]} : vector<8x8xf32> to vector<8x1xf32>
    %c0_570 = arith.constant 0 : index
    %c0_571 = arith.constant 0 : index
    %c0_572 = arith.constant 0 : index
    %1794 = vector.load %arg36[%c0_570, %c0_571, %c0_572] : memref<8x8x32xf32, #tpu.memory_space<vmem>>, vector<1x8x32xf32>
    %1795 = vector.shape_cast %1794 : vector<1x8x32xf32> to vector<8x32xf32>
    %1796 = vector.broadcast %1793 : vector<8x1xf32> to vector<8x32xf32>
    %1797 = arith.mulf %1796, %1795 : vector<8x32xf32>
    %1798 = vector.extract_strided_slice %1792 {offsets = [0, 1], sizes = [8, 1], strides = [1, 1]} : vector<8x8xf32> to vector<8x1xf32>
    %c1_573 = arith.constant 1 : index
    %c0_574 = arith.constant 0 : index
    %c0_575 = arith.constant 0 : index
    %1799 = vector.load %arg36[%c1_573, %c0_574, %c0_575] : memref<8x8x32xf32, #tpu.memory_space<vmem>>, vector<1x8x32xf32>
    %1800 = vector.shape_cast %1799 : vector<1x8x32xf32> to vector<8x32xf32>
    %1801 = vector.broadcast %1798 : vector<8x1xf32> to vector<8x32xf32>
    %1802 = arith.mulf %1801, %1800 : vector<8x32xf32>
    %1803 = arith.addf %1797, %1802 : vector<8x32xf32>
    %1804 = vector.extract_strided_slice %1792 {offsets = [0, 2], sizes = [8, 1], strides = [1, 1]} : vector<8x8xf32> to vector<8x1xf32>
    %c2_576 = arith.constant 2 : index
    %c0_577 = arith.constant 0 : index
    %c0_578 = arith.constant 0 : index
    %1805 = vector.load %arg36[%c2_576, %c0_577, %c0_578] : memref<8x8x32xf32, #tpu.memory_space<vmem>>, vector<1x8x32xf32>
    %1806 = vector.shape_cast %1805 : vector<1x8x32xf32> to vector<8x32xf32>
    %1807 = vector.broadcast %1804 : vector<8x1xf32> to vector<8x32xf32>
    %1808 = arith.mulf %1807, %1806 : vector<8x32xf32>
    %1809 = arith.addf %1803, %1808 : vector<8x32xf32>
    %1810 = vector.extract_strided_slice %1792 {offsets = [0, 3], sizes = [8, 1], strides = [1, 1]} : vector<8x8xf32> to vector<8x1xf32>
    %c3_579 = arith.constant 3 : index
    %c0_580 = arith.constant 0 : index
    %c0_581 = arith.constant 0 : index
    %1811 = vector.load %arg36[%c3_579, %c0_580, %c0_581] : memref<8x8x32xf32, #tpu.memory_space<vmem>>, vector<1x8x32xf32>
    %1812 = vector.shape_cast %1811 : vector<1x8x32xf32> to vector<8x32xf32>
    %1813 = vector.broadcast %1810 : vector<8x1xf32> to vector<8x32xf32>
    %1814 = arith.mulf %1813, %1812 : vector<8x32xf32>
    %1815 = arith.addf %1809, %1814 : vector<8x32xf32>
    %1816 = vector.extract_strided_slice %1792 {offsets = [0, 4], sizes = [8, 1], strides = [1, 1]} : vector<8x8xf32> to vector<8x1xf32>
    %c4_582 = arith.constant 4 : index
    %c0_583 = arith.constant 0 : index
    %c0_584 = arith.constant 0 : index
    %1817 = vector.load %arg36[%c4_582, %c0_583, %c0_584] : memref<8x8x32xf32, #tpu.memory_space<vmem>>, vector<1x8x32xf32>
    %1818 = vector.shape_cast %1817 : vector<1x8x32xf32> to vector<8x32xf32>
    %1819 = vector.broadcast %1816 : vector<8x1xf32> to vector<8x32xf32>
    %1820 = arith.mulf %1819, %1818 : vector<8x32xf32>
    %1821 = arith.addf %1815, %1820 : vector<8x32xf32>
    %1822 = vector.extract_strided_slice %1792 {offsets = [0, 5], sizes = [8, 1], strides = [1, 1]} : vector<8x8xf32> to vector<8x1xf32>
    %c5_585 = arith.constant 5 : index
    %c0_586 = arith.constant 0 : index
    %c0_587 = arith.constant 0 : index
    %1823 = vector.load %arg36[%c5_585, %c0_586, %c0_587] : memref<8x8x32xf32, #tpu.memory_space<vmem>>, vector<1x8x32xf32>
    %1824 = vector.shape_cast %1823 : vector<1x8x32xf32> to vector<8x32xf32>
    %1825 = vector.broadcast %1822 : vector<8x1xf32> to vector<8x32xf32>
    %1826 = arith.mulf %1825, %1824 : vector<8x32xf32>
    %1827 = arith.addf %1821, %1826 : vector<8x32xf32>
    %1828 = vector.extract_strided_slice %1792 {offsets = [0, 6], sizes = [8, 1], strides = [1, 1]} : vector<8x8xf32> to vector<8x1xf32>
    %c6_588 = arith.constant 6 : index
    %c0_589 = arith.constant 0 : index
    %c0_590 = arith.constant 0 : index
    %1829 = vector.load %arg36[%c6_588, %c0_589, %c0_590] : memref<8x8x32xf32, #tpu.memory_space<vmem>>, vector<1x8x32xf32>
    %1830 = vector.shape_cast %1829 : vector<1x8x32xf32> to vector<8x32xf32>
    %1831 = vector.broadcast %1828 : vector<8x1xf32> to vector<8x32xf32>
    %1832 = arith.mulf %1831, %1830 : vector<8x32xf32>
    %1833 = arith.addf %1827, %1832 : vector<8x32xf32>
    %1834 = vector.extract_strided_slice %1792 {offsets = [0, 7], sizes = [8, 1], strides = [1, 1]} : vector<8x8xf32> to vector<8x1xf32>
    %c7_591 = arith.constant 7 : index
    %c0_592 = arith.constant 0 : index
    %c0_593 = arith.constant 0 : index
    %1835 = vector.load %arg36[%c7_591, %c0_592, %c0_593] : memref<8x8x32xf32, #tpu.memory_space<vmem>>, vector<1x8x32xf32>
    %1836 = vector.shape_cast %1835 : vector<1x8x32xf32> to vector<8x32xf32>
    %1837 = vector.broadcast %1834 : vector<8x1xf32> to vector<8x32xf32>
    %1838 = arith.mulf %1837, %1836 : vector<8x32xf32>
    %1839 = arith.addf %1833, %1838 : vector<8x32xf32>
    %cst_594 = arith.constant dense<0.000000e+00> : vector<8x256xf32>
    %1840 = tpu.matmul %1771, %510, %cst_594 {dimension_numbers = #tpu.dot_dimension_numbers<[1], [0], [0], [1], [0, 0, 1, 1], [], []>} : vector<8x32xbf16>, vector<32x256xbf16>, vector<8x256xf32> -> vector<8x256xf32>
    %1841 = vector.broadcast %511 : vector<1x256xf32> to vector<8x256xf32>
    %1842 = arith.addf %1840, %1841 : vector<8x256xf32>
    %1843 = vector.extract_strided_slice %1842 {offsets = [0, 0], sizes = [8, 8], strides = [1, 1]} : vector<8x256xf32> to vector<8x8xf32>
    %1844 = vector.extract_strided_slice %1842 {offsets = [0, 128], sizes = [8, 8], strides = [1, 1]} : vector<8x256xf32> to vector<8x8xf32>
    %cst_595 = arith.constant dense<0.000000e+00> : vector<8x256xf32>
    %1845 = tpu.matmul %1771, %512, %cst_595 {dimension_numbers = #tpu.dot_dimension_numbers<[1], [0], [0], [1], [0, 0, 1, 1], [], []>} : vector<8x32xbf16>, vector<32x256xbf16>, vector<8x256xf32> -> vector<8x256xf32>
    %1846 = arith.truncf %1839 : vector<8x32xf32> to vector<8x32xbf16>
    %cst_596 = arith.constant dense<0.000000e+00> : vector<8x256xf32>
    %1847 = tpu.matmul %1846, %513, %cst_596 {dimension_numbers = #tpu.dot_dimension_numbers<[1], [0], [0], [1], [0, 0, 1, 1], [], []>} : vector<8x32xbf16>, vector<32x256xbf16>, vector<8x256xf32> -> vector<8x256xf32>
    %1848 = arith.addf %1845, %1847 : vector<8x256xf32>
    %1849 = vector.broadcast %514 : vector<1x256xf32> to vector<8x256xf32>
    %1850 = arith.addf %1848, %1849 : vector<8x256xf32>
    %1851 = vector.extract_strided_slice %1850 {offsets = [0, 0], sizes = [8, 8], strides = [1, 1]} : vector<8x256xf32> to vector<8x8xf32>
    %1852 = vector.extract_strided_slice %1850 {offsets = [0, 128], sizes = [8, 8], strides = [1, 1]} : vector<8x256xf32> to vector<8x8xf32>
    %1853 = arith.subf %1844, %1852 : vector<8x8xf32>
    %1854 = arith.subf %1852, %1844 : vector<8x8xf32>
    %1855 = math.exp %1854 : vector<8x8xf32>
    %1856 = arith.addf %1853, %1855 : vector<8x8xf32>
    %1857 = arith.subf %1851, %1843 : vector<8x8xf32>
    %1858 = arith.mulf %1857, %1857 : vector<8x8xf32>
    %cst_597 = arith.constant 0.000000e+00 : f32
    %1859 = vector.broadcast %cst_597 : f32 to vector<8x8xf32>
    %1860 = arith.subf %1859, %1844 : vector<8x8xf32>
    %1861 = math.exp %1860 : vector<8x8xf32>
    %1862 = arith.mulf %1858, %1861 : vector<8x8xf32>
    %1863 = arith.addf %1856, %1862 : vector<8x8xf32>
    %cst_598 = arith.constant 1.000000e+00 : f32
    %1864 = vector.broadcast %cst_598 : f32 to vector<8x8xf32>
    %1865 = arith.subf %1863, %1864 : vector<8x8xf32>
    %cst_599 = arith.constant 5.000000e-01 : f32
    %1866 = vector.broadcast %cst_599 : f32 to vector<8x8xf32>
    %1867 = arith.mulf %1866, %1865 : vector<8x8xf32>
    %cst_600 = arith.constant dense<0.000000e+00> : vector<8xf32>
    %1868 = vector.multi_reduction <add>, %1867, %cst_600 [1] : vector<8x8xf32> to vector<8xf32>
    %1869 = vector.shape_cast %1868 : vector<8xf32> to vector<8x1xf32>
    %1870 = arith.mulf %1869, %1778 : vector<8x1xf32>
    %1871 = arith.addf %1715, %1870 : vector<8x1xf32>
    %1872 = arith.truncf %1843 : vector<8x8xf32> to vector<8x8xbf16>
    %cst_601 = arith.constant dense<0.000000e+00> : vector<8x32xf32>
    %1873 = tpu.matmul %1872, %515, %cst_601 {dimension_numbers = #tpu.dot_dimension_numbers<[1], [0], [0], [1], [0, 0, 1, 1], [], []>} : vector<8x8xbf16>, vector<8x32xbf16>, vector<8x32xf32> -> vector<8x32xf32>
    %1874 = vector.broadcast %516 : vector<1x32xf32> to vector<8x32xf32>
    %1875 = arith.addf %1873, %1874 : vector<8x32xf32>
    %1876 = arith.subf %1839, %1875 : vector<8x32xf32>
    %1877 = arith.mulf %1876, %1876 : vector<8x32xf32>
    %cst_602 = arith.constant dense<0.000000e+00> : vector<8xf32>
    %1878 = vector.multi_reduction <add>, %1877, %cst_602 [1] : vector<8x32xf32> to vector<8xf32>
    %1879 = vector.shape_cast %1878 : vector<8xf32> to vector<8x1xf32>
    %1880 = arith.addf %1724, %1879 : vector<8x1xf32>
    %1881 = arith.index_cast %c8_i32_563 : i32 to index
    %c0_603 = arith.constant 0 : index
    %c0_604 = arith.constant 0 : index
    %1882 = vector.load %arg39[%1881, %c0_603, %c0_604] : memref<9x8x32xf32, #tpu.memory_space<vmem>>, vector<1x8x32xf32>
    %1883 = vector.shape_cast %1882 : vector<1x8x32xf32> to vector<8x32xf32>
    %1884 = arith.addf %1883, %508 : vector<8x32xf32>
    %1885 = arith.truncf %1875 : vector<8x32xf32> to vector<8x32xbf16>
    %cst_605 = arith.constant dense<0.000000e+00> : vector<8x32xf32>
    %1886 = tpu.matmul %1885, %517, %cst_605 {dimension_numbers = #tpu.dot_dimension_numbers<[1], [0], [0], [1], [0, 0, 1, 1], [], []>} : vector<8x32xbf16>, vector<32x32xbf16>, vector<8x32xf32> -> vector<8x32xf32>
    %1887 = arith.addf %1884, %1886 : vector<8x32xf32>
    %1888 = arith.truncf %1843 : vector<8x8xf32> to vector<8x8xbf16>
    %cst_606 = arith.constant dense<0.000000e+00> : vector<8x32xf32>
    %1889 = tpu.matmul %1888, %518, %cst_606 {dimension_numbers = #tpu.dot_dimension_numbers<[1], [0], [0], [1], [0, 0, 1, 1], [], []>} : vector<8x8xbf16>, vector<8x32xbf16>, vector<8x32xf32> -> vector<8x32xf32>
    %1890 = arith.addf %1887, %1889 : vector<8x32xf32>
    %1891 = arith.truncf %1890 : vector<8x32xf32> to vector<8x32xbf16>
    %cst_607 = arith.constant dense<0.000000e+00> : vector<8x512xf32>
    %1892 = tpu.matmul %1891, %519, %cst_607 {dimension_numbers = #tpu.dot_dimension_numbers<[1], [0], [0], [1], [0, 0, 1, 1], [], []>} : vector<8x32xbf16>, vector<32x512xbf16>, vector<8x512xf32> -> vector<8x512xf32>
    %cst_608 = arith.constant dense<0.000000e+00> : vector<8x512xf32>
    %1893 = tpu.matmul %1771, %520, %cst_608 {dimension_numbers = #tpu.dot_dimension_numbers<[1], [0], [0], [1], [0, 0, 1, 1], [], []>} : vector<8x32xbf16>, vector<32x512xbf16>, vector<8x512xf32> -> vector<8x512xf32>
    %1894 = arith.addf %1892, %1893 : vector<8x512xf32>
    %1895 = vector.broadcast %521 : vector<1x512xf32> to vector<8x512xf32>
    %1896 = arith.addf %1894, %1895 : vector<8x512xf32>
    %1897 = vector.extract_strided_slice %1896 {offsets = [0, 0], sizes = [8, 32], strides = [1, 1]} : vector<8x512xf32> to vector<8x32xf32>
    %1898 = arith.negf %1897 : vector<8x32xf32>
    %1899 = math.exp %1898 : vector<8x32xf32>
    %cst_609 = arith.constant 1.000000e+00 : f32
    %1900 = vector.broadcast %cst_609 : f32 to vector<8x32xf32>
    %1901 = arith.addf %1900, %1899 : vector<8x32xf32>
    %1902 = arith.divf %1900, %1901 : vector<8x32xf32>
    %1903 = vector.extract_strided_slice %1896 {offsets = [0, 128], sizes = [8, 32], strides = [1, 1]} : vector<8x512xf32> to vector<8x32xf32>
    %1904 = arith.negf %1903 : vector<8x32xf32>
    %1905 = math.exp %1904 : vector<8x32xf32>
    %cst_610 = arith.constant 1.000000e+00 : f32
    %1906 = vector.broadcast %cst_610 : f32 to vector<8x32xf32>
    %1907 = arith.addf %1906, %1905 : vector<8x32xf32>
    %1908 = arith.divf %1906, %1907 : vector<8x32xf32>
    %1909 = vector.extract_strided_slice %1896 {offsets = [0, 256], sizes = [8, 32], strides = [1, 1]} : vector<8x512xf32> to vector<8x32xf32>
    %1910 = math.tanh %1909 : vector<8x32xf32>
    %1911 = vector.extract_strided_slice %1896 {offsets = [0, 384], sizes = [8, 32], strides = [1, 1]} : vector<8x512xf32> to vector<8x32xf32>
    %1912 = arith.negf %1911 : vector<8x32xf32>
    %1913 = math.exp %1912 : vector<8x32xf32>
    %cst_611 = arith.constant 1.000000e+00 : f32
    %1914 = vector.broadcast %cst_611 : f32 to vector<8x32xf32>
    %1915 = arith.addf %1914, %1913 : vector<8x32xf32>
    %1916 = arith.divf %1914, %1915 : vector<8x32xf32>
    %1917 = arith.mulf %1908, %1763 : vector<8x32xf32>
    %1918 = arith.mulf %1902, %1910 : vector<8x32xf32>
    %1919 = arith.addf %1917, %1918 : vector<8x32xf32>
    %1920 = math.tanh %1919 : vector<8x32xf32>
    %1921 = arith.mulf %1916, %1920 : vector<8x32xf32>
    %1922 = arith.truncf %1921 : vector<8x32xf32> to vector<8x32xbf16>
    %1923 = arith.index_cast %c8_i32_563 : i32 to index
    %c0_612 = arith.constant 0 : index
    %c0_613 = arith.constant 0 : index
    %1924 = vector.load %arg31[%1923, %c0_612, %c0_613] : memref<9x8x32xbf16, #tpu.memory_space<vmem>>, vector<1x8x32xbf16>
    %1925 = vector.shape_cast %1924 : vector<1x8x32xbf16> to vector<8x32xbf16>
    %1926 = vector.shape_cast %1922 : vector<8x32xbf16> to vector<1x8x32xbf16>
    tpu.vector_store %arg31[%1923, %c0_612, %c0_613], %1926 {strides = array<i32>} : memref<9x8x32xbf16, #tpu.memory_space<vmem>>, vector<1x8x32xbf16>,
    %c9_i32 = arith.constant 9 : i32
    %c0_614 = arith.constant 0 : index
    %c0_615 = arith.constant 0 : index
    %1927 = vector.load %arg34[%c0_614, %c0_615] : memref<8x1xf32, #tpu.memory_space<vmem>>, vector<8x1xf32>
    tpu.vector_store %arg34[%c0_614, %c0_615], %1871 {strides = array<i32>} : memref<8x1xf32, #tpu.memory_space<vmem>>, vector<8x1xf32>,
    %c0_616 = arith.constant 0 : index
    %c0_617 = arith.constant 0 : index
    %1928 = vector.load %arg35[%c0_616, %c0_617] : memref<8x1xf32, #tpu.memory_space<vmem>>, vector<8x1xf32>
    tpu.vector_store %arg35[%c0_616, %c0_617], %1880 {strides = array<i32>} : memref<8x1xf32, #tpu.memory_space<vmem>>, vector<8x1xf32>,
    return
  }
  func.func @transform_0(%arg0: i32) -> (i32, i32, i32) {
    %c0_i32 = arith.constant 0 : i32
    %c0_i32_0 = arith.constant 0 : i32
    %c0_i32_1 = arith.constant 0 : i32
    return %c0_i32, %arg0, %c0_i32_0 : i32, i32, i32
  }
  func.func @transform_1(%arg0: i32) -> (i32, i32, i32) {
    %c0_i32 = arith.constant 0 : i32
    %c0_i32_0 = arith.constant 0 : i32
    %c0_i32_1 = arith.constant 0 : i32
    return %c0_i32, %arg0, %c0_i32_0 : i32, i32, i32
  }
  func.func @transform_2(%arg0: i32) -> (i32, i32) {
    %c0_i32 = arith.constant 0 : i32
    %c0_i32_0 = arith.constant 0 : i32
    return %arg0, %c0_i32 : i32, i32
  }
  func.func @transform_3(%arg0: i32) -> (i32, i32) {
    %c0_i32 = arith.constant 0 : i32
    %c0_i32_0 = arith.constant 0 : i32
    return %arg0, %c0_i32 : i32, i32
  }
  func.func @transform_4(%arg0: i32) -> (i32, i32) {
    %c0_i32 = arith.constant 0 : i32
    %c0_i32_0 = arith.constant 0 : i32
    return %arg0, %c0_i32 : i32, i32
  }
  func.func @transform_5(%arg0: i32) -> (i32, i32) {
    %c0_i32 = arith.constant 0 : i32
    %c0_i32_0 = arith.constant 0 : i32
    return %arg0, %c0_i32 : i32, i32
  }
  func.func @transform_6(%arg0: i32) -> (i32, i32) {
    %c0_i32 = arith.constant 0 : i32
    %c0_i32_0 = arith.constant 0 : i32
    %c0_i32_1 = arith.constant 0 : i32
    return %c0_i32, %c0_i32_0 : i32, i32
  }
  func.func @transform_7(%arg0: i32) -> (i32, i32) {
    %c0_i32 = arith.constant 0 : i32
    %c0_i32_0 = arith.constant 0 : i32
    %c0_i32_1 = arith.constant 0 : i32
    return %c0_i32, %c0_i32_0 : i32, i32
  }
  func.func @transform_8(%arg0: i32) -> (i32, i32) {
    %c0_i32 = arith.constant 0 : i32
    %c0_i32_0 = arith.constant 0 : i32
    %c0_i32_1 = arith.constant 0 : i32
    return %c0_i32, %c0_i32_0 : i32, i32
  }
  func.func @transform_9(%arg0: i32) -> (i32, i32) {
    %c0_i32 = arith.constant 0 : i32
    %c0_i32_0 = arith.constant 0 : i32
    %c0_i32_1 = arith.constant 0 : i32
    return %c0_i32, %c0_i32_0 : i32, i32
  }
  func.func @transform_10(%arg0: i32) -> (i32, i32) {
    %c0_i32 = arith.constant 0 : i32
    %c0_i32_0 = arith.constant 0 : i32
    %c0_i32_1 = arith.constant 0 : i32
    return %c0_i32, %c0_i32_0 : i32, i32
  }
  func.func @transform_11(%arg0: i32) -> (i32, i32) {
    %c0_i32 = arith.constant 0 : i32
    %c0_i32_0 = arith.constant 0 : i32
    %c0_i32_1 = arith.constant 0 : i32
    return %c0_i32, %c0_i32_0 : i32, i32
  }
  func.func @transform_12(%arg0: i32) -> (i32, i32) {
    %c0_i32 = arith.constant 0 : i32
    %c0_i32_0 = arith.constant 0 : i32
    %c0_i32_1 = arith.constant 0 : i32
    return %c0_i32, %c0_i32_0 : i32, i32
  }
  func.func @transform_13(%arg0: i32) -> (i32, i32) {
    %c0_i32 = arith.constant 0 : i32
    %c0_i32_0 = arith.constant 0 : i32
    %c0_i32_1 = arith.constant 0 : i32
    return %c0_i32, %c0_i32_0 : i32, i32
  }
  func.func @transform_14(%arg0: i32) -> (i32, i32) {
    %c0_i32 = arith.constant 0 : i32
    %c0_i32_0 = arith.constant 0 : i32
    %c0_i32_1 = arith.constant 0 : i32
    return %c0_i32, %c0_i32_0 : i32, i32
  }
  func.func @transform_15(%arg0: i32) -> (i32, i32) {
    %c0_i32 = arith.constant 0 : i32
    %c0_i32_0 = arith.constant 0 : i32
    %c0_i32_1 = arith.constant 0 : i32
    return %c0_i32, %c0_i32_0 : i32, i32
  }
  func.func @transform_16(%arg0: i32) -> (i32, i32) {
    %c0_i32 = arith.constant 0 : i32
    %c0_i32_0 = arith.constant 0 : i32
    %c0_i32_1 = arith.constant 0 : i32
    return %c0_i32, %c0_i32_0 : i32, i32
  }
  func.func @transform_17(%arg0: i32) -> (i32, i32) {
    %c0_i32 = arith.constant 0 : i32
    %c0_i32_0 = arith.constant 0 : i32
    %c0_i32_1 = arith.constant 0 : i32
    return %c0_i32, %c0_i32_0 : i32, i32
  }
  func.func @transform_18(%arg0: i32) -> (i32, i32) {
    %c0_i32 = arith.constant 0 : i32
    %c0_i32_0 = arith.constant 0 : i32
    %c0_i32_1 = arith.constant 0 : i32
    return %c0_i32, %c0_i32_0 : i32, i32
  }
  func.func @transform_19(%arg0: i32) -> (i32, i32) {
    %c0_i32 = arith.constant 0 : i32
    %c0_i32_0 = arith.constant 0 : i32
    %c0_i32_1 = arith.constant 0 : i32
    return %c0_i32, %c0_i32_0 : i32, i32
  }
  func.func @transform_20(%arg0: i32) -> (i32, i32) {
    %c0_i32 = arith.constant 0 : i32
    %c0_i32_0 = arith.constant 0 : i32
    %c0_i32_1 = arith.constant 0 : i32
    return %c0_i32, %c0_i32_0 : i32, i32
  }
  func.func @transform_21(%arg0: i32) -> (i32, i32) {
    %c0_i32 = arith.constant 0 : i32
    %c0_i32_0 = arith.constant 0 : i32
    %c0_i32_1 = arith.constant 0 : i32
    return %c0_i32, %c0_i32_0 : i32, i32
  }
  func.func @transform_22(%arg0: i32) -> (i32, i32) {
    %c0_i32 = arith.constant 0 : i32
    %c0_i32_0 = arith.constant 0 : i32
    %c0_i32_1 = arith.constant 0 : i32
    return %c0_i32, %c0_i32_0 : i32, i32
  }
  func.func @transform_23(%arg0: i32) -> (i32, i32) {
    %c0_i32 = arith.constant 0 : i32
    %c0_i32_0 = arith.constant 0 : i32
    %c0_i32_1 = arith.constant 0 : i32
    return %c0_i32, %c0_i32_0 : i32, i32
  }
  func.func @transform_24(%arg0: i32) -> (i32, i32) {
    %c0_i32 = arith.constant 0 : i32
    %c0_i32_0 = arith.constant 0 : i32
    %c0_i32_1 = arith.constant 0 : i32
    return %c0_i32, %c0_i32_0 : i32, i32
  }
  func.func @transform_25(%arg0: i32) -> (i32, i32) {
    %c0_i32 = arith.constant 0 : i32
    %c0_i32_0 = arith.constant 0 : i32
    %c0_i32_1 = arith.constant 0 : i32
    return %c0_i32, %c0_i32_0 : i32, i32
  }
  func.func @transform_26(%arg0: i32) -> (i32, i32) {
    %c0_i32 = arith.constant 0 : i32
    %c0_i32_0 = arith.constant 0 : i32
    %c0_i32_1 = arith.constant 0 : i32
    return %c0_i32, %c0_i32_0 : i32, i32
  }
  func.func @transform_27(%arg0: i32) -> (i32, i32) {
    %c0_i32 = arith.constant 0 : i32
    %c0_i32_0 = arith.constant 0 : i32
    %c0_i32_1 = arith.constant 0 : i32
    return %c0_i32, %c0_i32_0 : i32, i32
  }
  func.func @transform_28(%arg0: i32) -> (i32, i32) {
    %c0_i32 = arith.constant 0 : i32
    %c0_i32_0 = arith.constant 0 : i32
    %c0_i32_1 = arith.constant 0 : i32
    return %c0_i32, %c0_i32_0 : i32, i32
  }
  func.func @transform_29(%arg0: i32) -> (i32, i32) {
    %c0_i32 = arith.constant 0 : i32
    %c0_i32_0 = arith.constant 0 : i32
    %c0_i32_1 = arith.constant 0 : i32
    return %c0_i32, %c0_i32_0 : i32, i32
  }
  func.func @transform_30(%arg0: i32) -> (i32, i32, i32) {
    %c0_i32 = arith.constant 0 : i32
    %c0_i32_0 = arith.constant 0 : i32
    %c0_i32_1 = arith.constant 0 : i32
    return %c0_i32, %arg0, %c0_i32_0 : i32, i32, i32
  }
  func.func @transform_31(%arg0: i32) -> (i32, i32) {
    %c0_i32 = arith.constant 0 : i32
    %c0_i32_0 = arith.constant 0 : i32
    return %arg0, %c0_i32 : i32, i32
  }
  func.func @transform_32(%arg0: i32) -> (i32, i32) {
    %c0_i32 = arith.constant 0 : i32
    %c0_i32_0 = arith.constant 0 : i32
    return %arg0, %c0_i32 : i32, i32
  }
  func.func @transform_33(%arg0: i32) -> (i32, i32) {
    %c0_i32 = arith.constant 0 : i32
    %c0_i32_0 = arith.constant 0 : i32
    return %arg0, %c0_i32 : i32, i32
  }
  func.func @transform_34(%arg0: i32) -> (i32, i32) {
    %c0_i32 = arith.constant 0 : i32
    %c0_i32_0 = arith.constant 0 : i32
    return %arg0, %c0_i32 : i32, i32
  }
}

</mosaic_0001>

<bundles_post_ra>
// kernel: tpu_custom_call.1
= control target key start
LH: loop header
LB: loop body
LE: loop exit
PB: predicated region body
PF: predicated region fallthrough
CT: control target
= control target key end

     0   :  { %s9962_s6 = smov 1   ;;  %s9963_s10 = smov 2   ;;  %s12204_s0 = inlined_call_operand.smem [shape: u32[35], index: -1, kind: input, shape index: {}] }
   0x1   :  { %s10045_s5 = sld [smem:[%s12204_s0]]   ;;  %s9964_s14 = smov 3  }
   0x2   :  { %s10050_s9 = sld [smem:[%s12204_s0 + %s9962_s6]]   ;;  %s9965_s18 = smov 4  }
   0x3   :  { %s10055_s13 = sld [smem:[%s12204_s0 + %s9963_s10]]   ;;  %s9966_s22 = smov 5  }
   0x4   :  { %s10060_s17 = sld [smem:[%s12204_s0 + %s9964_s14]]   ;;  %s9967_s26 = smov 6  }
   0x5   :  { %s10065_s21 = sld [smem:[%s12204_s0 + %s9965_s18]]   ;;  %s9968_s30 = smov 7  }
   0x6   :  { %s10070_s25 = sld [smem:[%s12204_s0 + %s9966_s22]]   ;;  %s9969_s4 = smov 8  }
   0x7   :  { %s10075_s29 = sld [smem:[%s12204_s0 + %s9967_s26]]   ;;  %s9970_s10 = smov 9  }
   0x8   :  { %s10080_s3 = sld [smem:[%s12204_s0 + %s9968_s30]]   ;;  %s9971_s15 = smov 10  }
   0x9   :  { %s10085_s8 = sld [smem:[%s12204_s0 + %s9969_s4]]   ;;  %s9972_s20 = smov 11  }
   0xa   :  { %12316 = sst [smem:[#allocation59_spill]] %s10060_s17  ;;  %s9973_s26 = smov 12  }
   0xb   :  { %12317 = sst [smem:[#allocation60_spill]] %s10065_s21  ;;  %s9974_s1 = smov 13  }
   0xc   :  { %s10090_s14 = sld [smem:[%s12204_s0 + %s9970_s10]]   ;;  %s9975_s7 = smov 14  }
   0xd   :  { %12318 = sst [smem:[#allocation61_spill]] %s10075_s29  ;;  %s9977_s22 = smov 16  }
   0xe   :  { %s10095_s19 = sld [smem:[%s12204_s0 + %s9971_s15]]   ;;  %s9976_s15 = smov 15  }
   0xf   :  { %s10100_s24 = sld [smem:[%s12204_s0 + %s9972_s20]]   ;;  %s9978_s28 = smov 17  }
  0x10   :  { %s10105_s30 = sld [smem:[%s12204_s0 + %s9973_s26]]  }
  0x11   :  { %s10110_s6 = sld [smem:[%s12204_s0 + %s9974_s1]]  }
  0x12   :  { %s10115_s12 = sld [smem:[%s12204_s0 + %s9975_s7]]   ;;  %s9979_s7 = smov 18  }
  0x13   :  { %s10120_s20 = sld [smem:[%s12204_s0 + %s9976_s15]]   ;;  %s9980_s15 = smov 19  }
  0x14   :  { %s10125_s27 = sld [smem:[%s12204_s0 + %s9977_s22]]   ;;  %s9981_s22 = smov 20  }
  0x15   :  { %12319 = sst [smem:[#allocation62_spill]] %s10100_s24 }
  0x16   :  { %12320 = sst [smem:[#allocation63_spill]] %s10105_s30 }
  0x17   :  { %12321 = sst [smem:[#allocation64_spill]] %s10110_s6 }
  0x18   :  { %12322 = sst [smem:[#allocation65_spill]] %s10115_s12 }
  0x19   :  { %s10130_s4 = sld [smem:[%s12204_s0 + %s9978_s28]]   ;;  %s9982_s28 = smov 21  }
  0x1a   :  { %12323 = sst [smem:[#allocation66_spill]] %s10125_s27 }
  0x1b   :  { %s10135_s21 = sld [smem:[%s12204_s0 + %s9979_s7]]   ;;  %s9983_s7 = smov 22  }
  0x1c   :  { %s10140_s6 = sld [smem:[%s12204_s0 + %s9980_s15]]   ;;  %s9984_s15 = smov 23  }
  0x1d   :  { %s10145_s12 = sld [smem:[%s12204_s0 + %s9981_s22]]   ;;  %s9985_s22 = smov 24  }
  0x1e   :  { %s10150_s17 = sld [smem:[%s12204_s0 + %s9982_s28]]   ;;  %s9986_s28 = smov 25  }
  0x1f   :  { %s10155_s30 = sld [smem:[%s12204_s0 + %s9983_s7]]   ;;  %s9987_s7 = smov 26  }
  0x20   :  { %s10160_s29 = sld [smem:[%s12204_s0 + %s9984_s15]]   ;;  %s9988_s15 = smov 27  }
  0x21   :  { %12324 = sst [smem:[#allocation67_spill]] %s10135_s21 }
  0x22   :  { %s10170_s21 = sld [smem:[%s12204_s0 + %s9986_s28]]   ;;  %s9990_s28 = smov 29  }
  0x23   :  { %12325 = sst [smem:[#allocation68_spill]] %s10145_s12 }
  0x24   :  { %s10165_s12 = sld [smem:[%s12204_s0 + %s9985_s22]]   ;;  %s9989_s22 = smov 28  }
  0x25   :  { %12326 = sst [smem:[#allocation69_spill]] %s10155_s30 }
  0x26   :  { %s10175_s30 = sld [smem:[%s12204_s0 + %s9987_s7]]   ;;  %s9991_s7 = smov 30  }
  0x27   :  { %s10180_s27 = sld [smem:[%s12204_s0 + %s9988_s15]]   ;;  %s9992_s15 = smov 31  }
  0x28   :  { %s10190_s24 = sld [smem:[%s12204_s0 + %s9990_s28]]   ;;  %s9994_s28 = smov 33  }
  0x2a   :  { %12327 = sst [smem:[#allocation70_spill]] %s10165_s12 }
  0x2b   :  { %s10185_s12 = sld [smem:[%s12204_s0 + %s9989_s22]]   ;;  %s9993_s22 = smov 32  }
  0x2c   :  { %12328 = sst [smem:[#allocation71_spill]] %s10175_s30 }
  0x2d   :  { %12329 = sst [smem:[#allocation72_spill]] %s10180_s27 }
  0x2e   :  { %12331 = sst [smem:[#allocation74_spill]] %s10190_s24 }
  0x2f   :  { %s10195_s30 = sld [smem:[%s12204_s0 + %s9991_s7]]   ;;  %s9995_s7 = smov 34  }
  0x30   :  { %s10200_s27 = sld [smem:[%s12204_s0 + %s9992_s15]]  }
  0x31   :  { %12330 = sst [smem:[#allocation73_spill]] %s10185_s12 }
  0x32   :  { %s10205_s12 = sld [smem:[%s12204_s0 + %s9993_s22]]  }
  0x33   :  { %s10210_s24 = sld [smem:[%s12204_s0 + %s9994_s28]]  }
  0x35   :  { %12332 = sst [smem:[#allocation75_spill]] %s10195_s30 }
  0x36   :  { %s10215_s30 = sld [smem:[%s12204_s0 + %s9995_s7]]  }
  0x37   :  { %75 = vsyncpa [#allocation7], 0 }
  0x38   :  { %76 = vsyncpa [#allocation10], 0 }
  0x39   :  { %77 = vsyncpa [#allocation13], 0 }
  0x3a   :  { %78 = vsyncpa [#allocation16], 0 }
  0x3b   :  { %79 = vsyncpa [#allocation19], 0 }
  0x3c   :  { %80 = vsyncpa [#allocation22], 0 }
  0x3d   :  { %81 = vsyncpa [#allocation25], 0 }
  0x3e   :  { %82 = vsyncpa [#allocation28], 0 }
  0x3f   :  { %83 = vsyncpa [#allocation31], 0 }
  0x40   :  { %84 = vsyncpa [#allocation34], 0 }
  0x41   :  { %85 = vsyncpa [#allocation37], 0 }
  0x42   :  { %86 = vsyncpa [#allocation40], 0 }
  0x43   :  { %87 = vsyncpa [#allocation8], 0 }
  0x44   :  { %88 = vsyncpa [#allocation43], 0  ;;  %s9996_s15 = smov [#allocation9]   ;;  %s9997_s18 = smov [#allocation12]  }
  0x45   :  { %s106_s16 = sshll.u32 %s9996_s15, 4  ;;  %s133_s22 = sshll.u32 %s9997_s18, 4  ;;  %s107_s16 = int_to_ptr.vmem [resolvable:$true] %s106_s16  ;;  %s134_s22 = int_to_ptr.vmem [resolvable:$true] %s133_s22 }
  0x46   :  { %s9442_s0 = scalar_lea.vmem %s107_s16, 1152  ;;  %p9447_p1 = scmp.lt.s32.totalorder %s107_s16, %s107_s16 }
  0x47   :  { %p9443_p0 = scmp.ne.s32.totalorder %s107_s16, %s9442_s0  ;;  %p9448_p2 = scmp.lt.s32.totalorder %s9442_s0, %s9442_s0 }
  0x49   :  { %p9449_p3 = por %p9448_p2, %p9447_p1 }
  0x4b   :  { %p9450_p4 = pnand %p9449_p3, %p9443_p0 }
  0x4d   :  { %9453 = shalt.err (!%p9450_p4)
}
  0x4e   :  { %s9998_s23 = smov 128   ;;  %s9999_s26 = smov 8  }
  0x4f   :  { %112 = dma.hbm_to_vmem [thread:$0]  %s10050_s9, 1152, %s107_s16, [#allocation10], %s9998_s23, %s9998_s23, %s9999_s26  }
  0x50   :  { %s9462_s28 = scalar_lea.vmem %s134_s22, 128  ;;  %p9467_p6 = scmp.lt.s32.totalorder %s134_s22, %s134_s22 }
  0x51   :  { %p9463_p5 = scmp.ne.s32.totalorder %s134_s22, %s9462_s28  ;;  %p9468_p7 = scmp.lt.s32.totalorder %s9462_s28, %s9462_s28 }
  0x53   :  { %p9469_p8 = por %p9468_p7, %p9467_p6 }
  0x55   :  { %p9470_p9 = pnand %p9469_p8, %p9463_p5 }
  0x57   :  { %9473 = shalt.err (!%p9470_p9)
}
  0x58   :  { %136 = dma.hbm_to_vmem [thread:$0]  %s10070_s25, 128, %s134_s22, [#allocation13]  }
  0x59   :  { %s10000_s1 = smov [#allocation15]   ;;  %s10001_s7 = smov [#allocation18]  }
  0x5a   :  { %s157_s2 = sshll.u32 %s10000_s1, 4  ;;  %s178_s10 = sshll.u32 %s10001_s7, 4  ;;  %s158_s2 = int_to_ptr.vmem [resolvable:$true] %s157_s2  ;;  %s179_s10 = int_to_ptr.vmem [resolvable:$true] %s178_s10 }
  0x5b   :  { %s9482_s11 = scalar_lea.vmem %s158_s2, 64  ;;  %p9487_p11 = scmp.lt.s32.totalorder %s158_s2, %s158_s2 }
  0x5c   :  { %p9483_p10 = scmp.ne.s32.totalorder %s158_s2, %s9482_s11  ;;  %p9488_p12 = scmp.lt.s32.totalorder %s9482_s11, %s9482_s11 }
  0x5e   :  { %p9489_p13 = por %p9488_p12, %p9487_p11 }
  0x60   :  { %p9490_p0 = pnand %p9489_p13, %p9483_p10 }
  0x62   :  { %9493 = shalt.err (!%p9490_p0)
}
  0x63   :  { %160 = dma.hbm_to_vmem [thread:$0]  %s10085_s8, 64, %s158_s2, [#allocation16]  }
  0x64   :  { %s9502_s9 = scalar_lea.vmem %s179_s10, 512  ;;  %p9507_p2 = scmp.lt.s32.totalorder %s179_s10, %s179_s10 }
  0x65   :  { %p9503_p1 = scmp.ne.s32.totalorder %s179_s10, %s9502_s9  ;;  %p9508_p3 = scmp.lt.s32.totalorder %s9502_s9, %s9502_s9 }
  0x67   :  { %p9509_p4 = por %p9508_p3, %p9507_p2 }
  0x69   :  { %p9510_p5 = pnand %p9509_p4, %p9503_p1 }
  0x6b   :  { %9513 = shalt.err (!%p9510_p5)
}
  0x6c   :  { %184 = dma.hbm_to_vmem [thread:$0]  %s10095_s19, 512, %s179_s10, [#allocation19], %s9998_s23, %s9998_s23, %s9999_s26  }
  0x6d   :  { %s10002_s25 = smov [#allocation21]   ;;  %s10003_s16 = smov [#allocation24]  }
  0x6e   :  { %s206_s15 = sshll.u32 %s10002_s25, 4  ;;  %s228_s18 = sshll.u32 %s10003_s16, 4  ;;  %s207_s15 = int_to_ptr.vmem [resolvable:$true] %s206_s15  ;;  %s229_s18 = int_to_ptr.vmem [resolvable:$true] %s228_s18 }
  0x6f   :  { %s9522_s22 = scalar_lea.vmem %s207_s15, 512  ;;  %p9527_p7 = scmp.lt.s32.totalorder %s207_s15, %s207_s15 }
  0x70   :  { %p9523_p6 = scmp.ne.s32.totalorder %s207_s15, %s9522_s22  ;;  %p9528_p8 = scmp.lt.s32.totalorder %s9522_s22, %s9522_s22 }
  0x72   :  { %p9529_p9 = por %p9528_p8, %p9527_p7 }
  0x74   :  { %p9530_p10 = pnand %p9529_p9, %p9523_p6 }
  0x76   :  { %9533 = shalt.err (!%p9530_p10)
}
  0x77   :  { %212 = dma.hbm_to_vmem [thread:$0]  %s10120_s20, 512, %s207_s15, [#allocation22], %s9998_s23, %s9998_s23, %s9999_s26  }
  0x78   :  { %s9542_s8 = scalar_lea.vmem %s229_s18, 512  ;;  %p9547_p12 = scmp.lt.s32.totalorder %s229_s18, %s229_s18 }
  0x79   :  { %p9543_p11 = scmp.ne.s32.totalorder %s229_s18, %s9542_s8  ;;  %p9548_p13 = scmp.lt.s32.totalorder %s9542_s8, %s9542_s8 }
  0x7b   :  { %p9549_p0 = por %p9548_p13, %p9547_p12 }
  0x7d   :  { %p9550_p1 = pnand %p9549_p0, %p9543_p11 }
  0x7f   :  { %9553 = shalt.err (!%p9550_p1)
}
  0x80   :  { %234 = dma.hbm_to_vmem [thread:$0]  %s10130_s4, 512, %s229_s18, [#allocation25], %s9998_s23, %s9998_s23, %s9999_s26  }
  0x81   :  { %s10004_s19 = smov [#allocation27]   ;;  %s10005_s28 = smov [#allocation30]  }
  0x82   :  { %s253_s0 = sshll.u32 %s10004_s19, 4  ;;  %s273_s1 = sshll.u32 %s10005_s28, 4  ;;  %s254_s0 = int_to_ptr.vmem [resolvable:$true] %s253_s0  ;;  %s274_s1 = int_to_ptr.vmem [resolvable:$true] %s273_s1 }
  0x83   :  { %s9562_s2 = scalar_lea.vmem %s254_s0, 32  ;;  %p9567_p3 = scmp.lt.s32.totalorder %s254_s0, %s254_s0 }
  0x84   :  { %p9563_p2 = scmp.ne.s32.totalorder %s254_s0, %s9562_s2  ;;  %p9568_p4 = scmp.lt.s32.totalorder %s9562_s2, %s9562_s2 }
  0x86   :  { %p9569_p5 = por %p9568_p4, %p9567_p3 }
  0x88   :  { %p9570_p6 = pnand %p9569_p5, %p9563_p2 }
  0x8a   :  { %9573 = shalt.err (!%p9570_p6)
}
  0x8b   :  { %256 = dma.hbm_to_vmem [thread:$0]  %s10140_s6, 32, %s254_s0, [#allocation28]  }
  0x8c   :  { %s9582_s20 = scalar_lea.vmem %s274_s1, 16  ;;  %s9586_s7 = scalar_lea.vmem %s274_s1, 32 }
  0x8d   :  { %p9583_p7 = scmp.ne.s32.totalorder %s274_s1, %s9582_s20  ;;  %p9587_p8 = scmp.lt.s32.totalorder %s274_s1, %s274_s1 }
  0x8e   :  { %p9588_p9 = scmp.lt.s32.totalorder %s9586_s7, %s9582_s20 }
  0x90   :  { %p9589_p10 = por %p9588_p9, %p9587_p8 }
  0x92   :  { %p9590_p11 = pnand %p9589_p10, %p9583_p7 }
  0x94   :  { %9593 = shalt.err (!%p9590_p11)
}
  0x95   :  { %276 = dma.hbm_to_vmem [thread:$0]  %s10150_s17, 16, %s274_s1, [#allocation31]  }
  0x96   :  { %s10006_s4 = smov [#allocation33]   ;;  %s10007_s11 = smov [#allocation36]  }
  0x97   :  { %s294_s10 = sshll.u32 %s10006_s4, 4  ;;  %s317_s9 = sshll.u32 %s10007_s11, 4  ;;  %s295_s10 = int_to_ptr.vmem [resolvable:$true] %s294_s10  ;;  %s318_s9 = int_to_ptr.vmem [resolvable:$true] %s317_s9 }
  0x98   :  { %s9602_s25 = scalar_lea.vmem %s295_s10, 256  ;;  %p9607_p13 = scmp.lt.s32.totalorder %s295_s10, %s295_s10 }
  0x99   :  { %p9603_p12 = scmp.ne.s32.totalorder %s295_s10, %s9602_s25  ;;  %p9608_p0 = scmp.lt.s32.totalorder %s9602_s25, %s9602_s25 }
  0x9b   :  { %p9609_p1 = por %p9608_p0, %p9607_p13 }
  0x9d   :  { %p9610_p2 = pnand %p9609_p1, %p9603_p12 }
  0x9f   :  { %9613 = shalt.err (!%p9610_p2)
}
  0xa0   :  { %s10008_s6 = smov 64   ;;  %s10009_s15 = smov 4  }
  0xa1   :  { %300 = dma.hbm_to_vmem [thread:$0]  %s10160_s29, 256, %s295_s10, [#allocation34], %s10008_s6, %s10008_s6, %s10009_s15  }
  0xa2   :  { %s9622_s17 = scalar_lea.vmem %s318_s9, 64  ;;  %p9627_p4 = scmp.lt.s32.totalorder %s318_s9, %s318_s9 }
  0xa3   :  { %p9623_p3 = scmp.ne.s32.totalorder %s318_s9, %s9622_s17  ;;  %p9628_p5 = scmp.lt.s32.totalorder %s9622_s17, %s9622_s17 }
  0xa5   :  { %p9629_p6 = por %p9628_p5, %p9627_p4 }
  0xa7   :  { %p9630_p7 = pnand %p9629_p6, %p9623_p3 }
  0xa9   :  { %9633 = shalt.err (!%p9630_p7)
}
  0xaa   :  { %320 = dma.hbm_to_vmem [thread:$0]  %s10170_s21, 64, %s318_s9, [#allocation37]  }
  0xab   :  { %s10010_s16 = smov [#allocation6]   ;;  %s10011_s22 = smov [#allocation11]  }
  0xac   :  { %s94_s18 = sshll.u32 %s10010_s16, 4  ;;  %s119_s8 = sshll.u32 %s10011_s22, 4  ;;  %s95_s18 = int_to_ptr.vmem [resolvable:$true] %s94_s18  ;;  %s120_s8 = int_to_ptr.vmem [resolvable:$true] %s119_s8 }
  0xad   :  { %s9642_s19 = scalar_lea.vmem %s95_s18, 1024  ;;  %p9647_p9 = scmp.lt.s32.totalorder %s95_s18, %s95_s18 }
  0xae   :  { %p9643_p8 = scmp.ne.s32.totalorder %s95_s18, %s9642_s19  ;;  %p9648_p10 = scmp.lt.s32.totalorder %s9642_s19, %s9642_s19 }
  0xb0   :  { %p9649_p11 = por %p9648_p10, %p9647_p9 }
  0xb2   :  { %p9650_p12 = pnand %p9649_p11, %p9643_p8 }
  0xb4   :  { %9653 = shalt.err (!%p9650_p12)
}
  0xb5   :  { %100 = dma.hbm_to_vmem [thread:$0]  %s10045_s5, 1024, %s95_s18, [#allocation7], %s9998_s23, %s9998_s23, %s9999_s26  }
  0xb6   :  { %s9662_s29 = scalar_lea.vmem %s120_s8, 128  ;;  %p9667_p0 = scmp.lt.s32.totalorder %s120_s8, %s120_s8 }
  0xb7   :  { %p9663_p13 = scmp.ne.s32.totalorder %s120_s8, %s9662_s29  ;;  %p9668_p1 = scmp.lt.s32.totalorder %s9662_s29, %s9662_s29 }
  0xb9   :  { %p9669_p2 = por %p9668_p1, %p9667_p0 }
  0xbb   :  { %p9670_p3 = pnand %p9669_p2, %p9663_p13 }
  0xbd   :  { %9673 = shalt.err (!%p9670_p3)
}
  0xbe   :  { %122 = dma.hbm_to_vmem [thread:$0]  %s10055_s13, 128, %s120_s8, [#allocation10]  }
  0xbf   :  { %s10012_s21 = smov [#allocation14]  }
  0xc0   :  { %s144_s0 = sshll.u32 %s10012_s21, 4  ;;  %s145_s0 = int_to_ptr.vmem [resolvable:$true] %s144_s0 }
  0xc1   :  { %s9682_s28 = scalar_lea.vmem %s145_s0, 1024  ;;  %p9687_p5 = scmp.lt.s32.totalorder %s145_s0, %s145_s0 }
  0xc2   :  { %p9683_p4 = scmp.ne.s32.totalorder %s145_s0, %s9682_s28  ;;  %p9688_p6 = scmp.lt.s32.totalorder %s9682_s28, %s9682_s28 }
  0xc4   :  { %p9689_p7 = por %p9688_p6, %p9687_p5 }
  0xc6   :  { %p9690_p8 = pnand %p9689_p7, %p9683_p4 }
  0xc8   :  { %9693 = shalt.err (!%p9690_p8)
}
  0xc9   :  { %s10013_s5 = smov 256   ;;  %s10014_s1 = smov 16  }
  0xca   :  { %150 = dma.hbm_to_vmem [thread:$0]  %s10080_s3, 1024, %s145_s0, [#allocation13], %s10013_s5, %s10013_s5, %s10014_s1  }
  0xcb   :  { %s10015_s2 = smov [#allocation17]   ;;  %s10016_s13 = smov [#allocation20]  }
  0xcc   :  { %s166_s20 = sshll.u32 %s10015_s2, 4  ;;  %s191_s7 = sshll.u32 %s10016_s13, 4  ;;  %s167_s20 = int_to_ptr.vmem [resolvable:$true] %s166_s20  ;;  %s192_s7 = int_to_ptr.vmem [resolvable:$true] %s191_s7 }
  0xcd   :  { %s9702_s4 = scalar_lea.vmem %s167_s20, 512  ;;  %p9707_p10 = scmp.lt.s32.totalorder %s167_s20, %s167_s20 }
  0xce   :  { %p9703_p9 = scmp.ne.s32.totalorder %s167_s20, %s9702_s4  ;;  %p9708_p11 = scmp.lt.s32.totalorder %s9702_s4, %s9702_s4 }
  0xd0   :  { %p9709_p12 = por %p9708_p11, %p9707_p10 }
  0xd2   :  { %p9710_p13 = pnand %p9709_p12, %p9703_p9 }
  0xd4   :  { %9713 = shalt.err (!%p9710_p13)
}
  0xd5   :  { %172 = dma.hbm_to_vmem [thread:$0]  %s10090_s14, 512, %s167_s20, [#allocation16], %s9998_s23, %s9998_s23, %s9999_s26  }
  0xd6   :  { %s9722_s10 = scalar_lea.vmem %s192_s7, 32  ;;  %p9727_p1 = scmp.lt.s32.totalorder %s192_s7, %s192_s7 }
  0xd7   :  { %p9723_p0 = scmp.ne.s32.totalorder %s192_s7, %s9722_s10  ;;  %p9728_p2 = scmp.lt.s32.totalorder %s9722_s10, %s9722_s10 }
  0xd9   :  { %p9729_p3 = por %p9728_p2, %p9727_p1 }
  0xdb   :  { %p9730_p4 = pnand %p9729_p3, %p9723_p0 }
  0xdd   :  { %9733 = shalt.err (!%p9730_p4)
}
  0xde   :  { %s12333_s3 = sld [smem:[#allocation62_spill]]  ;;  %s10017_s11 = smov [#allocation23]  }
  0xdf   :  { %s219_s9 = sshll.u32 %s10017_s11, 4  ;;  %s10018_s25 = smov [#allocation26]   ;;  %s220_s9 = int_to_ptr.vmem [resolvable:$true] %s219_s9 }
  0xe0   :  { %s240_s17 = sshll.u32 %s10018_s25, 4  ;;  %s9742_s16 = scalar_lea.vmem %s220_s9, 32  ;;  %s241_s17 = int_to_ptr.vmem [resolvable:$true] %s240_s17 }
  0xe1   :  { %p9743_p5 = scmp.ne.s32.totalorder %s220_s9, %s9742_s16  ;;  %p9747_p6 = scmp.lt.s32.totalorder %s220_s9, %s220_s9 }
  0xe2   :  { %p9748_p7 = scmp.lt.s32.totalorder %s9742_s16, %s9742_s16 }
  0xe4   :  { %194 = dma.hbm_to_vmem [thread:$0]  %s12333_s3, 32, %s192_s7, [#allocation19]  }
  0xe5   :  { %p9749_p8 = por %p9748_p7, %p9747_p6 }
  0xe7   :  { %p9750_p9 = pnand %p9749_p8, %p9743_p5 }
  0xe9   :  { %9753 = shalt.err (!%p9750_p9)
}
  0xea   :  { %s12334_s14 = sld [smem:[#allocation66_spill]]  ;;  %s9762_s18 = scalar_lea.vmem %s241_s17, 512 }
  0xeb   :  { %p9763_p10 = scmp.ne.s32.totalorder %s241_s17, %s9762_s18  ;;  %p9767_p11 = scmp.lt.s32.totalorder %s241_s17, %s241_s17 }
  0xec   :  { %p9768_p12 = scmp.lt.s32.totalorder %s9762_s18, %s9762_s18 }
  0xee   :  { %p9769_p13 = por %p9768_p12, %p9767_p11 }
  0xf0   :  { %222 = dma.hbm_to_vmem [thread:$0]  %s12334_s14, 32, %s220_s9, [#allocation22]  }
  0xf1   :  { %p9770_p0 = pnand %p9769_p13, %p9763_p10 }
  0xf3   :  { %9773 = shalt.err (!%p9770_p0)
}
  0xf4   :  { %s12335_s22 = sld [smem:[#allocation67_spill]]  ;;  %s10019_s8 = smov [#allocation29]  }
  0xf5   :  { %s263_s19 = sshll.u32 %s10019_s8, 4  ;;  %s10020_s29 = smov [#allocation32]   ;;  %s264_s19 = int_to_ptr.vmem [resolvable:$true] %s263_s19 }
  0xf6   :  { %s282_s21 = sshll.u32 %s10020_s29, 4  ;;  %s9782_s0 = scalar_lea.vmem %s264_s19, 64  ;;  %s283_s21 = int_to_ptr.vmem [resolvable:$true] %s282_s21 }
  0xf7   :  { %p9783_p1 = scmp.ne.s32.totalorder %s264_s19, %s9782_s0  ;;  %p9787_p2 = scmp.lt.s32.totalorder %s264_s19, %s264_s19 }
  0xf8   :  { %p9788_p3 = scmp.lt.s32.totalorder %s9782_s0, %s9782_s0 }
  0xfa   :  { %246 = dma.hbm_to_vmem [thread:$0]  %s12335_s22, 512, %s241_s17, [#allocation25], %s9998_s23, %s9998_s23, %s9999_s26  }
  0xfb   :  { %p9789_p4 = por %p9788_p3, %p9787_p2 }
  0xfd   :  { %p9790_p5 = pnand %p9789_p4, %p9783_p1 }
  0xff   :  { %9793 = shalt.err (!%p9790_p5)
}
 0x100   :  { %s12336_s28 = sld [smem:[#allocation68_spill]]  ;;  %s9802_s2 = scalar_lea.vmem %s283_s21, 128 }
 0x101   :  { %p9803_p6 = scmp.ne.s32.totalorder %s283_s21, %s9802_s2  ;;  %p9807_p7 = scmp.lt.s32.totalorder %s283_s21, %s283_s21 }
 0x102   :  { %p9808_p8 = scmp.lt.s32.totalorder %s9802_s2, %s9802_s2 }
 0x104   :  { %p9809_p9 = por %p9808_p8, %p9807_p7 }
 0x106   :  { %266 = dma.hbm_to_vmem [thread:$0]  %s12336_s28, 64, %s264_s19, [#allocation28]  }
 0x107   :  { %p9810_p10 = pnand %p9809_p9, %p9803_p6 }
 0x109   :  { %9813 = shalt.err (!%p9810_p10)
}
 0x10a   :  { %s12337_s23 = sld [smem:[#allocation69_spill]]  ;;  %s10021_s26 = smov [#allocation35]  }
 0x10b   :  { %s307_s20 = sshll.u32 %s10021_s26, 4  ;;  %s10022_s13 = smov [#allocation38]   ;;  %s308_s20 = int_to_ptr.vmem [resolvable:$true] %s307_s20 }
 0x10c   :  { %s327_s7 = sshll.u32 %s10022_s13, 4  ;;  %s9822_s4 = scalar_lea.vmem %s308_s20, 64  ;;  %s328_s7 = int_to_ptr.vmem [resolvable:$true] %s327_s7 }
 0x10d   :  { %p9823_p11 = scmp.ne.s32.totalorder %s308_s20, %s9822_s4  ;;  %p9827_p12 = scmp.lt.s32.totalorder %s308_s20, %s308_s20 }
 0x10e   :  { %p9828_p13 = scmp.lt.s32.totalorder %s9822_s4, %s9822_s4 }
 0x110   :  { %288 = dma.hbm_to_vmem [thread:$0]  %s12337_s23, 128, %s283_s21, [#allocation31], %s10008_s6, %s10008_s6, %s10009_s15  }
 0x111   :  { %p9829_p0 = por %p9828_p13, %p9827_p12 }
 0x113   :  { %p9830_p1 = pnand %p9829_p0, %p9823_p11 }
 0x115   :  { %9833 = shalt.err (!%p9830_p1)
}
 0x116   :  { %s12338_s10 = sld [smem:[#allocation70_spill]]  ;;  %s9842_s3 = scalar_lea.vmem %s328_s7, 16 }
 0x117   :  { %p9843_p2 = scmp.ne.s32.totalorder %s328_s7, %s9842_s3  ;;  %s9846_s11 = scalar_lea.vmem %s328_s7, 32 }
 0x118   :  { %p9847_p3 = scmp.lt.s32.totalorder %s328_s7, %s328_s7  ;;  %p9848_p4 = scmp.lt.s32.totalorder %s9846_s11, %s9842_s3 }
 0x11a   :  { %p9849_p5 = por %p9848_p4, %p9847_p3 }
 0x11c   :  { %310 = dma.hbm_to_vmem [thread:$0]  %s12338_s10, 64, %s308_s20, [#allocation34]  }
 0x11d   :  { %p9850_p6 = pnand %p9849_p5, %p9843_p2 }
 0x11f   :  { %9853 = shalt.err (!%p9850_p6)
}
 0x120   :  { %s12339_s9 = sld [smem:[#allocation71_spill]]  ;;  %s10023_s25 = smov [#allocation39]  }
 0x121   :  { %s338_s17 = sshll.u32 %s10023_s25, 4  ;;  %s339_s17 = int_to_ptr.vmem [resolvable:$true] %s338_s17 }
 0x122   :  { %s9862_s16 = scalar_lea.vmem %s339_s17, 1024  ;;  %p9867_p8 = scmp.lt.s32.totalorder %s339_s17, %s339_s17 }
 0x123   :  { %p9863_p7 = scmp.ne.s32.totalorder %s339_s17, %s9862_s16  ;;  %p9868_p9 = scmp.lt.s32.totalorder %s9862_s16, %s9862_s16 }
 0x125   :  { %p9869_p10 = por %p9868_p9, %p9867_p8 }
 0x126   :  { %330 = dma.hbm_to_vmem [thread:$0]  %s12339_s9, 16, %s328_s7, [#allocation37]  }
 0x127   :  { %p9870_p11 = pnand %p9869_p10, %p9863_p7 }
 0x129   :  { %9873 = shalt.err (!%p9870_p11)
}
 0x12a   :  { %s12340_s14 = sld [smem:[#allocation73_spill]] }
 0x130   :  { %344 = dma.hbm_to_vmem [thread:$0]  %s12340_s14, 1024, %s339_s17, [#allocation40], %s10013_s5, %s10013_s5, %s10014_s1  }
 0x131   :  { %9934 = dma.done.wait [#allocation7], 1024  }
 0x132   :  { %9935 = vsyncadd [#allocation7], 4294966272 }
 0x133   :  { %9936 = dma.done.wait [#allocation10], 1280  }
 0x134   :  { %9937 = vsyncadd [#allocation10], 4294966016 }
 0x135   :  { %9938 = dma.done.wait [#allocation13], 1152  }
 0x136   :  { %9939 = vsyncadd [#allocation13], 4294966144 }
 0x137   :  { %9940 = dma.done.wait [#allocation16], 576  }
 0x138   :  { %9941 = vsyncadd [#allocation16], 4294966720 }
 0x139   :  { %9942 = dma.done.wait [#allocation19], 544  }
 0x13a   :  { %9943 = vsyncadd [#allocation19], 4294966752 }
 0x13b   :  { %9944 = dma.done.wait [#allocation22], 544  }
 0x13c   :  { %9945 = vsyncadd [#allocation22], 4294966752 }
 0x13d   :  { %9946 = dma.done.wait [#allocation25], 1024  }
 0x13e   :  { %9947 = vsyncadd [#allocation25], 4294966272 }
 0x13f   :  { %9948 = dma.done.wait [#allocation28], 96  }
 0x140   :  { %9949 = vsyncadd [#allocation28], 4294967200 }
 0x141   :  { %9950 = dma.done.wait [#allocation31], 144  }
 0x142   :  { %9951 = vsyncadd [#allocation31], 4294967152 }
 0x143   :  { %9952 = dma.done.wait [#allocation34], 320  }
 0x144   :  { %9953 = vsyncadd [#allocation34], 4294966976 }
 0x145   :  { %9954 = dma.done.wait [#allocation37], 80  }
 0x146   :  { %9955 = vsyncadd [#allocation37], 4294967216 }
 0x147   :  { %9956 = dma.done.wait [#allocation40], 1024  }
 0x148   :  { %9957 = vsyncadd [#allocation40], 4294966272  ;;  %s12341_s5 = sld [smem:[#allocation61_spill]]  ;;  %v12212_v0 = vmov 0   ;;  %v417_v5 = vld [vmem:[#allocation6] sm:$0xff]  ;;  %v418_v6 = vld [vmem:[#allocation6 + $0x8] sm:$0xff]  ;;  %v614_v59 = vlaneseq }
 0x149   :  { %498 = vmatprep.mubr.bf16.mxu0 %v12212_v0  ;;  %s12342_s1 = sld [smem:[#allocation63_spill]]  ;;  %571 = vmatprep.mubr.bf16.mxu1 %v12212_v0  ;;  %v425_v7 = vpack.c.bf16 %v418_v6, %v417_v5  ;;  %vm453_vm0 = vcmask 130048   ;;  %v12210_v9 = vmov 0.0   ;;  %v8926_v10 = vld [vmem:[#allocation32] sm:$0xff]   ;;  %v419_v11 = vld [vmem:[#allocation6 + $0x10] sm:$0xff]  ;;  %v420_v12 = vld [vmem:[#allocation6 + $0x18] sm:$0xff] }
 0x14a   :  { %8848 = vset.pattern.permute.xlu0 %v12212_v0  ;;  %8849 = vset.pattern.permute.xlu1 %v12212_v0  ;;  %s12343_s18 = sld [smem:[#allocation59_spill]]  ;;  %v10286_v13 = vld [vmem:[#allocation14 + $0x24] ss:$16 sps:$4 sm:$0xff]   ;;  %v426_v14 = vpack.c.bf16 %v420_v12, %v419_v11  ;;  %v10290_v15 = vld [vmem:[#allocation14 + $0x2c] ss:$16 sps:$4 sm:$0xff]   ;;  %vm10026_vm7 = vmmov 0  }
 0x14b   :  { %v421_v16 = vld [vmem:[#allocation6 + $0x20] sm:$0xff]  ;;  %v422_v18 = vld [vmem:[#allocation6 + $0x28] sm:$0xff]  ;;  %v423_v25 = vld [vmem:[#allocation6 + $0x30] sm:$0xff]  ;;  %v10386_v60 = vshrl.u32 %v614_v59, 7  ;;  %s12344_s22 = sld [smem:[#allocation65_spill]]  ;;  %vm938_vm10 = vcmask 261120  }
 0x14c   :  { %v427_v23 = vpack.c.bf16 %v422_v18, %v421_v16  ;;  %v424_v26 = vld [vmem:[#allocation6 + $0x38] sm:$0xff]  ;;  %v698_v33 = vld [vmem:[#allocation9] sm:$0xff]  ;;  %v699_v34 = vld [vmem:[#allocation9 + $0x8] sm:$0xff]  ;;  %vm832_vm11 = vcmask 64512   ;;  %s12347_s8 = sld [smem:[#allocation64_spill]]  ;;  %vm2285_vm12 = vcmask 1043456  }
 0x14d   :  { %v428_v30 = vpack.c.bf16 %v424_v26, %v423_v25  ;;  %v707_v37 = vpack.c.bf16 %v699_v34, %v698_v33  ;;  %v10323_v38 = vld [vmem:[#allocation14 + $0x20] ss:$16 sps:$4 sm:$0xff]   ;;  %v10325_v39 = vld [vmem:[#allocation14 + $0x28] ss:$16 sps:$4 sm:$0xff]   ;;  %v10327_v40 = vld [vmem:[#allocation14 + $0x4] ss:$16 sps:$4 sm:$0xff]  }
 0x14e   :  { %v8919_v1 = vld [vmem:[%s12341_s5 + $0x4] ss:$16 sps:$4 sm:$0xff]   ;;  %v8921_v2 = vld [vmem:[%s12341_s5 + $0xc] ss:$16 sps:$4 sm:$0xff]   ;;  %v8923_v3 = vld [vmem:[%s12341_s5] ss:$16 sps:$4 sm:$0xff]  }
 0x14f   :  { %480 = vmatprep.subr.bf16.mxu0 %v8919_v1  ;;  %v8924_v4 = vld [vmem:[%s12341_s5 + $0x8] ss:$16 sps:$4 sm:$0xff]   ;;  %553 = vmatprep.subr.bf16.mxu1 %v8921_v2  ;;  %v8925_v8 = vld [vmem:[%s12342_s1] sm:$0xff]   ;;  %v702_v49 = vld [vmem:[#allocation9 + $0x20] sm:$0xff]  ;;  %v12208_v61 = vsub.s32 2, %v10386_v60  ;;  %v10390_v62 = vsub.s32 0, %v10386_v60 }
 0x150   :  { %481 = vmatpush1.bf16.msra.mxu0 %v8923_v3  ;;  %554 = vmatpush1.bf16.msra.mxu1 %v8924_v4  ;;  %v10296_v17 = vld [vmem:[%s12343_s18] sm:$0xff]  ;;  %v701_v45 = vld [vmem:[#allocation9 + $0x18] sm:$0xff]  ;;  %v703_v50 = vld [vmem:[#allocation9 + $0x28] sm:$0xff]  ;;  %v12209_v11 = vsub.s32 3, %v10386_v60  ;;  %s12358_s19 = sld [smem:[#allocation72_spill]]  ;;  %vm3186_vm13 = vcmask 257024  }
 0x151   :  { %8471 = vmatprep.subr.bf16.mxu0 %v12210_v9  ;;  %8493 = vmatprep.subr.bf16.mxu1 %v12210_v9  ;;  %vm956_vm1 = vcmp.gt.f32.partialorder %v10296_v17, 0.0  ;;  %vm1133_vm2 = vcmp.gt.f32.partialorder %v10296_v17, 1.0  ;;  %vm1274_vm3 = vcmp.gt.f32.partialorder %v10296_v17, 2.0  ;;  %vm1415_vm4 = vcmp.gt.f32.partialorder %v10296_v17, 3.0  ;;  %v10329_v41 = vld [vmem:[#allocation14 + $0xc] ss:$16 sps:$4 sm:$0xff]  }
 0x152   :  { %v8130_v19 = vsel %vm956_vm1, 1.0, %v12210_v9  ;;  %v8142_v20 = vsel %vm1133_vm2, 1.0, %v12210_v9  ;;  %v8148_v24 = vsel %vm1274_vm3, 1.0, %v12210_v9  ;;  %v8154_v28 = vsel %vm1415_vm4, 1.0, %v12210_v9  ;;  %v700_v44 = vld [vmem:[#allocation9 + $0x10] sm:$0xff]  ;;  %v705_v53 = vld [vmem:[#allocation9 + $0x38] sm:$0xff] }
 0x153   :  { %8108 = vmatmul.mubr.msk.bf16.vlgmr.msra.gmra.mxu0 %vm453_vm0, %v425_v7  ;;  %8112 = vmatmul.mubr.msk.bf16.vlgmr.msra.gmra.mxu1 %vm453_vm0, %v425_v7  ;;  %v1123_v21 = vsub.f32 1.0, %v8130_v19  ;;  %v1263_v22 = vsub.f32 1.0, %v8142_v20  ;;  %v1404_v27 = vsub.f32 1.0, %v8148_v24  ;;  %v1545_v29 = vsub.f32 1.0, %v8154_v28  ;;  %v10337_v46 = vld [vmem:[#allocation14] ss:$16 sps:$4 sm:$0xff]  }
 0x154   :  { %8472 = vmatpush3.bf16.msra.mxu0 %v8925_v8  ;;  %508 = vmatprep.mubr.bf16.mxu0 %v12212_v0  ;;  %vm1556_vm5 = vcmp.gt.f32.partialorder %v10296_v17, 4.0  ;;  %vm1697_vm6 = vcmp.gt.f32.partialorder %v10296_v17, 5.0  ;;  %vm1838_vm8 = vcmp.gt.f32.partialorder %v10296_v17, 6.0  ;;  %v10342_v47 = vld [vmem:[#allocation14 + $0x8] ss:$16 sps:$4 sm:$0xff]   ;;  %v708_v48 = vpack.c.bf16 %v701_v45, %v700_v44  ;;  %s12368_s29 = sld [smem:[#allocation74_spill]] }
 0x155   :  { %581 = vmatprep.mubr.bf16.mxu1 %v12212_v0  ;;  %8494 = vmatpush3.bf16.msra.mxu1 %v8926_v10  ;;  %v8160_v31 = vsel %vm1556_vm5, 1.0, %v12210_v9  ;;  %v8166_v35 = vsel %vm1697_vm6, 1.0, %v12210_v9  ;;  %v8172_v42 = vsel %vm1838_vm8, 1.0, %v12210_v9  ;;  %v709_v51 = vpack.c.bf16 %v703_v50, %v702_v49  ;;  %v704_v52 = vld [vmem:[#allocation9 + $0x30] sm:$0xff]  ;;  %v706_v55 = vld [vmem:[#allocation9 + $0x40] sm:$0xff]  ;;  %s12521_s21 = sld [smem:[#allocation60_spill]] }
 0x156   :  { %1018 = vmatprep.subr.bf16.mxu0 %v10286_v13  ;;  %1059 = vmatprep.subr.bf16.mxu1 %v10290_v15  ;;  %v1686_v32 = vsub.f32 1.0, %v8160_v31  ;;  %v1827_v36 = vsub.f32 1.0, %v8166_v35  ;;  %v1968_v43 = vsub.f32 1.0, %v8172_v42  ;;  %v710_v54 = vpack.c.bf16 %v705_v53, %v704_v52  ;;  %v612_v1 = vld [vmem:[#allocation15] sm:$0xf]  ;;  %s10035_s0 = smov [#allocation44]  }
 0x157   :  { %1118 = vperm.xlu0 %8848, %v8130_v19   ;;  %1257 = vperm.xlu1 %8849, %v8142_v20   ;;  %v711_v56 = vpack.c.bf16 %v706_v55, %v706_v55  ;;  %vm1979_vm9 = vcmp.gt.f32.partialorder %v10296_v17, 7.0  ;;  %v10398_v3 = vrot.slane %v612_v1, %v12208_v61  ;;  %v10405_v6 = vrot.slane %v612_v1, %v10390_v62  ;;  %s8035_s28 = sshll.u32 %s10035_s0, 4  ;;  %s8036_s28 = int_to_ptr.vmem [resolvable:$true] %s8035_s28 }
 0x158   :  { %v8178_v57 = vsel %vm1979_vm9, 1.0, %v12210_v9  ;;  %v10408_v10 = vsub.s32 1, %v10386_v60  ;;  %vm8004_vm3 = vcmask 7168  }
 0x159   :  { %v2109_v58 = vsub.f32 1.0, %v8178_v57 }
 0x15a   :  { %v10422_v20 = vrot.slane %v612_v1, %v10408_v10 }
 0x15b   :  { %8109 = vmatmul.mubr.msk.bf16.gmra.mxu0 %vm453_vm0, %v426_v14  ;;  %8113 = vmatmul.mubr.msk.bf16.gmra.mxu1 %vm453_vm0, %v426_v14 }
 0x15c   :  { %518 = vmatprep.mubr.bf16.mxu0 %v12212_v0  ;;  %591 = vmatprep.mubr.bf16.mxu1 %v12212_v0 }
 0x15d   :  { %1126 = vperm.xlu0 %8848, %v1123_v21   ;;  %1266 = vperm.xlu1 %8849, %v1263_v22   ;;  %v10426_v21 = vrot.slane %v612_v1, %v12209_v11 }
 0x161   :  { %1398 = vperm.xlu0 %8848, %v8148_v24   ;;  %1407 = vperm.xlu1 %8849, %v1404_v27  }
 0x163   :  { %8110 = vmatmul.mubr.msk.bf16.gmra.mxu0 %vm453_vm0, %v427_v23  ;;  %8114 = vmatmul.mubr.msk.bf16.gmra.mxu1 %vm453_vm0, %v427_v23 }
 0x164   :  { %528 = vmatprep.mubr.bf16.mxu0 %v12212_v0  ;;  %601 = vmatprep.mubr.bf16.mxu1 %v12212_v0 }
 0x165   :  { %1539 = vperm.xlu0 %8848, %v8154_v28   ;;  %1548 = vperm.xlu1 %8849, %v1545_v29  }
 0x169   :  { %1680 = vperm.xlu0 %8848, %v8160_v31   ;;  %1689 = vperm.xlu1 %8849, %v1686_v32  }
 0x16b   :  { %8111 = vmatmul.mubr.msk.bf16.gmra.mxu0 %vm453_vm0, %v428_v30  ;;  %8115 = vmatmul.mubr.msk.bf16.gmra.mxu1 %vm453_vm0, %v428_v30 }
 0x16c   :  { %8473 = vmatprep.mubr.msk.bf16.mxu0 %vm10026_vm7, %v12210_v9  ;;  %8495 = vmatprep.mubr.msk.bf16.mxu1 %vm10026_vm7, %v12210_v9 }
 0x16d   :  { %1821 = vperm.xlu0 %8848, %v8166_v35   ;;  %1830 = vperm.xlu1 %8849, %v1827_v36  }
 0x171   :  { %1962 = vperm.xlu0 %8848, %v8172_v42   ;;  %1971 = vperm.xlu1 %8849, %v1968_v43  }
 0x173   :  { %8474 = vmatmul.mubr.msk.bf16.vlgmr.msra.gmra.mxu0 %vm453_vm0, %v707_v37  ;;  %8496 = vmatmul.mubr.msk.bf16.vlgmr.msra.gmra.mxu1 %vm453_vm0, %v707_v37 }
 0x174   :  { %1019 = vmatpush1.bf16.msra.mxu0 %v10323_v38  ;;  %8477 = vmatprep.mubr.msk.bf16.mxu0 %vm10026_vm7, %v12210_v9 }
 0x175   :  { %8499 = vmatprep.mubr.msk.bf16.mxu1 %vm10026_vm7, %v12210_v9  ;;  %1060 = vmatpush1.bf16.msra.mxu1 %v10325_v39 }
 0x176   :  { %1020 = vmatprep.subr.bf16.mxu0 %v10327_v40  ;;  %1061 = vmatprep.subr.bf16.mxu1 %v10329_v41 }
 0x177   :  { %2103 = vperm.xlu0 %8848, %v8178_v57   ;;  %2112 = vperm.xlu1 %8849, %v2109_v58  }
 0x178   :  { %1021 = vmatpush1.bf16.msra.mxu0 %v10337_v46 }
 0x179   :  { %1062 = vmatpush1.bf16.msra.mxu1 %v10342_v47  ;;  %1157 = vmatprep.subr.bf16.mxu0 %v10286_v13 }
 0x17a   :  { %1198 = vmatprep.subr.bf16.mxu1 %v10290_v15 }
 0x17b   :  { %8478 = vmatmul.mubr.msk.bf16.gmra.mxu0 %vm453_vm0, %v708_v48  ;;  %8500 = vmatmul.mubr.msk.bf16.gmra.mxu1 %vm453_vm0, %v708_v48 }
 0x17c   :  { %8481 = vmatprep.mubr.msk.bf16.mxu0 %vm10026_vm7, %v12210_v9  ;;  %8503 = vmatprep.mubr.msk.bf16.mxu1 %vm10026_vm7, %v12210_v9 }
 0x183   :  { %8482 = vmatmul.mubr.msk.bf16.gmra.mxu0 %vm453_vm0, %v709_v51  ;;  %8504 = vmatmul.mubr.msk.bf16.gmra.mxu1 %vm453_vm0, %v709_v51 }
 0x184   :  { %8485 = vmatprep.mubr.msk.bf16.mxu0 %vm10026_vm7, %v12210_v9  ;;  %8507 = vmatprep.mubr.msk.bf16.mxu1 %vm10026_vm7, %v12210_v9 }
 0x18b   :  { %8486 = vmatmul.mubr.msk.bf16.gmra.mxu0 %vm453_vm0, %v710_v54  ;;  %8508 = vmatmul.mubr.msk.bf16.gmra.mxu1 %vm453_vm0, %v710_v54 }
 0x18c   :  { %8489 = vmatprep.mubr.msk.bf16.mxu0 %vm10026_vm7, %v12210_v9  ;;  %8511 = vmatprep.mubr.msk.bf16.mxu1 %vm10026_vm7, %v12210_v9 }
 0x193   :  { %8490 = vmatmul.mubr.msk.bf16.gmra.mxu0 %vm453_vm0, %v711_v56  ;;  %8512 = vmatmul.mubr.msk.bf16.gmra.mxu1 %vm453_vm0, %v711_v56 }
 0x194   :  { %1038 = vmatprep.mubr.bf16.mxu0 %v12212_v0  ;;  %1079 = vmatprep.mubr.bf16.mxu1 %v12212_v0 }
 0x19b   :  { %1039 = vmatmul.mubr.bf16.vlgmr.msra.gmra.mxu0 %v12212_v0  ;;  %1080 = vmatmul.mubr.bf16.vlgmr.msra.gmra.mxu1 %v12212_v0 }
 0x19c   :  { %1158 = vmatpush1.bf16.msra.mxu0 %v10323_v38  ;;  %1199 = vmatpush1.bf16.msra.mxu1 %v10325_v39 }
 0x19d   :  { %1159 = vmatprep.subr.bf16.mxu0 %v10327_v40  ;;  %1200 = vmatprep.subr.bf16.mxu1 %v10329_v41 }
 0x19e   :  { %1177 = vmatprep.mubr.bf16.mxu0 %v12212_v0  ;;  %1218 = vmatprep.mubr.bf16.mxu1 %v12212_v0 }
 0x1a0   :  { %1160 = vmatpush1.bf16.msra.mxu0 %v10337_v46  ;;  %1201 = vmatpush1.bf16.msra.mxu1 %v10342_v47 }
 0x1a1   :  { %1298 = vmatprep.subr.bf16.mxu0 %v10286_v13  ;;  %1339 = vmatprep.subr.bf16.mxu1 %v10290_v15 }
 0x213   :  { %v10392_v63 = vpop.f32.mrf.mxu0  ;;  %v10394_v2 = vpop.f32.mrf.mxu1 }
 0x215   :  { %v10400_v4 = vpop.f32.mrf.mxu0  ;;  %v10402_v5 = vpop.f32.mrf.mxu1 }
 0x217   :  { %v504_v7 = vpop.f32.mrf.mxu0  ;;  %v577_v8 = vpop.f32.mrf.mxu1 }
 0x218   :  { %v10412_v12 = vadd.f32 %v10405_v6, %v504_v7  ;;  %v10415_v14 = vadd.f32 %v10398_v3, %v577_v8 }
 0x219   :  { %v10417_v16 = vpop.f32.mrf.mxu0  ;;  %v10419_v17 = vpop.f32.mrf.mxu1 }
 0x21b   :  { %v510_v18 = vpop.f32.mrf.mxu0  ;;  %v583_v19 = vpop.f32.mrf.mxu1 }
 0x21c   :  { %v10429_v22 = vadd.f32 %v10405_v6, %v510_v18  ;;  %v10432_v23 = vadd.f32 %v10398_v3, %v583_v19 }
 0x21d   :  { %v512_v24 = vpop.f32.mrf.mxu0  ;;  %v585_v25 = vpop.f32.mrf.mxu1 }
 0x21e   :  { %v10435_v26 = vadd.f32 %v10422_v20, %v512_v24  ;;  %v10438_v27 = vadd.f32 %v10426_v21, %v585_v25 }
 0x21f   :  { %v514_v28 = vpop.f32.mrf.mxu0  ;;  %v587_v29 = vpop.f32.mrf.mxu1 }
 0x220   :  { %v10441_v30 = vadd.f32 %v10405_v6, %v514_v28  ;;  %v10444_v31 = vadd.f32 %v10398_v3, %v587_v29  ;;  %v10495_v29 = vld [vmem:[%s12344_s22] ss:$0 sm:$0xff] }
 0x221   :  { %v10446_v32 = vpop.f32.mrf.mxu0  ;;  %v10448_v33 = vpop.f32.mrf.mxu1 }
 0x223   :  { %v520_v34 = vpop.f32.mrf.mxu0  ;;  %v593_v35 = vpop.f32.mrf.mxu1 }
 0x224   :  { %v10451_v36 = vadd.f32 %v10405_v6, %v520_v34  ;;  %v10454_v37 = vadd.f32 %v10398_v3, %v593_v35  ;;  %v10497_v34 = vld [vmem:[#allocation38] ss:$0 sm:$0xff] }
 0x225   :  { %v522_v42 = vpop.f32.mrf.mxu0  ;;  %v595_v43 = vpop.f32.mrf.mxu1  ;;  %v10499_v35 = vld [vmem:[#allocation11] sm:$0xff] }
 0x226   :  { %v10457_v44 = vadd.f32 %v10422_v20, %v522_v42  ;;  %v10460_v45 = vadd.f32 %v10426_v21, %v595_v43 }
 0x227   :  { %v524_v48 = vpop.f32.mrf.mxu0  ;;  %v597_v49 = vpop.f32.mrf.mxu1 }
 0x228   :  { %v10463_v50 = vadd.f32 %v10405_v6, %v524_v48  ;;  %v10466_v51 = vadd.f32 %v10398_v3, %v597_v49 }
 0x229   :  { %v10468_v52 = vpop.f32.mrf.mxu0  ;;  %v10470_v53 = vpop.f32.mrf.mxu1 }
 0x22b   :  { %v530_v54 = vpop.f32.mrf.mxu0  ;;  %v603_v55 = vpop.f32.mrf.mxu1 }
 0x22c   :  { %v10473_v56 = vadd.f32 %v10405_v6, %v530_v54  ;;  %v10476_v57 = vadd.f32 %v10398_v3, %v603_v55 }
 0x22d   :  { %v532_v58 = vpop.f32.mrf.mxu0  ;;  %v605_v59 = vpop.f32.mrf.mxu1 }
 0x22e   :  { %v10479_v1 = vadd.f32 %v10422_v20, %v532_v58  ;;  %v10482_v7 = vadd.f32 %v10426_v21, %v605_v59 }
 0x22f   :  { %v534_v8 = vpop.f32.mrf.mxu0  ;;  %v607_v18 = vpop.f32.mrf.mxu1 }
 0x230   :  { %v10485_v19 = vadd.f32 %v10405_v6, %v534_v8  ;;  %v10488_v24 = vadd.f32 %v10398_v3, %v607_v18 }
 0x231   :  { %v10490_v25 = vpop.f32.mrf.mxu0  ;;  %v10492_v28 = vpop.f32.mrf.mxu1 }
 0x233   :  { %v769_v42 = vpop.f32.mrf.mxu0  ;;  %v884_v43 = vpop.f32.mrf.mxu1 }
 0x234   :  { %v814_v48 = vadd.f32 %v10495_v29, %v769_v42  ;;  %v929_v49 = vadd.f32 %v10497_v34, %v884_v43 }
 0x235   :  { %v8475_v54 = vpop.f32.mrf.mxu0  ;;  %v8497_v55 = vpop.f32.mrf.mxu1 }
 0x236   :  { %v823_v58 = vadd.f32 %v814_v48, %v10499_v35  ;;  %939 = vst.msk [vmem:[#allocation5] sm:$0xff] %vm938_vm10, %v929_v49 }
 0x237   :  { %v772_v59 = vpop.f32.mrf.mxu0  ;;  %v887_v8 = vpop.f32.mrf.mxu1 }
 0x238   :  { %833 = vst.msk [vmem:[#allocation4] sm:$0xff] %vm832_vm11, %v823_v58  ;;  %v815_v18 = vadd.f32 %v10495_v29, %v772_v59  ;;  %v930_v61 = vadd.f32 %v10497_v34, %v887_v8 }
 0x239   :  { %v8476_v11 = vpop.f32.mrf.mxu0  ;;  %v8498_v9 = vpop.f32.mrf.mxu1 }
 0x23a   :  { %v824_v42 = vadd.f32 %v815_v18, %v10499_v35  ;;  %940 = vst.msk [vmem:[#allocation5 + $0x8] sm:$0xff] %vm938_vm10, %v930_v61 }
 0x23b   :  { %v777_v43 = vpop.f32.mrf.mxu0  ;;  %v892_v54 = vpop.f32.mrf.mxu1 }
 0x23c   :  { %834 = vst.msk [vmem:[#allocation4 + $0x8] sm:$0xff] %vm832_vm11, %v824_v42  ;;  %v816_v48 = vadd.f32 %v10495_v29, %v777_v43  ;;  %v931_v49 = vadd.f32 %v10497_v34, %v892_v54 }
 0x23d   :  { %v8479_v55 = vpop.f32.mrf.mxu0  ;;  %v8501_v58 = vpop.f32.mrf.mxu1 }
 0x23e   :  { %v825_v59 = vadd.f32 %v816_v48, %v10499_v35  ;;  %941 = vst.msk [vmem:[#allocation5 + $0x10] sm:$0xff] %vm938_vm10, %v931_v49 }
 0x23f   :  { %v780_v11 = vpop.f32.mrf.mxu0  ;;  %v895_v9 = vpop.f32.mrf.mxu1 }
 0x240   :  { %835 = vst.msk [vmem:[#allocation4 + $0x10] sm:$0xff] %vm832_vm11, %v825_v59  ;;  %v817_v61 = vadd.f32 %v10495_v29, %v780_v11  ;;  %v932_v8 = vadd.f32 %v10497_v34, %v895_v9 }
 0x241   :  { %v8480_v18 = vpop.f32.mrf.mxu0  ;;  %v8502_v42 = vpop.f32.mrf.mxu1 }
 0x242   :  { %v826_v43 = vadd.f32 %v817_v61, %v10499_v35  ;;  %942 = vst.msk [vmem:[#allocation5 + $0x18] sm:$0xff] %vm938_vm10, %v932_v8 }
 0x243   :  { %v785_v54 = vpop.f32.mrf.mxu0  ;;  %v900_v55 = vpop.f32.mrf.mxu1 }
 0x244   :  { %836 = vst.msk [vmem:[#allocation4 + $0x18] sm:$0xff] %vm832_vm11, %v826_v43  ;;  %v818_v48 = vadd.f32 %v10495_v29, %v785_v54  ;;  %v933_v49 = vadd.f32 %v10497_v34, %v900_v55 }
 0x245   :  { %v8483_v58 = vpop.f32.mrf.mxu0  ;;  %v8505_v59 = vpop.f32.mrf.mxu1 }
 0x246   :  { %v827_v11 = vadd.f32 %v818_v48, %v10499_v35  ;;  %943 = vst.msk [vmem:[#allocation5 + $0x20] sm:$0xff] %vm938_vm10, %v933_v49 }
 0x247   :  { %v788_v9 = vpop.f32.mrf.mxu0  ;;  %v903_v18 = vpop.f32.mrf.mxu1 }
 0x248   :  { %837 = vst.msk [vmem:[#allocation4 + $0x20] sm:$0xff] %vm832_vm11, %v827_v11  ;;  %v819_v61 = vadd.f32 %v10495_v29, %v788_v9  ;;  %v934_v8 = vadd.f32 %v10497_v34, %v903_v18 }
 0x249   :  { %v8484_v42 = vpop.f32.mrf.mxu0  ;;  %v8506_v43 = vpop.f32.mrf.mxu1 }
 0x24a   :  { %v828_v54 = vadd.f32 %v819_v61, %v10499_v35  ;;  %944 = vst.msk [vmem:[#allocation5 + $0x28] sm:$0xff] %vm938_vm10, %v934_v8 }
 0x24b   :  { %v793_v55 = vpop.f32.mrf.mxu0  ;;  %v908_v58 = vpop.f32.mrf.mxu1 }
 0x24c   :  { %838 = vst.msk [vmem:[#allocation4 + $0x28] sm:$0xff] %vm832_vm11, %v828_v54  ;;  %v820_v48 = vadd.f32 %v10495_v29, %v793_v55  ;;  %v935_v49 = vadd.f32 %v10497_v34, %v908_v58 }
 0x24d   :  { %v8487_v59 = vpop.f32.mrf.mxu0  ;;  %v8509_v11 = vpop.f32.mrf.mxu1 }
 0x24e   :  { %v829_v9 = vadd.f32 %v820_v48, %v10499_v35  ;;  %945 = vst.msk [vmem:[#allocation5 + $0x30] sm:$0xff] %vm938_vm10, %v935_v49 }
 0x24f   :  { %v796_v18 = vpop.f32.mrf.mxu0  ;;  %v911_v42 = vpop.f32.mrf.mxu1 }
 0x250   :  { %839 = vst.msk [vmem:[#allocation4 + $0x30] sm:$0xff] %vm832_vm11, %v829_v9  ;;  %v821_v61 = vadd.f32 %v10495_v29, %v796_v18  ;;  %v936_v8 = vadd.f32 %v10497_v34, %v911_v42 }
 0x251   :  { %v8488_v43 = vpop.f32.mrf.mxu0  ;;  %v8510_v54 = vpop.f32.mrf.mxu1 }
 0x252   :  { %v830_v55 = vadd.f32 %v821_v61, %v10499_v35  ;;  %946 = vst.msk [vmem:[#allocation5 + $0x38] sm:$0xff] %vm938_vm10, %v936_v8  ;;  %v634_v54 = vadd.f32 %v10405_v6, %v10392_v63  ;;  %v637_v63 = vadd.f32 %v10426_v21, %v10402_v5 }
 0x253   :  { %v801_v58 = vpop.f32.mrf.mxu0  ;;  %v916_v59 = vpop.f32.mrf.mxu1 }
 0x254   :  { %840 = vst.msk [vmem:[#allocation4 + $0x38] sm:$0xff] %vm832_vm11, %v830_v55  ;;  %v822_v48 = vadd.f32 %v10495_v29, %v801_v58  ;;  %v937_v49 = vadd.f32 %v10497_v34, %v916_v59  ;;  %v635_v29 = vadd.f32 %v10422_v20, %v10400_v4 }
 0x255   :  { %v8491_v11 = vpop.f32.mrf.mxu0  ;;  %v8513_v9 = vpop.f32.mrf.mxu1 }
 0x256   :  { %v831_v18 = vadd.f32 %v822_v48, %v10499_v35  ;;  %947 = vst.msk [vmem:[#allocation5 + $0x40] sm:$0xff] %vm938_vm10, %v937_v49 }
 0x257   :  { %v804_v42 = vpop.f32.mrf.mxu0  ;;  %v919_v43 = vpop.f32.mrf.mxu1 }
 0x258   :  { %841 = vst.msk [vmem:[#allocation4 + $0x40] sm:$0xff] %vm832_vm11, %v831_v18  ;;  %v636_v43 = vadd.f32 %v10398_v3, %v10394_v2 }
 0x259   :  { %v8492_v61 = vpop.f32.mrf.mxu0  ;;  %v8514_v8 = vpop.f32.mrf.mxu1 }
 0x25b   :  { %v1040_v55 = vpop.f32.mrf.mxu0  ;;  %v1081_v0 = vpop.f32.mrf.mxu1 }
 0x25c   :  { %v1088_v34 = vadd.f32 %v1040_v55, %v634_v54  ;;  %v1090_v4 = vadd.f32 %v1081_v0, %v636_v43 }
 0x25d   :  { %v1042_v58 = vpop.f32.mrf.mxu0  ;;  %v1083_v59 = vpop.f32.mrf.mxu1 }
 0x25e   :  { %v8139_v35 = vmul.f32 -1.442695, %v1088_v34  ;;  %v1089_v48 = vadd.f32 %v1042_v58, %v635_v29  ;;  %v1091_v6 = vadd.f32 %v1083_v59, %v637_v63  ;;  %v1119_v58 = vpop.permute.xlu0 %1118 }
 0x25f   :  { %v1044_v49 = vpop.f32.mrf.mxu0  ;;  %v1085_v11 = vpop.f32.mrf.mxu1 }
 0x260   :  { %8997 = vpow2.f32 %v8139_v35  ;;  %v8140_v9 = vmul.f32 -1.442695, %v1089_v48  ;;  %v8141_v61 = vmul.f32 -1.442695, %v1091_v6 }
 0x261   :  { %v1045_v18 = vpop.f32.mrf.mxu0  ;;  %v1086_v42 = vpop.f32.mrf.mxu1 }
 0x262   :  { %8999 = vpow2.f32 %v8140_v9  ;;  %v1127_v9 = vpop.permute.xlu0 %1126 }
 0x263   :  { %9001 = vtanh.f32 %v1090_v4  ;;  %v1129_v0 = vmul.f32 0.0, %v1127_v9 }
 0x264   :  { %9003 = vpow2.f32 %v8141_v61 }
 0x26d   :  { %v8998_v8 = vpop.eup %8997 }
 0x26e   :  { %v1095_v54 = vadd.f32 1.0, %v8998_v8  ;;  %v12345_v8 = vmov 0  }
 0x26f   :  { %v9000_v55 = vpop.eup %8999 }
 0x270   :  { %9005 = vrcp.f32 %v1095_v54  ;;  %v1101_v29 = vadd.f32 1.0, %v9000_v55  ;;  %v9002_v34 = vpop.eup %9001 }
 0x271   :  { %v9004_v35 = vpop.eup %9003 }
 0x272   :  { %9007 = vrcp.f32 %v1101_v29  ;;  %v1108_v59 = vadd.f32 1.0, %v9004_v35  ;;  %v639_v29 = vadd.f32 %v10422_v20, %v10417_v16 }
 0x274   :  { %9009 = vrcp.f32 %v1108_v59 }
 0x27d   :  { %v9006_v48 = vpop.eup %9005 }
 0x27e   :  { %v1112_v49 = vmul.f32 %v9006_v48, %v9002_v34 }
 0x27f   :  { %v9008_v5 = vpop.eup %9007 }
 0x280   :  { %v1111_v11 = vmul.f32 0.0, %v9008_v5 }
 0x281   :  { %v9010_v42 = vpop.eup %9009 }
 0x282   :  { %v1113_v2 = vadd.f32 %v1112_v49, %v1111_v11 }
 0x284   :  { %9011 = vtanh.f32 %v1113_v2  ;;  %v1131_v3 = vmul.f32 %v1119_v58, %v1113_v2 }
 0x286   :  { %v10554_v18 = vadd.f32 %v1131_v3, %v1129_v0 }
 0x291   :  { %v9012_v63 = vpop.eup %9011 }
 0x292   :  { %v1115_v6 = vmul.f32 %v9012_v63, %v9010_v42 }
 0x294   :  { %v1121_v43 = vmul.f32 %v1119_v58, %v1115_v6 }
 0x296   :  { %1122 = vst.msk [vmem:[#allocation2] sm:$0xff] %vm938_vm10, %v1121_v43  ;;  %v1130_v4 = vadd.f32 %v1129_v0, %v1121_v43  ;;  %v641_v0 = vadd.f32 %v10426_v21, %v10419_v17 }
 0x298   :  { %v1141_v61 = vpack.c.bf16 %v1130_v4, %v1130_v4 }
 0x29a   :  { %8143 = vmatmul.mubr.msk.bf16.vlgmr.msra.gmra.mxu0 %vm938_vm10, %v1141_v61  ;;  %8144 = vmatmul.mubr.msk.bf16.vlgmr.msra.gmra.mxu1 %vm938_vm10, %v1141_v61 }
 0x29b   :  { %1299 = vmatpush1.bf16.msra.mxu0 %v10323_v38  ;;  %1340 = vmatpush1.bf16.msra.mxu1 %v10325_v39 }
 0x29c   :  { %1300 = vmatprep.subr.bf16.mxu0 %v10327_v40  ;;  %1341 = vmatprep.subr.bf16.mxu1 %v10329_v41 }
 0x29d   :  { %1318 = vmatprep.mubr.bf16.mxu0 %v12345_v8  ;;  %1359 = vmatprep.mubr.bf16.mxu1 %v12345_v8 }
 0x29f   :  { %1301 = vmatpush1.bf16.msra.mxu0 %v10337_v46  ;;  %1342 = vmatpush1.bf16.msra.mxu1 %v10342_v47 }
 0x2a0   :  { %1439 = vmatprep.subr.bf16.mxu0 %v10286_v13  ;;  %1480 = vmatprep.subr.bf16.mxu1 %v10290_v15 }
 0x35a   :  { %v1179_v54 = vpop.f32.mrf.mxu0  ;;  %v1220_v55 = vpop.f32.mrf.mxu1 }
 0x35b   :  { %v1227_v34 = vadd.f32 %v1179_v54, %v10412_v12  ;;  %v1229_v42 = vadd.f32 %v1220_v55, %v10415_v14  ;;  %v1258_v14 = vpop.permute.xlu1 %1257 }
 0x35c   :  { %v1181_v58 = vpop.f32.mrf.mxu0  ;;  %v1222_v35 = vpop.f32.mrf.mxu1 }
 0x35d   :  { %v8145_v48 = vmul.f32 -1.442695, %v1227_v34  ;;  %v1228_v49 = vadd.f32 %v1181_v58, %v639_v29  ;;  %v1230_v3 = vadd.f32 %v1222_v35, %v641_v0 }
 0x35e   :  { %v1183_v5 = vpop.f32.mrf.mxu0  ;;  %v1224_v59 = vpop.f32.mrf.mxu1 }
 0x35f   :  { %9013 = vpow2.f32 %v8145_v48  ;;  %v8146_v11 = vmul.f32 -1.442695, %v1228_v49  ;;  %v8147_v16 = vmul.f32 -1.442695, %v1230_v3  ;;  %v1267_v59 = vpop.permute.xlu1 %1266 }
 0x360   :  { %v1184_v9 = vpop.f32.mrf.mxu0  ;;  %v1225_v2 = vpop.f32.mrf.mxu1 }
 0x361   :  { %9015 = vpow2.f32 %v8146_v11  ;;  %v1269_v11 = vmul.f32 %v1267_v59, %v1130_v4 }
 0x362   :  { %9017 = vtanh.f32 %v1229_v42 }
 0x363   :  { %9019 = vpow2.f32 %v8147_v16 }
 0x36c   :  { %v9014_v63 = vpop.eup %9013 }
 0x36d   :  { %v1234_v12 = vadd.f32 1.0, %v9014_v63 }
 0x36e   :  { %v9016_v6 = vpop.eup %9015 }
 0x36f   :  { %9021 = vrcp.f32 %v1234_v12  ;;  %v1240_v43 = vadd.f32 1.0, %v9016_v6  ;;  %v9018_v61 = vpop.eup %9017 }
 0x370   :  { %v9020_v54 = vpop.eup %9019 }
 0x371   :  { %9023 = vrcp.f32 %v1240_v43  ;;  %v1247_v48 = vadd.f32 1.0, %v9020_v54 }
 0x373   :  { %9025 = vrcp.f32 %v1247_v48 }
 0x37c   :  { %v9022_v29 = vpop.eup %9021 }
 0x37d   :  { %v1251_v34 = vmul.f32 %v9022_v29, %v9018_v61 }
 0x37e   :  { %v9024_v58 = vpop.eup %9023 }
 0x37f   :  { %v1250_v17 = vmul.f32 %v9024_v58, %v10554_v18 }
 0x380   :  { %v9026_v55 = vpop.eup %9025 }
 0x381   :  { %v1252_v35 = vadd.f32 %v1251_v34, %v1250_v17 }
 0x383   :  { %9027 = vtanh.f32 %v1252_v35 }
 0x390   :  { %v9028_v49 = vpop.eup %9027 }
 0x391   :  { %v1254_v5 = vmul.f32 %v9028_v49, %v9026_v55 }
 0x393   :  { %v1260_v9 = vmul.f32 %v1258_v14, %v1254_v5 }
 0x395   :  { %1262 = vst.msk [vmem:[#allocation2 + $0x8] sm:$0xff] %vm938_vm10, %v1260_v9  ;;  %v1270_v2 = vadd.f32 %v1269_v11, %v1260_v9 }
 0x397   :  { %v1282_v0 = vpack.c.bf16 %v1270_v2, %v1270_v2 }
 0x399   :  { %8149 = vmatmul.mubr.msk.bf16.vlgmr.msra.gmra.mxu0 %vm938_vm10, %v1282_v0  ;;  %8150 = vmatmul.mubr.msk.bf16.vlgmr.msra.gmra.mxu1 %vm938_vm10, %v1282_v0  ;;  %v1272_v0 = vmul.f32 %v1267_v59, %v10554_v18 }
 0x39a   :  { %1440 = vmatpush1.bf16.msra.mxu0 %v10323_v38  ;;  %1481 = vmatpush1.bf16.msra.mxu1 %v10325_v39 }
 0x39b   :  { %1441 = vmatprep.subr.bf16.mxu0 %v10327_v40  ;;  %1482 = vmatprep.subr.bf16.mxu1 %v10329_v41 }
 0x39c   :  { %1459 = vmatprep.mubr.bf16.mxu0 %v12345_v8  ;;  %1500 = vmatprep.mubr.bf16.mxu1 %v12345_v8 }
 0x39e   :  { %1442 = vmatpush1.bf16.msra.mxu0 %v10337_v46  ;;  %1483 = vmatpush1.bf16.msra.mxu1 %v10342_v47 }
 0x39f   :  { %1580 = vmatprep.subr.bf16.mxu0 %v10286_v13  ;;  %1621 = vmatprep.subr.bf16.mxu1 %v10290_v15 }
 0x459   :  { %v1320_v4 = vpop.f32.mrf.mxu0  ;;  %v1361_v3 = vpop.f32.mrf.mxu1 }
 0x45a   :  { %v1368_v42 = vadd.f32 %v1320_v4, %v10429_v22  ;;  %v1370_v48 = vadd.f32 %v1361_v3, %v10432_v23 }
 0x45b   :  { %v1322_v16 = vpop.f32.mrf.mxu0  ;;  %v1363_v63 = vpop.f32.mrf.mxu1 }
 0x45c   :  { %v8151_v12 = vmul.f32 -1.442695, %v1368_v42  ;;  %v1369_v6 = vadd.f32 %v1322_v16, %v10435_v26  ;;  %v1371_v58 = vadd.f32 %v1363_v63, %v10438_v27  ;;  %v1271_v26 = vmul.f32 %v1258_v14, %v1252_v35 }
 0x45d   :  { %v1324_v43 = vpop.f32.mrf.mxu0  ;;  %v1365_v61 = vpop.f32.mrf.mxu1 }
 0x45e   :  { %9029 = vpow2.f32 %v8151_v12  ;;  %v8152_v54 = vmul.f32 -1.442695, %v1369_v6  ;;  %v8153_v17 = vmul.f32 -1.442695, %v1371_v58  ;;  %v1273_v42 = vadd.f32 %v1272_v0, %v1271_v26  ;;  %v1399_v61 = vpop.permute.xlu0 %1398 }
 0x45f   :  { %v1325_v29 = vpop.f32.mrf.mxu0  ;;  %v1366_v34 = vpop.f32.mrf.mxu1 }
 0x460   :  { %9031 = vpow2.f32 %v8152_v54  ;;  %v1408_v54 = vpop.permute.xlu1 %1407  ;;  %v647_v34 = vadd.f32 %v10422_v20, %v10446_v32 }
 0x461   :  { %9033 = vtanh.f32 %v1370_v48  ;;  %v1410_v29 = vmul.f32 %v1408_v54, %v1270_v2 }
 0x462   :  { %9035 = vpow2.f32 %v8153_v17 }
 0x46b   :  { %v9030_v55 = vpop.eup %9029 }
 0x46c   :  { %v1375_v49 = vadd.f32 1.0, %v9030_v55 }
 0x46d   :  { %v9032_v22 = vpop.eup %9031 }
 0x46e   :  { %9037 = vrcp.f32 %v1375_v49  ;;  %v1381_v5 = vadd.f32 1.0, %v9032_v22  ;;  %v9034_v11 = vpop.eup %9033 }
 0x46f   :  { %v9036_v9 = vpop.eup %9035 }
 0x470   :  { %9039 = vrcp.f32 %v1381_v5  ;;  %v1388_v63 = vadd.f32 1.0, %v9036_v9 }
 0x472   :  { %9041 = vrcp.f32 %v1388_v63 }
 0x47b   :  { %v9038_v4 = vpop.eup %9037 }
 0x47c   :  { %v1392_v16 = vmul.f32 %v9038_v4, %v9034_v11 }
 0x47d   :  { %v9040_v27 = vpop.eup %9039 }
 0x47e   :  { %v1391_v23 = vmul.f32 %v9040_v27, %v1273_v42 }
 0x47f   :  { %v9042_v12 = vpop.eup %9041 }
 0x480   :  { %v1393_v3 = vadd.f32 %v1392_v16, %v1391_v23 }
 0x482   :  { %9043 = vtanh.f32 %v1393_v3  ;;  %v1412_v63 = vmul.f32 %v1399_v61, %v1393_v3 }
 0x48f   :  { %v9044_v6 = vpop.eup %9043 }
 0x490   :  { %v1395_v43 = vmul.f32 %v9044_v6, %v9042_v12  ;;  %v1413_v6 = vmul.f32 %v1408_v54, %v1273_v42  ;;  %v10627_v54 = vld [vmem:[#allocation14 + $0x2c] ss:$16 sps:$4 sm:$0xff]  }
 0x492   :  { %v1401_v35 = vmul.f32 %v1399_v61, %v1395_v43  ;;  %v10624_v61 = vld [vmem:[#allocation14 + $0x24] ss:$16 sps:$4 sm:$0xff]  }
 0x494   :  { %1403 = vst.msk [vmem:[#allocation2 + $0x10] sm:$0xff] %vm938_vm10, %v1401_v35  ;;  %v1411_v14 = vadd.f32 %v1410_v29, %v1401_v35  ;;  %v1414_v35 = vadd.f32 %v1413_v6, %v1412_v63 }
 0x496   :  { %v1423_v18 = vpack.c.bf16 %v1411_v14, %v1411_v14 }
 0x498   :  { %8155 = vmatmul.mubr.msk.bf16.vlgmr.msra.gmra.mxu0 %vm938_vm10, %v1423_v18  ;;  %8156 = vmatmul.mubr.msk.bf16.vlgmr.msra.gmra.mxu1 %vm938_vm10, %v1423_v18 }
 0x499   :  { %1581 = vmatpush1.bf16.msra.mxu0 %v10323_v38  ;;  %1622 = vmatpush1.bf16.msra.mxu1 %v10325_v39 }
 0x49a   :  { %1582 = vmatprep.subr.bf16.mxu0 %v10327_v40  ;;  %1623 = vmatprep.subr.bf16.mxu1 %v10329_v41 }
 0x49b   :  { %1600 = vmatprep.mubr.bf16.mxu0 %v12345_v8  ;;  %1641 = vmatprep.mubr.bf16.mxu1 %v12345_v8 }
 0x49d   :  { %1583 = vmatpush1.bf16.msra.mxu0 %v10337_v46  ;;  %1624 = vmatpush1.bf16.msra.mxu1 %v10342_v47 }
 0x49e   :  { %1721 = vmatprep.subr.bf16.mxu0 %v10286_v13  ;;  %1762 = vmatprep.subr.bf16.mxu1 %v10290_v15  ;;  %v649_v13 = vadd.f32 %v10426_v21, %v10448_v33 }
 0x558   :  { %v1461_v59 = vpop.f32.mrf.mxu0  ;;  %v1502_v2 = vpop.f32.mrf.mxu1 }
 0x559   :  { %v1509_v58 = vadd.f32 %v1461_v59, %v10441_v30  ;;  %v1511_v0 = vadd.f32 %v1502_v2, %v10444_v31 }
 0x55a   :  { %v1463_v48 = vpop.f32.mrf.mxu0  ;;  %v1504_v17 = vpop.f32.mrf.mxu1 }
 0x55b   :  { %v8157_v55 = vmul.f32 -1.442695, %v1509_v58  ;;  %v1510_v49 = vadd.f32 %v1463_v48, %v647_v34  ;;  %v1512_v15 = vadd.f32 %v1504_v17, %v649_v13  ;;  %v1540_v48 = vpop.permute.xlu0 %1539  ;;  %v1549_v17 = vpop.permute.xlu1 %1548 }
 0x55c   :  { %v1465_v22 = vpop.f32.mrf.mxu0  ;;  %v1506_v5 = vpop.f32.mrf.mxu1 }
 0x55d   :  { %9045 = vpow2.f32 %v8157_v55  ;;  %v8158_v26 = vmul.f32 -1.442695, %v1510_v49  ;;  %v8159_v32 = vmul.f32 -1.442695, %v1512_v15  ;;  %v1551_v49 = vmul.f32 %v1549_v17, %v1411_v14 }
 0x55e   :  { %v1466_v11 = vpop.f32.mrf.mxu0  ;;  %v1507_v9 = vpop.f32.mrf.mxu1 }
 0x55f   :  { %9047 = vpow2.f32 %v8158_v26 }
 0x560   :  { %9049 = vtanh.f32 %v1511_v0 }
 0x561   :  { %9051 = vpow2.f32 %v8159_v32 }
 0x56a   :  { %v9046_v4 = vpop.eup %9045 }
 0x56b   :  { %v1516_v30 = vadd.f32 1.0, %v9046_v4 }
 0x56c   :  { %v9048_v16 = vpop.eup %9047 }
 0x56d   :  { %9053 = vrcp.f32 %v1516_v30  ;;  %v1522_v27 = vadd.f32 1.0, %v9048_v16  ;;  %v9050_v23 = vpop.eup %9049 }
 0x56e   :  { %v9052_v12 = vpop.eup %9051 }
 0x56f   :  { %9055 = vrcp.f32 %v1522_v27  ;;  %v1529_v18 = vadd.f32 1.0, %v9052_v12  ;;  %v1554_v12 = vmul.f32 %v1549_v17, %v1414_v35 }
 0x571   :  { %9057 = vrcp.f32 %v1529_v18 }
 0x57a   :  { %v9054_v43 = vpop.eup %9053 }
 0x57b   :  { %v1533_v29 = vmul.f32 %v9054_v43, %v9050_v23 }
 0x57c   :  { %v9056_v33 = vpop.eup %9055 }
 0x57d   :  { %v1532_v59 = vmul.f32 %v9056_v33, %v1414_v35 }
 0x57e   :  { %v9058_v2 = vpop.eup %9057 }
 0x57f   :  { %v1534_v31 = vadd.f32 %v1533_v29, %v1532_v59 }
 0x581   :  { %9059 = vtanh.f32 %v1534_v31 }
 0x58e   :  { %v9060_v34 = vpop.eup %9059 }
 0x58f   :  { %v1536_v58 = vmul.f32 %v9060_v34, %v9058_v2 }
 0x591   :  { %v1542_v55 = vmul.f32 %v1540_v48, %v1536_v58  ;;  %v1681_v58 = vpop.permute.xlu0 %1680 }
 0x593   :  { %1544 = vst.msk [vmem:[#allocation2 + $0x18] sm:$0xff] %vm938_vm10, %v1542_v55  ;;  %v1552_v3 = vadd.f32 %v1551_v49, %v1542_v55  ;;  %v1690_v55 = vpop.permute.xlu1 %1689  ;;  %v10644_v49 = vld [vmem:[#allocation14 + $0x20] ss:$16 sps:$4 sm:$0xff]  }
 0x595   :  { %v1564_v42 = vpack.c.bf16 %v1552_v3, %v1552_v3 }
 0x597   :  { %8161 = vmatmul.mubr.msk.bf16.vlgmr.msra.gmra.mxu0 %vm938_vm10, %v1564_v42  ;;  %8162 = vmatmul.mubr.msk.bf16.vlgmr.msra.gmra.mxu1 %vm938_vm10, %v1564_v42  ;;  %v10647_v42 = vld [vmem:[#allocation14 + $0x28] ss:$16 sps:$4 sm:$0xff]  }
 0x598   :  { %1722 = vmatpush1.bf16.msra.mxu0 %v10323_v38  ;;  %1763 = vmatpush1.bf16.msra.mxu1 %v10325_v39 }
 0x599   :  { %1723 = vmatprep.subr.bf16.mxu0 %v10327_v40  ;;  %1764 = vmatprep.subr.bf16.mxu1 %v10329_v41 }
 0x59a   :  { %1741 = vmatprep.mubr.bf16.mxu0 %v12345_v8  ;;  %1782 = vmatprep.mubr.bf16.mxu1 %v12345_v8 }
 0x59c   :  { %1724 = vmatpush1.bf16.msra.mxu0 %v10337_v46  ;;  %1765 = vmatpush1.bf16.msra.mxu1 %v10342_v47 }
 0x59d   :  { %1862 = vmatprep.subr.bf16.mxu0 %v10624_v61  ;;  %1903 = vmatprep.subr.bf16.mxu1 %v10627_v54 }
 0x657   :  { %v1602_v38 = vpop.f32.mrf.mxu0  ;;  %v1643_v39 = vpop.f32.mrf.mxu1 }
 0x658   :  { %v1650_v40 = vadd.f32 %v1602_v38, %v10451_v36  ;;  %v1652_v32 = vadd.f32 %v1643_v39, %v10454_v37  ;;  %v9348_v38 = vld [vmem:[#allocation14 + $0xc] ss:$16 sps:$4 sm:$0xff]  }
 0x659   :  { %v1604_v41 = vpop.f32.mrf.mxu0  ;;  %v1645_v14 = vpop.f32.mrf.mxu1 }
 0x65a   :  { %v8163_v22 = vmul.f32 -1.442695, %v1650_v40  ;;  %v1651_v5 = vadd.f32 %v1604_v41, %v10457_v44  ;;  %v1653_v0 = vadd.f32 %v1645_v14, %v10460_v45  ;;  %v1553_v44 = vmul.f32 %v1540_v48, %v1534_v31 }
 0x65b   :  { %v1606_v26 = vpop.f32.mrf.mxu0  ;;  %v1647_v11 = vpop.f32.mrf.mxu1  ;;  %v1692_v48 = vmul.f32 %v1690_v55, %v1552_v3  ;;  %v10650_v3 = vld [vmem:[#allocation14 + $0x4] ss:$16 sps:$4 sm:$0xff]   ;;  %v655_v41 = vadd.f32 %v10422_v20, %v10468_v52 }
 0x65c   :  { %9061 = vpow2.f32 %v8163_v22  ;;  %v8164_v9 = vmul.f32 -1.442695, %v1651_v5  ;;  %v8165_v4 = vmul.f32 -1.442695, %v1653_v0  ;;  %v10634_v29 = vadd.f32 %v1554_v12, %v1553_v44 }
 0x65d   :  { %v1607_v13 = vpop.f32.mrf.mxu0  ;;  %v1648_v15 = vpop.f32.mrf.mxu1 }
 0x65e   :  { %9063 = vpow2.f32 %v8164_v9  ;;  %v1695_v44 = vmul.f32 %v1690_v55, %v10634_v29  ;;  %v9349_v55 = vld [vmem:[#allocation14] ss:$16 sps:$4 sm:$0xff]  }
 0x65f   :  { %9065 = vtanh.f32 %v1652_v32 }
 0x660   :  { %9067 = vpow2.f32 %v8165_v4 }
 0x669   :  { %v9062_v30 = vpop.eup %9061 }
 0x66a   :  { %v1657_v16 = vadd.f32 1.0, %v9062_v30 }
 0x66b   :  { %v9064_v36 = vpop.eup %9063 }
 0x66c   :  { %9069 = vrcp.f32 %v1657_v16  ;;  %v1663_v27 = vadd.f32 1.0, %v9064_v36  ;;  %v9066_v63 = vpop.eup %9065 }
 0x66d   :  { %v9068_v23 = vpop.eup %9067 }
 0x66e   :  { %9071 = vrcp.f32 %v1663_v27  ;;  %v1670_v33 = vadd.f32 1.0, %v9068_v23 }
 0x670   :  { %9073 = vrcp.f32 %v1670_v33 }
 0x679   :  { %v9070_v6 = vpop.eup %9069 }
 0x67a   :  { %v1674_v43 = vmul.f32 %v9070_v6, %v9066_v63 }
 0x67b   :  { %v9072_v45 = vpop.eup %9071 }
 0x67c   :  { %v1673_v37 = vmul.f32 %v9072_v45, %v10634_v29 }
 0x67d   :  { %v9074_v59 = vpop.eup %9073 }
 0x67e   :  { %v1675_v18 = vadd.f32 %v1674_v43, %v1673_v37 }
 0x680   :  { %9075 = vtanh.f32 %v1675_v18  ;;  %v1694_v16 = vmul.f32 %v1681_v58, %v1675_v18 }
 0x68d   :  { %v9076_v2 = vpop.eup %9075 }
 0x68e   :  { %v1677_v34 = vmul.f32 %v9076_v2, %v9074_v59  ;;  %v1822_v59 = vpop.permute.xlu0 %1821  ;;  %v1831_v2 = vpop.permute.xlu1 %1830 }
 0x690   :  { %v1683_v31 = vmul.f32 %v1681_v58, %v1677_v34 }
 0x692   :  { %1685 = vst.msk [vmem:[#allocation2 + $0x20] sm:$0xff] %vm938_vm10, %v1683_v31  ;;  %v10638_v35 = vadd.f32 %v1692_v48, %v1683_v31  ;;  %v9350_v31 = vld [vmem:[#allocation14 + $0x8] ss:$16 sps:$4 sm:$0xff]  }
 0x694   :  { %v1705_v17 = vpack.c.bf16 %v10638_v35, %v10638_v35  ;;  %v1833_v18 = vmul.f32 %v1831_v2, %v10638_v35 }
 0x696   :  { %8167 = vmatmul.mubr.msk.bf16.vlgmr.msra.gmra.mxu0 %vm938_vm10, %v1705_v17  ;;  %8168 = vmatmul.mubr.msk.bf16.vlgmr.msra.gmra.mxu1 %vm938_vm10, %v1705_v17 }
 0x697   :  { %1863 = vmatpush1.bf16.msra.mxu0 %v10644_v49  ;;  %1904 = vmatpush1.bf16.msra.mxu1 %v10647_v42 }
 0x698   :  { %1864 = vmatprep.subr.bf16.mxu0 %v10650_v3  ;;  %1905 = vmatprep.subr.bf16.mxu1 %v9348_v38 }
 0x699   :  { %1882 = vmatprep.mubr.bf16.mxu0 %v12345_v8  ;;  %1923 = vmatprep.mubr.bf16.mxu1 %v12345_v8 }
 0x69b   :  { %1865 = vmatpush1.bf16.msra.mxu0 %v10337_v46  ;;  %1906 = vmatpush1.bf16.msra.mxu1 %v10342_v47 }
 0x69c   :  { %2003 = vmatprep.subr.bf16.mxu0 %v10624_v61  ;;  %2044 = vmatprep.subr.bf16.mxu1 %v10627_v54  ;;  %v657_v61 = vadd.f32 %v10426_v21, %v10470_v53  ;;  %v1696_v53 = vadd.f32 %v1695_v44, %v1694_v16 }
 0x756   :  { %v1743_v39 = vpop.f32.mrf.mxu0  ;;  %v1784_v40 = vpop.f32.mrf.mxu1 }
 0x757   :  { %v1791_v14 = vadd.f32 %v1743_v39, %v10463_v50  ;;  %v1793_v0 = vadd.f32 %v1784_v40, %v10466_v51 }
 0x758   :  { %v1745_v22 = vpop.f32.mrf.mxu0  ;;  %v1786_v5 = vpop.f32.mrf.mxu1 }
 0x759   :  { %v8169_v26 = vmul.f32 -1.442695, %v1791_v14  ;;  %v1792_v11 = vadd.f32 %v1745_v22, %v655_v41  ;;  %v1794_v54 = vadd.f32 %v1786_v5, %v657_v61  ;;  %v1836_v61 = vmul.f32 %v1831_v2, %v1696_v53  ;;  %v8948_v2 = vld [vmem:[#allocation17] ss:$8 sps:$4 sm:$0xff]  }
 0x75a   :  { %v1747_v9 = vpop.f32.mrf.mxu0  ;;  %v1788_v13 = vpop.f32.mrf.mxu1 }
 0x75b   :  { %9077 = vpow2.f32 %v8169_v26  ;;  %v8170_v46 = vmul.f32 -1.442695, %v1792_v11  ;;  %v8171_v52 = vmul.f32 -1.442695, %v1794_v54 }
 0x75c   :  { %v1748_v47 = vpop.f32.mrf.mxu0  ;;  %v1789_v15 = vpop.f32.mrf.mxu1 }
 0x75d   :  { %9079 = vpow2.f32 %v8170_v46 }
 0x75e   :  { %9081 = vtanh.f32 %v1793_v0 }
 0x75f   :  { %9083 = vpow2.f32 %v8171_v52 }
 0x768   :  { %v9078_v32 = vpop.eup %9077 }
 0x769   :  { %v1798_v50 = vadd.f32 1.0, %v9078_v32 }
 0x76a   :  { %v9080_v4 = vpop.eup %9079 }
 0x76b   :  { %9085 = vrcp.f32 %v1798_v50  ;;  %v1804_v30 = vadd.f32 1.0, %v9080_v4  ;;  %v9082_v36 = vpop.eup %9081 }
 0x76c   :  { %v9084_v27 = vpop.eup %9083 }
 0x76d   :  { %9087 = vrcp.f32 %v1804_v30  ;;  %v1811_v6 = vadd.f32 1.0, %v9084_v27  ;;  %v1972_v27 = vpop.permute.xlu1 %1971 }
 0x76f   :  { %9089 = vrcp.f32 %v1811_v6  ;;  %v8941_v6 = vld [vmem:[#allocation18 + $0x14] ss:$8 sps:$4 sm:$0xff]  }
 0x778   :  { %v9086_v63 = vpop.eup %9085 }
 0x779   :  { %v1815_v23 = vmul.f32 %v9086_v63, %v9082_v36  ;;  %v1963_v36 = vpop.permute.xlu0 %1962 }
 0x77a   :  { %v9088_v12 = vpop.eup %9087 }
 0x77b   :  { %v1814_v51 = vmul.f32 %v9088_v12, %v1696_v53  ;;  %v8939_v12 = vld [vmem:[#allocation18 + $0x10] ss:$8 sps:$4 sm:$0xff]  }
 0x77c   :  { %v9090_v45 = vpop.eup %9089 }
 0x77d   :  { %v1816_v43 = vadd.f32 %v1815_v23, %v1814_v51  ;;  %v8944_v51 = vld [vmem:[#allocation18 + $0x4] ss:$8 sps:$4 sm:$0xff]  }
 0x77f   :  { %9091 = vtanh.f32 %v1816_v43 }
 0x78c   :  { %v9092_v33 = vpop.eup %9091 }
 0x78d   :  { %v1818_v37 = vmul.f32 %v9092_v33, %v9090_v45  ;;  %v12346_v45 = vmov 0.0   ;;  %v8945_v33 = vld [vmem:[#allocation17 + $0x10] ss:$8 sps:$4 sm:$0xff]  }
 0x78f   :  { %v1824_v34 = vmul.f32 %v1822_v59, %v1818_v37  ;;  %v8947_v37 = vld [vmem:[#allocation17 + $0x14] ss:$8 sps:$4 sm:$0xff]  }
 0x791   :  { %1826 = vst.msk [vmem:[#allocation2 + $0x28] sm:$0xff] %vm938_vm10, %v1824_v34  ;;  %v1834_v29 = vadd.f32 %v1833_v18, %v1824_v34 }
 0x793   :  { %v1846_v58 = vpack.c.bf16 %v1834_v29, %v1834_v29  ;;  %v1974_v63 = vmul.f32 %v1972_v27, %v1834_v29  ;;  %v663_v29 = vadd.f32 %v10422_v20, %v10490_v25 }
 0x795   :  { %8173 = vmatmul.mubr.msk.bf16.vlgmr.msra.gmra.mxu0 %vm938_vm10, %v1846_v58  ;;  %8174 = vmatmul.mubr.msk.bf16.vlgmr.msra.gmra.mxu1 %vm938_vm10, %v1846_v58 }
 0x796   :  { %2004 = vmatpush1.bf16.msra.mxu0 %v10644_v49  ;;  %2045 = vmatpush1.bf16.msra.mxu1 %v10647_v42 }
 0x797   :  { %2005 = vmatprep.subr.bf16.mxu0 %v10650_v3  ;;  %2046 = vmatprep.subr.bf16.mxu1 %v9348_v38 }
 0x798   :  { %2023 = vmatprep.mubr.bf16.mxu0 %v12345_v8  ;;  %2064 = vmatprep.mubr.bf16.mxu1 %v12345_v8 }
 0x79a   :  { %2006 = vmatpush1.bf16.msra.mxu0 %v9349_v55  ;;  %2047 = vmatpush1.bf16.msra.mxu1 %v9350_v31 }
 0x79b   :  { %2165 = vmatprep.subr.bf16.mxu0 %v8941_v6  ;;  %2229 = vmatprep.subr.bf16.mxu1 %v8947_v37 }
 0x855   :  { %v1884_v48 = vpop.f32.mrf.mxu0  ;;  %v1925_v35 = vpop.f32.mrf.mxu1 }
 0x856   :  { %v1932_v17 = vadd.f32 %v1884_v48, %v10473_v56  ;;  %v1934_v26 = vadd.f32 %v1925_v35, %v10476_v57 }
 0x857   :  { %v1886_v39 = vpop.f32.mrf.mxu0  ;;  %v1927_v40 = vpop.f32.mrf.mxu1 }
 0x858   :  { %v8175_v49 = vmul.f32 -1.442695, %v1932_v17  ;;  %v1933_v42 = vadd.f32 %v1886_v39, %v10479_v1  ;;  %v1935_v5 = vadd.f32 %v1927_v40, %v10482_v7  ;;  %v1835_v1 = vmul.f32 %v1822_v59, %v1816_v43  ;;  %v8942_v43 = vld [vmem:[#allocation18] ss:$8 sps:$4 sm:$0xff]   ;;  %v8950_v59 = vld [vmem:[#allocation17 + $0x4] ss:$8 sps:$4 sm:$0xff]  }
 0x859   :  { %v1888_v41 = vpop.f32.mrf.mxu0  ;;  %v1929_v3 = vpop.f32.mrf.mxu1 }
 0x85a   :  { %9093 = vpow2.f32 %v8175_v49  ;;  %v8176_v38 = vmul.f32 -1.442695, %v1933_v42  ;;  %v8177_v11 = vmul.f32 -1.442695, %v1935_v5  ;;  %v10679_v52 = vadd.f32 %v1836_v61, %v1835_v1 }
 0x85b   :  { %v1889_v14 = vpop.f32.mrf.mxu0  ;;  %v1930_v22 = vpop.f32.mrf.mxu1  ;;  %v665_v41 = vadd.f32 %v10426_v21, %v10492_v28 }
 0x85c   :  { %9095 = vpow2.f32 %v8176_v38 }
 0x85d   :  { %9097 = vtanh.f32 %v1934_v26 }
 0x85e   :  { %9099 = vpow2.f32 %v8177_v11 }
 0x867   :  { %v9094_v9 = vpop.eup %9093 }
 0x868   :  { %v1939_v13 = vadd.f32 1.0, %v9094_v9  ;;  %v1977_v9 = vmul.f32 %v1972_v27, %v10679_v52  ;;  %v10711_v27 = vld [vmem:[%s12347_s8] sm:$0xff]  }
 0x869   :  { %v9096_v56 = vpop.eup %9095  ;;  %12348 = vst [vmem:[#allocation76_spill] sm:$0xff] %v10711_v27 }
 0x86a   :  { %9101 = vrcp.f32 %v1939_v13  ;;  %v1945_v46 = vadd.f32 1.0, %v9096_v56  ;;  %v9098_v47 = vpop.eup %9097 }
 0x86b   :  { %v9100_v15 = vpop.eup %9099 }
 0x86c   :  { %9103 = vrcp.f32 %v1945_v46  ;;  %v1952_v32 = vadd.f32 1.0, %v9100_v15  ;;  %v2113_v15 = vpop.permute.xlu1 %2112 }
 0x86e   :  { %9105 = vrcp.f32 %v1952_v32 }
 0x877   :  { %v9102_v54 = vpop.eup %9101 }
 0x878   :  { %v1956_v0 = vmul.f32 %v9102_v54, %v9098_v47  ;;  %v2104_v47 = vpop.permute.xlu0 %2103 }
 0x879   :  { %v9104_v7 = vpop.eup %9103 }
 0x87a   :  { %v1955_v57 = vmul.f32 %v9104_v7, %v10679_v52 }
 0x87b   :  { %v9106_v4 = vpop.eup %9105 }
 0x87c   :  { %v1957_v50 = vadd.f32 %v1956_v0, %v1955_v57 }
 0x87e   :  { %9107 = vtanh.f32 %v1957_v50  ;;  %v1976_v5 = vmul.f32 %v1963_v36, %v1957_v50 }
 0x880   :  { %v1978_v21 = vadd.f32 %v1977_v9, %v1976_v5  ;;  %v10731_v5 = vld [vmem:[#allocation21 + $0x4] ss:$8 sps:$4 sm:$0xff]  }
 0x881   :  { %12350 = vst [vmem:[#allocation78_spill] sm:$0xff] %v10731_v5 }
 0x882   :  { %v2118_v54 = vmul.f32 %v2113_v15, %v1978_v21 }
 0x88b   :  { %v9108_v30 = vpop.eup %9107 }
 0x88c   :  { %v1959_v16 = vmul.f32 %v9108_v30, %v9106_v4 }
 0x88e   :  { %v1965_v44 = vmul.f32 %v1963_v36, %v1959_v16  ;;  %v10706_v16 = vld [vmem:[%s12347_s8 + $0x8] sm:$0xff]  }
 0x890   :  { %1967 = vst.msk [vmem:[#allocation2 + $0x30] sm:$0xff] %vm938_vm10, %v1965_v44  ;;  %v10683_v23 = vadd.f32 %v1974_v63, %v1965_v44  ;;  %v2281_v44 = vld [vmem:[#allocation36] sm:$0xf] }
 0x891   :  { %v2287_v63 = vsel %vm2285_vm12, %v2281_v44, 0  ;;  %v10763_v44 = vld [vmem:[#allocation26 + $0x4] ss:$8 sps:$4 sm:$0xff]  }
 0x892   :  { %v1987_v53 = vpack.c.bf16 %v10683_v23, %v10683_v23  ;;  %v2115_v4 = vmul.f32 %v2113_v15, %v10683_v23 }
 0x894   :  { %8179 = vmatmul.mubr.msk.bf16.vlgmr.msra.gmra.mxu0 %vm938_vm10, %v1987_v53  ;;  %8180 = vmatmul.mubr.msk.bf16.vlgmr.msra.gmra.mxu1 %vm938_vm10, %v1987_v53 }
 0x895   :  { %2185 = vmatprep.mubr.bf16.mxu0 %v12345_v8  ;;  %2249 = vmatprep.mubr.bf16.mxu1 %v12345_v8 }
 0x896   :  { %2166 = vmatpush1.bf16.msra.mxu0 %v8939_v12  ;;  %2230 = vmatpush1.bf16.msra.mxu1 %v8945_v33 }
 0x897   :  { %2167 = vmatprep.subr.bf16.mxu0 %v8944_v51  ;;  %2231 = vmatprep.subr.bf16.mxu1 %v8950_v59  ;;  %v2258_v51 = vld [vmem:[#allocation20] sm:$0x3] }
 0x898   :  { %v2267_v59 = vrot.slane %v2258_v51, %v10408_v10 }
 0x89a   :  { %2168 = vmatpush1.bf16.msra.mxu0 %v8942_v43  ;;  %2232 = vmatpush1.bf16.msra.mxu1 %v8948_v2  ;;  %v2263_v43 = vrot.slane %v2258_v51, %v10390_v62 }
 0x89b   :  { %8515 = vmatprep.subr.bf16.mxu0 %v12346_v45  ;;  %8521 = vmatprep.subr.bf16.mxu1 %v12346_v45 }
 0x954   :  { %v2025_v34 = vpop.f32.mrf.mxu0  ;;  %v2066_v18 = vpop.f32.mrf.mxu1 }
 0x955   :  { %v2073_v58 = vadd.f32 %v2025_v34, %v10485_v19  ;;  %v2075_v38 = vadd.f32 %v2066_v18, %v10488_v24 }
 0x956   :  { %v2027_v55 = vpop.f32.mrf.mxu0  ;;  %v2068_v31 = vpop.f32.mrf.mxu1 }
 0x957   :  { %v8181_v48 = vmul.f32 -1.442695, %v2073_v58  ;;  %v2074_v35 = vadd.f32 %v2027_v55, %v663_v29  ;;  %v2076_v3 = vadd.f32 %v2068_v31, %v665_v41 }
 0x958   :  { %v2029_v17 = vpop.f32.mrf.mxu0  ;;  %v2070_v39 = vpop.f32.mrf.mxu1 }
 0x959   :  { %9109 = vpow2.f32 %v8181_v48  ;;  %v8182_v40 = vmul.f32 -1.442695, %v2074_v35  ;;  %v8183_v20 = vmul.f32 -1.442695, %v2076_v3  ;;  %v2375_v48 = vld [vmem:[#allocation4] sm:$0xff] }
 0x95a   :  { %v2030_v49 = vpop.f32.mrf.mxu0  ;;  %v2071_v42 = vpop.f32.mrf.mxu1  ;;  %v2275_v3 = vld [vmem:[#allocation12] sm:$0xff] }
 0x95b   :  { %9111 = vpow2.f32 %v8182_v40 }
 0x95c   :  { %9113 = vtanh.f32 %v2075_v38 }
 0x95d   :  { %9115 = vpow2.f32 %v8183_v20 }
 0x966   :  { %v9110_v25 = vpop.eup %9109 }
 0x967   :  { %v2080_v19 = vadd.f32 1.0, %v9110_v25 }
 0x968   :  { %v9112_v14 = vpop.eup %9111 }
 0x969   :  { %9117 = vrcp.f32 %v2080_v19  ;;  %v2086_v22 = vadd.f32 1.0, %v9112_v14  ;;  %v9114_v26 = vpop.eup %9113  ;;  %v10727_v14 = vld [vmem:[#allocation21 + $0x14] ss:$8 sps:$4 sm:$0xff]  }
 0x96a   :  { %v9116_v11 = vpop.eup %9115 }
 0x96b   :  { %9119 = vrcp.f32 %v2086_v22  ;;  %v2093_v46 = vadd.f32 1.0, %v9116_v11  ;;  %v10729_v22 = vld [vmem:[#allocation21 + $0x10] ss:$8 sps:$4 sm:$0xff]  }
 0x96c   :  { %12349 = vst [vmem:[#allocation77_spill] sm:$0xff] %v10729_v22 }
 0x96d   :  { %9121 = vrcp.f32 %v2093_v46 }
 0x976   :  { %v9118_v13 = vpop.eup %9117 }
 0x977   :  { %v2097_v56 = vmul.f32 %v9118_v13, %v9114_v26  ;;  %v10735_v26 = vld [vmem:[#allocation21] ss:$8 sps:$4 sm:$0xff]  }
 0x978   :  { %v9120_v28 = vpop.eup %9119  ;;  %12351 = vst [vmem:[#allocation79_spill] sm:$0xff] %v10735_v26 }
 0x979   :  { %v2096_v24 = vmul.f32 %v9120_v28, %v1978_v21  ;;  %v12214_v28 = vmov 1  }
 0x97a   :  { %v9122_v52 = vpop.eup %9121  ;;  %8850 = vset.pattern.permute.xlu1 %v12214_v28 }
 0x97b   :  { %v2098_v1 = vadd.f32 %v2097_v56, %v2096_v24 }
 0x97d   :  { %9123 = vtanh.f32 %v2098_v1  ;;  %v2117_v61 = vmul.f32 %v2104_v47, %v2098_v1 }
 0x97f   :  { %v2119_v0 = vadd.f32 %v2118_v54, %v2117_v61 }
 0x981   :  { %v2125_v7 = vpack.c.bf16 %v2119_v0, %v2119_v0  ;;  %v12224_v0 = vmov 3  }
 0x983   :  { %8188 = vmatmul.mubr.msk.bf16.vlgmr.msra.gmra.mxu0 %vm938_vm10, %v2125_v7  ;;  %v12226_v7 = vmov 2  }
 0x984   :  { %8517 = vmatprep.mubr.msk.bf16.mxu0 %vm10026_vm7, %v12346_v45  ;;  %8516 = vmatpush3.bf16.msra.mxu0 %v2287_v63  ;;  %v10765_v63 = vld [vmem:[#allocation24 + $0x4] ss:$8 sps:$4 sm:$0xff]  }
 0x985   :  { %2539 = vmatprep.subr.bf16.mxu0 %v10727_v14 }
 0x98a   :  { %v9124_v32 = vpop.eup %9123 }
 0x98b   :  { %v2100_v57 = vmul.f32 %v9124_v32, %v9122_v52  ;;  %v12222_v52 = vmov 4   ;;  %v12220_v32 = vmov 5  }
 0x98d   :  { %v2106_v50 = vmul.f32 %v2104_v47, %v2100_v57  ;;  %v10749_v57 = vld [vmem:[#allocation26 + $0x14] ss:$8 sps:$4 sm:$0xff]  }
 0x98e   :  { %12352 = vst [vmem:[#allocation80_spill] sm:$0xff] %v10749_v57 }
 0x98f   :  { %2108 = vst.msk [vmem:[#allocation2 + $0x38] sm:$0xff] %vm938_vm10, %v2106_v50  ;;  %v2116_v30 = vadd.f32 %v2115_v4, %v2106_v50  ;;  %v10751_v50 = vld [vmem:[#allocation24 + $0x14] ss:$8 sps:$4 sm:$0xff]   ;;  %v10753_v4 = vld [vmem:[#allocation26 + $0x10] ss:$8 sps:$4 sm:$0xff]  }
 0x990   :  { %12353 = vst [vmem:[#allocation81_spill] sm:$0xff] %v10751_v50 }
 0x991   :  { %v2120_v36 = vpack.c.bf16 %v2116_v30, %v2116_v30  ;;  %v12218_v30 = vmov 6  }
 0x993   :  { %8193 = vmatmul.mubr.msk.bf16.vlgmr.msra.gmra.mxu1 %vm938_vm10, %v2120_v36  ;;  %v10756_v36 = vld [vmem:[#allocation24 + $0x10] ss:$8 sps:$4 sm:$0xff]  }
 0x994   :  { %8522 = vmatpush3.bf16.msra.mxu1 %v10706_v16  ;;  %8525 = vmatprep.mubr.msk.bf16.mxu1 %vm10026_vm7, %v12346_v45 }
 0x995   :  { %8523 = vmatprep.subr.bf16.mxu1 %v12346_v45 }
 0x998   :  { %8524 = vmatpush3.bf16.msra.mxu1 %v10711_v27 }
 0x999   :  { %2604 = vmatprep.subr.bf16.mxu1 %v10749_v57 }
 0x99b   :  { %8526 = vmatmul.mubr.bf16.vlgmr.msra.gmra.mxu1 %v12345_v8 }
 0x99c   :  { %2624 = vmatprep.mubr.bf16.mxu1 %v12345_v8  ;;  %2605 = vmatpush1.bf16.msra.mxu1 %v10753_v4 }
 0x99d   :  { %2606 = vmatprep.subr.bf16.mxu1 %v10763_v44 }
 0xa43   :  { %v2187_v23 = vpop.f32.mrf.mxu0 }
 0xa45   :  { %v2189_v53 = vpop.f32.mrf.mxu0 }
 0xa47   :  { %v2191_v12 = vpop.f32.mrf.mxu0 }
 0xa48   :  { %v12216_v12 = vmov 7  }
 0xa49   :  { %v2192_v6 = vpop.f32.mrf.mxu0 }
 0xa53   :  { %v2251_v33 = vpop.f32.mrf.mxu1 }
 0xa54   :  { %v2252_v37 = vadd.f32 %v2251_v33, %v2187_v23  ;;  %v10767_v23 = vld [vmem:[#allocation26] ss:$8 sps:$4 sm:$0xff]  }
 0xa55   :  { %v2253_v2 = vpop.f32.mrf.mxu1  ;;  %12354 = vst [vmem:[#allocation82_spill] sm:$0xff] %v10767_v23  ;;  %2607 = vmatpush1.bf16.msra.mxu1 %v10767_v23 }
 0xa56   :  { %v2270_v34 = vadd.f32 %v2263_v43, %v2252_v37  ;;  %v2254_v18 = vadd.f32 %v2253_v2, %v2189_v53  ;;  %v10769_v53 = vld [vmem:[#allocation24] ss:$8 sps:$4 sm:$0xff]   ;;  %8529 = vmatprep.subr.bf16.mxu1 %v12346_v45  ;;  %v10784_v2 = vld [vmem:[#allocation2 + $0x8] sm:$0xff] }
 0xa57   :  { %v2255_v29 = vpop.f32.mrf.mxu1  ;;  %12355 = vst [vmem:[#allocation83_spill] sm:$0xff] %v10769_v53 }
 0xa58   :  { %2278 = vst.msk [vmem:[#allocation42] sm:$0xff] %vm832_vm11, %v2270_v34  ;;  %v2271_v58 = vadd.f32 %v2267_v59, %v2254_v18 }
 0xa59   :  { %v2256_v55 = vpop.f32.mrf.mxu1 }
 0xa5a   :  { %v2272_v31 = vmul.f32 0.5, %v2271_v58  ;;  %2279 = vst.msk [vmem:[#allocation44] sm:$0xff] %vm832_vm11, %v2271_v58  ;;  %v10790_v55 = vld [vmem:[#allocation2 + $0x10] sm:$0xff] }
 0xa5b   :  { %v2422_v35 = vpop.f32.mrf.mxu1 }
 0xa5c   :  { %v2273_v17 = vmul.f32 1.442695, %v2272_v31  ;;  %v2428_v39 = vadd.f32 %v2422_v35, %v2375_v48 }
 0xa5d   :  { %v8527_v40 = vpop.f32.mrf.mxu1 }
 0xa5e   :  { %9125 = vpow2.f32 %v2273_v17  ;;  %v2429_v49 = vsel %vm832_vm11, %v2428_v39, -inf  ;;  %v10793_v17 = vld [vmem:[#allocation2 + $0x18] sm:$0xff] }
 0xa5f   :  { %2430 = vmax.xlane.f32.xlu0 %v2429_v49  ;;  %v2425_v42 = vpop.f32.mrf.mxu1 }
 0xa60   :  { %v10796_v42 = vld [vmem:[#allocation2 + $0x20] sm:$0xff] }
 0xa61   :  { %v8528_v41 = vpop.f32.mrf.mxu1 }
 0xa6b   :  { %v9126_v38 = vpop.eup %9125 }
 0xa6c   :  { %v2276_v20 = vmul.f32 %v9126_v38, %v2275_v3 }
 0xa6e   :  { %v2277_v25 = vadd.f32 %v2276_v20, %v2270_v34  ;;  %v10786_v34 = vld [vmem:[#allocation2] sm:$0xff] }
 0xa70   :  { %v2280_v19 = vpack.c.bf16 %v2277_v25, %v2277_v25  ;;  %v10799_v25 = vld [vmem:[#allocation2 + $0x28] sm:$0xff] }
 0xa72   :  { %8518 = vmatmul.mubr.msk.bf16.vlgmr.msra.gmra.mxu0 %vm832_vm11, %v2280_v19 }
 0xa73   :  { %2559 = vmatprep.mubr.bf16.mxu0 %v12345_v8  ;;  %2540 = vmatpush1.bf16.msra.mxu0 %v10729_v22 }
 0xa74   :  { %2541 = vmatprep.subr.bf16.mxu0 %v10731_v5 }
 0xa77   :  { %2542 = vmatpush1.bf16.msra.mxu0 %v10735_v26 }
 0xa78   :  { %2665 = vmatprep.subr.bf16.mxu0 %v10751_v50 }
 0xa7a   :  { %2560 = vmatmul.mubr.bf16.vlgmr.msra.gmra.mxu0 %v12345_v8 }
 0xa7b   :  { %2685 = vmatprep.mubr.bf16.mxu0 %v12345_v8  ;;  %2666 = vmatpush1.bf16.msra.mxu0 %v10756_v36 }
 0xa7c   :  { %2667 = vmatprep.subr.bf16.mxu0 %v10765_v63 }
 0xa7f   :  { %2668 = vmatpush1.bf16.msra.mxu0 %v10769_v53 }
 0xa80   :  { %8535 = vmatprep.subr.bf16.mxu0 %v12346_v45 }
 0xa82   :  { %2686 = vmatmul.mubr.bf16.vlgmr.msra.gmra.mxu0 %v12345_v8 }
 0xa83   :  { %8539 = vmatprep.mubr.msk.bf16.mxu0 %vm10026_vm7, %v12346_v45 }
 0xae8   :  { %v2431_v11 = vpop.xlane.xlu0 %2430 }
 0xae9   :  { %v2432_v9 = vsub.f32 %v2428_v39, %v2431_v11 }
 0xaeb   :  { %v2433_v13 = vmul.f32 1.442695, %v2432_v9  ;;  %v10802_v9 = vld [vmem:[#allocation2 + $0x30] sm:$0xff] }
 0xaed   :  { %9127 = vpow2.f32 %v2433_v13 }
 0xafa   :  { %v9128_v56 = vpop.eup %9127 }
 0xafb   :  { %v2435_v21 = vsel %vm832_vm11, %v9128_v56, 0.0 }
 0xafc   :  { %2436 = vadd.xlane.f32.xlu1 %v2435_v21 }
 0xb32   :  { %v10743_v46 = vpop.f32.mrf.mxu0 }
 0xb34   :  { %v8519_v24 = vpop.f32.mrf.mxu0 }
 0xb35   :  { %v10805_v24 = vld [vmem:[#allocation2 + $0x38] sm:$0xff] }
 0xb36   :  { %v2326_v1 = vpop.f32.mrf.mxu0 }
 0xb37   :  { %v2337_v1 = vld [vmem:[#allocation23] sm:$0x3] }
 0xb38   :  { %v8520_v47 = vpop.f32.mrf.mxu0 }
 0xb3a   :  { %v2561_v6 = vpop.f32.mrf.mxu0 }
 0xb3c   :  { %v10776_v51 = vpop.f32.mrf.mxu0 }
 0xb3e   :  { %v2565_v43 = vpop.f32.mrf.mxu0 }
 0xb3f   :  { %v10811_v43 = vrot.slane %v2337_v1, %v10390_v62 }
 0xb40   :  { %v2566_v33 = vpop.f32.mrf.mxu0 }
 0xb85   :  { %v2437_v15 = vpop.xlane.xlu1 %2436 }
 0xb86   :  { %9129 = vrcp.f32 %v2437_v15 }
 0xb93   :  { %v9130_v61 = vpop.eup %9129 }
 0xb94   :  { %v2439_v54 = vmul.f32 %v9130_v61, %v9128_v56  ;;  %v2347_v61 = vld [vmem:[#allocation29] sm:$0xf] }
 0xb95   :  { %v10814_v33 = vsel %vm2285_vm12, %v2347_v61, 0 }
 0xb96   :  { %2449 = vperm.xlu1 %8850, %v2439_v54   ;;  %2443 = vperm.xlu0 %8848, %v2439_v54  }
 0xb9a   :  { %8852 = vset.pattern.permute.xlu1 %v12224_v0  ;;  %8851 = vset.pattern.permute.xlu0 %v12226_v7 }
 0xb9b   :  { %2463 = vperm.xlu1 %8852, %v2439_v54   ;;  %2456 = vperm.xlu0 %8851, %v2439_v54  }
 0xb9f   :  { %8853 = vset.pattern.permute.xlu1 %v12222_v52  ;;  %8854 = vset.pattern.permute.xlu0 %v12220_v32 }
 0xba0   :  { %2470 = vperm.xlu1 %8853, %v2439_v54   ;;  %2477 = vperm.xlu0 %8854, %v2439_v54  }
 0xba4   :  { %8855 = vset.pattern.permute.xlu1 %v12218_v30  ;;  %8857 = vset.pattern.permute.xlu0 %v12345_v8 }
 0xba5   :  { %2484 = vperm.xlu1 %8855, %v2439_v54  }
 0xba9   :  { %8856 = vset.pattern.permute.xlu1 %v12216_v12 }
 0xbaa   :  { %2491 = vperm.xlu1 %8856, %v2439_v54  }
 0xbae   :  { %8858 = vset.pattern.permute.xlu1 %v12214_v28 }
 0xc11   :  { %v2450_v37 = vpop.permute.xlu1 %2449  ;;  %v2444_v59 = vpop.permute.xlu0 %2443 }
 0xc12   :  { %v2452_v18 = vmul.f32 %v2450_v37, %v10784_v2  ;;  %v2446_v29 = vmul.f32 %v2444_v59, %v10786_v34  ;;  %v2562_v59 = vadd.f32 %v2561_v6, %v10811_v43  ;;  %v2687_v6 = vpop.f32.mrf.mxu0 }
 0xc14   :  { %v2453_v48 = vadd.f32 %v2452_v18, %v2446_v29  ;;  %v2353_v18 = vld [vmem:[#allocation35] sm:$0xf]  ;;  %v2726_v29 = vpack.c.bf16 %v2562_v59, %v2562_v59 }
 0xc16   :  { %v2464_v58 = vpop.permute.xlu1 %2463  ;;  %v2457_v31 = vpop.permute.xlu0 %2456 }
 0xc17   :  { %v2459_v35 = vmul.f32 %v2457_v31, %v10790_v55  ;;  %v2466_v39 = vmul.f32 %v2464_v58, %v10793_v17  ;;  %v10825_v58 = vsel %vm2285_vm12, %v2353_v18, 0  ;;  %v2689_v31 = vpop.f32.mrf.mxu0 }
 0xc19   :  { %v2460_v40 = vadd.f32 %v2459_v35, %v2453_v48  ;;  %v10833_v48 = vld [vmem:[#allocation33 + $0x8] sm:$0xff]   ;;  %v2691_v35 = vpop.f32.mrf.mxu0 }
 0xc1a   :  { %12357 = vst [vmem:[#allocation85_spill] sm:$0xff] %v10833_v48  ;;  %8536 = vmatpush3.bf16.msra.mxu0 %v10833_v48 }
 0xc1b   :  { %v2467_v49 = vadd.f32 %v2466_v39, %v2460_v40  ;;  %v2471_v41 = vpop.permute.xlu1 %2470  ;;  %v2478_v38 = vpop.permute.xlu0 %2477  ;;  %8537 = vmatprep.subr.bf16.mxu0 %v12346_v45  ;;  %v10837_v40 = vld [vmem:[#allocation33] sm:$0xff]  }
 0xc1c   :  { %v2473_v3 = vmul.f32 %v2471_v41, %v10796_v42  ;;  %v2480_v19 = vmul.f32 %v2478_v38, %v10799_v25  ;;  %v2692_v39 = vpop.f32.mrf.mxu0  ;;  %12359 = vst [vmem:[#allocation86_spill] sm:$0xff] %v10837_v40  ;;  %v10842_v41 = vld [vmem:[#allocation39 + $0x2c] ss:$16 sps:$4 sm:$0xff]  }
 0xc1d   :  { %v10847_v38 = vld [vmem:[#allocation39 + $0xc] ss:$16 sps:$4 sm:$0xff]  }
 0xc1e   :  { %v2474_v20 = vadd.f32 %v2473_v3, %v2467_v49  ;;  %8538 = vmatpush3.bf16.msra.mxu0 %v10837_v40  ;;  %v10840_v49 = vld [vmem:[#allocation39 + $0x24] ss:$16 sps:$4 sm:$0xff]   ;;  %v10844_v3 = vld [vmem:[#allocation39 + $0x28] ss:$16 sps:$4 sm:$0xff]  }
 0xc1f   :  { %12360 = vst [vmem:[#allocation87_spill] sm:$0xff] %v10840_v49  ;;  %2941 = vmatprep.subr.bf16.mxu0 %v10840_v49 }
 0xc20   :  { %v2485_v11 = vpop.permute.xlu1 %2484  ;;  %v2481_v13 = vadd.f32 %v2480_v19, %v2474_v20  ;;  %v10851_v20 = vld [vmem:[#allocation39 + $0x8] ss:$16 sps:$4 sm:$0xff]   ;;  %v10855_v19 = vld [vmem:[%s12358_s19 + $0x2c] ss:$16 sps:$4 sm:$0xff]  }
 0xc21   :  { %v2487_v56 = vmul.f32 %v2485_v11, %v10802_v9  ;;  %v10862_v11 = vrot.slane %v2337_v1, %v10408_v10 }
 0xc23   :  { %v2488_v47 = vadd.f32 %v2487_v56, %v2481_v13  ;;  %12361 = vst [vmem:[#allocation88_spill] sm:$0xff] %v10862_v11  ;;  %v2564_v13 = vadd.f32 %v10776_v51, %v10862_v11 }
 0xc25   :  { %v2492_v21 = vpop.permute.xlu1 %2491  ;;  %v2714_v56 = vsub.f32 0.0, %v2564_v13 }
 0xc26   :  { %v2494_v15 = vmul.f32 %v2492_v21, %v10805_v24 }
 0xc27   :  { %v2715_v21 = vmul.f32 1.442695, %v2714_v56  ;;  %v10874_v56 = vld [vmem:[#allocation30] ss:$0 sm:$0xff] }
 0xc28   :  { %v10808_v54 = vadd.f32 %v2494_v15, %v2488_v47  ;;  %v2346_v47 = vld [vmem:[#allocation27] sm:$0x3] }
 0xc29   :  { %9131 = vpow2.f32 %v2715_v21  ;;  %v10867_v15 = vrot.slane %v2346_v47, %v10390_v62  ;;  %v10870_v18 = vrot.slane %v2346_v47, %v10408_v10 }
 0xc2a   :  { %12356 = vst [vmem:[#allocation84_spill] sm:$0xff] %v10808_v54  ;;  %v2568_v37 = vpack.c.bf16 %v10808_v54, %v10808_v54 }
 0xc2c   :  { %8206 = vmatmul.mubr.msk.bf16.vlgmr.msra.gmra.mxu1 %vm938_vm10, %v2568_v37 }
 0xc2d   :  { %8530 = vmatpush3.bf16.msra.mxu1 %v10814_v33  ;;  %8531 = vmatprep.mubr.msk.bf16.mxu1 %vm10026_vm7, %v12346_v45 }
 0xc2e   :  { %8543 = vmatprep.subr.bf16.mxu1 %v12346_v45 }
 0xc34   :  { %8532 = vmatmul.mubr.msk.bf16.vlgmr.msra.gmra.mxu1 %vm832_vm11, %v2726_v29 }
 0xc35   :  { %8544 = vmatpush3.bf16.msra.mxu1 %v10825_v58  ;;  %8545 = vmatprep.mubr.msk.bf16.mxu1 %vm10026_vm7, %v12346_v45 }
 0xc36   :  { %2982 = vmatprep.subr.bf16.mxu1 %v10842_v41  ;;  %v9132_v52 = vpop.eup %9131 }
 0xc3c   :  { %8546 = vmatmul.mubr.msk.bf16.vlgmr.msra.gmra.mxu1 %vm832_vm11, %v2726_v29 }
 0xc3d   :  { %3002 = vmatprep.mubr.bf16.mxu1 %v12345_v8  ;;  %2983 = vmatpush1.bf16.msra.mxu1 %v10844_v3 }
 0xc3e   :  { %2984 = vmatprep.subr.bf16.mxu1 %v10847_v38 }
 0xc41   :  { %2985 = vmatpush1.bf16.msra.mxu1 %v10851_v20 }
 0xc42   :  { %3107 = vmatprep.subr.bf16.mxu1 %v10855_v19 }
 0xc44   :  { %3003 = vmatmul.mubr.bf16.vlgmr.msra.gmra.mxu1 %v12345_v8 }
 0xc45   :  { %3127 = vmatprep.mubr.bf16.mxu1 %v12345_v8 }
 0xcec   :  { %v2626_v61 = vpop.f32.mrf.mxu1 }
 0xced   :  { %v2688_v37 = vadd.f32 %v2687_v6, %v2626_v61 }
 0xcee   :  { %v2628_v29 = vpop.f32.mrf.mxu1 }
 0xcef   :  { %v2705_v35 = vadd.f32 %v10867_v15, %v2688_v37  ;;  %v2690_v1 = vadd.f32 %v2689_v31, %v2628_v29  ;;  %v10879_v31 = vld [vmem:[#allocation39 + $0x20] ss:$16 sps:$4 sm:$0xff]  }
 0xcf0   :  { %v2630_v39 = vpop.f32.mrf.mxu1 }
 0xcf1   :  { %v2712_v28 = vsub.f32 %v2705_v35, %v2562_v59  ;;  %v2706_v51 = vadd.f32 %v10870_v18, %v2690_v1  ;;  %v10883_v59 = vld [vmem:[#allocation39 + $0x4] ss:$16 sps:$4 sm:$0xff]  }
 0xcf2   :  { %v2631_v12 = vpop.f32.mrf.mxu1 }
 0xcf3   :  { %v2713_v21 = vmul.f32 %v2712_v28, %v2712_v28  ;;  %v2707_v30 = vsub.f32 %v2564_v13, %v2706_v51  ;;  %v2708_v32 = vsub.f32 %v2706_v51, %v2564_v13 }
 0xcf4   :  { %v2773_v0 = vpop.f32.mrf.mxu1 }
 0xcf5   :  { %v2709_v6 = vmul.f32 1.442695, %v2708_v32  ;;  %v10877_v47 = vadd.f32 %v10874_v56, %v2773_v0  ;;  %v2717_v61 = vmul.f32 %v9132_v52, %v2713_v21  ;;  %v10887_v32 = vld [vmem:[#allocation39] ss:$16 sps:$4 sm:$0xff]   ;;  %v10892_v0 = vld [vmem:[%s12358_s19 + $0x24] ss:$16 sps:$4 sm:$0xff]  }
 0xcf6   :  { %v8533_v37 = vpop.f32.mrf.mxu1  ;;  %12363 = vst [vmem:[#allocation90_spill] sm:$0xff] %v10892_v0 }
 0xcf7   :  { %12362 = vst [vmem:[#allocation89_spill] sm:$0xff] %v10877_v47  ;;  %9133 = vpow2.f32 %v2709_v6  ;;  %v2787_v12 = vpack.c.bf16 %v10877_v47, %v10877_v47  ;;  %v10901_v6 = vld [vmem:[%s12358_s19 + $0x20] ss:$16 sps:$4 sm:$0xff]   ;;  %v10904_v37 = vld [vmem:[%s12358_s19 + $0x28] ss:$16 sps:$4 sm:$0xff]  }
 0xcf8   :  { %v2776_v28 = vpop.f32.mrf.mxu1  ;;  %12365 = vst [vmem:[#allocation92_spill] sm:$0xff] %v10901_v6  ;;  %3108 = vmatpush1.bf16.msra.mxu1 %v10904_v37 }
 0xcf9   :  { %8540 = vmatmul.mubr.msk.bf16.vlgmr.msra.gmra.mxu0 %vm938_vm10, %v2787_v12  ;;  %v10909_v12 = vld [vmem:[%s12358_s19 + $0x4] ss:$16 sps:$4 sm:$0xff]   ;;  %v10912_v28 = vld [vmem:[%s12358_s19 + $0xc] ss:$16 sps:$4 sm:$0xff]  }
 0xcfa   :  { %v8534_v13 = vpop.f32.mrf.mxu1  ;;  %2942 = vmatpush1.bf16.msra.mxu0 %v10879_v31  ;;  %2961 = vmatprep.mubr.bf16.mxu0 %v12345_v8  ;;  %12366 = vst [vmem:[#allocation93_spill] sm:$0xff] %v10909_v12 }
 0xcfb   :  { %2943 = vmatprep.subr.bf16.mxu0 %v10883_v59  ;;  %v10915_v13 = vld [vmem:[%s12358_s19] ss:$16 sps:$4 sm:$0xff]   ;;  %3109 = vmatprep.subr.bf16.mxu1 %v10912_v28 }
 0xcfc   :  { %v2881_v52 = vpop.f32.mrf.mxu1  ;;  %12367 = vst [vmem:[#allocation94_spill] sm:$0xff] %v10915_v13 }
 0xcfe   :  { %v8547_v29 = vpop.f32.mrf.mxu1  ;;  %2944 = vmatpush1.bf16.msra.mxu0 %v10887_v32 }
 0xcff   :  { %3066 = vmatprep.subr.bf16.mxu0 %v10892_v0  ;;  %v10918_v29 = vld [vmem:[%s12358_s19 + $0x8] ss:$16 sps:$4 sm:$0xff]  }
 0xd00   :  { %v2884_v35 = vpop.f32.mrf.mxu1  ;;  %3110 = vmatpush1.bf16.msra.mxu1 %v10918_v29 }
 0xd01   :  { %2962 = vmatmul.mubr.bf16.vlgmr.msra.gmra.mxu0 %v12345_v8  ;;  %3316 = vmatprep.subr.bf16.mxu1 %v10727_v14 }
 0xd02   :  { %v8548_v1 = vpop.f32.mrf.mxu1  ;;  %3086 = vmatprep.mubr.bf16.mxu0 %v12345_v8  ;;  %3067 = vmatpush1.bf16.msra.mxu0 %v10901_v6 }
 0xd03   :  { %3068 = vmatprep.subr.bf16.mxu0 %v10909_v12 }
 0xd04   :  { %v9134_v39 = vpop.eup %9133 }
 0xd05   :  { %v2711_v51 = vadd.f32 %v9134_v39, %v2707_v30  ;;  %v3004_v30 = vpop.f32.mrf.mxu1  ;;  %v2785_v39 = vld [vmem:[#allocation5] sm:$0xff] }
 0xd06   :  { %3069 = vmatpush1.bf16.msra.mxu0 %v10915_v13 }
 0xd07   :  { %v10898_v21 = vadd.f32 %v2717_v61, %v2711_v51  ;;  %8549 = vmatprep.subr.bf16.mxu0 %v12346_v45  ;;  %v3006_v61 = vpop.f32.mrf.mxu1  ;;  %v2786_v51 = vadd.f32 %v2785_v39, %v10743_v46 }
 0xd09   :  { %12364 = vst [vmem:[#allocation91_spill] sm:$0xff] %v10898_v21  ;;  %v3008_v35 = vpop.f32.mrf.mxu1 }
 0xd0b   :  { %v3009_v1 = vpop.f32.mrf.mxu1 }
 0xdb9   :  { %v2837_v7 = vpop.f32.mrf.mxu0 }
 0xdba   :  { %v2843_v21 = vadd.f32 %v2837_v7, %v2786_v51 }
 0xdbb   :  { %v8541_v54 = vpop.f32.mrf.mxu0 }
 0xdbc   :  { %v2887_v47 = vadd.f32 %v2881_v52, %v2843_v21  ;;  %v2370_v52 = vld [vmem:[%s12368_s29] sm:$0xf] }
 0xdbd   :  { %v2840_v12 = vpop.f32.mrf.mxu0  ;;  %v10942_v21 = vrot.slane %v2370_v52, %v10390_v62  ;;  %v10945_v35 = vrot.slane %v2370_v52, %v10408_v10 }
 0xdbe   :  { %v2888_v6 = vpack.c.bf16 %v2887_v47, %v2887_v47 }
 0xdbf   :  { %v8542_v13 = vpop.f32.mrf.mxu0 }
 0xdc0   :  { %8234 = vmatmul.mubr.msk.bf16.vlgmr.msra.gmra.mxu0 %vm938_vm10, %v2888_v6  ;;  %8235 = vmatmul.mubr.msk.bf16.vlgmr.msra.gmra.mxu1 %vm938_vm10, %v2888_v6 }
 0xdc1   :  { %v2963_v0 = vpop.f32.mrf.mxu0  ;;  %8550 = vmatpush3.bf16.msra.mxu0 %v10706_v16  ;;  %3317 = vmatpush1.bf16.msra.mxu1 %v10729_v22 }
 0xdc2   :  { %8551 = vmatprep.subr.bf16.mxu0 %v12346_v45  ;;  %3318 = vmatprep.subr.bf16.mxu1 %v10731_v5 }
 0xdc3   :  { %v2965_v7 = vpop.f32.mrf.mxu0  ;;  %8553 = vmatprep.mubr.msk.bf16.mxu0 %vm10026_vm7, %v12346_v45  ;;  %3336 = vmatprep.mubr.bf16.mxu1 %v12345_v8 }
 0xdc5   :  { %v2967_v54 = vpop.f32.mrf.mxu0  ;;  %8552 = vmatpush3.bf16.msra.mxu0 %v10711_v27  ;;  %3319 = vmatpush1.bf16.msra.mxu1 %v10735_v26 }
 0xdc6   :  { %3402 = vmatprep.subr.bf16.mxu1 %v10751_v50  ;;  %3361 = vmatprep.subr.bf16.mxu0 %v10749_v57 }
 0xdc7   :  { %v2968_v47 = vpop.f32.mrf.mxu0 }
 0xe80   :  { %v3088_v6 = vpop.f32.mrf.mxu0  ;;  %v3129_v12 = vpop.f32.mrf.mxu1 }
 0xe81   :  { %v3089_v13 = vadd.f32 %v3088_v6, %v2963_v0  ;;  %v12369_v0 = vsub.s32 3, %v10386_v60 }
 0xe82   :  { %v3090_v1 = vpop.f32.mrf.mxu0  ;;  %v3131_v39 = vpop.f32.mrf.mxu1 }
 0xe83   :  { %v3157_v51 = vadd.f32 %v10942_v21, %v3089_v13  ;;  %v3091_v54 = vadd.f32 %v3090_v1, %v2965_v7  ;;  %v10951_v6 = vrot.slane %v2370_v52, %v12369_v0  ;;  %v3132_v10 = vadd.f32 %v3131_v39, %v3006_v61 }
 0xe84   :  { %v3092_v26 = vpop.f32.mrf.mxu0  ;;  %v3133_v50 = vpop.f32.mrf.mxu1  ;;  %v12370_v13 = vsub.s32 2, %v10386_v60 }
 0xe85   :  { %v8236_v27 = vmul.f32 -1.442695, %v3157_v51  ;;  %v3158_v47 = vadd.f32 %v10945_v35, %v3091_v54  ;;  %v3160_v22 = vadd.f32 %v10951_v6, %v3132_v10  ;;  %v3130_v26 = vadd.f32 %v3129_v12, %v3004_v30 }
 0xe86   :  { %v3093_v57 = vpop.f32.mrf.mxu0  ;;  %v3134_v5 = vpop.f32.mrf.mxu1  ;;  %v10956_v7 = vrot.slane %v2370_v52, %v12370_v13  ;;  %v3192_v13 = vld [vmem:[#allocation4 + $0x8] sm:$0xff] }
 0xe87   :  { %9135 = vpow2.f32 %v8236_v27  ;;  %v8237_v62 = vmul.f32 -1.442695, %v3158_v47  ;;  %v8238_v50 = vmul.f32 -1.442695, %v3160_v22 }
 0xe88   :  { %v3159_v57 = vadd.f32 %v10956_v7, %v3130_v26 }
 0xe89   :  { %9137 = vpow2.f32 %v8237_v62 }
 0xe8a   :  { %9139 = vpow2.f32 %v8238_v50 }
 0xe94   :  { %v9136_v1 = vpop.eup %9135 }
 0xe95   :  { %v3164_v5 = vadd.f32 1.0, %v9136_v1 }
 0xe96   :  { %v9138_v27 = vpop.eup %9137 }
 0xe97   :  { %9141 = vrcp.f32 %v3164_v5  ;;  %v3170_v51 = vadd.f32 1.0, %v9138_v27  ;;  %v9140_v54 = vpop.eup %9139 }
 0xe98   :  { %9143 = vtanh.f32 %v3159_v57  ;;  %v3177_v62 = vadd.f32 1.0, %v9140_v54 }
 0xe99   :  { %9145 = vrcp.f32 %v3170_v51 }
 0xe9a   :  { %9147 = vrcp.f32 %v3177_v62 }
 0xea4   :  { %v9142_v61 = vpop.eup %9141 }
 0xea5   :  { %v9144_v39 = vpop.eup %9143 }
 0xea6   :  { %v9146_v47 = vpop.eup %9145  ;;  %v3181_v52 = vmul.f32 %v9144_v39, %v9142_v61 }
 0xea7   :  { %v3180_v60 = vmul.f32 0.0, %v9146_v47  ;;  %v9148_v22 = vpop.eup %9147 }
 0xea9   :  { %v10959_v0 = vadd.f32 %v3181_v52, %v3180_v60 }
 0xeab   :  { %9149 = vtanh.f32 %v10959_v0 }
 0xeb8   :  { %v9150_v30 = vpop.eup %9149 }
 0xeb9   :  { %v3184_v12 = vmul.f32 %v9150_v30, %v9148_v22 }
 0xebb   :  { %v10962_v10 = vpack.c.bf16 %v3184_v12, %v3184_v12 }
 0xebd   :  { %8554 = vmatmul.mubr.msk.bf16.vlgmr.msra.gmra.mxu0 %vm938_vm10, %v10962_v10  ;;  %8241 = vmatmul.mubr.msk.bf16.vlgmr.msra.gmra.mxu1 %vm938_vm10, %v10962_v10  ;;  %3187 = vst.msk [vmem:[#allocation41] sm:$0xf] %vm3186_vm13, %v10962_v10 }
 0xebe   :  { %3403 = vmatpush1.bf16.msra.mxu1 %v10756_v36  ;;  %3422 = vmatprep.mubr.bf16.mxu1 %v12345_v8 }
 0xebf   :  { %3404 = vmatprep.subr.bf16.mxu1 %v10765_v63  ;;  %3362 = vmatpush1.bf16.msra.mxu0 %v10753_v4 }
 0xec0   :  { %3363 = vmatprep.subr.bf16.mxu0 %v10763_v44  ;;  %3381 = vmatprep.mubr.bf16.mxu0 %v12345_v8 }
 0xec2   :  { %3405 = vmatpush1.bf16.msra.mxu1 %v10769_v53 }
 0xec3   :  { %3364 = vmatpush1.bf16.msra.mxu0 %v10767_v23  ;;  %8563 = vmatprep.subr.bf16.mxu1 %v12346_v45 }
 0xec4   :  { %8557 = vmatprep.subr.bf16.mxu0 %v12346_v45 }
 0xec5   :  { %8243 = vmatmul.mubr.msk.bf16.vlgmr.msra.gmra.mxu1 %vm938_vm10, %v10962_v10 }
 0xec6   :  { %8564 = vmatpush3.bf16.msra.mxu1 %v10833_v48  ;;  %8567 = vmatprep.mubr.msk.bf16.mxu1 %vm10026_vm7, %v12346_v45 }
 0xec7   :  { %8565 = vmatprep.subr.bf16.mxu1 %v12346_v45 }
 0xeca   :  { %8566 = vmatpush3.bf16.msra.mxu1 %v10837_v40 }
 0xecb   :  { %3604 = vmatprep.subr.bf16.mxu1 %v10840_v49 }
 0xf7d   :  { %v3230_v26 = vpop.f32.mrf.mxu0  ;;  %v10988_v50 = vpop.f32.mrf.mxu1 }
 0xf7e   :  { %v3236_v1 = vadd.f32 %v3230_v26, %v3192_v13 }
 0xf7f   :  { %v8555_v57 = vpop.f32.mrf.mxu0  ;;  %v10990_v5 = vpop.f32.mrf.mxu1 }
 0xf80   :  { %v3237_v27 = vsel %vm832_vm11, %v3236_v1, -inf }
 0xf81   :  { %v3342_v51 = vpop.f32.mrf.mxu1  ;;  %3238 = vmax.xlane.f32.xlu0 %v3237_v27  ;;  %v3233_v54 = vpop.f32.mrf.mxu0 }
 0xf82   :  { %v12371_v54 = vmov 2  }
 0xf83   :  { %v8556_v61 = vpop.f32.mrf.mxu0  ;;  %v3343_v39 = vpop.f32.mrf.mxu1 }
 0xf84   :  { %v12372_v61 = vmov 3   ;;  %v12373_v39 = vmov 4  }
 0xf85   :  { %v10993_v47 = vpop.f32.mrf.mxu1 }
 0xf87   :  { %v10995_v62 = vpop.f32.mrf.mxu1 }
 0xf89   :  { %v3428_v60 = vpop.f32.mrf.mxu1 }
 0xf8a   :  { %v12375_v60 = vmov 6  }
 0xf8b   :  { %v3429_v52 = vpop.f32.mrf.mxu1 }
 0xf8c   :  { %v12376_v52 = vmov 7  }
0x100a   :  { %v3239_v22 = vpop.xlane.xlu0 %3238 }
0x100b   :  { %v3240_v30 = vsub.f32 %v3236_v1, %v3239_v22  ;;  %v12374_v1 = vmov 5   ;;  %v12377_v22 = vmov 1  }
0x100d   :  { %v3241_v12 = vmul.f32 1.442695, %v3240_v30 }
0x100f   :  { %9151 = vpow2.f32 %v3241_v12 }
0x101c   :  { %v9152_v13 = vpop.eup %9151 }
0x101d   :  { %v3243_v26 = vsel %vm832_vm11, %v9152_v13, 0.0 }
0x101e   :  { %3244 = vadd.xlane.f32.xlu1 %v3243_v26 }
0x10a7   :  { %v3245_v57 = vpop.xlane.xlu1 %3244 }
0x10a8   :  { %9153 = vrcp.f32 %v3245_v57 }
0x10b5   :  { %v9154_v27 = vpop.eup %9153 }
0x10b6   :  { %v3247_v51 = vmul.f32 %v9154_v27, %v9152_v13 }
0x10b8   :  { %3257 = vperm.xlu1 %8858, %v3247_v51   ;;  %3251 = vperm.xlu0 %8857, %v3247_v51  }
0x10bc   :  { %8859 = vset.pattern.permute.xlu1 %v12371_v54 }
0x10bd   :  { %3264 = vperm.xlu1 %8859, %v3247_v51  }
0x10c1   :  { %8860 = vset.pattern.permute.xlu1 %v12372_v61 }
0x10c2   :  { %3271 = vperm.xlu1 %8860, %v3247_v51  }
0x10c6   :  { %8861 = vset.pattern.permute.xlu1 %v12373_v39 }
0x10c7   :  { %3278 = vperm.xlu1 %8861, %v3247_v51  }
0x10cb   :  { %8862 = vset.pattern.permute.xlu1 %v12374_v1 }
0x10cc   :  { %3285 = vperm.xlu1 %8862, %v3247_v51  }
0x10d0   :  { %8863 = vset.pattern.permute.xlu1 %v12375_v60 }
0x10d1   :  { %3292 = vperm.xlu1 %8863, %v3247_v51  }
0x10d5   :  { %8864 = vset.pattern.permute.xlu1 %v12376_v52 }
0x10d6   :  { %3299 = vperm.xlu1 %8864, %v3247_v51  }
0x10da   :  { %8865 = vset.pattern.permute.xlu1 %v12377_v22 }
0x1133   :  { %v3258_v30 = vpop.permute.xlu1 %3257  ;;  %v3252_v26 = vpop.permute.xlu0 %3251 }
0x1134   :  { %v3260_v27 = vmul.f32 %v3258_v30, %v10784_v2  ;;  %v3254_v39 = vmul.f32 %v3252_v26, %v10786_v34 }
0x1136   :  { %v3261_v61 = vadd.f32 %v3260_v27, %v3254_v39 }
0x1138   :  { %v3265_v12 = vpop.permute.xlu1 %3264 }
0x1139   :  { %v3267_v1 = vmul.f32 %v3265_v12, %v10790_v55 }
0x113b   :  { %v3268_v49 = vadd.f32 %v3267_v1, %v3261_v61 }
0x113d   :  { %v3272_v13 = vpop.permute.xlu1 %3271 }
0x113e   :  { %v3274_v60 = vmul.f32 %v3272_v13, %v10793_v17 }
0x1140   :  { %v3275_v52 = vadd.f32 %v3274_v60, %v3268_v49 }
0x1142   :  { %v3279_v57 = vpop.permute.xlu1 %3278 }
0x1143   :  { %v3281_v51 = vmul.f32 %v3279_v57, %v10796_v42  ;;  %v3339_v42 = vadd.f32 %v10988_v50, %v10811_v43 }
0x1145   :  { %v3282_v48 = vadd.f32 %v3281_v51, %v3275_v52 }
0x1147   :  { %v3286_v54 = vpop.permute.xlu1 %3285 }
0x1148   :  { %v3288_v22 = vmul.f32 %v3286_v54, %v10799_v25 }
0x114a   :  { %v3289_v53 = vadd.f32 %v3288_v22, %v3282_v48 }
0x114c   :  { %v3293_v40 = vpop.permute.xlu1 %3292 }
0x114d   :  { %v3295_v23 = vmul.f32 %v3293_v40, %v10802_v9 }
0x114f   :  { %v3296_v30 = vadd.f32 %v3295_v23, %v3289_v53  ;;  %v3452_v23 = vpack.c.bf16 %v3339_v42, %v3339_v42  ;;  %v3341_v53 = vadd.f32 %v10990_v5, %v10862_v11 }
0x1151   :  { %v3300_v2 = vpop.permute.xlu1 %3299  ;;  %v3440_v25 = vsub.f32 0.0, %v3341_v53 }
0x1152   :  { %v3302_v34 = vmul.f32 %v3300_v2, %v10805_v24 }
0x1153   :  { %v3441_v9 = vmul.f32 1.442695, %v3440_v25 }
0x1154   :  { %v11013_v55 = vadd.f32 %v3302_v34, %v3296_v30  ;;  %v12380_v34 = vld [vmem:[#allocation90_spill] sm:$0xff] }
0x1155   :  { %9155 = vpow2.f32 %v3441_v9 }
0x1156   :  { %12378 = vst [vmem:[#allocation95_spill] sm:$0xff] %v11013_v55  ;;  %v3345_v17 = vpack.c.bf16 %v11013_v55, %v11013_v55  ;;  %v11149_v55 = vld [vmem:[#allocation2 + $0x28] sm:$0xff] }
0x1158   :  { %8242 = vmatmul.mubr.msk.bf16.vlgmr.msra.gmra.mxu0 %vm938_vm10, %v3345_v17 }
0x1159   :  { %8558 = vmatpush3.bf16.msra.mxu0 %v10814_v33  ;;  %8559 = vmatprep.mubr.msk.bf16.mxu0 %vm10026_vm7, %v12346_v45 }
0x115a   :  { %8571 = vmatprep.subr.bf16.mxu0 %v12346_v45 }
0x1160   :  { %8560 = vmatmul.mubr.msk.bf16.vlgmr.msra.gmra.mxu0 %vm832_vm11, %v3452_v23 }
0x1161   :  { %8572 = vmatpush3.bf16.msra.mxu0 %v10825_v58  ;;  %8573 = vmatprep.mubr.msk.bf16.mxu0 %vm10026_vm7, %v12346_v45 }
0x1162   :  { %3645 = vmatprep.subr.bf16.mxu0 %v10842_v41  ;;  %v9156_v5 = vpop.eup %9155 }
0x1168   :  { %8574 = vmatmul.mubr.msk.bf16.vlgmr.msra.gmra.mxu0 %vm832_vm11, %v3452_v23  ;;  %v12381_v23 = vld [vmem:[#allocation92_spill] sm:$0xff] }
0x1169   :  { %3646 = vmatpush1.bf16.msra.mxu0 %v10844_v3  ;;  %3665 = vmatprep.mubr.bf16.mxu0 %v12345_v8 }
0x116a   :  { %3647 = vmatprep.subr.bf16.mxu0 %v10847_v38 }
0x116d   :  { %3648 = vmatpush1.bf16.msra.mxu0 %v10851_v20 }
0x116e   :  { %3730 = vmatprep.subr.bf16.mxu0 %v10855_v19 }
0x1170   :  { %8249 = vmatmul.mubr.msk.bf16.vlgmr.msra.gmra.mxu0 %vm938_vm10, %v10962_v10 }
0x1171   :  { %3731 = vmatpush1.bf16.msra.mxu0 %v10904_v37  ;;  %3750 = vmatprep.mubr.bf16.mxu0 %v12345_v8 }
0x1172   :  { %3732 = vmatprep.subr.bf16.mxu0 %v10912_v28 }
0x1175   :  { %3733 = vmatpush1.bf16.msra.mxu0 %v10918_v29 }
0x1176   :  { %3918 = vmatprep.subr.bf16.mxu0 %v10727_v14 }
0x1218   :  { %v3383_v48 = vpop.f32.mrf.mxu0 }
0x1219   :  { %v3425_v40 = vadd.f32 %v10993_v47, %v3383_v48 }
0x121a   :  { %v3385_v49 = vpop.f32.mrf.mxu0 }
0x121b   :  { %v3431_v50 = vadd.f32 %v3425_v40, %v10867_v15  ;;  %v3427_v54 = vadd.f32 %v10995_v62, %v3385_v49  ;;  %v12383_v49 = vld [vmem:[#allocation94_spill] sm:$0xff] }
0x121c   :  { %v3387_v61 = vpop.f32.mrf.mxu0 }
0x121d   :  { %v3438_v39 = vsub.f32 %v3431_v50, %v3339_v42  ;;  %v3432_v1 = vadd.f32 %v3427_v54, %v10870_v18 }
0x121e   :  { %v3388_v60 = vpop.f32.mrf.mxu0 }
0x121f   :  { %v3439_v14 = vmul.f32 %v3438_v39, %v3438_v39  ;;  %v3433_v52 = vsub.f32 %v3341_v53, %v3432_v1  ;;  %v3434_v22 = vsub.f32 %v3432_v1, %v3341_v53  ;;  %v12382_v53 = vld [vmem:[#allocation93_spill] sm:$0xff] }
0x1220   :  { %v3490_v12 = vpop.f32.mrf.mxu0 }
0x1221   :  { %v3435_v13 = vmul.f32 1.442695, %v3434_v22  ;;  %v11049_v26 = vadd.f32 %v10874_v56, %v3490_v12  ;;  %v3443_v47 = vmul.f32 %v9156_v5, %v3439_v14 }
0x1222   :  { %v8561_v57 = vpop.f32.mrf.mxu0 }
0x1223   :  { %12379 = vst [vmem:[#allocation96_spill] sm:$0xff] %v11049_v26  ;;  %9157 = vpow2.f32 %v3435_v13  ;;  %v3505_v62 = vpack.c.bf16 %v11049_v26, %v11049_v26  ;;  %v12386_v57 = vld [vmem:[#allocation78_spill] sm:$0xff] }
0x1224   :  { %v3493_v27 = vpop.f32.mrf.mxu0 }
0x1225   :  { %8568 = vmatmul.mubr.msk.bf16.vlgmr.msra.gmra.mxu1 %vm938_vm10, %v3505_v62 }
0x1226   :  { %v8562_v51 = vpop.f32.mrf.mxu0  ;;  %3605 = vmatpush1.bf16.msra.mxu1 %v10879_v31  ;;  %3624 = vmatprep.mubr.bf16.mxu1 %v12345_v8 }
0x1227   :  { %3606 = vmatprep.subr.bf16.mxu1 %v10883_v59  ;;  %v12387_v51 = vld [vmem:[#allocation76_spill] sm:$0xff] }
0x1228   :  { %v3584_v2 = vpop.f32.mrf.mxu0 }
0x122a   :  { %v8575_v30 = vpop.f32.mrf.mxu0  ;;  %3607 = vmatpush1.bf16.msra.mxu1 %v10887_v32 }
0x122b   :  { %3689 = vmatprep.subr.bf16.mxu1 %v12380_v34  ;;  %v12389_v30 = vld [vmem:[#allocation81_spill] sm:$0xff] }
0x122c   :  { %v3587_v17 = vpop.f32.mrf.mxu0 }
0x122d   :  { %8248 = vmatmul.mubr.msk.bf16.vlgmr.msra.gmra.mxu1 %vm938_vm10, %v10962_v10  ;;  %v3503_v10 = vld [vmem:[#allocation5 + $0x8] sm:$0xff] }
0x122e   :  { %v8576_v42 = vpop.f32.mrf.mxu0  ;;  %3690 = vmatpush1.bf16.msra.mxu1 %v12381_v23  ;;  %3709 = vmatprep.mubr.bf16.mxu1 %v12345_v8  ;;  %v3504_v39 = vadd.f32 %v3503_v10, %v10743_v46 }
0x122f   :  { %3691 = vmatprep.subr.bf16.mxu1 %v12382_v53 }
0x1230   :  { %v9158_v25 = vpop.eup %9157  ;;  %v3667_v9 = vpop.f32.mrf.mxu0 }
0x1231   :  { %v3437_v48 = vadd.f32 %v9158_v25, %v3433_v52 }
0x1232   :  { %v3669_v40 = vpop.f32.mrf.mxu0  ;;  %3692 = vmatpush1.bf16.msra.mxu1 %v12383_v49 }
0x1233   :  { %8577 = vmatprep.subr.bf16.mxu1 %v12346_v45  ;;  %v11066_v50 = vadd.f32 %v3443_v47, %v3437_v48  ;;  %v12385_v47 = vld [vmem:[#allocation77_spill] sm:$0xff] }
0x1234   :  { %v3671_v54 = vpop.f32.mrf.mxu0 }
0x1235   :  { %12384 = vst [vmem:[#allocation90_spill] sm:$0xff] %v11066_v50 }
0x1236   :  { %v3672_v61 = vpop.f32.mrf.mxu0 }
0x12e5   :  { %v3543_v1 = vpop.f32.mrf.mxu1 }
0x12e6   :  { %v3549_v60 = vadd.f32 %v3543_v1, %v3504_v39 }
0x12e7   :  { %v8569_v14 = vpop.f32.mrf.mxu1 }
0x12e8   :  { %v3590_v22 = vadd.f32 %v3584_v2, %v3549_v60  ;;  %v12388_v2 = vld [vmem:[#allocation79_spill] sm:$0xff] }
0x12e9   :  { %v3546_v5 = vpop.f32.mrf.mxu1 }
0x12ea   :  { %v3591_v12 = vpack.c.bf16 %v3590_v22, %v3590_v22 }
0x12eb   :  { %v8570_v13 = vpop.f32.mrf.mxu1 }
0x12ec   :  { %8250 = vmatmul.mubr.msk.bf16.vlgmr.msra.gmra.mxu1 %vm938_vm10, %v3591_v12  ;;  %8251 = vmatmul.mubr.msk.bf16.vlgmr.msra.gmra.mxu0 %vm938_vm10, %v3591_v12 }
0x12ed   :  { %v3626_v52 = vpop.f32.mrf.mxu1  ;;  %8578 = vmatpush3.bf16.msra.mxu1 %v10706_v16  ;;  %3919 = vmatpush1.bf16.msra.mxu0 %v12385_v47  ;;  %v12390_v16 = vld [vmem:[#allocation80_spill] sm:$0xff] }
0x12ee   :  { %8579 = vmatprep.subr.bf16.mxu1 %v12346_v45  ;;  %3920 = vmatprep.subr.bf16.mxu0 %v12386_v57 }
0x12ef   :  { %v3628_v62 = vpop.f32.mrf.mxu1  ;;  %8581 = vmatprep.mubr.msk.bf16.mxu1 %vm10026_vm7, %v12346_v45  ;;  %3938 = vmatprep.mubr.bf16.mxu0 %v12345_v8 }
0x12f1   :  { %v3630_v27 = vpop.f32.mrf.mxu1  ;;  %8580 = vmatpush3.bf16.msra.mxu1 %v12387_v51  ;;  %3921 = vmatpush1.bf16.msra.mxu0 %v12388_v2 }
0x12f2   :  { %4004 = vmatprep.subr.bf16.mxu0 %v12389_v30  ;;  %3963 = vmatprep.subr.bf16.mxu1 %v12390_v16 }
0x12f3   :  { %v3631_v17 = vpop.f32.mrf.mxu1 }
0x13ac   :  { %v3711_v42 = vpop.f32.mrf.mxu1  ;;  %v3752_v25 = vpop.f32.mrf.mxu0 }
0x13ad   :  { %v3712_v48 = vadd.f32 %v3711_v42, %v3626_v52  ;;  %v3753_v27 = vadd.f32 %v3752_v25, %v3667_v9 }
0x13ae   :  { %v3713_v54 = vpop.f32.mrf.mxu1  ;;  %v3754_v61 = vpop.f32.mrf.mxu0 }
0x13af   :  { %v3759_v10 = vadd.f32 %v3712_v48, %v10942_v21  ;;  %v3714_v39 = vadd.f32 %v3713_v54, %v3628_v62  ;;  %v3755_v47 = vadd.f32 %v3754_v61, %v3669_v40  ;;  %v3761_v2 = vadd.f32 %v3753_v27, %v10956_v7 }
0x13b0   :  { %v3715_v1 = vpop.f32.mrf.mxu1  ;;  %v3756_v60 = vpop.f32.mrf.mxu0 }
0x13b1   :  { %v8252_v14 = vmul.f32 -1.442695, %v3759_v10  ;;  %v3760_v22 = vadd.f32 %v3714_v39, %v10945_v35  ;;  %v3762_v57 = vadd.f32 %v3755_v47, %v10951_v6 }
0x13b2   :  { %v3716_v5 = vpop.f32.mrf.mxu1  ;;  %v3757_v12 = vpop.f32.mrf.mxu0 }
0x13b3   :  { %9159 = vpow2.f32 %v8252_v14  ;;  %v8253_v13 = vmul.f32 -1.442695, %v3760_v22  ;;  %v8254_v52 = vmul.f32 -1.442695, %v3762_v57  ;;  %v12392_v14 = vld [vmem:[#allocation82_spill] sm:$0xff] }
0x13b5   :  { %9161 = vpow2.f32 %v8253_v13 }
0x13b6   :  { %9163 = vpow2.f32 %v8254_v52 }
0x13c0   :  { %v9160_v51 = vpop.eup %9159 }
0x13c1   :  { %v3766_v30 = vadd.f32 1.0, %v9160_v51 }
0x13c2   :  { %v9162_v62 = vpop.eup %9161 }
0x13c3   :  { %9165 = vrcp.f32 %v3766_v30  ;;  %v3772_v16 = vadd.f32 1.0, %v9162_v62  ;;  %v9164_v17 = vpop.eup %9163 }
0x13c4   :  { %9167 = vtanh.f32 %v3761_v2  ;;  %v3779_v10 = vadd.f32 1.0, %v9164_v17 }
0x13c5   :  { %9169 = vrcp.f32 %v3772_v16 }
0x13c6   :  { %9171 = vrcp.f32 %v3779_v10 }
0x13d0   :  { %v9166_v42 = vpop.eup %9165 }
0x13d1   :  { %v9168_v48 = vpop.eup %9167 }
0x13d2   :  { %v9170_v54 = vpop.eup %9169  ;;  %v3783_v40 = vmul.f32 %v9168_v48, %v9166_v42 }
0x13d3   :  { %v3782_v61 = vmul.f32 %v9170_v54, %v10959_v0  ;;  %v9172_v25 = vpop.eup %9171  ;;  %v12391_v0 = vld [vmem:[#allocation83_spill] sm:$0xff] }
0x13d5   :  { %v11087_v9 = vadd.f32 %v3783_v40, %v3782_v61 }
0x13d7   :  { %9173 = vtanh.f32 %v11087_v9 }
0x13e4   :  { %v9174_v39 = vpop.eup %9173 }
0x13e5   :  { %v3786_v1 = vmul.f32 %v9174_v39, %v9172_v25 }
0x13e7   :  { %v11090_v60 = vpack.c.bf16 %v3786_v1, %v3786_v1  ;;  %v12396_v1 = vmov 3  }
0x13e9   :  { %8582 = vmatmul.mubr.msk.bf16.vlgmr.msra.gmra.mxu1 %vm938_vm10, %v11090_v60  ;;  %8257 = vmatmul.mubr.msk.bf16.vlgmr.msra.gmra.mxu0 %vm938_vm10, %v11090_v60  ;;  %3789 = vst.msk [vmem:[#allocation41 + $0x4] sm:$0xf] %vm3186_vm13, %v11090_v60 }
0x13ea   :  { %4005 = vmatpush1.bf16.msra.mxu0 %v10756_v36  ;;  %4024 = vmatprep.mubr.bf16.mxu0 %v12345_v8  ;;  %v12393_v36 = vld [vmem:[#allocation85_spill] sm:$0xff] }
0x13eb   :  { %4006 = vmatprep.subr.bf16.mxu0 %v10765_v63  ;;  %3964 = vmatpush1.bf16.msra.mxu1 %v10753_v4  ;;  %v12394_v4 = vld [vmem:[#allocation86_spill] sm:$0xff]  ;;  %v3794_v63 = vld [vmem:[#allocation4 + $0x10] sm:$0xff] }
0x13ec   :  { %3965 = vmatprep.subr.bf16.mxu1 %v10763_v44  ;;  %3983 = vmatprep.mubr.bf16.mxu1 %v12345_v8  ;;  %v12395_v44 = vld [vmem:[#allocation87_spill] sm:$0xff] }
0x13ee   :  { %4007 = vmatpush1.bf16.msra.mxu0 %v12391_v0  ;;  %v12397_v0 = vmov 2  }
0x13ef   :  { %3966 = vmatpush1.bf16.msra.mxu1 %v12392_v14  ;;  %8591 = vmatprep.subr.bf16.mxu0 %v12346_v45  ;;  %v12398_v14 = vmov 4  }
0x13f0   :  { %8585 = vmatprep.subr.bf16.mxu1 %v12346_v45 }
0x13f1   :  { %8259 = vmatmul.mubr.msk.bf16.vlgmr.msra.gmra.mxu0 %vm938_vm10, %v11090_v60 }
0x13f2   :  { %8592 = vmatpush3.bf16.msra.mxu0 %v12393_v36  ;;  %8595 = vmatprep.mubr.msk.bf16.mxu0 %vm10026_vm7, %v12346_v45  ;;  %v12399_v36 = vmov 5  }
0x13f3   :  { %8593 = vmatprep.subr.bf16.mxu0 %v12346_v45 }
0x13f6   :  { %8594 = vmatpush3.bf16.msra.mxu0 %v12394_v4  ;;  %v12400_v4 = vmov 6  }
0x13f7   :  { %4206 = vmatprep.subr.bf16.mxu0 %v12395_v44  ;;  %v12401_v44 = vmov 7  }
0x14a9   :  { %v3832_v22 = vpop.f32.mrf.mxu1  ;;  %v11116_v5 = vpop.f32.mrf.mxu0 }
0x14aa   :  { %v3838_v12 = vadd.f32 %v3832_v22, %v3794_v63  ;;  %v12402_v63 = vmov 1  }
0x14ab   :  { %v8583_v13 = vpop.f32.mrf.mxu1  ;;  %v11118_v47 = vpop.f32.mrf.mxu0 }
0x14ac   :  { %v3839_v57 = vsel %vm832_vm11, %v3838_v12, -inf  ;;  %v11134_v13 = vld [vmem:[#allocation2 + $0x8] sm:$0xff] }
0x14ad   :  { %v3944_v27 = vpop.f32.mrf.mxu0  ;;  %3840 = vmax.xlane.f32.xlu0 %v3839_v57  ;;  %v3835_v52 = vpop.f32.mrf.mxu1  ;;  %v11136_v57 = vld [vmem:[#allocation2] sm:$0xff] }
0x14af   :  { %v8584_v51 = vpop.f32.mrf.mxu1  ;;  %v3945_v2 = vpop.f32.mrf.mxu0 }
0x14b0   :  { %v11140_v2 = vld [vmem:[#allocation2 + $0x10] sm:$0xff] }
0x14b1   :  { %v11121_v30 = vpop.f32.mrf.mxu0 }
0x14b3   :  { %v11123_v62 = vpop.f32.mrf.mxu0 }
0x14b5   :  { %v4030_v16 = vpop.f32.mrf.mxu0 }
0x14b7   :  { %v4031_v17 = vpop.f32.mrf.mxu0 }
0x1536   :  { %v3841_v42 = vpop.xlane.xlu0 %3840 }
0x1537   :  { %v3842_v48 = vsub.f32 %v3838_v12, %v3841_v42 }
0x1539   :  { %v3843_v54 = vmul.f32 1.442695, %v3842_v48  ;;  %v11143_v48 = vld [vmem:[#allocation2 + $0x18] sm:$0xff] }
0x153b   :  { %9175 = vpow2.f32 %v3843_v54 }
0x1548   :  { %v9176_v10 = vpop.eup %9175 }
0x1549   :  { %v3845_v40 = vsel %vm832_vm11, %v9176_v10, 0.0 }
0x154a   :  { %3846 = vadd.xlane.f32.xlu1 %v3845_v40 }
0x15d3   :  { %v3847_v61 = vpop.xlane.xlu1 %3846 }
0x15d4   :  { %9177 = vrcp.f32 %v3847_v61  ;;  %v11146_v61 = vld [vmem:[#allocation2 + $0x20] sm:$0xff] }
0x15e1   :  { %v9178_v25 = vpop.eup %9177 }
0x15e2   :  { %v3849_v39 = vmul.f32 %v9178_v25, %v9176_v10 }
0x15e4   :  { %3859 = vperm.xlu1 %8865, %v3849_v39   ;;  %3853 = vperm.xlu0 %8857, %v3849_v39  }
0x15e8   :  { %8867 = vset.pattern.permute.xlu1 %v12396_v1  ;;  %8866 = vset.pattern.permute.xlu0 %v12397_v0 }
0x15e9   :  { %3873 = vperm.xlu1 %8867, %v3849_v39   ;;  %3866 = vperm.xlu0 %8866, %v3849_v39  }
0x15ed   :  { %8868 = vset.pattern.permute.xlu1 %v12398_v14  ;;  %8869 = vset.pattern.permute.xlu0 %v12399_v36 }
0x15ee   :  { %3880 = vperm.xlu1 %8868, %v3849_v39   ;;  %3887 = vperm.xlu0 %8869, %v3849_v39  }
0x15f2   :  { %8870 = vset.pattern.permute.xlu1 %v12400_v4  ;;  %8872 = vset.pattern.permute.xlu0 %v12345_v8 }
0x15f3   :  { %3894 = vperm.xlu1 %8870, %v3849_v39  }
0x15f7   :  { %8871 = vset.pattern.permute.xlu1 %v12401_v44 }
0x15f8   :  { %3901 = vperm.xlu1 %8871, %v3849_v39  }
0x15fc   :  { %8873 = vset.pattern.permute.xlu1 %v12402_v63 }
0x165f   :  { %v3860_v22 = vpop.permute.xlu1 %3859  ;;  %v3854_v12 = vpop.permute.xlu0 %3853 }
0x1660   :  { %v3862_v27 = vmul.f32 %v3860_v22, %v11134_v13  ;;  %v3856_v52 = vmul.f32 %v3854_v12, %v11136_v57 }
0x1662   :  { %v3863_v17 = vadd.f32 %v3862_v27, %v3856_v52  ;;  %v11152_v52 = vld [vmem:[#allocation2 + $0x30] sm:$0xff] }
0x1664   :  { %v3874_v51 = vpop.permute.xlu1 %3873  ;;  %v3867_v16 = vpop.permute.xlu0 %3866 }
0x1665   :  { %v3869_v42 = vmul.f32 %v3867_v16, %v11140_v2  ;;  %v3876_v54 = vmul.f32 %v3874_v51, %v11143_v48 }
0x1667   :  { %v3870_v10 = vadd.f32 %v3869_v42, %v3863_v17 }
0x1669   :  { %v3877_v40 = vadd.f32 %v3876_v54, %v3870_v10  ;;  %v3881_v25 = vpop.permute.xlu1 %3880  ;;  %v3888_v22 = vpop.permute.xlu0 %3887 }
0x166a   :  { %v3883_v39 = vmul.f32 %v3881_v25, %v11146_v61  ;;  %v3890_v26 = vmul.f32 %v3888_v22, %v11149_v55 }
0x166c   :  { %v3884_v12 = vadd.f32 %v3883_v39, %v3877_v40 }
0x166e   :  { %v3895_v27 = vpop.permute.xlu1 %3894  ;;  %v3891_v16 = vadd.f32 %v3890_v26, %v3884_v12  ;;  %v3941_v26 = vadd.f32 %v11116_v5, %v10811_v43 }
0x166f   :  { %v3897_v50 = vmul.f32 %v3895_v27, %v11152_v52 }
0x1671   :  { %v3898_v17 = vadd.f32 %v3897_v50, %v3891_v16  ;;  %v4054_v50 = vpack.c.bf16 %v3941_v26, %v3941_v26 }
0x1673   :  { %v3902_v51 = vpop.permute.xlu1 %3901 }
0x1674   :  { %v3904_v42 = vmul.f32 %v3902_v51, %v10805_v24  ;;  %v11184_v24 = vld [vmem:[#allocation21 + $0x14] ss:$8 sps:$4 sm:$0xff]  }
0x1675   :  { %12404 = vst [vmem:[#allocation93_spill] sm:$0xff] %v11184_v24 }
0x1676   :  { %v11156_v54 = vadd.f32 %v3904_v42, %v3898_v17 }
0x1678   :  { %12403 = vst [vmem:[#allocation92_spill] sm:$0xff] %v11156_v54  ;;  %v3947_v10 = vpack.c.bf16 %v11156_v54, %v11156_v54 }
0x167a   :  { %8258 = vmatmul.mubr.msk.bf16.vlgmr.msra.gmra.mxu1 %vm938_vm10, %v3947_v10 }
0x167b   :  { %8586 = vmatpush3.bf16.msra.mxu1 %v10814_v33  ;;  %8587 = vmatprep.mubr.msk.bf16.mxu1 %vm10026_vm7, %v12346_v45 }
0x167c   :  { %8599 = vmatprep.subr.bf16.mxu1 %v12346_v45 }
0x1682   :  { %8588 = vmatmul.mubr.msk.bf16.vlgmr.msra.gmra.mxu1 %vm832_vm11, %v4054_v50 }
0x1683   :  { %8600 = vmatpush3.bf16.msra.mxu1 %v10825_v58  ;;  %8601 = vmatprep.mubr.msk.bf16.mxu1 %vm10026_vm7, %v12346_v45 }
0x1684   :  { %4247 = vmatprep.subr.bf16.mxu1 %v10842_v41  ;;  %v3943_v41 = vadd.f32 %v11118_v47, %v10862_v11 }
0x168a   :  { %8602 = vmatmul.mubr.msk.bf16.vlgmr.msra.gmra.mxu1 %vm832_vm11, %v4054_v50 }
0x168b   :  { %4248 = vmatpush1.bf16.msra.mxu1 %v10844_v3  ;;  %4267 = vmatprep.mubr.bf16.mxu1 %v12345_v8  ;;  %v4042_v3 = vsub.f32 0.0, %v3943_v41 }
0x168c   :  { %4249 = vmatprep.subr.bf16.mxu1 %v10847_v38 }
0x168d   :  { %v4043_v38 = vmul.f32 1.442695, %v4042_v3 }
0x168f   :  { %4250 = vmatpush1.bf16.msra.mxu1 %v10851_v20  ;;  %9179 = vpow2.f32 %v4043_v38 }
0x1690   :  { %4332 = vmatprep.subr.bf16.mxu1 %v10855_v19 }
0x1692   :  { %8265 = vmatmul.mubr.msk.bf16.vlgmr.msra.gmra.mxu1 %vm938_vm10, %v11090_v60 }
0x1693   :  { %4333 = vmatpush1.bf16.msra.mxu1 %v10904_v37  ;;  %4352 = vmatprep.mubr.bf16.mxu1 %v12345_v8 }
0x1694   :  { %4334 = vmatprep.subr.bf16.mxu1 %v10912_v28 }
0x1697   :  { %4335 = vmatpush1.bf16.msra.mxu1 %v10918_v29 }
0x1698   :  { %4520 = vmatprep.subr.bf16.mxu1 %v11184_v24 }
0x169c   :  { %v9180_v47 = vpop.eup %9179 }
0x173a   :  { %v3985_v20 = vpop.f32.mrf.mxu1 }
0x173b   :  { %v4027_v19 = vadd.f32 %v11121_v30, %v3985_v20 }
0x173c   :  { %v3987_v37 = vpop.f32.mrf.mxu1 }
0x173d   :  { %v4033_v5 = vadd.f32 %v4027_v19, %v10867_v15  ;;  %v4029_v28 = vadd.f32 %v11123_v62, %v3987_v37  ;;  %v4105_v19 = vld [vmem:[#allocation5 + $0x10] sm:$0xff] }
0x173e   :  { %v3989_v40 = vpop.f32.mrf.mxu1 }
0x173f   :  { %v4040_v29 = vsub.f32 %v4033_v5, %v3941_v26  ;;  %v4034_v25 = vadd.f32 %v4029_v28, %v10870_v18 }
0x1740   :  { %v3990_v39 = vpop.f32.mrf.mxu1 }
0x1741   :  { %v4041_v22 = vmul.f32 %v4040_v29, %v4040_v29  ;;  %v4035_v12 = vsub.f32 %v3943_v41, %v4034_v25  ;;  %v4036_v27 = vsub.f32 %v4034_v25, %v3943_v41  ;;  %v11217_v39 = vld [vmem:[%s12347_s8 + $0x8] sm:$0xff]  }
0x1742   :  { %v4092_v16 = vpop.f32.mrf.mxu1 }
0x1743   :  { %v4037_v51 = vmul.f32 1.442695, %v4036_v27  ;;  %v11194_v17 = vadd.f32 %v10874_v56, %v4092_v16  ;;  %v4045_v30 = vmul.f32 %v9180_v47, %v4041_v22  ;;  %v11220_v22 = vld [vmem:[#allocation21 + $0x10] ss:$8 sps:$4 sm:$0xff]  }
0x1744   :  { %v8589_v42 = vpop.f32.mrf.mxu1  ;;  %v11231_v16 = vld [vmem:[%s12347_s8] sm:$0xff]  }
0x1745   :  { %12405 = vst [vmem:[#allocation94_spill] sm:$0xff] %v11194_v17  ;;  %9181 = vpow2.f32 %v4037_v51  ;;  %v4107_v62 = vpack.c.bf16 %v11194_v17, %v11194_v17  ;;  %12407 = vst [vmem:[#allocation78_spill] sm:$0xff] %v11231_v16  ;;  %v11234_v51 = vld [vmem:[#allocation21] ss:$8 sps:$4 sm:$0xff]  }
0x1746   :  { %v4095_v10 = vpop.f32.mrf.mxu1  ;;  %12408 = vst [vmem:[#allocation76_spill] sm:$0xff] %v11234_v51  ;;  %v11240_v42 = vld [vmem:[#allocation26 + $0x14] ss:$8 sps:$4 sm:$0xff]  }
0x1747   :  { %8596 = vmatmul.mubr.msk.bf16.vlgmr.msra.gmra.mxu0 %vm938_vm10, %v4107_v62  ;;  %12410 = vst [vmem:[#allocation81_spill] sm:$0xff] %v11240_v42 }
0x1748   :  { %v8590_v26 = vpop.f32.mrf.mxu1  ;;  %4207 = vmatpush1.bf16.msra.mxu0 %v10879_v31  ;;  %4226 = vmatprep.mubr.bf16.mxu0 %v12345_v8 }
0x1749   :  { %4208 = vmatprep.subr.bf16.mxu0 %v10883_v59 }
0x174a   :  { %v4186_v50 = vpop.f32.mrf.mxu1 }
0x174c   :  { %v8603_v41 = vpop.f32.mrf.mxu1  ;;  %4209 = vmatpush1.bf16.msra.mxu0 %v10887_v32 }
0x174d   :  { %4291 = vmatprep.subr.bf16.mxu0 %v12380_v34 }
0x174e   :  { %v4189_v56 = vpop.f32.mrf.mxu1 }
0x174f   :  { %8264 = vmatmul.mubr.msk.bf16.vlgmr.msra.gmra.mxu0 %vm938_vm10, %v11090_v60 }
0x1750   :  { %v8604_v3 = vpop.f32.mrf.mxu1  ;;  %4292 = vmatpush1.bf16.msra.mxu0 %v12381_v23  ;;  %4311 = vmatprep.mubr.bf16.mxu0 %v12345_v8  ;;  %v4106_v23 = vadd.f32 %v4105_v19, %v10743_v46 }
0x1751   :  { %4293 = vmatprep.subr.bf16.mxu0 %v12382_v53 }
0x1752   :  { %v9182_v31 = vpop.eup %9181  ;;  %v4269_v38 = vpop.f32.mrf.mxu1 }
0x1753   :  { %v4039_v59 = vadd.f32 %v9182_v31, %v4035_v12  ;;  %v11224_v12 = vld [vmem:[#allocation21 + $0x4] ss:$8 sps:$4 sm:$0xff]  }
0x1754   :  { %v4271_v20 = vpop.f32.mrf.mxu1  ;;  %4294 = vmatpush1.bf16.msra.mxu0 %v12383_v49 }
0x1755   :  { %8605 = vmatprep.subr.bf16.mxu0 %v12346_v45  ;;  %v11211_v32 = vadd.f32 %v4045_v30, %v4039_v59  ;;  %v11237_v30 = vld [vmem:[#allocation24 + $0x14] ss:$8 sps:$4 sm:$0xff]  }
0x1756   :  { %v4273_v34 = vpop.f32.mrf.mxu1  ;;  %12409 = vst [vmem:[#allocation79_spill] sm:$0xff] %v11237_v30 }
0x1757   :  { %12406 = vst [vmem:[#allocation77_spill] sm:$0xff] %v11211_v32 }
0x1758   :  { %v4274_v60 = vpop.f32.mrf.mxu1 }
0x1807   :  { %v4145_v37 = vpop.f32.mrf.mxu0 }
0x1808   :  { %v4151_v5 = vadd.f32 %v4145_v37, %v4106_v23 }
0x1809   :  { %v8597_v28 = vpop.f32.mrf.mxu0 }
0x180a   :  { %v4192_v53 = vadd.f32 %v4186_v50, %v4151_v5 }
0x180b   :  { %v4148_v40 = vpop.f32.mrf.mxu0 }
0x180c   :  { %v4193_v29 = vpack.c.bf16 %v4192_v53, %v4192_v53 }
0x180d   :  { %v8598_v25 = vpop.f32.mrf.mxu0 }
0x180e   :  { %8266 = vmatmul.mubr.msk.bf16.vlgmr.msra.gmra.mxu0 %vm938_vm10, %v4193_v29  ;;  %8267 = vmatmul.mubr.msk.bf16.vlgmr.msra.gmra.mxu1 %vm938_vm10, %v4193_v29 }
0x180f   :  { %v4228_v49 = vpop.f32.mrf.mxu0  ;;  %8606 = vmatpush3.bf16.msra.mxu0 %v11217_v39  ;;  %4521 = vmatpush1.bf16.msra.mxu1 %v11220_v22 }
0x1810   :  { %8607 = vmatprep.subr.bf16.mxu0 %v12346_v45  ;;  %4522 = vmatprep.subr.bf16.mxu1 %v11224_v12 }
0x1811   :  { %v4230_v27 = vpop.f32.mrf.mxu0  ;;  %8609 = vmatprep.mubr.msk.bf16.mxu0 %vm10026_vm7, %v12346_v45  ;;  %4540 = vmatprep.mubr.bf16.mxu1 %v12345_v8 }
0x1813   :  { %v4232_v47 = vpop.f32.mrf.mxu0  ;;  %8608 = vmatpush3.bf16.msra.mxu0 %v11231_v16  ;;  %4523 = vmatpush1.bf16.msra.mxu1 %v11234_v51 }
0x1814   :  { %4606 = vmatprep.subr.bf16.mxu1 %v11237_v30  ;;  %4565 = vmatprep.subr.bf16.mxu0 %v11240_v42 }
0x1815   :  { %v4233_v62 = vpop.f32.mrf.mxu0 }
0x18ce   :  { %v4313_v10 = vpop.f32.mrf.mxu0  ;;  %v4354_v26 = vpop.f32.mrf.mxu1 }
0x18cf   :  { %v4314_v50 = vadd.f32 %v4313_v10, %v4228_v49  ;;  %v4355_v40 = vadd.f32 %v4354_v26, %v4269_v38 }
0x18d0   :  { %v4315_v41 = vpop.f32.mrf.mxu0  ;;  %v4356_v56 = vpop.f32.mrf.mxu1 }
0x18d1   :  { %v4361_v3 = vadd.f32 %v4314_v50, %v10942_v21  ;;  %v4316_v31 = vadd.f32 %v4315_v41, %v4230_v27  ;;  %v4357_v28 = vadd.f32 %v4356_v56, %v4271_v20  ;;  %v4363_v49 = vadd.f32 %v4355_v40, %v10956_v7  ;;  %v11289_v40 = vld [vmem:[#allocation33] sm:$0xff]  }
0x18d2   :  { %v4317_v59 = vpop.f32.mrf.mxu0  ;;  %v4358_v34 = vpop.f32.mrf.mxu1 }
0x18d3   :  { %v8268_v60 = vmul.f32 -1.442695, %v4361_v3  ;;  %v4362_v19 = vadd.f32 %v4316_v31, %v10945_v35  ;;  %v4364_v53 = vadd.f32 %v4357_v28, %v10951_v6  ;;  %v11276_v28 = vld [vmem:[#allocation26] ss:$8 sps:$4 sm:$0xff]  }
0x18d4   :  { %v4318_v23 = vpop.f32.mrf.mxu0  ;;  %v4359_v37 = vpop.f32.mrf.mxu1 }
0x18d5   :  { %9183 = vpow2.f32 %v8268_v60  ;;  %v8269_v5 = vmul.f32 -1.442695, %v4362_v19  ;;  %v8270_v29 = vmul.f32 -1.442695, %v4364_v53  ;;  %v11263_v19 = vld [vmem:[#allocation24 + $0x4] ss:$8 sps:$4 sm:$0xff]  }
0x18d6   :  { %v11266_v23 = vld [vmem:[#allocation26 + $0x10] ss:$8 sps:$4 sm:$0xff]   ;;  %v11269_v37 = vld [vmem:[#allocation26 + $0x4] ss:$8 sps:$4 sm:$0xff]  }
0x18d7   :  { %9185 = vpow2.f32 %v8269_v5  ;;  %v11273_v5 = vld [vmem:[#allocation24] ss:$8 sps:$4 sm:$0xff]   ;;  %v11283_v53 = vld [vmem:[#allocation33 + $0x8] sm:$0xff]  }
0x18d8   :  { %9187 = vpow2.f32 %v8270_v29  ;;  %v11292_v29 = vld [vmem:[#allocation39 + $0x24] ss:$16 sps:$4 sm:$0xff]  }
0x18e2   :  { %v9184_v25 = vpop.eup %9183 }
0x18e3   :  { %v4368_v47 = vadd.f32 1.0, %v9184_v25  ;;  %v4396_v25 = vld [vmem:[#allocation4 + $0x18] sm:$0xff] }
0x18e4   :  { %v9186_v27 = vpop.eup %9185 }
0x18e5   :  { %9189 = vrcp.f32 %v4368_v47  ;;  %v4374_v62 = vadd.f32 1.0, %v9186_v27  ;;  %v9188_v10 = vpop.eup %9187 }
0x18e6   :  { %9191 = vtanh.f32 %v4363_v49  ;;  %v4381_v31 = vadd.f32 1.0, %v9188_v10 }
0x18e7   :  { %9193 = vrcp.f32 %v4374_v62 }
0x18e8   :  { %9195 = vrcp.f32 %v4381_v31 }
0x18f2   :  { %v9190_v50 = vpop.eup %9189 }
0x18f3   :  { %v9192_v41 = vpop.eup %9191 }
0x18f4   :  { %v9194_v3 = vpop.eup %9193  ;;  %v4385_v20 = vmul.f32 %v9192_v41, %v9190_v50 }
0x18f5   :  { %v4384_v56 = vmul.f32 %v9194_v3, %v11087_v9  ;;  %v9196_v26 = vpop.eup %9195  ;;  %v11259_v9 = vld [vmem:[#allocation24 + $0x10] ss:$8 sps:$4 sm:$0xff]  }
0x18f7   :  { %v11248_v38 = vadd.f32 %v4385_v20, %v4384_v56 }
0x18f9   :  { %9197 = vtanh.f32 %v11248_v38 }
0x1906   :  { %v9198_v59 = vpop.eup %9197 }
0x1907   :  { %v4388_v34 = vmul.f32 %v9198_v59, %v9196_v26 }
0x1909   :  { %v11251_v60 = vpack.c.bf16 %v4388_v34, %v4388_v34 }
0x190b   :  { %8610 = vmatmul.mubr.msk.bf16.vlgmr.msra.gmra.mxu0 %vm938_vm10, %v11251_v60  ;;  %8273 = vmatmul.mubr.msk.bf16.vlgmr.msra.gmra.mxu1 %vm938_vm10, %v11251_v60  ;;  %4391 = vst.msk [vmem:[#allocation41 + $0x8] sm:$0xf] %vm3186_vm13, %v11251_v60 }
0x190c   :  { %4607 = vmatpush1.bf16.msra.mxu1 %v11259_v9  ;;  %4626 = vmatprep.mubr.bf16.mxu1 %v12345_v8 }
0x190d   :  { %4608 = vmatprep.subr.bf16.mxu1 %v11263_v19  ;;  %4566 = vmatpush1.bf16.msra.mxu0 %v11266_v23 }
0x190e   :  { %4567 = vmatprep.subr.bf16.mxu0 %v11269_v37  ;;  %4585 = vmatprep.mubr.bf16.mxu0 %v12345_v8 }
0x1910   :  { %4609 = vmatpush1.bf16.msra.mxu1 %v11273_v5 }
0x1911   :  { %4568 = vmatpush1.bf16.msra.mxu0 %v11276_v28  ;;  %8619 = vmatprep.subr.bf16.mxu1 %v12346_v45 }
0x1912   :  { %8613 = vmatprep.subr.bf16.mxu0 %v12346_v45 }
0x1913   :  { %8275 = vmatmul.mubr.msk.bf16.vlgmr.msra.gmra.mxu1 %vm938_vm10, %v11251_v60 }
0x1914   :  { %8620 = vmatpush3.bf16.msra.mxu1 %v11283_v53  ;;  %8623 = vmatprep.mubr.msk.bf16.mxu1 %vm10026_vm7, %v12346_v45 }
0x1915   :  { %8621 = vmatprep.subr.bf16.mxu1 %v12346_v45 }
0x1918   :  { %8622 = vmatpush3.bf16.msra.mxu1 %v11289_v40 }
0x1919   :  { %4808 = vmatprep.subr.bf16.mxu1 %v11292_v29 }
0x19cb   :  { %v4434_v49 = vpop.f32.mrf.mxu0  ;;  %v11295_v47 = vpop.f32.mrf.mxu1 }
0x19cc   :  { %v4440_v27 = vadd.f32 %v4434_v49, %v4396_v25 }
0x19cd   :  { %v8611_v62 = vpop.f32.mrf.mxu0  ;;  %v11297_v10 = vpop.f32.mrf.mxu1 }
0x19ce   :  { %v4441_v50 = vsel %vm832_vm11, %v4440_v27, -inf }
0x19cf   :  { %v4546_v41 = vpop.f32.mrf.mxu1  ;;  %4442 = vmax.xlane.f32.xlu0 %v4441_v50  ;;  %v4437_v3 = vpop.f32.mrf.mxu0 }
0x19d1   :  { %v8612_v31 = vpop.f32.mrf.mxu0  ;;  %v4547_v20 = vpop.f32.mrf.mxu1 }
0x19d3   :  { %v11300_v56 = vpop.f32.mrf.mxu1 }
0x19d5   :  { %v11302_v26 = vpop.f32.mrf.mxu1 }
0x19d7   :  { %v4632_v59 = vpop.f32.mrf.mxu1 }
0x19d9   :  { %v4633_v34 = vpop.f32.mrf.mxu1 }
0x1a58   :  { %v4443_v54 = vpop.xlane.xlu0 %4442 }
0x1a59   :  { %v4444_v17 = vsub.f32 %v4440_v27, %v4443_v54 }
0x1a5b   :  { %v4445_v32 = vmul.f32 1.442695, %v4444_v17 }
0x1a5d   :  { %9199 = vpow2.f32 %v4445_v32 }
0x1a6a   :  { %v9200_v25 = vpop.eup %9199 }
0x1a6b   :  { %v4447_v49 = vsel %vm832_vm11, %v9200_v25, 0.0 }
0x1a6c   :  { %4448 = vadd.xlane.f32.xlu1 %v4447_v49 }
0x1af5   :  { %v4449_v62 = vpop.xlane.xlu1 %4448 }
0x1af6   :  { %9201 = vrcp.f32 %v4449_v62 }
0x1b03   :  { %v9202_v50 = vpop.eup %9201 }
0x1b04   :  { %v4451_v41 = vmul.f32 %v9202_v50, %v9200_v25 }
0x1b06   :  { %4461 = vperm.xlu1 %8873, %v4451_v41   ;;  %4455 = vperm.xlu0 %8872, %v4451_v41  }
0x1b0a   :  { %8874 = vset.pattern.permute.xlu1 %v12397_v0  ;;  %8879 = vset.pattern.permute.xlu0 %v12401_v44 }
0x1b0b   :  { %4468 = vperm.xlu1 %8874, %v4451_v41   ;;  %4503 = vperm.xlu0 %8879, %v4451_v41  }
0x1b0f   :  { %8875 = vset.pattern.permute.xlu1 %v12396_v1  ;;  %8881 = vset.pattern.permute.xlu0 %v12402_v63 }
0x1b10   :  { %4475 = vperm.xlu1 %8875, %v4451_v41  }
0x1b14   :  { %8876 = vset.pattern.permute.xlu1 %v12398_v14 }
0x1b15   :  { %4482 = vperm.xlu1 %8876, %v4451_v41  }
0x1b19   :  { %8877 = vset.pattern.permute.xlu1 %v12399_v36 }
0x1b1a   :  { %4489 = vperm.xlu1 %8877, %v4451_v41  }
0x1b1e   :  { %8878 = vset.pattern.permute.xlu1 %v12400_v4 }
0x1b1f   :  { %4496 = vperm.xlu1 %8878, %v4451_v41  }
0x1b23   :  { %8880 = vset.pattern.permute.xlu1 %v12345_v8 }
0x1b81   :  { %v4462_v54 = vpop.permute.xlu1 %4461  ;;  %v4456_v27 = vpop.permute.xlu0 %4455 }
0x1b82   :  { %v4464_v3 = vmul.f32 %v4462_v54, %v11134_v13  ;;  %v4458_v31 = vmul.f32 %v4456_v27, %v11136_v57  ;;  %v11320_v27 = vld [vmem:[#allocation2 + $0x38] sm:$0xff] }
0x1b84   :  { %v4465_v34 = vadd.f32 %v4464_v3, %v4458_v31 }
0x1b86   :  { %v4469_v17 = vpop.permute.xlu1 %4468  ;;  %v4504_v4 = vpop.permute.xlu0 %4503 }
0x1b87   :  { %v4471_v59 = vmul.f32 %v4469_v17, %v11140_v2  ;;  %v4506_v17 = vmul.f32 %v4504_v4, %v11320_v27 }
0x1b89   :  { %v4472_v49 = vadd.f32 %v4471_v59, %v4465_v34  ;;  %v11359_v59 = vld [vmem:[%s12358_s19 + $0x28] ss:$16 sps:$4 sm:$0xff]   ;;  %v11364_v34 = vld [vmem:[%s12358_s19 + $0xc] ss:$16 sps:$4 sm:$0xff]  }
0x1b8a   :  { %12413 = vst [vmem:[#allocation82_spill] sm:$0xff] %v11359_v59  ;;  %12414 = vst [vmem:[#allocation85_spill] sm:$0xff] %v11364_v34 }
0x1b8b   :  { %v4476_v32 = vpop.permute.xlu1 %4475 }
0x1b8c   :  { %v4478_v25 = vmul.f32 %v4476_v32, %v11143_v48 }
0x1b8e   :  { %v4479_v41 = vadd.f32 %v4478_v25, %v4472_v49  ;;  %v11368_v25 = vld [vmem:[%s12358_s19 + $0x8] ss:$16 sps:$4 sm:$0xff]   ;;  %v4545_v49 = vadd.f32 %v11297_v10, %v10862_v11 }
0x1b8f   :  { %12415 = vst [vmem:[#allocation86_spill] sm:$0xff] %v11368_v25 }
0x1b90   :  { %v4483_v20 = vpop.permute.xlu1 %4482 }
0x1b91   :  { %v4485_v62 = vmul.f32 %v4483_v20, %v11146_v61  ;;  %v11353_v20 = vld [vmem:[%s12358_s19 + $0x2c] ss:$16 sps:$4 sm:$0xff]  }
0x1b92   :  { %12412 = vst [vmem:[#allocation83_spill] sm:$0xff] %v11353_v20 }
0x1b93   :  { %v4486_v44 = vadd.f32 %v4485_v62, %v4479_v41  ;;  %v4644_v62 = vsub.f32 0.0, %v4545_v49 }
0x1b95   :  { %v4490_v50 = vpop.permute.xlu1 %4489 }
0x1b96   :  { %v4492_v63 = vmul.f32 %v4490_v50, %v11149_v55  ;;  %v4645_v50 = vmul.f32 1.442695, %v4644_v62 }
0x1b98   :  { %v4493_v14 = vadd.f32 %v4492_v63, %v4486_v44  ;;  %v11342_v44 = vld [vmem:[#allocation39 + $0x28] ss:$16 sps:$4 sm:$0xff]   ;;  %v11346_v63 = vld [vmem:[#allocation39 + $0xc] ss:$16 sps:$4 sm:$0xff]   ;;  %9203 = vpow2.f32 %v4645_v50 }
0x1b99   :  { %v11378_v50 = vld [vmem:[#allocation30] ss:$0 sm:$0xff] }
0x1b9a   :  { %v4497_v36 = vpop.permute.xlu1 %4496 }
0x1b9b   :  { %v4499_v54 = vmul.f32 %v4497_v36, %v11152_v52  ;;  %v4543_v36 = vadd.f32 %v11295_v47, %v10811_v43  ;;  %v11349_v47 = vld [vmem:[#allocation39 + $0x8] ss:$16 sps:$4 sm:$0xff]  }
0x1b9d   :  { %v4500_v3 = vadd.f32 %v4499_v54, %v4493_v14  ;;  %v4656_v4 = vpack.c.bf16 %v4543_v36, %v4543_v36  ;;  %v11338_v14 = vld [vmem:[#allocation39 + $0x2c] ss:$16 sps:$4 sm:$0xff]  }
0x1b9f   :  { %v11323_v31 = vadd.f32 %v4506_v17, %v4500_v3 }
0x1ba1   :  { %12411 = vst [vmem:[#allocation80_spill] sm:$0xff] %v11323_v31  ;;  %v4549_v32 = vpack.c.bf16 %v11323_v31, %v11323_v31 }
0x1ba3   :  { %8274 = vmatmul.mubr.msk.bf16.vlgmr.msra.gmra.mxu0 %vm938_vm10, %v4549_v32 }
0x1ba4   :  { %8614 = vmatpush3.bf16.msra.mxu0 %v10814_v33  ;;  %8615 = vmatprep.mubr.msk.bf16.mxu0 %vm10026_vm7, %v12346_v45 }
0x1ba5   :  { %8627 = vmatprep.subr.bf16.mxu0 %v12346_v45  ;;  %v9204_v10 = vpop.eup %9203 }
0x1bab   :  { %8616 = vmatmul.mubr.msk.bf16.vlgmr.msra.gmra.mxu0 %vm832_vm11, %v4656_v4 }
0x1bac   :  { %8628 = vmatpush3.bf16.msra.mxu0 %v10825_v58  ;;  %8629 = vmatprep.mubr.msk.bf16.mxu0 %vm10026_vm7, %v12346_v45 }
0x1bad   :  { %4849 = vmatprep.subr.bf16.mxu0 %v11338_v14 }
0x1bb3   :  { %8630 = vmatmul.mubr.msk.bf16.vlgmr.msra.gmra.mxu0 %vm832_vm11, %v4656_v4 }
0x1bb4   :  { %4850 = vmatpush1.bf16.msra.mxu0 %v11342_v44  ;;  %4869 = vmatprep.mubr.bf16.mxu0 %v12345_v8 }
0x1bb5   :  { %4851 = vmatprep.subr.bf16.mxu0 %v11346_v63 }
0x1bb8   :  { %4852 = vmatpush1.bf16.msra.mxu0 %v11349_v47 }
0x1bb9   :  { %4934 = vmatprep.subr.bf16.mxu0 %v11353_v20 }
0x1bbb   :  { %8281 = vmatmul.mubr.msk.bf16.vlgmr.msra.gmra.mxu0 %vm938_vm10, %v11251_v60 }
0x1bbc   :  { %4935 = vmatpush1.bf16.msra.mxu0 %v11359_v59  ;;  %4954 = vmatprep.mubr.bf16.mxu0 %v12345_v8 }
0x1bbd   :  { %4936 = vmatprep.subr.bf16.mxu0 %v11364_v34 }
0x1bc0   :  { %4937 = vmatpush1.bf16.msra.mxu0 %v11368_v25 }
0x1bc1   :  { %5122 = vmatprep.subr.bf16.mxu0 %v11184_v24 }
0x1c63   :  { %v4587_v41 = vpop.f32.mrf.mxu0 }
0x1c64   :  { %v4629_v54 = vadd.f32 %v11300_v56, %v4587_v41 }
0x1c65   :  { %v4589_v17 = vpop.f32.mrf.mxu0 }
0x1c66   :  { %v4635_v3 = vadd.f32 %v4629_v54, %v10867_v15  ;;  %v4631_v32 = vadd.f32 %v11302_v26, %v4589_v17 }
0x1c67   :  { %v4591_v4 = vpop.f32.mrf.mxu0 }
0x1c68   :  { %v4642_v31 = vsub.f32 %v4635_v3, %v4543_v36  ;;  %v4636_v25 = vadd.f32 %v4631_v32, %v10870_v18  ;;  %v11403_v32 = vld [vmem:[%s12358_s19 + $0x20] ss:$16 sps:$4 sm:$0xff]   ;;  %v11408_v4 = vld [vmem:[%s12358_s19 + $0x4] ss:$16 sps:$4 sm:$0xff]  }
0x1c69   :  { %v4592_v34 = vpop.f32.mrf.mxu0  ;;  %12419 = vst [vmem:[#allocation99_spill] sm:$0xff] %v11403_v32  ;;  %12420 = vst [vmem:[#allocation100_spill] sm:$0xff] %v11408_v4 }
0x1c6a   :  { %v4643_v24 = vmul.f32 %v4642_v31, %v4642_v31  ;;  %v4637_v59 = vsub.f32 %v4545_v49, %v4636_v25  ;;  %v4638_v20 = vsub.f32 %v4636_v25, %v4545_v49  ;;  %v11386_v34 = vld [vmem:[#allocation39 + $0x20] ss:$16 sps:$4 sm:$0xff]   ;;  %v11397_v49 = vld [vmem:[%s12358_s19 + $0x24] ss:$16 sps:$4 sm:$0xff]  }
0x1c6b   :  { %v4694_v11 = vpop.f32.mrf.mxu0  ;;  %v11393_v25 = vld [vmem:[#allocation39] ss:$16 sps:$4 sm:$0xff]   ;;  %12418 = vst [vmem:[#allocation98_spill] sm:$0xff] %v11397_v49 }
0x1c6c   :  { %v4639_v62 = vmul.f32 1.442695, %v4638_v20  ;;  %v11381_v56 = vadd.f32 %v11378_v50, %v4694_v11  ;;  %v4647_v41 = vmul.f32 %v9204_v10, %v4643_v24  ;;  %v11390_v11 = vld [vmem:[#allocation39 + $0x4] ss:$16 sps:$4 sm:$0xff]   ;;  %12417 = vst [vmem:[#allocation97_spill] sm:$0xff] %v11393_v25 }
0x1c6d   :  { %v8617_v54 = vpop.f32.mrf.mxu0 }
0x1c6e   :  { %12416 = vst [vmem:[#allocation87_spill] sm:$0xff] %v11381_v56  ;;  %9205 = vpow2.f32 %v4639_v62  ;;  %v4709_v26 = vpack.c.bf16 %v11381_v56, %v11381_v56 }
0x1c6f   :  { %v4697_v36 = vpop.f32.mrf.mxu0 }
0x1c70   :  { %8624 = vmatmul.mubr.msk.bf16.vlgmr.msra.gmra.mxu1 %vm938_vm10, %v4709_v26  ;;  %v11412_v36 = vld [vmem:[%s12358_s19] ss:$16 sps:$4 sm:$0xff]  }
0x1c71   :  { %v8618_v31 = vpop.f32.mrf.mxu0  ;;  %4809 = vmatpush1.bf16.msra.mxu1 %v11386_v34  ;;  %4828 = vmatprep.mubr.bf16.mxu1 %v12345_v8  ;;  %12421 = vst [vmem:[#allocation101_spill] sm:$0xff] %v11412_v36 }
0x1c72   :  { %4810 = vmatprep.subr.bf16.mxu1 %v11390_v11 }
0x1c73   :  { %v4788_v24 = vpop.f32.mrf.mxu0 }
0x1c75   :  { %v8631_v20 = vpop.f32.mrf.mxu0  ;;  %4811 = vmatpush1.bf16.msra.mxu1 %v11393_v25 }
0x1c76   :  { %4893 = vmatprep.subr.bf16.mxu1 %v11397_v49 }
0x1c77   :  { %v4791_v17 = vpop.f32.mrf.mxu0 }
0x1c78   :  { %8280 = vmatmul.mubr.msk.bf16.vlgmr.msra.gmra.mxu1 %vm938_vm10, %v11251_v60  ;;  %v4707_v17 = vld [vmem:[#allocation5 + $0x18] sm:$0xff] }
0x1c79   :  { %v8632_v3 = vpop.f32.mrf.mxu0  ;;  %4894 = vmatpush1.bf16.msra.mxu1 %v11403_v32  ;;  %4913 = vmatprep.mubr.bf16.mxu1 %v12345_v8 }
0x1c7a   :  { %4895 = vmatprep.subr.bf16.mxu1 %v11408_v4  ;;  %v4708_v3 = vadd.f32 %v4707_v17, %v10743_v46 }
0x1c7b   :  { %v9206_v10 = vpop.eup %9205  ;;  %v4871_v62 = vpop.f32.mrf.mxu0 }
0x1c7c   :  { %v4641_v54 = vadd.f32 %v9206_v10, %v4637_v59 }
0x1c7d   :  { %v4873_v26 = vpop.f32.mrf.mxu0  ;;  %4896 = vmatpush1.bf16.msra.mxu1 %v11412_v36 }
0x1c7e   :  { %8633 = vmatprep.subr.bf16.mxu1 %v12346_v45  ;;  %v11416_v60 = vadd.f32 %v4647_v41, %v4641_v54 }
0x1c7f   :  { %v4875_v31 = vpop.f32.mrf.mxu0 }
0x1c80   :  { %12422 = vst [vmem:[#allocation102_spill] sm:$0xff] %v11416_v60 }
0x1c81   :  { %v4876_v20 = vpop.f32.mrf.mxu0 }
0x1d30   :  { %v4747_v56 = vpop.f32.mrf.mxu1 }
0x1d31   :  { %v4753_v32 = vadd.f32 %v4747_v56, %v4708_v3 }
0x1d32   :  { %v8625_v4 = vpop.f32.mrf.mxu1 }
0x1d33   :  { %v4794_v49 = vadd.f32 %v4788_v24, %v4753_v32 }
0x1d34   :  { %v4750_v25 = vpop.f32.mrf.mxu1 }
0x1d35   :  { %v4795_v59 = vpack.c.bf16 %v4794_v49, %v4794_v49 }
0x1d36   :  { %v8626_v10 = vpop.f32.mrf.mxu1 }
0x1d37   :  { %8282 = vmatmul.mubr.msk.bf16.vlgmr.msra.gmra.mxu1 %vm938_vm10, %v4795_v59  ;;  %8283 = vmatmul.mubr.msk.bf16.vlgmr.msra.gmra.mxu0 %vm938_vm10, %v4795_v59 }
0x1d38   :  { %v4830_v36 = vpop.f32.mrf.mxu1  ;;  %8634 = vmatpush3.bf16.msra.mxu1 %v11217_v39  ;;  %5123 = vmatpush1.bf16.msra.mxu0 %v11220_v22 }
0x1d39   :  { %8635 = vmatprep.subr.bf16.mxu1 %v12346_v45  ;;  %5124 = vmatprep.subr.bf16.mxu0 %v11224_v12 }
0x1d3a   :  { %v4832_v41 = vpop.f32.mrf.mxu1  ;;  %8637 = vmatprep.mubr.msk.bf16.mxu1 %vm10026_vm7, %v12346_v45  ;;  %5142 = vmatprep.mubr.bf16.mxu0 %v12345_v8 }
0x1d3c   :  { %v4834_v56 = vpop.f32.mrf.mxu1  ;;  %8636 = vmatpush3.bf16.msra.mxu1 %v11231_v16  ;;  %5125 = vmatpush1.bf16.msra.mxu0 %v11234_v51 }
0x1d3d   :  { %5208 = vmatprep.subr.bf16.mxu0 %v11237_v30  ;;  %5167 = vmatprep.subr.bf16.mxu1 %v11240_v42 }
0x1d3e   :  { %v4835_v24 = vpop.f32.mrf.mxu1 }
0x1df7   :  { %v4915_v25 = vpop.f32.mrf.mxu1  ;;  %v4956_v49 = vpop.f32.mrf.mxu0 }
0x1df8   :  { %v4916_v32 = vadd.f32 %v4915_v25, %v4830_v36  ;;  %v4957_v51 = vadd.f32 %v4956_v49, %v4871_v62 }
0x1df9   :  { %v4917_v4 = vpop.f32.mrf.mxu1  ;;  %v4958_v54 = vpop.f32.mrf.mxu0 }
0x1dfa   :  { %v4963_v31 = vadd.f32 %v4916_v32, %v10942_v21  ;;  %v4918_v20 = vadd.f32 %v4917_v4, %v4832_v41  ;;  %v4959_v42 = vadd.f32 %v4958_v54, %v4873_v26  ;;  %v4965_v16 = vadd.f32 %v4957_v51, %v10956_v7 }
0x1dfb   :  { %v4919_v17 = vpop.f32.mrf.mxu1  ;;  %v4960_v3 = vpop.f32.mrf.mxu0 }
0x1dfc   :  { %v8284_v59 = vmul.f32 -1.442695, %v4963_v31  ;;  %v4964_v10 = vadd.f32 %v4918_v20, %v10945_v35  ;;  %v4966_v24 = vadd.f32 %v4959_v42, %v10951_v6 }
0x1dfd   :  { %v4920_v56 = vpop.f32.mrf.mxu1  ;;  %v4961_v60 = vpop.f32.mrf.mxu0 }
0x1dfe   :  { %9207 = vpow2.f32 %v8284_v59  ;;  %v8285_v30 = vmul.f32 -1.442695, %v4964_v10  ;;  %v8286_v36 = vmul.f32 -1.442695, %v4966_v24 }
0x1e00   :  { %9209 = vpow2.f32 %v8285_v30 }
0x1e01   :  { %9211 = vpow2.f32 %v8286_v36 }
0x1e0b   :  { %v9208_v25 = vpop.eup %9207 }
0x1e0c   :  { %v4970_v32 = vadd.f32 1.0, %v9208_v25 }
0x1e0d   :  { %v9210_v41 = vpop.eup %9209 }
0x1e0e   :  { %9213 = vrcp.f32 %v4970_v32  ;;  %v4976_v4 = vadd.f32 1.0, %v9210_v41  ;;  %v9212_v31 = vpop.eup %9211 }
0x1e0f   :  { %9215 = vtanh.f32 %v4965_v16  ;;  %v4983_v30 = vadd.f32 1.0, %v9212_v31  ;;  %v4998_v16 = vld [vmem:[#allocation4 + $0x20] sm:$0xff] }
0x1e10   :  { %9217 = vrcp.f32 %v4976_v4 }
0x1e11   :  { %9219 = vrcp.f32 %v4983_v30 }
0x1e1b   :  { %v9214_v60 = vpop.eup %9213 }
0x1e1c   :  { %v9216_v20 = vpop.eup %9215 }
0x1e1d   :  { %v9218_v17 = vpop.eup %9217  ;;  %v4987_v26 = vmul.f32 %v9216_v20, %v9214_v60 }
0x1e1e   :  { %v4986_v42 = vmul.f32 %v9218_v17, %v11248_v38  ;;  %v9220_v51 = vpop.eup %9219 }
0x1e20   :  { %v11437_v62 = vadd.f32 %v4987_v26, %v4986_v42 }
0x1e22   :  { %9221 = vtanh.f32 %v11437_v62 }
0x1e2f   :  { %v9222_v49 = vpop.eup %9221 }
0x1e30   :  { %v4990_v54 = vmul.f32 %v9222_v49, %v9220_v51 }
0x1e32   :  { %v11440_v3 = vpack.c.bf16 %v4990_v54, %v4990_v54 }
0x1e34   :  { %8638 = vmatmul.mubr.msk.bf16.vlgmr.msra.gmra.mxu1 %vm938_vm10, %v11440_v3  ;;  %8289 = vmatmul.mubr.msk.bf16.vlgmr.msra.gmra.mxu0 %vm938_vm10, %v11440_v3  ;;  %4993 = vst.msk [vmem:[#allocation41 + $0xc] sm:$0xf] %vm3186_vm13, %v11440_v3 }
0x1e35   :  { %5209 = vmatpush1.bf16.msra.mxu0 %v11259_v9  ;;  %5228 = vmatprep.mubr.bf16.mxu0 %v12345_v8 }
0x1e36   :  { %5210 = vmatprep.subr.bf16.mxu0 %v11263_v19  ;;  %5168 = vmatpush1.bf16.msra.mxu1 %v11266_v23 }
0x1e37   :  { %5169 = vmatprep.subr.bf16.mxu1 %v11269_v37  ;;  %5187 = vmatprep.mubr.bf16.mxu1 %v12345_v8 }
0x1e39   :  { %5211 = vmatpush1.bf16.msra.mxu0 %v11273_v5 }
0x1e3a   :  { %5170 = vmatpush1.bf16.msra.mxu1 %v11276_v28  ;;  %8647 = vmatprep.subr.bf16.mxu0 %v12346_v45 }
0x1e3b   :  { %8641 = vmatprep.subr.bf16.mxu1 %v12346_v45 }
0x1e3c   :  { %8291 = vmatmul.mubr.msk.bf16.vlgmr.msra.gmra.mxu0 %vm938_vm10, %v11440_v3 }
0x1e3d   :  { %8648 = vmatpush3.bf16.msra.mxu0 %v11283_v53  ;;  %8651 = vmatprep.mubr.msk.bf16.mxu0 %vm10026_vm7, %v12346_v45 }
0x1e3e   :  { %8649 = vmatprep.subr.bf16.mxu0 %v12346_v45 }
0x1e41   :  { %8650 = vmatpush3.bf16.msra.mxu0 %v11289_v40 }
0x1e42   :  { %5410 = vmatprep.subr.bf16.mxu0 %v11292_v29 }
0x1ef4   :  { %v5036_v38 = vpop.f32.mrf.mxu1  ;;  %v11466_v59 = vpop.f32.mrf.mxu0 }
0x1ef5   :  { %v5042_v10 = vadd.f32 %v5036_v38, %v4998_v16 }
0x1ef6   :  { %v8639_v56 = vpop.f32.mrf.mxu1  ;;  %v11468_v24 = vpop.f32.mrf.mxu0 }
0x1ef7   :  { %v5043_v36 = vsel %vm832_vm11, %v5042_v10, -inf  ;;  %v12423_v56 = vmov 4  }
0x1ef8   :  { %v5148_v25 = vpop.f32.mrf.mxu0  ;;  %5044 = vmax.xlane.f32.xlu1 %v5043_v36  ;;  %v5039_v32 = vpop.f32.mrf.mxu1  ;;  %v12425_v36 = vmov 6  }
0x1ef9   :  { %v12426_v25 = vmov 7  }
0x1efa   :  { %v8640_v41 = vpop.f32.mrf.mxu1  ;;  %v5149_v4 = vpop.f32.mrf.mxu0 }
0x1efc   :  { %v11471_v31 = vpop.f32.mrf.mxu0 }
0x1efe   :  { %v11473_v60 = vpop.f32.mrf.mxu0 }
0x1f00   :  { %v5234_v20 = vpop.f32.mrf.mxu0 }
0x1f02   :  { %v5235_v17 = vpop.f32.mrf.mxu0 }
0x1f81   :  { %v5045_v30 = vpop.xlane.xlu1 %5044 }
0x1f82   :  { %v5046_v26 = vsub.f32 %v5042_v10, %v5045_v30  ;;  %v12424_v10 = vmov 5  }
0x1f84   :  { %v5047_v42 = vmul.f32 1.442695, %v5046_v26 }
0x1f86   :  { %9223 = vpow2.f32 %v5047_v42 }
0x1f93   :  { %v9224_v51 = vpop.eup %9223 }
0x1f94   :  { %v5049_v49 = vsel %vm832_vm11, %v9224_v51, 0.0 }
0x1f95   :  { %5050 = vadd.xlane.f32.xlu0 %v5049_v49 }
0x201e   :  { %v5051_v54 = vpop.xlane.xlu0 %5050 }
0x201f   :  { %9225 = vrcp.f32 %v5051_v54 }
0x202c   :  { %v9226_v16 = vpop.eup %9225 }
0x202d   :  { %v5053_v38 = vmul.f32 %v9226_v16, %v9224_v51 }
0x202f   :  { %5063 = vperm.xlu0 %8881, %v5053_v38   ;;  %5057 = vperm.xlu1 %8880, %v5053_v38  }
0x2033   :  { %8882 = vset.pattern.permute.xlu1 %v12397_v0 }
0x2034   :  { %5070 = vperm.xlu1 %8882, %v5053_v38  }
0x2038   :  { %8883 = vset.pattern.permute.xlu1 %v12396_v1 }
0x2039   :  { %5077 = vperm.xlu1 %8883, %v5053_v38  }
0x203d   :  { %8884 = vset.pattern.permute.xlu1 %v12423_v56 }
0x203e   :  { %5084 = vperm.xlu1 %8884, %v5053_v38  }
0x2042   :  { %8885 = vset.pattern.permute.xlu1 %v12424_v10 }
0x2043   :  { %5091 = vperm.xlu1 %8885, %v5053_v38  }
0x2047   :  { %8886 = vset.pattern.permute.xlu1 %v12425_v36 }
0x2048   :  { %5098 = vperm.xlu1 %8886, %v5053_v38  }
0x204c   :  { %8887 = vset.pattern.permute.xlu1 %v12426_v25 }
0x204d   :  { %5105 = vperm.xlu1 %8887, %v5053_v38  }
0x2051   :  { %8888 = vset.pattern.permute.xlu1 %v12345_v8 }
0x20aa   :  { %v5058_v32 = vpop.permute.xlu1 %5057  ;;  %v5064_v20 = vpop.permute.xlu0 %5063 }
0x20ab   :  { %v5066_v30 = vmul.f32 %v5064_v20, %v11134_v13  ;;  %v5060_v26 = vmul.f32 %v5058_v32, %v11136_v57 }
0x20ad   :  { %v5067_v49 = vadd.f32 %v5066_v30, %v5060_v26 }
0x20af   :  { %v5071_v41 = vpop.permute.xlu1 %5070 }
0x20b0   :  { %v5073_v42 = vmul.f32 %v5071_v41, %v11140_v2 }
0x20b2   :  { %v5074_v16 = vadd.f32 %v5073_v42, %v5067_v49 }
0x20b4   :  { %v5078_v4 = vpop.permute.xlu1 %5077 }
0x20b5   :  { %v5080_v54 = vmul.f32 %v5078_v4, %v11143_v48 }
0x20b7   :  { %v5081_v36 = vadd.f32 %v5080_v54, %v5074_v16 }
0x20b9   :  { %v5085_v17 = vpop.permute.xlu1 %5084 }
0x20ba   :  { %v5087_v38 = vmul.f32 %v5085_v17, %v11146_v61  ;;  %v12429_v61 = vld [vmem:[#allocation82_spill] sm:$0xff] }
0x20bc   :  { %v5088_v25 = vadd.f32 %v5087_v38, %v5081_v36 }
0x20be   :  { %v5092_v51 = vpop.permute.xlu1 %5091 }
0x20bf   :  { %v5094_v10 = vmul.f32 %v5092_v51, %v11149_v55  ;;  %v5145_v55 = vadd.f32 %v11466_v59, %v10811_v43  ;;  %v12431_v59 = vld [vmem:[#allocation86_spill] sm:$0xff] }
0x20c1   :  { %v5095_v56 = vadd.f32 %v5094_v10, %v5088_v25  ;;  %v12433_v10 = vld [vmem:[#allocation88_spill] sm:$0xff] }
0x20c2   :  { %v5147_v36 = vadd.f32 %v11468_v24, %v12433_v10 }
0x20c3   :  { %v5099_v1 = vpop.permute.xlu1 %5098 }
0x20c4   :  { %v5101_v0 = vmul.f32 %v5099_v1, %v11152_v52  ;;  %v5258_v1 = vpack.c.bf16 %v5145_v55, %v5145_v55  ;;  %v12430_v52 = vld [vmem:[#allocation85_spill] sm:$0xff]  ;;  %v5246_v25 = vsub.f32 0.0, %v5147_v36 }
0x20c6   :  { %v5102_v20 = vadd.f32 %v5101_v0, %v5095_v56  ;;  %v12428_v0 = vld [vmem:[#allocation83_spill] sm:$0xff]  ;;  %v12432_v56 = vld [vmem:[#allocation93_spill] sm:$0xff]  ;;  %v5247_v32 = vmul.f32 1.442695, %v5246_v25 }
0x20c8   :  { %v5106_v13 = vpop.permute.xlu1 %5105  ;;  %9227 = vpow2.f32 %v5247_v32  ;;  %v12435_v32 = vld [vmem:[#allocation97_spill] sm:$0xff] }
0x20c9   :  { %v5108_v57 = vmul.f32 %v5106_v13, %v11320_v27 }
0x20cb   :  { %v11491_v2 = vadd.f32 %v5108_v57, %v5102_v20 }
0x20cd   :  { %12427 = vst [vmem:[#allocation103_spill] sm:$0xff] %v11491_v2  ;;  %v5151_v48 = vpack.c.bf16 %v11491_v2, %v11491_v2 }
0x20cf   :  { %8290 = vmatmul.mubr.msk.bf16.vlgmr.msra.gmra.mxu1 %vm938_vm10, %v5151_v48 }
0x20d0   :  { %8642 = vmatpush3.bf16.msra.mxu1 %v10814_v33  ;;  %8643 = vmatprep.mubr.msk.bf16.mxu1 %vm10026_vm7, %v12346_v45 }
0x20d1   :  { %8655 = vmatprep.subr.bf16.mxu1 %v12346_v45 }
0x20d5   :  { %v9228_v24 = vpop.eup %9227 }
0x20d7   :  { %8644 = vmatmul.mubr.msk.bf16.vlgmr.msra.gmra.mxu1 %vm832_vm11, %v5258_v1 }
0x20d8   :  { %8656 = vmatpush3.bf16.msra.mxu1 %v10825_v58  ;;  %8657 = vmatprep.mubr.msk.bf16.mxu1 %vm10026_vm7, %v12346_v45 }
0x20d9   :  { %5451 = vmatprep.subr.bf16.mxu1 %v11338_v14 }
0x20df   :  { %8658 = vmatmul.mubr.msk.bf16.vlgmr.msra.gmra.mxu1 %vm832_vm11, %v5258_v1 }
0x20e0   :  { %5452 = vmatpush1.bf16.msra.mxu1 %v11342_v44  ;;  %5471 = vmatprep.mubr.bf16.mxu1 %v12345_v8 }
0x20e1   :  { %5453 = vmatprep.subr.bf16.mxu1 %v11346_v63 }
0x20e4   :  { %5454 = vmatpush1.bf16.msra.mxu1 %v11349_v47 }
0x20e5   :  { %5536 = vmatprep.subr.bf16.mxu1 %v12428_v0 }
0x20e7   :  { %8297 = vmatmul.mubr.msk.bf16.vlgmr.msra.gmra.mxu1 %vm938_vm10, %v11440_v3 }
0x20e8   :  { %5537 = vmatpush1.bf16.msra.mxu1 %v12429_v61  ;;  %5556 = vmatprep.mubr.bf16.mxu1 %v12345_v8 }
0x20e9   :  { %5538 = vmatprep.subr.bf16.mxu1 %v12430_v52 }
0x20ec   :  { %5539 = vmatpush1.bf16.msra.mxu1 %v12431_v59 }
0x20ed   :  { %5724 = vmatprep.subr.bf16.mxu1 %v12432_v56 }
0x218f   :  { %v5189_v41 = vpop.f32.mrf.mxu1 }
0x2190   :  { %v5231_v4 = vadd.f32 %v11471_v31, %v5189_v41  ;;  %v12436_v41 = vld [vmem:[#allocation98_spill] sm:$0xff] }
0x2191   :  { %v5191_v17 = vpop.f32.mrf.mxu1 }
0x2192   :  { %v5237_v30 = vadd.f32 %v5231_v4, %v10867_v15  ;;  %v5233_v26 = vadd.f32 %v11473_v60, %v5191_v17 }
0x2193   :  { %v5193_v42 = vpop.f32.mrf.mxu1 }
0x2194   :  { %v5244_v51 = vsub.f32 %v5237_v30, %v5145_v55  ;;  %v5238_v49 = vadd.f32 %v5233_v26, %v10870_v18  ;;  %v12437_v30 = vld [vmem:[#allocation99_spill] sm:$0xff]  ;;  %v12438_v26 = vld [vmem:[#allocation100_spill] sm:$0xff] }
0x2195   :  { %v5194_v54 = vpop.f32.mrf.mxu1 }
0x2196   :  { %v5245_v16 = vmul.f32 %v5244_v51, %v5244_v51  ;;  %v5239_v38 = vsub.f32 %v5147_v36, %v5238_v49  ;;  %v5240_v13 = vsub.f32 %v5238_v49, %v5147_v36 }
0x2197   :  { %v5296_v20 = vpop.f32.mrf.mxu1 }
0x2198   :  { %v5241_v57 = vmul.f32 1.442695, %v5240_v13  ;;  %v11527_v48 = vadd.f32 %v11378_v50, %v5296_v20  ;;  %v5249_v31 = vmul.f32 %v9228_v24, %v5245_v16  ;;  %v12439_v16 = vld [vmem:[#allocation101_spill] sm:$0xff] }
0x2199   :  { %v8645_v1 = vpop.f32.mrf.mxu1 }
0x219a   :  { %12434 = vst [vmem:[#allocation83_spill] sm:$0xff] %v11527_v48  ;;  %9229 = vpow2.f32 %v5241_v57  ;;  %v5311_v60 = vpack.c.bf16 %v11527_v48, %v11527_v48 }
0x219b   :  { %v5299_v56 = vpop.f32.mrf.mxu1 }
0x219c   :  { %8652 = vmatmul.mubr.msk.bf16.vlgmr.msra.gmra.mxu0 %vm938_vm10, %v5311_v60 }
0x219d   :  { %v8646_v55 = vpop.f32.mrf.mxu1  ;;  %5411 = vmatpush1.bf16.msra.mxu0 %v11386_v34  ;;  %5430 = vmatprep.mubr.bf16.mxu0 %v12345_v8 }
0x219e   :  { %5412 = vmatprep.subr.bf16.mxu0 %v11390_v11 }
0x219f   :  { %v5390_v36 = vpop.f32.mrf.mxu1 }
0x21a1   :  { %v8659_v25 = vpop.f32.mrf.mxu1  ;;  %5413 = vmatpush1.bf16.msra.mxu0 %v12435_v32 }
0x21a2   :  { %5495 = vmatprep.subr.bf16.mxu0 %v12436_v41 }
0x21a3   :  { %v5393_v4 = vpop.f32.mrf.mxu1 }
0x21a4   :  { %8296 = vmatmul.mubr.msk.bf16.vlgmr.msra.gmra.mxu0 %vm938_vm10, %v11440_v3  ;;  %v5309_v3 = vld [vmem:[#allocation5 + $0x20] sm:$0xff] }
0x21a5   :  { %v8660_v17 = vpop.f32.mrf.mxu1  ;;  %5496 = vmatpush1.bf16.msra.mxu0 %v12437_v30  ;;  %5515 = vmatprep.mubr.bf16.mxu0 %v12345_v8  ;;  %v5310_v57 = vadd.f32 %v5309_v3, %v10743_v46 }
0x21a6   :  { %5497 = vmatprep.subr.bf16.mxu0 %v12438_v26 }
0x21a7   :  { %v9230_v42 = vpop.eup %9229  ;;  %v5473_v51 = vpop.f32.mrf.mxu1 }
0x21a8   :  { %v5243_v49 = vadd.f32 %v9230_v42, %v5239_v38  ;;  %v12441_v42 = vld [vmem:[#allocation78_spill] sm:$0xff] }
0x21a9   :  { %v5475_v54 = vpop.f32.mrf.mxu1  ;;  %5498 = vmatpush1.bf16.msra.mxu0 %v12439_v16 }
0x21aa   :  { %8661 = vmatprep.subr.bf16.mxu0 %v12346_v45  ;;  %v11544_v13 = vadd.f32 %v5249_v31, %v5243_v49  ;;  %v12442_v49 = vld [vmem:[#allocation76_spill] sm:$0xff] }
0x21ab   :  { %v5477_v24 = vpop.f32.mrf.mxu1 }
0x21ac   :  { %12440 = vst [vmem:[#allocation82_spill] sm:$0xff] %v11544_v13  ;;  %v12443_v24 = vld [vmem:[#allocation79_spill] sm:$0xff] }
0x21ad   :  { %v5478_v20 = vpop.f32.mrf.mxu1 }
0x225c   :  { %v5349_v1 = vpop.f32.mrf.mxu0 }
0x225d   :  { %v5355_v60 = vadd.f32 %v5349_v1, %v5310_v57 }
0x225e   :  { %v8653_v56 = vpop.f32.mrf.mxu0 }
0x225f   :  { %v5396_v55 = vadd.f32 %v5390_v36, %v5355_v60 }
0x2260   :  { %v5352_v25 = vpop.f32.mrf.mxu0 }
0x2261   :  { %v5397_v4 = vpack.c.bf16 %v5396_v55, %v5396_v55 }
0x2262   :  { %v8654_v17 = vpop.f32.mrf.mxu0 }
0x2263   :  { %8298 = vmatmul.mubr.msk.bf16.vlgmr.msra.gmra.mxu0 %vm938_vm10, %v5397_v4  ;;  %8299 = vmatmul.mubr.msk.bf16.vlgmr.msra.gmra.mxu1 %vm938_vm10, %v5397_v4 }
0x2264   :  { %v5432_v38 = vpop.f32.mrf.mxu0  ;;  %8662 = vmatpush3.bf16.msra.mxu0 %v11217_v39  ;;  %5725 = vmatpush1.bf16.msra.mxu1 %v11220_v22  ;;  %v12444_v39 = vld [vmem:[#allocation81_spill] sm:$0xff] }
0x2265   :  { %8663 = vmatprep.subr.bf16.mxu0 %v12346_v45  ;;  %5726 = vmatprep.subr.bf16.mxu1 %v11224_v12 }
0x2266   :  { %v5434_v31 = vpop.f32.mrf.mxu0  ;;  %8665 = vmatprep.mubr.msk.bf16.mxu0 %vm10026_vm7, %v12346_v45  ;;  %5744 = vmatprep.mubr.bf16.mxu1 %v12345_v8 }
0x2268   :  { %v5436_v36 = vpop.f32.mrf.mxu0  ;;  %8664 = vmatpush3.bf16.msra.mxu0 %v12441_v42  ;;  %5727 = vmatpush1.bf16.msra.mxu1 %v12442_v49 }
0x2269   :  { %5810 = vmatprep.subr.bf16.mxu1 %v12443_v24  ;;  %5769 = vmatprep.subr.bf16.mxu0 %v12444_v39 }
0x226a   :  { %v5437_v22 = vpop.f32.mrf.mxu0 }
0x2323   :  { %v5517_v20 = vpop.f32.mrf.mxu0  ;;  %v5558_v3 = vpop.f32.mrf.mxu1 }
0x2324   :  { %v5518_v57 = vadd.f32 %v5517_v20, %v5432_v38  ;;  %v5559_v22 = vadd.f32 %v5558_v3, %v5473_v51 }
0x2325   :  { %v5519_v12 = vpop.f32.mrf.mxu0  ;;  %v5560_v1 = vpop.f32.mrf.mxu1 }
0x2326   :  { %v5565_v60 = vadd.f32 %v5518_v57, %v10942_v21  ;;  %v5520_v56 = vadd.f32 %v5519_v12, %v5434_v31  ;;  %v5561_v24 = vadd.f32 %v5560_v1, %v5475_v54  ;;  %v5567_v2 = vadd.f32 %v5559_v22, %v10956_v7 }
0x2327   :  { %v5521_v55 = vpop.f32.mrf.mxu0  ;;  %v5562_v25 = vpop.f32.mrf.mxu1 }
0x2328   :  { %v8300_v4 = vmul.f32 -1.442695, %v5565_v60  ;;  %v5566_v17 = vadd.f32 %v5520_v56, %v10945_v35  ;;  %v5568_v39 = vadd.f32 %v5561_v24, %v10951_v6 }
0x2329   :  { %v5522_v36 = vpop.f32.mrf.mxu0  ;;  %v5563_v42 = vpop.f32.mrf.mxu1 }
0x232a   :  { %9231 = vpow2.f32 %v8300_v4  ;;  %v8301_v49 = vmul.f32 -1.442695, %v5566_v17  ;;  %v8302_v38 = vmul.f32 -1.442695, %v5568_v39 }
0x232c   :  { %9233 = vpow2.f32 %v8301_v49 }
0x232d   :  { %9235 = vpow2.f32 %v8302_v38 }
0x2337   :  { %v9232_v20 = vpop.eup %9231 }
0x2338   :  { %v5572_v57 = vadd.f32 1.0, %v9232_v20 }
0x2339   :  { %v9234_v31 = vpop.eup %9233 }
0x233a   :  { %9237 = vrcp.f32 %v5572_v57  ;;  %v5578_v12 = vadd.f32 1.0, %v9234_v31  ;;  %v9236_v60 = vpop.eup %9235 }
0x233b   :  { %9239 = vtanh.f32 %v5567_v2  ;;  %v5585_v4 = vadd.f32 1.0, %v9236_v60 }
0x233c   :  { %9241 = vrcp.f32 %v5578_v12 }
0x233d   :  { %9243 = vrcp.f32 %v5585_v4  ;;  %v12446_v4 = vmov 2  }
0x2347   :  { %v9238_v56 = vpop.eup %9237 }
0x2348   :  { %v9240_v55 = vpop.eup %9239 }
0x2349   :  { %v9242_v25 = vpop.eup %9241  ;;  %v5589_v54 = vmul.f32 %v9240_v55, %v9238_v56 }
0x234a   :  { %v5588_v1 = vmul.f32 %v9242_v25, %v11437_v62  ;;  %v9244_v3 = vpop.eup %9243  ;;  %v12445_v25 = vmov 4  }
0x234c   :  { %v11565_v51 = vadd.f32 %v5589_v54, %v5588_v1  ;;  %v12447_v54 = vmov 7   ;;  %v12448_v1 = vmov 3  }
0x234e   :  { %9245 = vtanh.f32 %v11565_v51 }
0x235b   :  { %v9246_v17 = vpop.eup %9245 }
0x235c   :  { %v5592_v36 = vmul.f32 %v9246_v17, %v9244_v3  ;;  %v12449_v3 = vmov 5   ;;  %v12450_v17 = vmov 1  }
0x235e   :  { %v11568_v42 = vpack.c.bf16 %v5592_v36, %v5592_v36  ;;  %v12451_v36 = vmov 6  }
0x2360   :  { %8666 = vmatmul.mubr.msk.bf16.vlgmr.msra.gmra.mxu0 %vm938_vm10, %v11568_v42  ;;  %8305 = vmatmul.mubr.msk.bf16.vlgmr.msra.gmra.mxu1 %vm938_vm10, %v11568_v42  ;;  %5595 = vst.msk [vmem:[#allocation41 + $0x10] sm:$0xf] %vm3186_vm13, %v11568_v42 }
0x2361   :  { %5811 = vmatpush1.bf16.msra.mxu1 %v11259_v9  ;;  %5830 = vmatprep.mubr.bf16.mxu1 %v12345_v8  ;;  %v5600_v9 = vld [vmem:[#allocation4 + $0x28] sm:$0xff] }
0x2362   :  { %5812 = vmatprep.subr.bf16.mxu1 %v11263_v19  ;;  %5770 = vmatpush1.bf16.msra.mxu0 %v11266_v23 }
0x2363   :  { %5771 = vmatprep.subr.bf16.mxu0 %v11269_v37  ;;  %5789 = vmatprep.mubr.bf16.mxu0 %v12345_v8 }
0x2365   :  { %5813 = vmatpush1.bf16.msra.mxu1 %v11273_v5 }
0x2366   :  { %5772 = vmatpush1.bf16.msra.mxu0 %v11276_v28  ;;  %8675 = vmatprep.subr.bf16.mxu1 %v12346_v45 }
0x2367   :  { %8669 = vmatprep.subr.bf16.mxu0 %v12346_v45 }
0x2368   :  { %8307 = vmatmul.mubr.msk.bf16.vlgmr.msra.gmra.mxu1 %vm938_vm10, %v11568_v42 }
0x2369   :  { %8676 = vmatpush3.bf16.msra.mxu1 %v11283_v53  ;;  %8679 = vmatprep.mubr.msk.bf16.mxu1 %vm10026_vm7, %v12346_v45 }
0x236a   :  { %8677 = vmatprep.subr.bf16.mxu1 %v12346_v45 }
0x236d   :  { %8678 = vmatpush3.bf16.msra.mxu1 %v11289_v40 }
0x236e   :  { %6012 = vmatprep.subr.bf16.mxu1 %v11292_v29 }
0x2420   :  { %v5638_v19 = vpop.f32.mrf.mxu0  ;;  %v11594_v23 = vpop.f32.mrf.mxu1 }
0x2421   :  { %v5644_v37 = vadd.f32 %v5638_v19, %v5600_v9 }
0x2422   :  { %v8667_v5 = vpop.f32.mrf.mxu0  ;;  %v11596_v28 = vpop.f32.mrf.mxu1 }
0x2423   :  { %v5645_v62 = vsel %vm832_vm11, %v5644_v37, -inf  ;;  %v11614_v5 = vld [vmem:[#allocation2] sm:$0xff] }
0x2424   :  { %v5750_v53 = vpop.f32.mrf.mxu1  ;;  %5646 = vmax.xlane.f32.xlu1 %v5645_v62  ;;  %v5641_v2 = vpop.f32.mrf.mxu0  ;;  %12452 = vst [vmem:[#allocation85_spill] sm:$0xff] %v11614_v5 }
0x2426   :  { %v8668_v49 = vpop.f32.mrf.mxu0  ;;  %v5751_v24 = vpop.f32.mrf.mxu1 }
0x2427   :  { %v11618_v49 = vld [vmem:[#allocation2 + $0x10] sm:$0xff] }
0x2428   :  { %v11599_v39 = vpop.f32.mrf.mxu1 }
0x242a   :  { %v11601_v40 = vpop.f32.mrf.mxu1 }
0x242c   :  { %v5836_v29 = vpop.f32.mrf.mxu1 }
0x242e   :  { %v5837_v22 = vpop.f32.mrf.mxu1 }
0x242f   :  { %v11621_v22 = vld [vmem:[#allocation2 + $0x18] sm:$0xff] }
0x24ad   :  { %v5647_v38 = vpop.xlane.xlu1 %5646 }
0x24ae   :  { %v5648_v20 = vsub.f32 %v5644_v37, %v5647_v38  ;;  %v11612_v37 = vld [vmem:[#allocation2 + $0x8] sm:$0xff] }
0x24b0   :  { %v5649_v57 = vmul.f32 1.442695, %v5648_v20 }
0x24b2   :  { %9247 = vpow2.f32 %v5649_v57 }
0x24bf   :  { %v9248_v31 = vpop.eup %9247 }
0x24c0   :  { %v5651_v12 = vsel %vm832_vm11, %v9248_v31, 0.0 }
0x24c1   :  { %5652 = vadd.xlane.f32.xlu0 %v5651_v12 }
0x254a   :  { %v5653_v60 = vpop.xlane.xlu0 %5652 }
0x254b   :  { %9249 = vrcp.f32 %v5653_v60  ;;  %v11624_v60 = vld [vmem:[#allocation2 + $0x20] sm:$0xff] }
0x2558   :  { %v9250_v56 = vpop.eup %9249 }
0x2559   :  { %v5655_v55 = vmul.f32 %v9250_v56, %v9248_v31 }
0x255b   :  { %5665 = vperm.xlu0 %8881, %v5655_v55   ;;  %5659 = vperm.xlu1 %8888, %v5655_v55  }
0x255f   :  { %8891 = vset.pattern.permute.xlu0 %v12445_v25  ;;  %8889 = vset.pattern.permute.xlu1 %v12446_v4 }
0x2560   :  { %5686 = vperm.xlu0 %8891, %v5655_v55   ;;  %5672 = vperm.xlu1 %8889, %v5655_v55  }
0x2564   :  { %8894 = vset.pattern.permute.xlu0 %v12447_v54  ;;  %8890 = vset.pattern.permute.xlu1 %v12448_v1 }
0x2565   :  { %5707 = vperm.xlu0 %8894, %v5655_v55   ;;  %5679 = vperm.xlu1 %8890, %v5655_v55  }
0x2569   :  { %8892 = vset.pattern.permute.xlu1 %v12449_v3  ;;  %8896 = vset.pattern.permute.xlu0 %v12450_v17 }
0x256a   :  { %5693 = vperm.xlu1 %8892, %v5655_v55  }
0x256e   :  { %8893 = vset.pattern.permute.xlu1 %v12451_v36 }
0x256f   :  { %5700 = vperm.xlu1 %8893, %v5655_v55  }
0x2573   :  { %8895 = vset.pattern.permute.xlu1 %v12345_v8 }
0x25d6   :  { %v5660_v9 = vpop.permute.xlu1 %5659  ;;  %v5666_v19 = vpop.permute.xlu0 %5665 }
0x25d7   :  { %v5668_v62 = vmul.f32 %v5666_v19, %v11612_v37  ;;  %v5662_v53 = vmul.f32 %v5660_v9, %v11614_v5  ;;  %v11627_v9 = vld [vmem:[#allocation2 + $0x28] sm:$0xff] }
0x25d9   :  { %v5669_v29 = vadd.f32 %v5668_v62, %v5662_v53  ;;  %v11630_v62 = vld [vmem:[#allocation2 + $0x30] sm:$0xff] }
0x25db   :  { %v5673_v2 = vpop.permute.xlu1 %5672  ;;  %v5687_v31 = vpop.permute.xlu0 %5686 }
0x25dc   :  { %v5675_v24 = vmul.f32 %v5673_v2, %v11618_v49  ;;  %v5689_v56 = vmul.f32 %v5687_v31, %v11624_v60 }
0x25de   :  { %v5676_v20 = vadd.f32 %v5675_v24, %v5669_v29 }
0x25e0   :  { %v5680_v38 = vpop.permute.xlu1 %5679  ;;  %v5708_v2 = vpop.permute.xlu0 %5707 }
0x25e1   :  { %v5682_v57 = vmul.f32 %v5680_v38, %v11621_v22  ;;  %v5710_v29 = vmul.f32 %v5708_v2, %v11320_v27  ;;  %v11662_v27 = vld [vmem:[#allocation21 + $0x14] ss:$8 sps:$4 sm:$0xff]  }
0x25e2   :  { %12454 = vst [vmem:[#allocation93_spill] sm:$0xff] %v11662_v27 }
0x25e3   :  { %v5683_v12 = vadd.f32 %v5682_v57, %v5676_v20 }
0x25e5   :  { %v5694_v55 = vpop.permute.xlu1 %5693  ;;  %v5690_v19 = vadd.f32 %v5689_v56, %v5683_v12 }
0x25e6   :  { %v5696_v48 = vmul.f32 %v5694_v55, %v11627_v9 }
0x25e8   :  { %v5697_v13 = vadd.f32 %v5696_v48, %v5690_v19  ;;  %v5747_v48 = vadd.f32 %v11594_v23, %v10811_v43 }
0x25ea   :  { %v5701_v53 = vpop.permute.xlu1 %5700  ;;  %v5860_v31 = vpack.c.bf16 %v5747_v48, %v5747_v48 }
0x25eb   :  { %v5703_v24 = vmul.f32 %v5701_v53, %v11630_v62 }
0x25ed   :  { %v5704_v38 = vadd.f32 %v5703_v24, %v5697_v13 }
0x25ef   :  { %v11634_v20 = vadd.f32 %v5710_v29, %v5704_v38 }
0x25f1   :  { %12453 = vst [vmem:[#allocation86_spill] sm:$0xff] %v11634_v20  ;;  %v5753_v57 = vpack.c.bf16 %v11634_v20, %v11634_v20 }
0x25f3   :  { %8306 = vmatmul.mubr.msk.bf16.vlgmr.msra.gmra.mxu0 %vm938_vm10, %v5753_v57 }
0x25f4   :  { %8670 = vmatpush3.bf16.msra.mxu0 %v10814_v33  ;;  %8671 = vmatprep.mubr.msk.bf16.mxu0 %vm10026_vm7, %v12346_v45 }
0x25f5   :  { %8683 = vmatprep.subr.bf16.mxu0 %v12346_v45 }
0x25fb   :  { %8672 = vmatmul.mubr.msk.bf16.vlgmr.msra.gmra.mxu0 %vm832_vm11, %v5860_v31 }
0x25fc   :  { %8684 = vmatpush3.bf16.msra.mxu0 %v10825_v58  ;;  %8685 = vmatprep.mubr.msk.bf16.mxu0 %vm10026_vm7, %v12346_v45 }
0x25fd   :  { %6053 = vmatprep.subr.bf16.mxu0 %v11338_v14  ;;  %v5749_v14 = vadd.f32 %v11596_v28, %v12433_v10 }
0x2603   :  { %8686 = vmatmul.mubr.msk.bf16.vlgmr.msra.gmra.mxu0 %vm832_vm11, %v5860_v31 }
0x2604   :  { %6054 = vmatpush1.bf16.msra.mxu0 %v11342_v44  ;;  %6073 = vmatprep.mubr.bf16.mxu0 %v12345_v8  ;;  %v5848_v44 = vsub.f32 0.0, %v5749_v14 }
0x2605   :  { %6055 = vmatprep.subr.bf16.mxu0 %v11346_v63 }
0x2606   :  { %v5849_v63 = vmul.f32 1.442695, %v5848_v44 }
0x2608   :  { %6056 = vmatpush1.bf16.msra.mxu0 %v11349_v47  ;;  %9251 = vpow2.f32 %v5849_v63 }
0x2609   :  { %6138 = vmatprep.subr.bf16.mxu0 %v12428_v0 }
0x260b   :  { %8313 = vmatmul.mubr.msk.bf16.vlgmr.msra.gmra.mxu0 %vm938_vm10, %v11568_v42 }
0x260c   :  { %6139 = vmatpush1.bf16.msra.mxu0 %v12429_v61  ;;  %6158 = vmatprep.mubr.bf16.mxu0 %v12345_v8 }
0x260d   :  { %6140 = vmatprep.subr.bf16.mxu0 %v12430_v52 }
0x2610   :  { %6141 = vmatpush1.bf16.msra.mxu0 %v12431_v59 }
0x2611   :  { %6326 = vmatprep.subr.bf16.mxu0 %v11662_v27 }
0x2615   :  { %v9252_v28 = vpop.eup %9251 }
0x26b3   :  { %v5791_v47 = vpop.f32.mrf.mxu0 }
0x26b4   :  { %v5833_v0 = vadd.f32 %v11599_v39, %v5791_v47 }
0x26b5   :  { %v5793_v61 = vpop.f32.mrf.mxu0 }
0x26b6   :  { %v5839_v13 = vadd.f32 %v5833_v0, %v10867_v15  ;;  %v5835_v52 = vadd.f32 %v11601_v40, %v5793_v61  ;;  %v5911_v0 = vld [vmem:[#allocation5 + $0x28] sm:$0xff] }
0x26b7   :  { %v5795_v23 = vpop.f32.mrf.mxu0 }
0x26b8   :  { %v5846_v59 = vsub.f32 %v5839_v13, %v5747_v48  ;;  %v5840_v12 = vadd.f32 %v5835_v52, %v10870_v18 }
0x26b9   :  { %v5796_v56 = vpop.f32.mrf.mxu0 }
0x26ba   :  { %v5847_v55 = vmul.f32 %v5846_v59, %v5846_v59  ;;  %v5841_v19 = vsub.f32 %v5749_v14, %v5840_v12  ;;  %v5842_v2 = vsub.f32 %v5840_v12, %v5749_v14  ;;  %v11695_v56 = vld [vmem:[%s12347_s8 + $0x8] sm:$0xff]  }
0x26bb   :  { %v5898_v53 = vpop.f32.mrf.mxu0 }
0x26bc   :  { %v5843_v24 = vmul.f32 1.442695, %v5842_v2  ;;  %v11672_v29 = vadd.f32 %v11378_v50, %v5898_v53  ;;  %v5851_v39 = vmul.f32 %v9252_v28, %v5847_v55  ;;  %v11698_v55 = vld [vmem:[#allocation21 + $0x10] ss:$8 sps:$4 sm:$0xff]  }
0x26bd   :  { %v8673_v38 = vpop.f32.mrf.mxu0  ;;  %v11709_v53 = vld [vmem:[%s12347_s8] sm:$0xff]  }
0x26be   :  { %12455 = vst [vmem:[#allocation97_spill] sm:$0xff] %v11672_v29  ;;  %9253 = vpow2.f32 %v5843_v24  ;;  %v5913_v40 = vpack.c.bf16 %v11672_v29, %v11672_v29  ;;  %12457 = vst [vmem:[#allocation99_spill] sm:$0xff] %v11709_v53  ;;  %v11712_v24 = vld [vmem:[#allocation21] ss:$8 sps:$4 sm:$0xff]  }
0x26bf   :  { %v5901_v57 = vpop.f32.mrf.mxu0  ;;  %12458 = vst [vmem:[#allocation100_spill] sm:$0xff] %v11712_v24  ;;  %v11718_v38 = vld [vmem:[#allocation26 + $0x14] ss:$8 sps:$4 sm:$0xff]  }
0x26c0   :  { %8680 = vmatmul.mubr.msk.bf16.vlgmr.msra.gmra.mxu1 %vm938_vm10, %v5913_v40  ;;  %12460 = vst [vmem:[#allocation78_spill] sm:$0xff] %v11718_v38 }
0x26c1   :  { %v8674_v48 = vpop.f32.mrf.mxu0  ;;  %6013 = vmatpush1.bf16.msra.mxu1 %v11386_v34  ;;  %6032 = vmatprep.mubr.bf16.mxu1 %v12345_v8 }
0x26c2   :  { %6014 = vmatprep.subr.bf16.mxu1 %v11390_v11 }
0x26c3   :  { %v5992_v31 = vpop.f32.mrf.mxu0 }
0x26c5   :  { %v8687_v14 = vpop.f32.mrf.mxu0  ;;  %6015 = vmatpush1.bf16.msra.mxu1 %v12435_v32 }
0x26c6   :  { %6097 = vmatprep.subr.bf16.mxu1 %v12436_v41 }
0x26c7   :  { %v5995_v50 = vpop.f32.mrf.mxu0 }
0x26c8   :  { %8312 = vmatmul.mubr.msk.bf16.vlgmr.msra.gmra.mxu1 %vm938_vm10, %v11568_v42 }
0x26c9   :  { %v8688_v44 = vpop.f32.mrf.mxu0  ;;  %6098 = vmatpush1.bf16.msra.mxu1 %v12437_v30  ;;  %6117 = vmatprep.mubr.bf16.mxu1 %v12345_v8  ;;  %v5912_v30 = vadd.f32 %v5911_v0, %v10743_v46 }
0x26ca   :  { %6099 = vmatprep.subr.bf16.mxu1 %v12438_v26 }
0x26cb   :  { %v9254_v34 = vpop.eup %9253  ;;  %v6075_v63 = vpop.f32.mrf.mxu0 }
0x26cc   :  { %v5845_v11 = vadd.f32 %v9254_v34, %v5841_v19  ;;  %v11702_v19 = vld [vmem:[#allocation21 + $0x4] ss:$8 sps:$4 sm:$0xff]  }
0x26cd   :  { %v6077_v47 = vpop.f32.mrf.mxu0  ;;  %6100 = vmatpush1.bf16.msra.mxu1 %v12439_v16 }
0x26ce   :  { %8689 = vmatprep.subr.bf16.mxu1 %v12346_v45  ;;  %v11689_v32 = vadd.f32 %v5851_v39, %v5845_v11  ;;  %v11715_v39 = vld [vmem:[#allocation24 + $0x14] ss:$8 sps:$4 sm:$0xff]  }
0x26cf   :  { %v6079_v41 = vpop.f32.mrf.mxu0  ;;  %12459 = vst [vmem:[#allocation101_spill] sm:$0xff] %v11715_v39 }
0x26d0   :  { %12456 = vst [vmem:[#allocation98_spill] sm:$0xff] %v11689_v32 }
0x26d1   :  { %v6080_v42 = vpop.f32.mrf.mxu0 }
0x2780   :  { %v5951_v61 = vpop.f32.mrf.mxu1 }
0x2781   :  { %v5957_v13 = vadd.f32 %v5951_v61, %v5912_v30 }
0x2782   :  { %v8681_v52 = vpop.f32.mrf.mxu1 }
0x2783   :  { %v5998_v26 = vadd.f32 %v5992_v31, %v5957_v13 }
0x2784   :  { %v5954_v23 = vpop.f32.mrf.mxu1 }
0x2785   :  { %v5999_v59 = vpack.c.bf16 %v5998_v26, %v5998_v26 }
0x2786   :  { %v8682_v12 = vpop.f32.mrf.mxu1 }
0x2787   :  { %8314 = vmatmul.mubr.msk.bf16.vlgmr.msra.gmra.mxu1 %vm938_vm10, %v5999_v59  ;;  %8315 = vmatmul.mubr.msk.bf16.vlgmr.msra.gmra.mxu0 %vm938_vm10, %v5999_v59 }
0x2788   :  { %v6034_v16 = vpop.f32.mrf.mxu1  ;;  %8690 = vmatpush3.bf16.msra.mxu1 %v11695_v56  ;;  %6327 = vmatpush1.bf16.msra.mxu0 %v11698_v55 }
0x2789   :  { %8691 = vmatprep.subr.bf16.mxu1 %v12346_v45  ;;  %6328 = vmatprep.subr.bf16.mxu0 %v11702_v19 }
0x278a   :  { %v6036_v2 = vpop.f32.mrf.mxu1  ;;  %8693 = vmatprep.mubr.msk.bf16.mxu1 %vm10026_vm7, %v12346_v45  ;;  %6346 = vmatprep.mubr.bf16.mxu0 %v12345_v8 }
0x278c   :  { %v6038_v28 = vpop.f32.mrf.mxu1  ;;  %8692 = vmatpush3.bf16.msra.mxu1 %v11709_v53  ;;  %6329 = vmatpush1.bf16.msra.mxu0 %v11712_v24 }
0x278d   :  { %6412 = vmatprep.subr.bf16.mxu0 %v11715_v39  ;;  %6371 = vmatprep.subr.bf16.mxu1 %v11718_v38 }
0x278e   :  { %v6039_v40 = vpop.f32.mrf.mxu1 }
0x2847   :  { %v6119_v57 = vpop.f32.mrf.mxu1  ;;  %v6160_v48 = vpop.f32.mrf.mxu0 }
0x2848   :  { %v6120_v31 = vadd.f32 %v6119_v57, %v6034_v16  ;;  %v6161_v23 = vadd.f32 %v6160_v48, %v6075_v63 }
0x2849   :  { %v6121_v14 = vpop.f32.mrf.mxu1  ;;  %v6162_v50 = vpop.f32.mrf.mxu0 }
0x284a   :  { %v6167_v44 = vadd.f32 %v6120_v31, %v10942_v21  ;;  %v6122_v34 = vadd.f32 %v6121_v14, %v6036_v2  ;;  %v6163_v52 = vadd.f32 %v6162_v50, %v6077_v47  ;;  %v6169_v16 = vadd.f32 %v6161_v23, %v10956_v7  ;;  %v11767_v23 = vld [vmem:[#allocation33] sm:$0xff]  }
0x284b   :  { %v6123_v11 = vpop.f32.mrf.mxu1  ;;  %v6164_v41 = vpop.f32.mrf.mxu0 }
0x284c   :  { %v8316_v42 = vmul.f32 -1.442695, %v6167_v44  ;;  %v6168_v0 = vadd.f32 %v6122_v34, %v10945_v35  ;;  %v6170_v26 = vadd.f32 %v6163_v52, %v10951_v6  ;;  %v11754_v52 = vld [vmem:[#allocation26] ss:$8 sps:$4 sm:$0xff]  }
0x284d   :  { %v6124_v30 = vpop.f32.mrf.mxu1  ;;  %v6165_v61 = vpop.f32.mrf.mxu0 }
0x284e   :  { %9255 = vpow2.f32 %v8316_v42  ;;  %v8317_v13 = vmul.f32 -1.442695, %v6168_v0  ;;  %v8318_v59 = vmul.f32 -1.442695, %v6170_v26  ;;  %v11741_v0 = vld [vmem:[#allocation24 + $0x4] ss:$8 sps:$4 sm:$0xff]  }
0x284f   :  { %v11744_v30 = vld [vmem:[#allocation26 + $0x10] ss:$8 sps:$4 sm:$0xff]   ;;  %v11747_v61 = vld [vmem:[#allocation26 + $0x4] ss:$8 sps:$4 sm:$0xff]  }
0x2850   :  { %9257 = vpow2.f32 %v8317_v13  ;;  %v11751_v13 = vld [vmem:[#allocation24] ss:$8 sps:$4 sm:$0xff]   ;;  %v11761_v26 = vld [vmem:[#allocation33 + $0x8] sm:$0xff]  }
0x2851   :  { %9259 = vpow2.f32 %v8318_v59  ;;  %v11770_v59 = vld [vmem:[#allocation39 + $0x24] ss:$16 sps:$4 sm:$0xff]  }
0x2852   :  { %12461 = vst [vmem:[#allocation76_spill] sm:$0xff] %v11770_v59 }
0x285b   :  { %v9256_v12 = vpop.eup %9255 }
0x285c   :  { %v6174_v28 = vadd.f32 1.0, %v9256_v12  ;;  %v6202_v12 = vld [vmem:[#allocation4 + $0x30] sm:$0xff] }
0x285d   :  { %v9258_v2 = vpop.eup %9257 }
0x285e   :  { %9261 = vrcp.f32 %v6174_v28  ;;  %v6180_v40 = vadd.f32 1.0, %v9258_v2  ;;  %v9260_v57 = vpop.eup %9259 }
0x285f   :  { %9263 = vtanh.f32 %v6169_v16  ;;  %v6187_v34 = vadd.f32 1.0, %v9260_v57 }
0x2860   :  { %9265 = vrcp.f32 %v6180_v40 }
0x2861   :  { %9267 = vrcp.f32 %v6187_v34 }
0x286b   :  { %v9262_v31 = vpop.eup %9261 }
0x286c   :  { %v9264_v14 = vpop.eup %9263 }
0x286d   :  { %v9266_v44 = vpop.eup %9265  ;;  %v6191_v47 = vmul.f32 %v9264_v14, %v9262_v31 }
0x286e   :  { %v6190_v50 = vmul.f32 %v9266_v44, %v11565_v51  ;;  %v9268_v48 = vpop.eup %9267  ;;  %v11737_v51 = vld [vmem:[#allocation24 + $0x10] ss:$8 sps:$4 sm:$0xff]  }
0x2870   :  { %v11726_v63 = vadd.f32 %v6191_v47, %v6190_v50 }
0x2872   :  { %9269 = vtanh.f32 %v11726_v63 }
0x287f   :  { %v9270_v11 = vpop.eup %9269 }
0x2880   :  { %v6194_v41 = vmul.f32 %v9270_v11, %v9268_v48 }
0x2882   :  { %v11729_v42 = vpack.c.bf16 %v6194_v41, %v6194_v41 }
0x2884   :  { %8694 = vmatmul.mubr.msk.bf16.vlgmr.msra.gmra.mxu1 %vm938_vm10, %v11729_v42  ;;  %8321 = vmatmul.mubr.msk.bf16.vlgmr.msra.gmra.mxu0 %vm938_vm10, %v11729_v42  ;;  %6197 = vst.msk [vmem:[#allocation41 + $0x14] sm:$0xf] %vm3186_vm13, %v11729_v42 }
0x2885   :  { %6413 = vmatpush1.bf16.msra.mxu0 %v11737_v51  ;;  %6432 = vmatprep.mubr.bf16.mxu0 %v12345_v8 }
0x2886   :  { %6414 = vmatprep.subr.bf16.mxu0 %v11741_v0  ;;  %6372 = vmatpush1.bf16.msra.mxu1 %v11744_v30 }
0x2887   :  { %6373 = vmatprep.subr.bf16.mxu1 %v11747_v61  ;;  %6391 = vmatprep.mubr.bf16.mxu1 %v12345_v8 }
0x2889   :  { %6415 = vmatpush1.bf16.msra.mxu0 %v11751_v13 }
0x288a   :  { %6374 = vmatpush1.bf16.msra.mxu1 %v11754_v52  ;;  %8703 = vmatprep.subr.bf16.mxu0 %v12346_v45 }
0x288b   :  { %8697 = vmatprep.subr.bf16.mxu1 %v12346_v45 }
0x288c   :  { %8323 = vmatmul.mubr.msk.bf16.vlgmr.msra.gmra.mxu0 %vm938_vm10, %v11729_v42 }
0x288d   :  { %8704 = vmatpush3.bf16.msra.mxu0 %v11761_v26  ;;  %8707 = vmatprep.mubr.msk.bf16.mxu0 %vm10026_vm7, %v12346_v45 }
0x288e   :  { %8705 = vmatprep.subr.bf16.mxu0 %v12346_v45 }
0x2891   :  { %8706 = vmatpush3.bf16.msra.mxu0 %v11767_v23 }
0x2892   :  { %6614 = vmatprep.subr.bf16.mxu0 %v11770_v59 }
0x2944   :  { %v6240_v16 = vpop.f32.mrf.mxu1  ;;  %v11773_v28 = vpop.f32.mrf.mxu0 }
0x2945   :  { %v6246_v2 = vadd.f32 %v6240_v16, %v6202_v12 }
0x2946   :  { %v8695_v40 = vpop.f32.mrf.mxu1  ;;  %v11775_v57 = vpop.f32.mrf.mxu0 }
0x2947   :  { %v6247_v31 = vsel %vm832_vm11, %v6246_v2, -inf }
0x2948   :  { %v6352_v14 = vpop.f32.mrf.mxu0  ;;  %6248 = vmax.xlane.f32.xlu1 %v6247_v31  ;;  %v6243_v44 = vpop.f32.mrf.mxu1 }
0x294a   :  { %v8696_v34 = vpop.f32.mrf.mxu1  ;;  %v6353_v47 = vpop.f32.mrf.mxu0 }
0x294c   :  { %v11778_v50 = vpop.f32.mrf.mxu0 }
0x294e   :  { %v11780_v48 = vpop.f32.mrf.mxu0 }
0x2950   :  { %v6438_v11 = vpop.f32.mrf.mxu0 }
0x2952   :  { %v6439_v41 = vpop.f32.mrf.mxu0 }
0x29d1   :  { %v6249_v20 = vpop.xlane.xlu1 %6248 }
0x29d2   :  { %v6250_v29 = vsub.f32 %v6246_v2, %v6249_v20 }
0x29d4   :  { %v6251_v32 = vmul.f32 1.442695, %v6250_v29 }
0x29d6   :  { %9271 = vpow2.f32 %v6251_v32 }
0x29e3   :  { %v9272_v12 = vpop.eup %9271 }
0x29e4   :  { %v6253_v16 = vsel %vm832_vm11, %v9272_v12, 0.0 }
0x29e5   :  { %6254 = vadd.xlane.f32.xlu0 %v6253_v16 }
0x2a6e   :  { %v6255_v40 = vpop.xlane.xlu0 %6254 }
0x2a6f   :  { %9273 = vrcp.f32 %v6255_v40 }
0x2a7c   :  { %v9274_v31 = vpop.eup %9273 }
0x2a7d   :  { %v6257_v14 = vmul.f32 %v9274_v31, %v9272_v12 }
0x2a7f   :  { %6267 = vperm.xlu0 %8896, %v6257_v14   ;;  %6261 = vperm.xlu1 %8895, %v6257_v14  }
0x2a83   :  { %8897 = vset.pattern.permute.xlu1 %v12446_v4  ;;  %8903 = vset.pattern.permute.xlu0 %v12345_v8 }
0x2a84   :  { %6274 = vperm.xlu1 %8897, %v6257_v14  }
0x2a88   :  { %8898 = vset.pattern.permute.xlu1 %v12448_v1 }
0x2a89   :  { %6281 = vperm.xlu1 %8898, %v6257_v14  }
0x2a8d   :  { %8899 = vset.pattern.permute.xlu1 %v12445_v25 }
0x2a8e   :  { %6288 = vperm.xlu1 %8899, %v6257_v14  }
0x2a92   :  { %8900 = vset.pattern.permute.xlu1 %v12449_v3 }
0x2a93   :  { %6295 = vperm.xlu1 %8900, %v6257_v14  }
0x2a97   :  { %8901 = vset.pattern.permute.xlu1 %v12451_v36 }
0x2a98   :  { %6302 = vperm.xlu1 %8901, %v6257_v14  }
0x2a9c   :  { %8902 = vset.pattern.permute.xlu1 %v12447_v54 }
0x2a9d   :  { %6309 = vperm.xlu1 %8902, %v6257_v14  }
0x2aa1   :  { %8904 = vset.pattern.permute.xlu1 %v12450_v17 }
0x2afa   :  { %v6262_v20 = vpop.permute.xlu1 %6261  ;;  %v6268_v2 = vpop.permute.xlu0 %6267 }
0x2afb   :  { %v6270_v34 = vmul.f32 %v6268_v2, %v11612_v37  ;;  %v6264_v47 = vmul.f32 %v6262_v20, %v11614_v5  ;;  %v11798_v2 = vld [vmem:[#allocation2 + $0x38] sm:$0xff] }
0x2afd   :  { %v6271_v12 = vadd.f32 %v6270_v34, %v6264_v47  ;;  %v11842_v47 = vld [vmem:[%s12358_s19 + $0xc] ss:$16 sps:$4 sm:$0xff]  }
0x2afe   :  { %12464 = vst [vmem:[#allocation104_spill] sm:$0xff] %v11842_v47 }
0x2aff   :  { %v6275_v29 = vpop.permute.xlu1 %6274 }
0x2b00   :  { %v6277_v11 = vmul.f32 %v6275_v29, %v11618_v49 }
0x2b02   :  { %v6278_v40 = vadd.f32 %v6277_v11, %v6271_v12  ;;  %v11846_v11 = vld [vmem:[%s12358_s19 + $0x8] ss:$16 sps:$4 sm:$0xff]  }
0x2b03   :  { %12465 = vst [vmem:[#allocation105_spill] sm:$0xff] %v11846_v11 }
0x2b04   :  { %v6282_v32 = vpop.permute.xlu1 %6281 }
0x2b05   :  { %v6284_v16 = vmul.f32 %v6282_v32, %v11621_v22 }
0x2b07   :  { %v6285_v14 = vadd.f32 %v6284_v16, %v6278_v40 }
0x2b09   :  { %v6289_v44 = vpop.permute.xlu1 %6288 }
0x2b0a   :  { %v6291_v31 = vmul.f32 %v6289_v44, %v11624_v60  ;;  %v11837_v44 = vld [vmem:[%s12358_s19 + $0x28] ss:$16 sps:$4 sm:$0xff]  }
0x2b0b   :  { %12463 = vst [vmem:[#allocation81_spill] sm:$0xff] %v11837_v44 }
0x2b0c   :  { %v6292_v36 = vadd.f32 %v6291_v31, %v6285_v14 }
0x2b0e   :  { %v6296_v41 = vpop.permute.xlu1 %6295 }
0x2b0f   :  { %v6298_v17 = vmul.f32 %v6296_v41, %v11627_v9  ;;  %v6351_v41 = vadd.f32 %v11775_v57, %v12433_v10 }
0x2b11   :  { %v6299_v25 = vadd.f32 %v6298_v17, %v6292_v36  ;;  %v11820_v17 = vld [vmem:[#allocation39 + $0x28] ss:$16 sps:$4 sm:$0xff]   ;;  %v11824_v36 = vld [vmem:[#allocation39 + $0xc] ss:$16 sps:$4 sm:$0xff]   ;;  %v6450_v12 = vsub.f32 0.0, %v6351_v41 }
0x2b13   :  { %v6303_v54 = vpop.permute.xlu1 %6302  ;;  %v6451_v16 = vmul.f32 1.442695, %v6450_v12 }
0x2b14   :  { %v6305_v3 = vmul.f32 %v6303_v54, %v11630_v62  ;;  %v6349_v54 = vadd.f32 %v11773_v28, %v10811_v43  ;;  %v11831_v28 = vld [vmem:[%s12358_s19 + $0x2c] ss:$16 sps:$4 sm:$0xff]  }
0x2b15   :  { %9275 = vpow2.f32 %v6451_v16  ;;  %v11856_v16 = vld [vmem:[#allocation30] ss:$0 sm:$0xff] }
0x2b16   :  { %v6306_v5 = vadd.f32 %v6305_v3, %v6299_v25  ;;  %v6462_v25 = vpack.c.bf16 %v6349_v54, %v6349_v54  ;;  %v11816_v3 = vld [vmem:[#allocation39 + $0x2c] ss:$16 sps:$4 sm:$0xff]  }
0x2b18   :  { %v6310_v20 = vpop.permute.xlu1 %6309 }
0x2b19   :  { %v6312_v29 = vmul.f32 %v6310_v20, %v11798_v2 }
0x2b1b   :  { %v11801_v34 = vadd.f32 %v6312_v29, %v6306_v5  ;;  %v11827_v5 = vld [vmem:[#allocation39 + $0x8] ss:$16 sps:$4 sm:$0xff]  }
0x2b1d   :  { %12462 = vst [vmem:[#allocation79_spill] sm:$0xff] %v11801_v34  ;;  %v6355_v32 = vpack.c.bf16 %v11801_v34, %v11801_v34 }
0x2b1f   :  { %8322 = vmatmul.mubr.msk.bf16.vlgmr.msra.gmra.mxu1 %vm938_vm10, %v6355_v32 }
0x2b20   :  { %8698 = vmatpush3.bf16.msra.mxu1 %v10814_v33  ;;  %8699 = vmatprep.mubr.msk.bf16.mxu1 %vm10026_vm7, %v12346_v45 }
0x2b21   :  { %8711 = vmatprep.subr.bf16.mxu1 %v12346_v45 }
0x2b22   :  { %v9276_v57 = vpop.eup %9275 }
0x2b27   :  { %8700 = vmatmul.mubr.msk.bf16.vlgmr.msra.gmra.mxu1 %vm832_vm11, %v6462_v25 }
0x2b28   :  { %8712 = vmatpush3.bf16.msra.mxu1 %v10825_v58  ;;  %8713 = vmatprep.mubr.msk.bf16.mxu1 %vm10026_vm7, %v12346_v45 }
0x2b29   :  { %6655 = vmatprep.subr.bf16.mxu1 %v11816_v3 }
0x2b2f   :  { %8714 = vmatmul.mubr.msk.bf16.vlgmr.msra.gmra.mxu1 %vm832_vm11, %v6462_v25 }
0x2b30   :  { %6656 = vmatpush1.bf16.msra.mxu1 %v11820_v17  ;;  %6675 = vmatprep.mubr.bf16.mxu1 %v12345_v8 }
0x2b31   :  { %6657 = vmatprep.subr.bf16.mxu1 %v11824_v36 }
0x2b34   :  { %6658 = vmatpush1.bf16.msra.mxu1 %v11827_v5 }
0x2b35   :  { %6740 = vmatprep.subr.bf16.mxu1 %v11831_v28 }
0x2b37   :  { %8329 = vmatmul.mubr.msk.bf16.vlgmr.msra.gmra.mxu1 %vm938_vm10, %v11729_v42 }
0x2b38   :  { %6741 = vmatpush1.bf16.msra.mxu1 %v11837_v44  ;;  %6760 = vmatprep.mubr.bf16.mxu1 %v12345_v8 }
0x2b39   :  { %6742 = vmatprep.subr.bf16.mxu1 %v11842_v47 }
0x2b3c   :  { %6743 = vmatpush1.bf16.msra.mxu1 %v11846_v11 }
0x2b3d   :  { %6928 = vmatprep.subr.bf16.mxu1 %v11662_v27 }
0x2bdf   :  { %v6393_v40 = vpop.f32.mrf.mxu1 }
0x2be0   :  { %v6435_v31 = vadd.f32 %v11778_v50, %v6393_v40 }
0x2be1   :  { %v6395_v14 = vpop.f32.mrf.mxu1 }
0x2be2   :  { %v6441_v20 = vadd.f32 %v6435_v31, %v10867_v15  ;;  %v6437_v29 = vadd.f32 %v11780_v48, %v6395_v14  ;;  %v11875_v14 = vld [vmem:[%s12358_s19 + $0x24] ss:$16 sps:$4 sm:$0xff]  }
0x2be3   :  { %v6397_v32 = vpop.f32.mrf.mxu1  ;;  %12468 = vst [vmem:[#allocation108_spill] sm:$0xff] %v11875_v14 }
0x2be4   :  { %v6448_v25 = vsub.f32 %v6441_v20, %v6349_v54  ;;  %v6442_v34 = vadd.f32 %v6437_v29, %v10870_v18  ;;  %v11881_v32 = vld [vmem:[%s12358_s19 + $0x20] ss:$16 sps:$4 sm:$0xff]  }
0x2be5   :  { %v6398_v11 = vpop.f32.mrf.mxu1  ;;  %12469 = vst [vmem:[#allocation109_spill] sm:$0xff] %v11881_v32 }
0x2be6   :  { %v6449_v27 = vmul.f32 %v6448_v25, %v6448_v25  ;;  %v6443_v47 = vsub.f32 %v6351_v41, %v6442_v34  ;;  %v6444_v44 = vsub.f32 %v6442_v34, %v6351_v41  ;;  %v11864_v11 = vld [vmem:[#allocation39 + $0x20] ss:$16 sps:$4 sm:$0xff]   ;;  %v11886_v25 = vld [vmem:[%s12358_s19 + $0x4] ss:$16 sps:$4 sm:$0xff]  }
0x2be7   :  { %v6500_v10 = vpop.f32.mrf.mxu1  ;;  %v11871_v41 = vld [vmem:[#allocation39] ss:$16 sps:$4 sm:$0xff]   ;;  %12470 = vst [vmem:[#allocation110_spill] sm:$0xff] %v11886_v25 }
0x2be8   :  { %v6445_v12 = vmul.f32 1.442695, %v6444_v44  ;;  %v11859_v50 = vadd.f32 %v11856_v16, %v6500_v10  ;;  %v6453_v40 = vmul.f32 %v9276_v57, %v6449_v27  ;;  %v11868_v10 = vld [vmem:[#allocation39 + $0x4] ss:$16 sps:$4 sm:$0xff]   ;;  %12467 = vst [vmem:[#allocation107_spill] sm:$0xff] %v11871_v41 }
0x2be9   :  { %v8701_v31 = vpop.f32.mrf.mxu1 }
0x2bea   :  { %12466 = vst [vmem:[#allocation106_spill] sm:$0xff] %v11859_v50  ;;  %9277 = vpow2.f32 %v6445_v12  ;;  %v6515_v48 = vpack.c.bf16 %v11859_v50, %v11859_v50 }
0x2beb   :  { %v6503_v54 = vpop.f32.mrf.mxu1 }
0x2bec   :  { %8708 = vmatmul.mubr.msk.bf16.vlgmr.msra.gmra.mxu0 %vm938_vm10, %v6515_v48  ;;  %v11890_v54 = vld [vmem:[%s12358_s19] ss:$16 sps:$4 sm:$0xff]  }
0x2bed   :  { %v8702_v34 = vpop.f32.mrf.mxu1  ;;  %6615 = vmatpush1.bf16.msra.mxu0 %v11864_v11  ;;  %6634 = vmatprep.mubr.bf16.mxu0 %v12345_v8  ;;  %12471 = vst [vmem:[#allocation111_spill] sm:$0xff] %v11890_v54 }
0x2bee   :  { %6616 = vmatprep.subr.bf16.mxu0 %v11868_v10 }
0x2bef   :  { %v6594_v27 = vpop.f32.mrf.mxu1 }
0x2bf1   :  { %v8715_v44 = vpop.f32.mrf.mxu1  ;;  %6617 = vmatpush1.bf16.msra.mxu0 %v11871_v41 }
0x2bf2   :  { %6699 = vmatprep.subr.bf16.mxu0 %v11875_v14 }
0x2bf3   :  { %v6597_v20 = vpop.f32.mrf.mxu1 }
0x2bf4   :  { %8328 = vmatmul.mubr.msk.bf16.vlgmr.msra.gmra.mxu0 %vm938_vm10, %v11729_v42  ;;  %v6513_v20 = vld [vmem:[#allocation5 + $0x30] sm:$0xff] }
0x2bf5   :  { %v8716_v29 = vpop.f32.mrf.mxu1  ;;  %6700 = vmatpush1.bf16.msra.mxu0 %v11881_v32  ;;  %6719 = vmatprep.mubr.bf16.mxu0 %v12345_v8 }
0x2bf6   :  { %6701 = vmatprep.subr.bf16.mxu0 %v11886_v25  ;;  %v6514_v29 = vadd.f32 %v6513_v20, %v10743_v46 }
0x2bf7   :  { %v9278_v57 = vpop.eup %9277  ;;  %v6677_v12 = vpop.f32.mrf.mxu1 }
0x2bf8   :  { %v6447_v31 = vadd.f32 %v9278_v57, %v6443_v47 }
0x2bf9   :  { %v6679_v48 = vpop.f32.mrf.mxu1  ;;  %6702 = vmatpush1.bf16.msra.mxu0 %v11890_v54 }
0x2bfa   :  { %8717 = vmatprep.subr.bf16.mxu0 %v12346_v45  ;;  %v11894_v42 = vadd.f32 %v6453_v40, %v6447_v31 }
0x2bfb   :  { %v6681_v34 = vpop.f32.mrf.mxu1 }
0x2bfc   :  { %12472 = vst [vmem:[#allocation112_spill] sm:$0xff] %v11894_v42 }
0x2bfd   :  { %v6682_v44 = vpop.f32.mrf.mxu1 }
0x2cac   :  { %v6553_v50 = vpop.f32.mrf.mxu0 }
0x2cad   :  { %v6559_v32 = vadd.f32 %v6553_v50, %v6514_v29 }
0x2cae   :  { %v8709_v25 = vpop.f32.mrf.mxu0 }
0x2caf   :  { %v6600_v14 = vadd.f32 %v6594_v27, %v6559_v32 }
0x2cb0   :  { %v6556_v41 = vpop.f32.mrf.mxu0 }
0x2cb1   :  { %v6601_v47 = vpack.c.bf16 %v6600_v14, %v6600_v14 }
0x2cb2   :  { %v8710_v57 = vpop.f32.mrf.mxu0 }
0x2cb3   :  { %8330 = vmatmul.mubr.msk.bf16.vlgmr.msra.gmra.mxu0 %vm938_vm10, %v6601_v47  ;;  %8331 = vmatmul.mubr.msk.bf16.vlgmr.msra.gmra.mxu1 %vm938_vm10, %v6601_v47 }
0x2cb4   :  { %v6636_v54 = vpop.f32.mrf.mxu0  ;;  %8718 = vmatpush3.bf16.msra.mxu0 %v11695_v56  ;;  %6929 = vmatpush1.bf16.msra.mxu1 %v11698_v55 }
0x2cb5   :  { %8719 = vmatprep.subr.bf16.mxu0 %v12346_v45  ;;  %6930 = vmatprep.subr.bf16.mxu1 %v11702_v19 }
0x2cb6   :  { %v6638_v40 = vpop.f32.mrf.mxu0  ;;  %8721 = vmatprep.mubr.msk.bf16.mxu0 %vm10026_vm7, %v12346_v45  ;;  %6948 = vmatprep.mubr.bf16.mxu1 %v12345_v8 }
0x2cb8   :  { %v6640_v50 = vpop.f32.mrf.mxu0  ;;  %8720 = vmatpush3.bf16.msra.mxu0 %v11709_v53  ;;  %6931 = vmatpush1.bf16.msra.mxu1 %v11712_v24 }
0x2cb9   :  { %7014 = vmatprep.subr.bf16.mxu1 %v11715_v39  ;;  %6973 = vmatprep.subr.bf16.mxu0 %v11718_v38 }
0x2cba   :  { %v6641_v27 = vpop.f32.mrf.mxu0 }
0x2d73   :  { %v6721_v41 = vpop.f32.mrf.mxu0  ;;  %v6762_v14 = vpop.f32.mrf.mxu1 }
0x2d74   :  { %v6722_v32 = vadd.f32 %v6721_v41, %v6636_v54  ;;  %v6763_v24 = vadd.f32 %v6762_v14, %v6677_v12 }
0x2d75   :  { %v6723_v25 = vpop.f32.mrf.mxu0  ;;  %v6764_v31 = vpop.f32.mrf.mxu1 }
0x2d76   :  { %v6769_v34 = vadd.f32 %v6722_v32, %v10942_v21  ;;  %v6724_v44 = vadd.f32 %v6723_v25, %v6638_v40  ;;  %v6765_v38 = vadd.f32 %v6764_v31, %v6679_v48  ;;  %v6771_v53 = vadd.f32 %v6763_v24, %v10956_v7 }
0x2d77   :  { %v6725_v20 = vpop.f32.mrf.mxu0  ;;  %v6766_v29 = vpop.f32.mrf.mxu1 }
0x2d78   :  { %v8332_v47 = vmul.f32 -1.442695, %v6769_v34  ;;  %v6770_v57 = vadd.f32 %v6724_v44, %v10945_v35  ;;  %v6772_v27 = vadd.f32 %v6765_v38, %v10951_v6 }
0x2d79   :  { %v6726_v50 = vpop.f32.mrf.mxu0  ;;  %v6767_v42 = vpop.f32.mrf.mxu1 }
0x2d7a   :  { %9279 = vpow2.f32 %v8332_v47  ;;  %v8333_v39 = vmul.f32 -1.442695, %v6770_v57  ;;  %v8334_v54 = vmul.f32 -1.442695, %v6772_v27 }
0x2d7c   :  { %9281 = vpow2.f32 %v8333_v39 }
0x2d7d   :  { %9283 = vpow2.f32 %v8334_v54 }
0x2d87   :  { %v9280_v41 = vpop.eup %9279 }
0x2d88   :  { %v6776_v32 = vadd.f32 1.0, %v9280_v41 }
0x2d89   :  { %v9282_v40 = vpop.eup %9281 }
0x2d8a   :  { %9285 = vrcp.f32 %v6776_v32  ;;  %v6782_v25 = vadd.f32 1.0, %v9282_v40  ;;  %v9284_v34 = vpop.eup %9283 }
0x2d8b   :  { %9287 = vtanh.f32 %v6771_v53  ;;  %v6789_v39 = vadd.f32 1.0, %v9284_v34  ;;  %v6804_v53 = vld [vmem:[#allocation4 + $0x38] sm:$0xff] }
0x2d8c   :  { %9289 = vrcp.f32 %v6782_v25 }
0x2d8d   :  { %9291 = vrcp.f32 %v6789_v39 }
0x2d97   :  { %v9286_v42 = vpop.eup %9285 }
0x2d98   :  { %v9288_v44 = vpop.eup %9287 }
0x2d99   :  { %v9290_v20 = vpop.eup %9289  ;;  %v6793_v48 = vmul.f32 %v9288_v44, %v9286_v42 }
0x2d9a   :  { %v6792_v38 = vmul.f32 %v9290_v20, %v11726_v63  ;;  %v9292_v24 = vpop.eup %9291 }
0x2d9c   :  { %v11915_v12 = vadd.f32 %v6793_v48, %v6792_v38 }
0x2d9e   :  { %9293 = vtanh.f32 %v11915_v12 }
0x2dab   :  { %v9294_v14 = vpop.eup %9293 }
0x2dac   :  { %v6796_v31 = vmul.f32 %v9294_v14, %v9292_v24 }
0x2dae   :  { %v11918_v29 = vpack.c.bf16 %v6796_v31, %v6796_v31 }
0x2db0   :  { %8722 = vmatmul.mubr.msk.bf16.vlgmr.msra.gmra.mxu0 %vm938_vm10, %v11918_v29  ;;  %8337 = vmatmul.mubr.msk.bf16.vlgmr.msra.gmra.mxu1 %vm938_vm10, %v11918_v29  ;;  %6799 = vst.msk [vmem:[#allocation41 + $0x18] sm:$0xf] %vm3186_vm13, %v11918_v29 }
0x2db1   :  { %7015 = vmatpush1.bf16.msra.mxu1 %v11737_v51  ;;  %7034 = vmatprep.mubr.bf16.mxu1 %v12345_v8 }
0x2db2   :  { %7016 = vmatprep.subr.bf16.mxu1 %v11741_v0  ;;  %6974 = vmatpush1.bf16.msra.mxu0 %v11744_v30 }
0x2db3   :  { %6975 = vmatprep.subr.bf16.mxu0 %v11747_v61  ;;  %6993 = vmatprep.mubr.bf16.mxu0 %v12345_v8 }
0x2db5   :  { %7017 = vmatpush1.bf16.msra.mxu1 %v11751_v13 }
0x2db6   :  { %6976 = vmatpush1.bf16.msra.mxu0 %v11754_v52  ;;  %8731 = vmatprep.subr.bf16.mxu1 %v12346_v45 }
0x2db7   :  { %8725 = vmatprep.subr.bf16.mxu0 %v12346_v45 }
0x2db8   :  { %8339 = vmatmul.mubr.msk.bf16.vlgmr.msra.gmra.mxu1 %vm938_vm10, %v11918_v29 }
0x2db9   :  { %8732 = vmatpush3.bf16.msra.mxu1 %v11761_v26  ;;  %8735 = vmatprep.mubr.msk.bf16.mxu1 %vm10026_vm7, %v12346_v45 }
0x2dba   :  { %8733 = vmatprep.subr.bf16.mxu1 %v12346_v45 }
0x2dbd   :  { %8734 = vmatpush3.bf16.msra.mxu1 %v11767_v23 }
0x2dbe   :  { %7216 = vmatprep.subr.bf16.mxu1 %v11770_v59 }
0x2e70   :  { %v6842_v63 = vpop.f32.mrf.mxu0  ;;  %v11944_v47 = vpop.f32.mrf.mxu1 }
0x2e71   :  { %v6848_v57 = vadd.f32 %v6842_v63, %v6804_v53 }
0x2e72   :  { %v8723_v50 = vpop.f32.mrf.mxu0  ;;  %v11946_v27 = vpop.f32.mrf.mxu1 }
0x2e73   :  { %v6849_v54 = vsel %vm832_vm11, %v6848_v57, -inf  ;;  %v12473_v50 = vmov 4  }
0x2e74   :  { %v6954_v41 = vpop.f32.mrf.mxu1  ;;  %6850 = vmax.xlane.f32.xlu1 %v6849_v54  ;;  %v6845_v32 = vpop.f32.mrf.mxu0  ;;  %v12475_v54 = vmov 6  }
0x2e75   :  { %v12476_v41 = vmov 7   ;;  %v12477_v32 = vmov 1  }
0x2e76   :  { %v8724_v40 = vpop.f32.mrf.mxu0  ;;  %v6955_v25 = vpop.f32.mrf.mxu1 }
0x2e78   :  { %v11949_v34 = vpop.f32.mrf.mxu1 }
0x2e7a   :  { %v11951_v42 = vpop.f32.mrf.mxu1 }
0x2e7c   :  { %v7040_v44 = vpop.f32.mrf.mxu1 }
0x2e7e   :  { %v7041_v20 = vpop.f32.mrf.mxu1 }
0x2efd   :  { %v6851_v39 = vpop.xlane.xlu1 %6850 }
0x2efe   :  { %v6852_v48 = vsub.f32 %v6848_v57, %v6851_v39  ;;  %v12474_v57 = vmov 5  }
0x2f00   :  { %v6853_v38 = vmul.f32 1.442695, %v6852_v48 }
0x2f02   :  { %9295 = vpow2.f32 %v6853_v38  ;;  %v12478_v38 = vld [vmem:[#allocation85_spill] sm:$0xff] }
0x2f0f   :  { %v9296_v24 = vpop.eup %9295 }
0x2f10   :  { %v6855_v14 = vsel %vm832_vm11, %v9296_v24, 0.0 }
0x2f11   :  { %6856 = vadd.xlane.f32.xlu0 %v6855_v14 }
0x2f9a   :  { %v6857_v31 = vpop.xlane.xlu0 %6856 }
0x2f9b   :  { %9297 = vrcp.f32 %v6857_v31 }
0x2fa8   :  { %v9298_v53 = vpop.eup %9297 }
0x2fa9   :  { %v6859_v63 = vmul.f32 %v9298_v53, %v9296_v24 }
0x2fab   :  { %6869 = vperm.xlu1 %8904, %v6859_v63   ;;  %6863 = vperm.xlu0 %8903, %v6859_v63  }
0x2faf   :  { %8905 = vset.pattern.permute.xlu1 %v12446_v4 }
0x2fb0   :  { %6876 = vperm.xlu1 %8905, %v6859_v63  }
0x2fb4   :  { %8906 = vset.pattern.permute.xlu1 %v12448_v1 }
0x2fb5   :  { %6883 = vperm.xlu1 %8906, %v6859_v63  }
0x2fb9   :  { %8907 = vset.pattern.permute.xlu1 %v12473_v50 }
0x2fba   :  { %6890 = vperm.xlu1 %8907, %v6859_v63  }
0x2fbe   :  { %8908 = vset.pattern.permute.xlu1 %v12474_v57 }
0x2fbf   :  { %6897 = vperm.xlu1 %8908, %v6859_v63  }
0x2fc3   :  { %8909 = vset.pattern.permute.xlu1 %v12475_v54 }
0x2fc4   :  { %6904 = vperm.xlu1 %8909, %v6859_v63  }
0x2fc8   :  { %8910 = vset.pattern.permute.xlu1 %v12476_v41 }
0x2fc9   :  { %6911 = vperm.xlu1 %8910, %v6859_v63  }
0x2fcd   :  { %8911 = vset.pattern.permute.xlu1 %v12477_v32 }
0x3026   :  { %v6870_v40 = vpop.permute.xlu1 %6869  ;;  %v6864_v20 = vpop.permute.xlu0 %6863 }
0x3027   :  { %v6872_v48 = vmul.f32 %v6870_v40, %v11612_v37  ;;  %v6866_v24 = vmul.f32 %v6864_v20, %v12478_v38 }
0x3029   :  { %v6873_v53 = vadd.f32 %v6872_v48, %v6866_v24 }
0x302b   :  { %v6877_v25 = vpop.permute.xlu1 %6876 }
0x302c   :  { %v6879_v14 = vmul.f32 %v6877_v25, %v11618_v49 }
0x302e   :  { %v6880_v54 = vadd.f32 %v6879_v14, %v6873_v53 }
0x3030   :  { %v6884_v44 = vpop.permute.xlu1 %6883 }
0x3031   :  { %v6886_v57 = vmul.f32 %v6884_v44, %v11621_v22 }
0x3033   :  { %v6887_v41 = vadd.f32 %v6886_v57, %v6880_v54 }
0x3035   :  { %v6891_v39 = vpop.permute.xlu1 %6890 }
0x3036   :  { %v6893_v63 = vmul.f32 %v6891_v39, %v11624_v60  ;;  %v6951_v60 = vadd.f32 %v11944_v47, %v10811_v43 }
0x3038   :  { %v6894_v1 = vadd.f32 %v6893_v63, %v6887_v41 }
0x303a   :  { %v6898_v31 = vpop.permute.xlu1 %6897 }
0x303b   :  { %v6900_v32 = vmul.f32 %v6898_v31, %v11627_v9  ;;  %v12480_v9 = vld [vmem:[#allocation104_spill] sm:$0xff] }
0x303d   :  { %v6901_v59 = vadd.f32 %v6900_v32, %v6894_v1  ;;  %v12479_v1 = vld [vmem:[#allocation81_spill] sm:$0xff] }
0x303f   :  { %v6905_v50 = vpop.permute.xlu1 %6904 }
0x3040   :  { %v6907_v4 = vmul.f32 %v6905_v50, %v11630_v62  ;;  %v12481_v62 = vld [vmem:[#allocation105_spill] sm:$0xff] }
0x3042   :  { %v6908_v40 = vadd.f32 %v6907_v4, %v6901_v59  ;;  %v7064_v4 = vpack.c.bf16 %v6951_v60, %v6951_v60  ;;  %v12482_v59 = vld [vmem:[#allocation93_spill] sm:$0xff] }
0x3044   :  { %v6912_v37 = vpop.permute.xlu1 %6911 }
0x3045   :  { %v6914_v20 = vmul.f32 %v6912_v37, %v11798_v2  ;;  %v12483_v2 = vld [vmem:[#allocation88_spill] sm:$0xff] }
0x3047   :  { %v11969_v49 = vadd.f32 %v6914_v20, %v6908_v40  ;;  %v12485_v20 = vld [vmem:[#allocation108_spill] sm:$0xff] }
0x3049   :  { %v6957_v22 = vpack.c.bf16 %v11969_v49, %v11969_v49 }
0x304b   :  { %8338 = vmatmul.mubr.msk.bf16.vlgmr.msra.gmra.mxu0 %vm938_vm10, %v6957_v22 }
0x304c   :  { %8726 = vmatpush3.bf16.msra.mxu0 %v10814_v33  ;;  %8727 = vmatprep.mubr.msk.bf16.mxu0 %vm10026_vm7, %v12346_v45 }
0x304d   :  { %8739 = vmatprep.subr.bf16.mxu0 %v12346_v45 }
0x3053   :  { %8728 = vmatmul.mubr.msk.bf16.vlgmr.msra.gmra.mxu0 %vm832_vm11, %v7064_v4 }
0x3054   :  { %8740 = vmatpush3.bf16.msra.mxu0 %v10825_v58  ;;  %8741 = vmatprep.mubr.msk.bf16.mxu0 %vm10026_vm7, %v12346_v45 }
0x3055   :  { %7257 = vmatprep.subr.bf16.mxu0 %v11816_v3  ;;  %v6953_v3 = vadd.f32 %v11946_v27, %v12483_v2 }
0x305b   :  { %8742 = vmatmul.mubr.msk.bf16.vlgmr.msra.gmra.mxu0 %vm832_vm11, %v7064_v4  ;;  %v12486_v4 = vld [vmem:[#allocation109_spill] sm:$0xff] }
0x305c   :  { %7258 = vmatpush1.bf16.msra.mxu0 %v11820_v17  ;;  %7277 = vmatprep.mubr.bf16.mxu0 %v12345_v8  ;;  %v7052_v17 = vsub.f32 0.0, %v6953_v3 }
0x305d   :  { %7259 = vmatprep.subr.bf16.mxu0 %v11824_v36 }
0x305e   :  { %v7053_v36 = vmul.f32 1.442695, %v7052_v17 }
0x3060   :  { %7260 = vmatpush1.bf16.msra.mxu0 %v11827_v5  ;;  %9299 = vpow2.f32 %v7053_v36 }
0x3061   :  { %7342 = vmatprep.subr.bf16.mxu0 %v11831_v28 }
0x3063   :  { %8345 = vmatmul.mubr.msk.bf16.vlgmr.msra.gmra.mxu0 %vm938_vm10, %v11918_v29 }
0x3064   :  { %7343 = vmatpush1.bf16.msra.mxu0 %v12479_v1  ;;  %7362 = vmatprep.mubr.bf16.mxu0 %v12345_v8 }
0x3065   :  { %7344 = vmatprep.subr.bf16.mxu0 %v12480_v9 }
0x3068   :  { %7345 = vmatpush1.bf16.msra.mxu0 %v12481_v62 }
0x3069   :  { %7530 = vmatprep.subr.bf16.mxu0 %v12482_v59  ;;  %v12488_v59 = vld [vmem:[#allocation111_spill] sm:$0xff] }
0x306d   :  { %v9300_v27 = vpop.eup %9299 }
0x310b   :  { %v6995_v5 = vpop.f32.mrf.mxu0 }
0x310c   :  { %v7037_v28 = vadd.f32 %v11949_v34, %v6995_v5 }
0x310d   :  { %v6997_v47 = vpop.f32.mrf.mxu0 }
0x310e   :  { %v7043_v50 = vadd.f32 %v7037_v28, %v10867_v15  ;;  %v7039_v57 = vadd.f32 %v11951_v42, %v6997_v47 }
0x310f   :  { %v6999_v54 = vpop.f32.mrf.mxu0 }
0x3110   :  { %v7050_v41 = vsub.f32 %v7043_v50, %v6951_v60  ;;  %v7044_v25 = vadd.f32 %v7039_v57, %v10870_v18 }
0x3111   :  { %v7000_v44 = vpop.f32.mrf.mxu0 }
0x3112   :  { %v7051_v39 = vmul.f32 %v7050_v41, %v7050_v41  ;;  %v7045_v48 = vsub.f32 %v6953_v3, %v7044_v25  ;;  %v7046_v38 = vsub.f32 %v7044_v25, %v6953_v3 }
0x3113   :  { %v7102_v24 = vpop.f32.mrf.mxu0 }
0x3114   :  { %v7047_v14 = vmul.f32 1.442695, %v7046_v38  ;;  %v12005_v31 = vadd.f32 %v11856_v16, %v7102_v24  ;;  %v7055_v34 = vmul.f32 %v9300_v27, %v7051_v39  ;;  %v12484_v16 = vld [vmem:[#allocation107_spill] sm:$0xff]  ;;  %v12490_v27 = vld [vmem:[#allocation100_spill] sm:$0xff]  ;;  %v12491_v24 = vld [vmem:[#allocation101_spill] sm:$0xff] }
0x3115   :  { %v8729_v53 = vpop.f32.mrf.mxu0  ;;  %v12489_v38 = vld [vmem:[#allocation99_spill] sm:$0xff] }
0x3116   :  { %9301 = vpow2.f32 %v7047_v14  ;;  %v7117_v42 = vpack.c.bf16 %v12005_v31, %v12005_v31 }
0x3117   :  { %v7105_v63 = vpop.f32.mrf.mxu0 }
0x3118   :  { %8736 = vmatmul.mubr.msk.bf16.vlgmr.msra.gmra.mxu1 %vm938_vm10, %v7117_v42 }
0x3119   :  { %v8730_v32 = vpop.f32.mrf.mxu0  ;;  %7217 = vmatpush1.bf16.msra.mxu1 %v11864_v11  ;;  %7236 = vmatprep.mubr.bf16.mxu1 %v12345_v8  ;;  %v12487_v11 = vld [vmem:[#allocation110_spill] sm:$0xff] }
0x311a   :  { %7218 = vmatprep.subr.bf16.mxu1 %v11868_v10 }
0x311b   :  { %v7196_v37 = vpop.f32.mrf.mxu0 }
0x311d   :  { %v8743_v40 = vpop.f32.mrf.mxu0  ;;  %7219 = vmatpush1.bf16.msra.mxu1 %v12484_v16 }
0x311e   :  { %7301 = vmatprep.subr.bf16.mxu1 %v12485_v20 }
0x311f   :  { %v7199_v22 = vpop.f32.mrf.mxu0 }
0x3120   :  { %8344 = vmatmul.mubr.msk.bf16.vlgmr.msra.gmra.mxu1 %vm938_vm10, %v11918_v29  ;;  %v7115_v29 = vld [vmem:[#allocation5 + $0x38] sm:$0xff] }
0x3121   :  { %v8744_v60 = vpop.f32.mrf.mxu0  ;;  %7302 = vmatpush1.bf16.msra.mxu1 %v12486_v4  ;;  %7321 = vmatprep.mubr.bf16.mxu1 %v12345_v8  ;;  %v7116_v5 = vadd.f32 %v7115_v29, %v10743_v46 }
0x3122   :  { %7303 = vmatprep.subr.bf16.mxu1 %v12487_v11 }
0x3123   :  { %v9302_v1 = vpop.eup %9301  ;;  %v7279_v9 = vpop.f32.mrf.mxu0 }
0x3124   :  { %v7049_v10 = vadd.f32 %v9302_v1, %v7045_v48 }
0x3125   :  { %v7281_v62 = vpop.f32.mrf.mxu0  ;;  %7304 = vmatpush1.bf16.msra.mxu1 %v12488_v59 }
0x3126   :  { %8745 = vmatprep.subr.bf16.mxu1 %v12346_v45  ;;  %v12022_v3 = vadd.f32 %v7055_v34, %v7049_v10 }
0x3127   :  { %v7283_v17 = vpop.f32.mrf.mxu0 }
0x3129   :  { %v7284_v36 = vpop.f32.mrf.mxu0 }
0x31d8   :  { %v7155_v28 = vpop.f32.mrf.mxu1 }
0x31d9   :  { %v7161_v47 = vadd.f32 %v7155_v28, %v7116_v5 }
0x31da   :  { %v8737_v50 = vpop.f32.mrf.mxu1 }
0x31db   :  { %v7202_v57 = vadd.f32 %v7196_v37, %v7161_v47 }
0x31dc   :  { %v7158_v54 = vpop.f32.mrf.mxu1 }
0x31dd   :  { %v7203_v41 = vpack.c.bf16 %v7202_v57, %v7202_v57 }
0x31de   :  { %v8738_v25 = vpop.f32.mrf.mxu1 }
0x31df   :  { %8346 = vmatmul.mubr.msk.bf16.vlgmr.msra.gmra.mxu1 %vm938_vm10, %v7203_v41  ;;  %8347 = vmatmul.mubr.msk.bf16.vlgmr.msra.gmra.mxu0 %vm938_vm10, %v7203_v41 }
0x31e0   :  { %v7238_v44 = vpop.f32.mrf.mxu1  ;;  %8746 = vmatpush3.bf16.msra.mxu1 %v11695_v56  ;;  %7531 = vmatpush1.bf16.msra.mxu0 %v11698_v55  ;;  %v12492_v56 = vld [vmem:[#allocation78_spill] sm:$0xff] }
0x31e1   :  { %8747 = vmatprep.subr.bf16.mxu1 %v12346_v45  ;;  %7532 = vmatprep.subr.bf16.mxu0 %v11702_v19 }
0x31e2   :  { %v7240_v39 = vpop.f32.mrf.mxu1  ;;  %8749 = vmatprep.mubr.msk.bf16.mxu1 %vm10026_vm7, %v12346_v45  ;;  %7550 = vmatprep.mubr.bf16.mxu0 %v12345_v8 }
0x31e4   :  { %v7242_v48 = vpop.f32.mrf.mxu1  ;;  %8748 = vmatpush3.bf16.msra.mxu1 %v12489_v38  ;;  %7533 = vmatpush1.bf16.msra.mxu0 %v12490_v27 }
0x31e5   :  { %7616 = vmatprep.subr.bf16.mxu0 %v12491_v24  ;;  %7575 = vmatprep.subr.bf16.mxu1 %v12492_v56 }
0x31e6   :  { %v7243_v55 = vpop.f32.mrf.mxu1 }
0x329f   :  { %v7323_v14 = vpop.f32.mrf.mxu1  ;;  %v7364_v34 = vpop.f32.mrf.mxu0 }
0x32a0   :  { %v7324_v53 = vadd.f32 %v7323_v14, %v7238_v44  ;;  %v7365_v10 = vadd.f32 %v7364_v34, %v7279_v9 }
0x32a1   :  { %v7325_v19 = vpop.f32.mrf.mxu1  ;;  %v7366_v42 = vpop.f32.mrf.mxu0 }
0x32a2   :  { %v7371_v63 = vadd.f32 %v7324_v53, %v10942_v21  ;;  %v7326_v32 = vadd.f32 %v7325_v19, %v7240_v39  ;;  %v7367_v11 = vadd.f32 %v7366_v42, %v7281_v62  ;;  %v7373_v36 = vadd.f32 %v7365_v10, %v10956_v7 }
0x32a3   :  { %v7327_v37 = vpop.f32.mrf.mxu1  ;;  %v7368_v40 = vpop.f32.mrf.mxu0  ;;  %v12499_v10 = vmov 7  }
0x32a4   :  { %v8348_v16 = vmul.f32 -1.442695, %v7371_v63  ;;  %v7372_v20 = vadd.f32 %v7326_v32, %v10945_v35  ;;  %v7374_v1 = vadd.f32 %v7367_v11, %v10951_v6  ;;  %v12497_v11 = vmov 6  }
0x32a5   :  { %v7328_v22 = vpop.f32.mrf.mxu1  ;;  %v7369_v60 = vpop.f32.mrf.mxu0 }
0x32a6   :  { %9303 = vpow2.f32 %v8348_v16  ;;  %v8349_v4 = vmul.f32 -1.442695, %v7372_v20  ;;  %v8350_v59 = vmul.f32 -1.442695, %v7374_v1  ;;  %v12494_v22 = vmov 2  }
0x32a7   :  { %v12495_v60 = vmov 3   ;;  %v12498_v1 = vmov 5  }
0x32a8   :  { %9305 = vpow2.f32 %v8349_v4  ;;  %v12496_v4 = vmov 4  }
0x32a9   :  { %9307 = vpow2.f32 %v8350_v59  ;;  %v12500_v59 = vld [vmem:[#allocation90_spill] sm:$0xff] }
0x32b3   :  { %v9304_v17 = vpop.eup %9303 }
0x32b4   :  { %v7378_v29 = vadd.f32 1.0, %v9304_v17  ;;  %v8244_v17 = vadd.f32 -1.0, %v12500_v59 }
0x32b5   :  { %v9306_v5 = vpop.eup %9305 }
0x32b6   :  { %9309 = vrcp.f32 %v7378_v29  ;;  %v7384_v28 = vadd.f32 1.0, %v9306_v5  ;;  %v9308_v47 = vpop.eup %9307  ;;  %v12502_v29 = vld [vmem:[#allocation84_spill] sm:$0xff] }
0x32b7   :  { %9311 = vtanh.f32 %v7373_v36  ;;  %v7391_v41 = vadd.f32 1.0, %v9308_v47  ;;  %v12501_v36 = vld [vmem:[#allocation89_spill] sm:$0xff] }
0x32b8   :  { %9313 = vrcp.f32 %v7384_v28  ;;  %v2779_v5 = vsub.f32 %v12502_v29, %v12501_v36  ;;  %v3446_v28 = vmul.f32 0.5, %v8244_v17  ;;  %v8340_v36 = vadd.f32 -1.0, %v12022_v3 }
0x32b9   :  { %9315 = vrcp.f32 %v7391_v41 }
0x32ba   :  { %v3447_v47 = vsel %vm832_vm11, %v3446_v28, 0.0  ;;  %v12516_v28 = vld [vmem:[#allocation103_spill] sm:$0xff] }
0x32c3   :  { %v9310_v50 = vpop.eup %9309 }
0x32c4   :  { %v9312_v57 = vpop.eup %9311 }
0x32c5   :  { %v9314_v54 = vpop.eup %9313  ;;  %v7395_v62 = vmul.f32 %v9312_v57, %v9310_v50  ;;  %v2780_v50 = vmul.f32 %v2779_v5, %v2779_v5  ;;  %v12503_v57 = vld [vmem:[#allocation77_spill] sm:$0xff]  ;;  %v12515_v5 = vld [vmem:[#allocation83_spill] sm:$0xff] }
0x32c6   :  { %v7394_v25 = vmul.f32 %v9314_v54, %v11915_v12  ;;  %v9316_v44 = vpop.eup %9315  ;;  %v8260_v54 = vadd.f32 -1.0, %v12503_v57 }
0x32c7   :  { %v2781_v41 = vsel %vm938_vm10, %v2780_v50, 0.0 }
0x32c8   :  { %v12043_v9 = vadd.f32 %v7395_v62, %v7394_v25  ;;  %v4048_v62 = vmul.f32 0.5, %v8260_v54  ;;  %v12504_v25 = vld [vmem:[#allocation102_spill] sm:$0xff]  ;;  %v7058_v54 = vmul.f32 0.5, %v8340_v36 }
0x32ca   :  { %9317 = vtanh.f32 %v12043_v9  ;;  %v7059_v3 = vsel %vm832_vm11, %v7058_v54, 0.0 }
0x32d7   :  { %v9318_v39 = vpop.eup %9317 }
0x32d8   :  { %v7398_v48 = vmul.f32 %v9318_v39, %v9316_v44  ;;  %v8276_v44 = vadd.f32 -1.0, %v12504_v25  ;;  %v12505_v39 = vld [vmem:[#allocation91_spill] sm:$0xff]  ;;  %v12518_v25 = vld [vmem:[#allocation86_spill] sm:$0xff] }
0x32da   :  { %v12046_v38 = vpack.c.bf16 %v7398_v48, %v7398_v48  ;;  %v8211_v48 = vadd.f32 -1.0, %v12505_v39 }
0x32dc   :  { %8750 = vmatmul.mubr.msk.bf16.vlgmr.msra.gmra.mxu1 %vm938_vm10, %v12046_v38  ;;  %8353 = vmatmul.mubr.msk.bf16.vlgmr.msra.gmra.mxu0 %vm938_vm10, %v12046_v38  ;;  %7401 = vst.msk [vmem:[#allocation41 + $0x1c] sm:$0xf] %vm3186_vm13, %v12046_v38 }
0x32dd   :  { %7617 = vmatpush1.bf16.msra.mxu0 %v11737_v51  ;;  %7636 = vmatprep.mubr.bf16.mxu0 %v12345_v8  ;;  %v12493_v51 = vld [vmem:[#allocation76_spill] sm:$0xff] }
0x32de   :  { %7618 = vmatprep.subr.bf16.mxu0 %v11741_v0  ;;  %7576 = vmatpush1.bf16.msra.mxu1 %v11744_v30  ;;  %v7406_v0 = vld [vmem:[#allocation4 + $0x40] sm:$0xff] }
0x32df   :  { %7577 = vmatprep.subr.bf16.mxu1 %v11747_v61  ;;  %7595 = vmatprep.mubr.bf16.mxu1 %v12345_v8 }
0x32e1   :  { %7619 = vmatpush1.bf16.msra.mxu0 %v11751_v13 }
0x32e2   :  { %7578 = vmatpush1.bf16.msra.mxu1 %v11754_v52  ;;  %8759 = vmatprep.subr.bf16.mxu0 %v12346_v45 }
0x32e3   :  { %8753 = vmatprep.subr.bf16.mxu1 %v12346_v45 }
0x32e4   :  { %8355 = vmatmul.mubr.msk.bf16.vlgmr.msra.gmra.mxu0 %vm938_vm10, %v12046_v38 }
0x32e5   :  { %8760 = vmatpush3.bf16.msra.mxu0 %v11761_v26  ;;  %8763 = vmatprep.mubr.msk.bf16.mxu0 %vm10026_vm7, %v12346_v45 }
0x32e6   :  { %8761 = vmatprep.subr.bf16.mxu0 %v12346_v45 }
0x32e9   :  { %8762 = vmatpush3.bf16.msra.mxu0 %v11767_v23 }
0x32ea   :  { %7818 = vmatprep.subr.bf16.mxu0 %v12493_v51  ;;  %v4049_v51 = vsel %vm832_vm11, %v4048_v62, 0.0  ;;  %v12517_v62 = vld [vmem:[#allocation97_spill] sm:$0xff] }
0x339c   :  { %v7444_v30 = vpop.f32.mrf.mxu1  ;;  %v12072_v61 = vpop.f32.mrf.mxu0 }
0x339d   :  { %v7450_v13 = vadd.f32 %v7444_v30, %v7406_v0  ;;  %v4650_v0 = vmul.f32 0.5, %v8276_v44  ;;  %v12506_v30 = vld [vmem:[#allocation82_spill] sm:$0xff]  ;;  %v5904_v44 = vsub.f32 %v12518_v25, %v12517_v62 }
0x339e   :  { %v8751_v52 = vpop.f32.mrf.mxu1  ;;  %v12074_v12 = vpop.f32.mrf.mxu0 }
0x339f   :  { %v7451_v27 = vsel %vm832_vm11, %v7450_v13, -inf  ;;  %v12507_v52 = vld [vmem:[#allocation96_spill] sm:$0xff] }
0x33a0   :  { %v7556_v26 = vpop.f32.mrf.mxu0  ;;  %7452 = vmax.xlane.f32.xlu1 %v7451_v27  ;;  %v7447_v24 = vpop.f32.mrf.mxu1  ;;  %v12508_v27 = vld [vmem:[#allocation95_spill] sm:$0xff] }
0x33a1   :  { %v3496_v26 = vsub.f32 %v12508_v27, %v12507_v52  ;;  %v2720_v24 = vmul.f32 0.5, %v8211_v48  ;;  %v5905_v48 = vmul.f32 %v5904_v44, %v5904_v44  ;;  %v7108_v27 = vsub.f32 %v11969_v49, %v12005_v31 }
0x33a2   :  { %v8752_v56 = vpop.f32.mrf.mxu1  ;;  %v7557_v55 = vpop.f32.mrf.mxu0 }
0x33a3   :  { %v4651_v56 = vsel %vm832_vm11, %v4650_v0, 0.0  ;;  %v12520_v0 = vld [vmem:[#allocation79_spill] sm:$0xff] }
0x33a4   :  { %v12077_v14 = vpop.f32.mrf.mxu0 }
0x33a6   :  { %v12079_v23 = vpop.f32.mrf.mxu0 }
0x33a8   :  { %v7642_v34 = vpop.f32.mrf.mxu0 }
0x33a9   :  { %v12509_v34 = vld [vmem:[#allocation98_spill] sm:$0xff] }
0x33aa   :  { %v7643_v53 = vpop.f32.mrf.mxu0 }
0x33ab   :  { %v8308_v53 = vadd.f32 -1.0, %v12509_v34 }
0x3429   :  { %v7453_v19 = vpop.xlane.xlu1 %7452 }
0x342a   :  { %v7454_v42 = vsub.f32 %v7450_v13, %v7453_v19  ;;  %v8292_v13 = vadd.f32 -1.0, %v12506_v30  ;;  %v3497_v19 = vmul.f32 %v3496_v26, %v3496_v26  ;;  %v5906_v26 = vsel %vm938_vm10, %v5905_v48, 0.0  ;;  %v9418_v48 = vld [vmem:[#allocation39 + $0x2c] ss:$16 sps:$4 sm:$0xff]  }
0x342c   :  { %v7455_v63 = vmul.f32 1.442695, %v7454_v42  ;;  %v5252_v55 = vmul.f32 0.5, %v8292_v13  ;;  %v12510_v42 = vld [vmem:[#allocation94_spill] sm:$0xff] }
0x342e   :  { %9319 = vpow2.f32 %v7455_v63  ;;  %v12511_v63 = vld [vmem:[#allocation92_spill] sm:$0xff] }
0x343b   :  { %v9320_v32 = vpop.eup %9319 }
0x343c   :  { %v7457_v37 = vsel %vm832_vm11, %v9320_v32, 0.0 }
0x343d   :  { %7458 = vadd.xlane.f32.xlu0 %v7457_v37  ;;  %v2721_v37 = vsel %vm832_vm11, %v2720_v24, 0.0  ;;  %v7109_v24 = vmul.f32 %v7108_v27, %v7108_v27 }
0x34c6   :  { %v7459_v40 = vpop.xlane.xlu0 %7458 }
0x34c7   :  { %9321 = vrcp.f32 %v7459_v40  ;;  %v5253_v40 = vsel %vm832_vm11, %v5252_v55, 0.0  ;;  %v7110_v55 = vsel %vm938_vm10, %v7109_v24, 0.0 }
0x34d4   :  { %v9322_v16 = vpop.eup %9321 }
0x34d5   :  { %v7461_v20 = vmul.f32 %v9322_v16, %v9320_v32  ;;  %v4098_v32 = vsub.f32 %v12511_v63, %v12510_v42  ;;  %v5854_v16 = vmul.f32 0.5, %v8308_v53  ;;  %v7462_v42 = vld [vmem:[#allocation2] sm:$0xff] }
0x34d7   :  { %7471 = vperm.xlu1 %8911, %v7461_v20   ;;  %7465 = vperm.xlu0 %8903, %v7461_v20   ;;  %v5855_v59 = vsel %vm832_vm11, %v5854_v16, 0.0 }
0x34db   :  { %8912 = vset.pattern.permute.xlu1 %v12494_v22  ;;  %8913 = vset.pattern.permute.xlu0 %v12495_v60  ;;  %v4099_v60 = vmul.f32 %v4098_v32, %v4098_v32 }
0x34dc   :  { %7478 = vperm.xlu1 %8912, %v7461_v20   ;;  %7485 = vperm.xlu0 %8913, %v7461_v20  }
0x34dd   :  { %v4100_v50 = vsel %vm938_vm10, %v4099_v60, 0.0 }
0x34e0   :  { %8914 = vset.pattern.permute.xlu1 %v12496_v4  ;;  %8916 = vset.pattern.permute.xlu0 %v12497_v11  ;;  %v12513_v4 = vld [vmem:[#allocation87_spill] sm:$0xff]  ;;  %v12514_v11 = vld [vmem:[#allocation80_spill] sm:$0xff] }
0x34e1   :  { %7492 = vperm.xlu1 %8914, %v7461_v20   ;;  %7506 = vperm.xlu0 %8916, %v7461_v20  }
0x34e5   :  { %8915 = vset.pattern.permute.xlu1 %v12498_v1  ;;  %8918 = vset.pattern.permute.xlu0 %v12499_v10  ;;  %v4700_v1 = vsub.f32 %v12514_v11, %v12513_v4  ;;  %v7490_v11 = vld [vmem:[#allocation2 + $0x20] sm:$0xff] }
0x34e6   :  { %7499 = vperm.xlu1 %8915, %v7461_v20  }
0x34e7   :  { %v4701_v29 = vmul.f32 %v4700_v1, %v4700_v1 }
0x34e9   :  { %v4702_v39 = vsel %vm938_vm10, %v4701_v29, 0.0 }
0x34ea   :  { %8917 = vset.pattern.permute.xlu1 %v12499_v10  ;;  %v3498_v10 = vsel %vm938_vm10, %v3497_v19, 0.0  ;;  %v7469_v19 = vld [vmem:[#allocation2 + $0x8] sm:$0xff] }
0x34eb   :  { %7513 = vperm.xlu1 %8917, %v7461_v20   ;;  %v12512_v20 = vld [vmem:[#allocation112_spill] sm:$0xff] }
0x34ec   :  { %v8324_v22 = vadd.f32 -1.0, %v12512_v20 }
0x34ee   :  { %v6456_v17 = vmul.f32 0.5, %v8324_v22  ;;  %v7483_v22 = vld [vmem:[#allocation2 + $0x18] sm:$0xff] }
0x34f0   :  { %v6457_v57 = vsel %vm832_vm11, %v6456_v17, 0.0  ;;  %v7497_v17 = vld [vmem:[#allocation2 + $0x28] sm:$0xff] }
0x3500   :  { %3448 = vadd.xlane.f32.xlu0 %v3447_v47  ;;  %v5302_v47 = vsub.f32 %v12516_v28, %v12515_v5  ;;  %v7504_v28 = vld [vmem:[#allocation2 + $0x30] sm:$0xff] }
0x3504   :  { %2782 = vadd.xlane.f32.xlu0 %v2781_v41  ;;  %v5303_v41 = vmul.f32 %v5302_v47, %v5302_v47 }
0x3506   :  { %v5304_v13 = vsel %vm938_vm10, %v5303_v41, 0.0  ;;  %v9417_v41 = vld [vmem:[#allocation2 + $0x38] sm:$0xff] }
0x3508   :  { %4050 = vadd.xlane.f32.xlu0 %v4049_v51  ;;  %v12519_v51 = vld [vmem:[#allocation106_spill] sm:$0xff] }
0x3509   :  { %v6506_v30 = vsub.f32 %v12520_v0, %v12519_v51  ;;  %v9422_v51 = vld [vmem:[%s12358_s19 + $0x2c] ss:$16 sps:$4 sm:$0xff]  }
0x350a   :  { %v9424_v0 = vld [vmem:[%s12358_s19 + $0xc] ss:$16 sps:$4 sm:$0xff]  }
0x350b   :  { %v6507_v52 = vmul.f32 %v6506_v30, %v6506_v30  ;;  %v9425_v30 = vld [vmem:[%s12358_s19 + $0x8] ss:$16 sps:$4 sm:$0xff]  }
0x350c   :  { %4652 = vadd.xlane.f32.xlu0 %v4651_v56 }
0x350d   :  { %v6508_v56 = vsel %vm938_vm10, %v6507_v52, 0.0 }
0x350f   :  { %2722 = vadd.xlane.f32.xlu1 %v2721_v37  ;;  %v7476_v37 = vld [vmem:[#allocation2 + $0x10] sm:$0xff] }
0x3510   :  { %5254 = vadd.xlane.f32.xlu0 %v5253_v40 }
0x3513   :  { %3499 = vadd.xlane.f32.xlu1 %v3498_v10 }
0x3514   :  { %5856 = vadd.xlane.f32.xlu0 %v5855_v59 }
0x3517   :  { %4101 = vadd.xlane.f32.xlu1 %v4100_v50 }
0x3518   :  { %6458 = vadd.xlane.f32.xlu0 %v6457_v57 }
0x351b   :  { %4703 = vadd.xlane.f32.xlu1 %v4702_v39  ;;  %v7553_v39 = vadd.f32 %v12072_v61, %v10811_v43  ;;  %v9420_v43 = vld [vmem:[#allocation39 + $0xc] ss:$16 sps:$4 sm:$0xff]   ;;  %v9421_v61 = vld [vmem:[#allocation39 + $0x8] ss:$16 sps:$4 sm:$0xff]  }
0x351c   :  { %7060 = vadd.xlane.f32.xlu0 %v7059_v3 }
0x351d   :  { %v7666_v3 = vpack.c.bf16 %v7553_v39, %v7553_v39 }
0x351f   :  { %5305 = vadd.xlane.f32.xlu1 %v5304_v13  ;;  %v7555_v13 = vadd.f32 %v12074_v12, %v12483_v2 }
0x3521   :  { %v7654_v27 = vsub.f32 0.0, %v7555_v13 }
0x3523   :  { %5907 = vadd.xlane.f32.xlu1 %v5906_v26 }
0x3527   :  { %6509 = vadd.xlane.f32.xlu1 %v6508_v56 }
0x352b   :  { %7111 = vadd.xlane.f32.xlu1 %v7110_v55 }
0x3552   :  { %v7472_v34 = vpop.permute.xlu1 %7471  ;;  %v7466_v53 = vpop.permute.xlu0 %7465 }
0x3553   :  { %v7474_v63 = vmul.f32 %v7472_v34, %v7469_v19  ;;  %v7468_v32 = vmul.f32 %v7466_v53, %v7462_v42  ;;  %v7655_v34 = vmul.f32 1.442695, %v7654_v27 }
0x3555   :  { %v7475_v16 = vadd.f32 %v7474_v63, %v7468_v32  ;;  %9323 = vpow2.f32 %v7655_v34 }
0x3557   :  { %v7479_v40 = vpop.permute.xlu1 %7478  ;;  %v7486_v31 = vpop.permute.xlu0 %7485 }
0x3558   :  { %v7481_v49 = vmul.f32 %v7479_v40, %v7476_v37  ;;  %v7488_v60 = vmul.f32 %v7486_v31, %v7483_v22  ;;  %v9426_v37 = vld [vmem:[#allocation30] ss:$0 sm:$0xff]  ;;  %v9428_v22 = vld [vmem:[#allocation39 + $0x4] ss:$16 sps:$4 sm:$0xff]  }
0x355a   :  { %v7482_v20 = vadd.f32 %v7481_v49, %v7475_v16 }
0x355c   :  { %v7493_v4 = vpop.permute.xlu1 %7492  ;;  %v7489_v1 = vadd.f32 %v7488_v60, %v7482_v20  ;;  %v7507_v59 = vpop.permute.xlu0 %7506  ;;  %v9427_v20 = vld [vmem:[#allocation39 + $0x20] ss:$16 sps:$4 sm:$0xff]  }
0x355d   :  { %v7495_v10 = vmul.f32 %v7493_v4, %v7490_v11  ;;  %v7509_v47 = vmul.f32 %v7507_v59, %v7504_v28  ;;  %v9429_v11 = vld [vmem:[#allocation39] ss:$16 sps:$4 sm:$0xff]   ;;  %v9432_v28 = vld [vmem:[%s12358_s19 + $0x4] ss:$16 sps:$4 sm:$0xff]  }
0x355f   :  { %v7496_v29 = vadd.f32 %v7495_v10, %v7489_v1  ;;  %v9430_v1 = vld [vmem:[%s12358_s19 + $0x24] ss:$16 sps:$4 sm:$0xff]  }
0x3561   :  { %v7500_v36 = vpop.permute.xlu1 %7499 }
0x3562   :  { %v7502_v5 = vmul.f32 %v7500_v36, %v7497_v17  ;;  %v9431_v36 = vld [vmem:[%s12358_s19 + $0x20] ss:$16 sps:$4 sm:$0xff]  }
0x3564   :  { %v7503_v50 = vadd.f32 %v7502_v5, %v7496_v29  ;;  %v9324_v29 = vpop.eup %9323 }
0x3566   :  { %v7514_v57 = vpop.permute.xlu1 %7513  ;;  %v7510_v54 = vadd.f32 %v7509_v47, %v7503_v50 }
0x3567   :  { %v7516_v62 = vmul.f32 %v9417_v41, %v7514_v57 }
0x3569   :  { %v7517_v25 = vadd.f32 %v7516_v62, %v7510_v54  ;;  %v9433_v62 = vld [vmem:[%s12358_s19] ss:$16 sps:$4 sm:$0xff]  }
0x356b   :  { %v7559_v44 = vpack.c.bf16 %v7517_v25, %v7517_v25 }
0x356d   :  { %8354 = vmatmul.mubr.msk.bf16.vlgmr.msra.gmra.mxu1 %vm938_vm10, %v7559_v44 }
0x356e   :  { %8754 = vmatpush3.bf16.msra.mxu1 %v10814_v33  ;;  %8755 = vmatprep.mubr.msk.bf16.mxu1 %vm10026_vm7, %v12346_v45  ;;  %v9419_v33 = vld [vmem:[#allocation39 + $0x28] ss:$16 sps:$4 sm:$0xff]  }
0x356f   :  { %8767 = vmatprep.subr.bf16.mxu1 %v12346_v45 }
0x3575   :  { %8756 = vmatmul.mubr.msk.bf16.vlgmr.msra.gmra.mxu1 %vm832_vm11, %v7666_v3 }
0x3576   :  { %8768 = vmatpush3.bf16.msra.mxu1 %v10825_v58  ;;  %8769 = vmatprep.mubr.msk.bf16.mxu1 %vm10026_vm7, %v12346_v45  ;;  %v9423_v58 = vld [vmem:[%s12358_s19 + $0x28] ss:$16 sps:$4 sm:$0xff]  }
0x3577   :  { %7859 = vmatprep.subr.bf16.mxu1 %v9418_v48 }
0x357d   :  { %8770 = vmatmul.mubr.msk.bf16.vlgmr.msra.gmra.mxu1 %vm832_vm11, %v7666_v3 }
0x357e   :  { %7860 = vmatpush1.bf16.msra.mxu1 %v9419_v33  ;;  %7879 = vmatprep.mubr.bf16.mxu1 %v12345_v8 }
0x357f   :  { %7861 = vmatprep.subr.bf16.mxu1 %v9420_v43 }
0x3582   :  { %7862 = vmatpush1.bf16.msra.mxu1 %v9421_v61 }
0x3583   :  { %7944 = vmatprep.subr.bf16.mxu1 %v9422_v51 }
0x3585   :  { %8361 = vmatmul.mubr.msk.bf16.vlgmr.msra.gmra.mxu1 %vm938_vm10, %v12046_v38 }
0x3586   :  { %7945 = vmatpush1.bf16.msra.mxu1 %v9423_v58  ;;  %7964 = vmatprep.mubr.bf16.mxu1 %v12345_v8 }
0x3587   :  { %7946 = vmatprep.subr.bf16.mxu1 %v9424_v0 }
0x3589   :  { %v3449_v61 = vpop.xlane.xlu0 %3448 }
0x358a   :  { %7947 = vmatpush1.bf16.msra.mxu1 %v9425_v30  ;;  %v415_v30 = vld [vmem:[%s12521_s21] sm:$0xff] }
0x358d   :  { %v2783_v58 = vpop.xlane.xlu0 %2782 }
0x3598   :  { %v2723_v48 = vpop.xlane.xlu1 %2722 }
0x359c   :  { %v3500_v33 = vpop.xlane.xlu1 %3499 }
0x35a0   :  { %v4102_v43 = vpop.xlane.xlu1 %4101 }
0x35a4   :  { %v4704_v51 = vpop.xlane.xlu1 %4703 }
0x35a8   :  { %v5306_v0 = vpop.xlane.xlu1 %5305 }
0x35ac   :  { %v5908_v27 = vpop.xlane.xlu1 %5907 }
0x362d   :  { %v7597_v52 = vpop.f32.mrf.mxu1 }
0x362e   :  { %v7639_v63 = vadd.f32 %v12077_v14, %v7597_v52  ;;  %v2371_v52 = vadd.f32 1.0, %v415_v30 }
0x362f   :  { %v7599_v26 = vpop.f32.mrf.mxu1 }
0x3630   :  { %v7641_v24 = vadd.f32 %v12079_v23, %v7599_v26  ;;  %v7645_v23 = vadd.f32 %v7639_v63, %v10867_v15  ;;  %vm2372_vm14 = vcmp.gt.f32.partialorder %v2371_v52, 0.0  ;;  %vm3188_vm15 = vcmp.gt.f32.partialorder %v2371_v52, 1.0 }
0x3631   :  { %v7601_v56 = vpop.f32.mrf.mxu1  ;;  %v3501_v26 = vadd.f32 %v3500_v33, %v2783_v58  ;;  %v8239_v34 = vsel %vm3188_vm15, 1.0, %v12346_v45  ;;  %vm3790_vm0 = vcmp.gt.f32.partialorder %v2371_v52, 2.0  ;;  %vm4392_vm1 = vcmp.gt.f32.partialorder %v2371_v52, 3.0 }
0x3632   :  { %v7646_v55 = vadd.f32 %v7641_v24, %v10870_v18  ;;  %v7652_v4 = vsub.f32 %v7645_v23, %v7553_v39  ;;  %v8195_v56 = vsel %vm2372_vm14, 1.0, %v12346_v45  ;;  %v3450_v63 = vmul.f32 %v8239_v34, %v3449_v61 }
0x3633   :  { %v7602_v53 = vpop.f32.mrf.mxu1  ;;  %vm4994_vm2 = vcmp.gt.f32.partialorder %v2371_v52, 4.0  ;;  %vm5596_vm4 = vcmp.gt.f32.partialorder %v2371_v52, 5.0  ;;  %vm6198_vm5 = vcmp.gt.f32.partialorder %v2371_v52, 6.0  ;;  %vm6800_vm6 = vcmp.gt.f32.partialorder %v2371_v52, 7.0 }
0x3634   :  { %v7648_v19 = vsub.f32 %v7646_v55, %v7555_v13  ;;  %v7653_v59 = vmul.f32 %v7652_v4, %v7652_v4  ;;  %v7647_v5 = vsub.f32 %v7555_v13, %v7646_v55  ;;  %v4051_v13 = vpop.xlane.xlu0 %4050  ;;  %v4103_v55 = vadd.f32 %v4102_v43, %v3501_v26  ;;  %v6510_v53 = vpop.xlane.xlu1 %6509 }
0x3635   :  { %v7704_v42 = vpop.f32.mrf.mxu1  ;;  %vm7402_vm7 = vcmp.gt.f32.partialorder %v2371_v52, 8.0 }
0x3636   :  { %v7649_v32 = vmul.f32 1.442695, %v7648_v19  ;;  %v7705_v40 = vadd.f32 %v9426_v37, %v7704_v42  ;;  %v7657_v54 = vmul.f32 %v9324_v29, %v7653_v59  ;;  %v2724_v19 = vmul.f32 %v8195_v56, %v2723_v48  ;;  %v7717_v48 = vld [vmem:[#allocation5 + $0x40] sm:$0xff] }
0x3637   :  { %v8757_v16 = vpop.f32.mrf.mxu1  ;;  %v4705_v42 = vadd.f32 %v4704_v51, %v4103_v55  ;;  %v8255_v37 = vsel %vm3790_vm0, 1.0, %v12346_v45  ;;  %v8303_v59 = vsel %vm5596_vm4, 1.0, %v12346_v45  ;;  %v8319_v29 = vsel %vm6198_vm5, 1.0, %v12346_v45 }
0x3638   :  { %9325 = vpow2.f32 %v7649_v32  ;;  %v7710_v2 = vsub.f32 %v7517_v25, %v7705_v40  ;;  %v7719_v12 = vpack.c.bf16 %v7705_v40, %v7705_v40  ;;  %v4653_v24 = vpop.xlane.xlu0 %4652  ;;  %v3451_v16 = vadd.f32 %v3450_v63, %v2724_v19 }
0x3639   :  { %v7707_v49 = vpop.f32.mrf.mxu1  ;;  %v5307_v32 = vadd.f32 %v5306_v0, %v4705_v42  ;;  %v7718_v33 = vadd.f32 %v7717_v48, %v10743_v46 }
0x363a   :  { %v7711_v31 = vmul.f32 %v7710_v2, %v7710_v2  ;;  %8764 = vmatmul.mubr.msk.bf16.vlgmr.msra.gmra.mxu0 %vm938_vm10, %v7719_v12  ;;  %v7112_v12 = vpop.xlane.xlu1 %7111  ;;  %v4052_v49 = vmul.f32 %v8255_v37, %v4051_v13 }
0x363b   :  { %v8758_v18 = vpop.f32.mrf.mxu1  ;;  %7819 = vmatpush1.bf16.msra.mxu0 %v9427_v20  ;;  %7838 = vmatprep.mubr.bf16.mxu0 %v12345_v8  ;;  %v5909_v2 = vadd.f32 %v5908_v27, %v5307_v32 }
0x363c   :  { %v7712_v14 = vsel %vm938_vm10, %v7711_v31, 0.0  ;;  %7820 = vmatprep.subr.bf16.mxu0 %v9428_v22  ;;  %v5255_v40 = vpop.xlane.xlu0 %5254  ;;  %v8271_v31 = vsel %vm4392_vm1, 1.0, %v12346_v45  ;;  %v4053_v18 = vadd.f32 %v4052_v49, %v3451_v16 }
0x363d   :  { %v12158_v60 = vpop.f32.mrf.mxu1  ;;  %7713 = vadd.xlane.f32.xlu1 %v7712_v14  ;;  %v6511_v23 = vadd.f32 %v6510_v53, %v5909_v2  ;;  %v4654_v4 = vmul.f32 %v8271_v31, %v4653_v24 }
0x363f   :  { %v8771_v15 = vpop.f32.mrf.mxu1  ;;  %7821 = vmatpush1.bf16.msra.mxu0 %v9429_v11  ;;  %v7113_v20 = vadd.f32 %v7112_v12, %v6511_v23  ;;  %v8287_v11 = vsel %vm4994_vm2, 1.0, %v12346_v45 }
0x3640   :  { %7903 = vmatprep.subr.bf16.mxu0 %v9430_v1  ;;  %v5857_v14 = vpop.xlane.xlu0 %5856  ;;  %v4655_v1 = vadd.f32 %v4654_v4, %v4053_v18 }
0x3641   :  { %v7801_v10 = vpop.f32.mrf.mxu1 }
0x3642   :  { %8360 = vmatmul.mubr.msk.bf16.vlgmr.msra.gmra.mxu0 %vm938_vm10, %v12046_v38  ;;  %v5256_v10 = vmul.f32 %v8287_v11, %v5255_v40 }
0x3643   :  { %v8772_v17 = vpop.f32.mrf.mxu1  ;;  %7904 = vmatpush1.bf16.msra.mxu0 %v9431_v36  ;;  %7923 = vmatprep.mubr.bf16.mxu0 %v12345_v8 }
0x3644   :  { %7905 = vmatprep.subr.bf16.mxu0 %v9432_v28  ;;  %v6459_v17 = vpop.xlane.xlu0 %6458  ;;  %v5257_v36 = vadd.f32 %v5256_v10, %v4655_v1 }
0x3645   :  { %v9326_v47 = vpop.eup %9325  ;;  %v12166_v50 = vpop.f32.mrf.mxu1 }
0x3646   :  { %v7651_v57 = vadd.f32 %v9326_v47, %v7647_v5  ;;  %v5858_v5 = vmul.f32 %v8303_v59, %v5857_v14  ;;  %v6460_v47 = vmul.f32 %v8319_v29, %v6459_v17 }
0x3647   :  { %v12168_v41 = vpop.f32.mrf.mxu1  ;;  %7906 = vmatpush1.bf16.msra.mxu0 %v9433_v62 }
0x3648   :  { %v7658_v38 = vadd.f32 %v7657_v54, %v7651_v57  ;;  %v5859_v28 = vadd.f32 %v5858_v5, %v5257_v36  ;;  %v8335_v57 = vsel %vm6800_vm6, 1.0, %v12346_v45  ;;  %v7061_v54 = vpop.xlane.xlu0 %7060 }
0x3649   :  { %v7885_v25 = vpop.f32.mrf.mxu1 }
0x364a   :  { %v8356_v44 = vadd.f32 -1.0, %v7658_v38  ;;  %v6461_v62 = vadd.f32 %v6460_v47, %v5859_v28  ;;  %v7062_v38 = vmul.f32 %v8335_v57, %v7061_v54  ;;  %v8351_v25 = vsel %vm7402_vm7, 1.0, %v12346_v45 }
0x364b   :  { %v7886_v39 = vpop.f32.mrf.mxu1 }
0x364c   :  { %v7660_v3 = vmul.f32 0.5, %v8356_v44  ;;  %v7063_v39 = vadd.f32 %v7062_v38, %v6461_v62 }
0x364e   :  { %v7661_v8 = vsel %vm832_vm11, %v7660_v3, 0.0 }
0x364f   :  { %7662 = vadd.xlane.f32.xlu0 %v7661_v8 }
0x36c6   :  { %v7714_v22 = vpop.xlane.xlu1 %7713 }
0x36c7   :  { %v7715_v15 = vadd.f32 %v7714_v22, %v7113_v20 }
0x36c9   :  { %8006 = vst.msk [vmem:[%s10215_s30] sm:$0xff] %vm8004_vm3, %v7715_v15 }
0x36d8   :  { %v7663_v44 = vpop.xlane.xlu0 %7662 }
0x36d9   :  { %v7664_v3 = vmul.f32 %v8351_v25, %v7663_v44 }
0x36db   :  { %v7665_v8 = vadd.f32 %v7664_v3, %v7063_v39 }
0x36dd   :  { %8005 = vst.msk [vmem:[%s10210_s24] sm:$0xff] %vm8004_vm3, %v7665_v8  ;;  %s10034_s24 = smov [#allocation42]  }
0x36de   :  { %s8025_s30 = sshll.u32 %s10034_s24, 4  ;;  %s8026_s30 = int_to_ptr.vmem [resolvable:$true] %s8025_s30 }
0x36df   :  { %s9874_s2 = scalar_lea.vmem %s8026_s30, 128  ;;  %p9879_p13 = scmp.lt.s32.totalorder %s8026_s30, %s8026_s30 }
0x36e0   :  { %p9875_p12 = scmp.ne.s32.totalorder %s8026_s30, %s9874_s2  ;;  %p9880_p0 = scmp.lt.s32.totalorder %s9874_s2, %s9874_s2 }
0x36e2   :  { %p9881_p1 = por %p9880_p0, %p9879_p13 }
0x36e4   :  { %p9882_p2 = pnand %p9881_p1, %p9875_p12 }
0x36fa   :  { %v7757_v43 = vpop.f32.mrf.mxu0 }
0x36fb   :  { %v7763_v61 = vadd.f32 %v7757_v43, %v7718_v33 }
0x36fc   :  { %v8765_v51 = vpop.f32.mrf.mxu0 }
0x36fd   :  { %v7804_v58 = vadd.f32 %v12158_v60, %v7763_v61 }
0x36fe   :  { %v7760_v0 = vpop.f32.mrf.mxu0 }
0x36ff   :  { %v7805_v30 = vpack.c.bf16 %v7804_v58, %v7804_v58 }
0x3700   :  { %v8766_v13 = vpop.f32.mrf.mxu0 }
0x3701   :  { %8362 = vmatmul.mubr.msk.bf16.vlgmr.msra.gmra.mxu0 %vm938_vm10, %v7805_v30  ;;  %8363 = vmatmul.mubr.msk.bf16.vlgmr.msra.gmra.mxu1 %vm938_vm10, %v7805_v30 }
0x3702   :  { %v7840_v45 = vpop.f32.mrf.mxu0 }
0x3704   :  { %v7842_v52 = vpop.f32.mrf.mxu0 }
0x3706   :  { %v7844_v27 = vpop.f32.mrf.mxu0 }
0x3708   :  { %v7845_v26 = vpop.f32.mrf.mxu0 }
0x3709   :  { %9885 = shalt.err (!%p9882_p2)
}
0x370a   :  { %8028 = dma.vmem_to_hbm [thread:$0]  %s8026_s30, 128, %s10200_s27, [#allocation43]  }
0x370b   :  { %s9894_s23 = scalar_lea.vmem %s8036_s28, 128  ;;  %p9899_p4 = scmp.lt.s32.totalorder %s8036_s28, %s8036_s28 }
0x370c   :  { %p9895_p3 = scmp.ne.s32.totalorder %s8036_s28, %s9894_s23  ;;  %p9900_p5 = scmp.lt.s32.totalorder %s9894_s23, %s9894_s23 }
0x370e   :  { %p9901_p6 = por %p9900_p5, %p9899_p4 }
0x3710   :  { %p9902_p7 = pnand %p9901_p6, %p9895_p3 }
0x3712   :  { %9905 = shalt.err (!%p9902_p7)
}
0x3713   :  { %8038 = dma.vmem_to_hbm [thread:$0]  %s8036_s28, 128, %s10205_s12, [#allocation43]  }
0x3714   :  { %s10036_s12 = smov [#allocation41]  }
0x3715   :  { %s8012_s27 = sshll.u32 %s10036_s12, 4  ;;  %s8013_s27 = int_to_ptr.vmem [resolvable:$true] %s8012_s27 }
0x3716   :  { %s9914_s26 = scalar_lea.vmem %s8013_s27, 576  ;;  %p9919_p9 = scmp.lt.s32.totalorder %s8013_s27, %s8013_s27 }
0x3717   :  { %p9915_p8 = scmp.ne.s32.totalorder %s8013_s27, %s9914_s26  ;;  %p9920_p10 = scmp.lt.s32.totalorder %s9914_s26, %s9914_s26 }
0x3719   :  { %p9921_p11 = por %p9920_p10, %p9919_p9 }
0x371b   :  { %p9922_p12 = pnand %p9921_p11, %p9915_p8 }
0x37c1   :  { %v7925_v46 = vpop.f32.mrf.mxu0  ;;  %v7966_v60 = vpop.f32.mrf.mxu1 }
0x37c2   :  { %v7926_v24 = vadd.f32 %v7925_v46, %v7840_v45  ;;  %v7967_v49 = vadd.f32 %v7966_v60, %v12166_v50 }
0x37c3   :  { %v7927_v56 = vpop.f32.mrf.mxu0  ;;  %v7968_v55 = vpop.f32.mrf.mxu1 }
0x37c4   :  { %v7973_v34 = vadd.f32 %v7926_v24, %v10942_v21  ;;  %v7928_v53 = vadd.f32 %v7927_v56, %v7842_v52  ;;  %v7969_v2 = vadd.f32 %v7968_v55, %v12168_v41  ;;  %v7975_v21 = vadd.f32 %v7967_v49, %v10956_v7 }
0x37c5   :  { %v7929_v19 = vpop.f32.mrf.mxu0  ;;  %v7970_v42 = vpop.f32.mrf.mxu1 }
0x37c6   :  { %v8364_v63 = vmul.f32 -1.442695, %v7973_v34  ;;  %v7974_v32 = vadd.f32 %v7928_v53, %v10945_v35  ;;  %v7976_v12 = vadd.f32 %v7969_v2, %v10951_v6 }
0x37c7   :  { %v7930_v37 = vpop.f32.mrf.mxu0  ;;  %v7971_v40 = vpop.f32.mrf.mxu1 }
0x37c8   :  { %9327 = vpow2.f32 %v8364_v63  ;;  %v8365_v16 = vmul.f32 -1.442695, %v7974_v32  ;;  %v8366_v23 = vmul.f32 -1.442695, %v7976_v12 }
0x37ca   :  { %9329 = vpow2.f32 %v8365_v16 }
0x37cb   :  { %9331 = vpow2.f32 %v8366_v23 }
0x37d5   :  { %v9328_v31 = vpop.eup %9327 }
0x37d6   :  { %v7980_v18 = vadd.f32 1.0, %v9328_v31 }
0x37d7   :  { %v9330_v20 = vpop.eup %9329 }
0x37d8   :  { %9333 = vrcp.f32 %v7980_v18  ;;  %v7986_v35 = vadd.f32 1.0, %v9330_v20  ;;  %v9332_v14 = vpop.eup %9331 }
0x37d9   :  { %9335 = vtanh.f32 %v7975_v21  ;;  %v7993_v41 = vadd.f32 1.0, %v9332_v14 }
0x37da   :  { %9337 = vrcp.f32 %v7986_v35 }
0x37db   :  { %9339 = vrcp.f32 %v7993_v41 }
0x37e5   :  { %v9334_v22 = vpop.eup %9333 }
0x37e6   :  { %v9336_v4 = vpop.eup %9335 }
0x37e7   :  { %v9338_v15 = vpop.eup %9337  ;;  %v7997_v11 = vmul.f32 %v9336_v4, %v9334_v22 }
0x37e8   :  { %v7996_v6 = vmul.f32 %v9338_v15, %v12043_v9  ;;  %v9340_v1 = vpop.eup %9339 }
0x37ea   :  { %v7998_v50 = vadd.f32 %v7997_v11, %v7996_v6 }
0x37ec   :  { %9341 = vtanh.f32 %v7998_v50 }
0x37f9   :  { %v9342_v7 = vpop.eup %9341 }
0x37fa   :  { %v8000_v10 = vmul.f32 %v9342_v7, %v9340_v1 }
0x37fc   :  { %v8001_v59 = vpack.c.bf16 %v8000_v10, %v8000_v10 }
0x37fe   :  { %8003 = vst.msk [vmem:[#allocation41 + $0x20] sm:$0xf] %vm3186_vm13, %v8001_v59 }
0x37ff   :  { %9925 = shalt.err (!%p9922_p12)
}
0x3800   :  { %s12522_s20 = sld [smem:[#allocation75_spill]] }
0x3806   :  { %8018 = dma.vmem_to_hbm [thread:$0]  %s8013_s27, 576, %s12522_s20, [#allocation8], %s10008_s6, %s10008_s6, %s10009_s15  }
0x3807   :  { %9958 = dma.done.wait [#allocation8], 576  }
0x3808   :  { %9959 = vsyncadd [#allocation8], 4294966720 }
0x3809   :  { %9960 = dma.done.wait [#allocation43], 256  }
0x380a   :  { %9961 = vsyncadd [#allocation43], 4294967040 }
0x380b   :  { %8056 = vsyncpa [#allocation7], 1 }
0x380c   :  { %8057 = vsyncpa [#allocation10], 1 }
0x380d   :  { %8058 = vsyncpa [#allocation13], 1 }
0x380e   :  { %8059 = vsyncpa [#allocation16], 1 }
0x380f   :  { %8060 = vsyncpa [#allocation19], 1 }
0x3810   :  { %8061 = vsyncpa [#allocation22], 1 }
0x3811   :  { %8062 = vsyncpa [#allocation25], 1 }
0x3812   :  { %8063 = vsyncpa [#allocation28], 1 }
0x3813   :  { %8064 = vsyncpa [#allocation31], 1 }
0x3814   :  { %8065 = vsyncpa [#allocation34], 1 }
0x3815   :  { %8066 = vsyncpa [#allocation37], 1 }
0x3816   :  { %8067 = vsyncpa [#allocation40], 1 }
0x3817   :  { %8068 = vsyncpa [#allocation8], 1 }
0x3818   :  { %8069 = vsyncpa [#allocation43], 1 }

</bundles_post_ra>
